<compile_context>
chip_gen: v6e
topology: v6e:2x2x1
jax: 0.10.0
libtpu: 0.0.40
codegen_flags: <defaults>
</compile_context>

<pallas_src>
import functools
import numpy as np
import jax
import jax.numpy as jnp
from jax import lax
from jax.experimental import pallas as pl
from jax.experimental.pallas import tpu as pltpu

NUM_GRAPHS      = 16        # graphs in the batch
GRAPHS_PER_STEP = 8         # graphs handled per grid step (256 node rows / step)
N_NODES         = 32        # nodes per graph
IN_DIM          = 32        # in_dim of the attention layer (hidden_dim in gravnet)
OUT_DIM         = 8         # per-head dim (out_dim in the torch module)
NUM_HEADS       = 4
USE_BIAS        = True
HID             = NUM_HEADS * OUT_DIM       # 32

# Set to jnp.bfloat16 on v6e/v7x (f32 matmuls are multi-pass there).  bf16 operands
# deviate beyond the 5e-3 reference tolerance, so the shipped default stays f32.
MXU_DTYPE = jnp.float32


def _mha_kernel(h_ref, adj_ref, wqkv_ref, bqkv_ref, bdT_ref, bd_ref, o_ref,
                *, n, heads, dh, gb, mxu_dtype):
    """Fused MultiHeadAttentionLayer forward (possible_empty=True) for `gb` graphs."""
    H = heads * dh

    # ---- batched QKV projection for all gb graphs: ONE MXU matmul, M = gb*n ----------
    # Wq / bq columns are pre-scaled by 1/sqrt(dh) on the host.
    qkv = jnp.dot(h_ref[...].astype(mxu_dtype), wqkv_ref[...].astype(mxu_dtype),
                  preferred_element_type=jnp.float32) + bqkv_ref[...]        # [gb*n, 3H]

    bdT = bdT_ref[...]      # [H, heads*n]      bdT[f, h*n+u] = (head(f) == h)
    bd = bd_ref[...]        # [heads*n, H]      bd  = bdT^T   (both constant inputs)

    outs = []
    for g in range(gb):                                  # static unroll over graphs
        r0 = g * n
        q = qkv[r0:r0 + n, 0 * H:1 * H]                  # [n, H]  (already 1/sqrt(dh)-scaled)
        k = qkv[r0:r0 + n, 1 * H:2 * H]
        v = qkv[r0:r0 + n, 2 * H:3 * H]

        # lane-dense packed K^T: [H, heads*n] = [32, 128]
        kbT = jnp.concatenate([k.T] * heads, axis=1) * bdT

        # all-head scores, lane packed: s[v, h*n+u] = Q_h[v] . K_h[u]   -> [n, heads*n]
        s = jnp.dot(q.astype(mxu_dtype), kbT.astype(mxu_dtype),
                    preferred_element_type=jnp.float32)

        # clip/exp in f32 on the VPU/EUP; keep only real edges of this graph.
        # adj_ref[g] is the host-pre-tiled [n, heads*n] adjacency slab.
        e = jnp.exp(jnp.clip(s, -5.0, 5.0)) * adj_ref[g]

        # fused aggregation RHS [heads*n, 2H]: [ block-diag V | head mask ]
        rhs = jnp.concatenate(
            [jnp.concatenate([v] * heads, axis=0) * bd, bd], axis=1)
        r = jnp.dot(e.astype(mxu_dtype), rhs.astype(mxu_dtype),
                    preferred_element_type=jnp.float32)                      # [n, 2H]
        wv = r[:, :H]
        z = r[:, H:]

        # possible_empty=True: divide only where the node actually received messages
        zsafe = jnp.where(z > 0.0, z, 1.0)
        outs.append(jnp.where(z > 0.0, wv / zsafe, wv))

    o_ref[...] = jnp.concatenate(outs, axis=0)            # [gb*n, H]


@jax.jit
def mha_forward(h, adj, wqkv, bqkv):
    """h: [G, N, in_dim], adj: [G, N, N] (adj[g, v, u] = edge u -> v), wqkv: [in_dim, 3H]."""
    g_total, n, in_dim = h.shape
    assert g_total % GRAPHS_PER_STEP == 0
    gb, heads, dh = GRAPHS_PER_STEP, NUM_HEADS, OUT_DIM
    hdim = heads * dh

    # ---- host-side prep (once per forward, NOT per grid step) -----------------------
    inv_scale = 1.0 / float(np.sqrt(dh))
    wqkv_s = jnp.concatenate([wqkv[:, :hdim] * inv_scale, wqkv[:, hdim:]], axis=1)
    bqkv_s = jnp.concatenate([bqkv[:hdim] * inv_scale, bqkv[hdim:]]).reshape(1, -1)
    adj_t = jnp.tile(adj, (1, 1, heads))                  # [G, n, heads*n], lane dense
    h_flat = h.reshape(g_total * n, in_dim)

    # constant block-diagonal head masks (hoisted out of the kernel)
    fh = np.arange(hdim) // dh                            # head owning feature column f
    uh = np.arange(heads * n) // n                        # head owning packed column h*n+u
    bdT = jnp.asarray(fh[:, None] == uh[None, :], jnp.float32)   # [H, heads*n]
    bd = jnp.asarray(uh[:, None] == fh[None, :], jnp.float32)    # [heads*n, H]

    kern = functools.partial(_mha_kernel, n=n, heads=heads, dh=dh, gb=gb,
                             mxu_dtype=MXU_DTYPE)
    out = pl.pallas_call(
        kern,
        out_shape=jax.ShapeDtypeStruct((g_total * n, hdim), jnp.float32),
        grid_spec=pltpu.PrefetchScalarGridSpec(
            num_scalar_prefetch=0,
            grid=(g_total // gb,),
            in_specs=[
                pl.BlockSpec((gb * n, in_dim), lambda i: (i, 0)),        # node features
                pl.BlockSpec((gb, n, heads * n), lambda i: (i, 0, 0)),   # tiled adjacency
                pl.BlockSpec((in_dim, 3 * hdim), lambda i: (0, 0)),      # wqkv   (resident)
                pl.BlockSpec((1, 3 * hdim), lambda i: (0, 0)),           # bqkv   (resident)
                pl.BlockSpec((hdim, heads * n), lambda i: (0, 0)),       # bdT    (resident)
                pl.BlockSpec((heads * n, hdim), lambda i: (0, 0)),       # bd     (resident)
            ],
            out_specs=pl.BlockSpec((gb * n, hdim), lambda i: (i, 0)),
        ),
        compiler_params=pltpu.CompilerParams(
            dimension_semantics=("parallel",)),            # lets v7x use both TCs
    )(h_flat, adj_t, wqkv_s, bqkv_s, bdT, bd)

    # torch returns head_out of shape [num_nodes, num_heads, out_dim] per graph
    return out.reshape(g_total, n, heads, dh)


def mha_reference(h, adj, wqkv, bqkv):
    """Pure-JAX reference mirroring the PyTorch module (possible_empty=True)."""
    hp = lax.Precision.HIGHEST
    hdim = NUM_HEADS * OUT_DIM
    g, n, _ = h.shape
    qkv = jnp.einsum('gni,io->gno', h, wqkv, precision=hp) + bqkv
    q = qkv[..., 0 * hdim:1 * hdim].reshape(g, n, NUM_HEADS, OUT_DIM)
    k = qkv[..., 1 * hdim:2 * hdim].reshape(g, n, NUM_HEADS, OUT_DIM)
    v = qkv[..., 2 * hdim:3 * hdim].reshape(g, n, NUM_HEADS, OUT_DIM)
    # score on edge (src=u, dst=v): K[u] . Q[v] per head
    s = jnp.einsum('gvhd,guhd->gvuh', q, k, precision=hp) / np.sqrt(OUT_DIM)
    e = jnp.exp(jnp.clip(s, -5.0, 5.0)) * adj[..., None]
    wv = jnp.einsum('gvuh,guhd->gvhd', e, v, precision=hp)
    z = e.sum(axis=2)[..., None]
    return jnp.where(z > 0, wv / jnp.where(z > 0, z, 1.0), wv)


if __name__ == "__main__":
    key = jax.random.PRNGKey(0)
    kh, kadj, kw, kb = jax.random.split(key, 4)

    h = jax.random.normal(kh, (NUM_GRAPHS, N_NODES, IN_DIM), jnp.float32)

    # deterministic sparse directed graphs; node 0 of every graph receives NO edges so the
    # possible_empty branch is exercised.
    adj = (jax.random.uniform(kadj, (NUM_GRAPHS, N_NODES, N_NODES)) < 0.25).astype(jnp.float32)
    adj = adj * (1.0 - jnp.eye(N_NODES, dtype=jnp.float32))     # no self loops
    adj = adj.at[:, 0, :].set(0.0)                              # empty destinations

    # fused QKV weights: columns = [Wq | Wk | Wv], feature index f = head*dh + d
    wqkv = jax.random.normal(kw, (IN_DIM, 3 * HID), jnp.float32) / np.sqrt(IN_DIM)
    if USE_BIAS:
        bqkv = 0.01 * jax.random.normal(kb, (3 * HID,), jnp.float32)
    else:
        bqkv = jnp.zeros((3 * HID,), jnp.float32)

    out = jax.block_until_ready(mha_forward(h, adj, wqkv, bqkv))
    ref = jax.block_until_ready(mha_reference(h, adj, wqkv, bqkv))
    np.testing.assert_allclose(np.asarray(out), np.asarray(ref), rtol=5e-3, atol=5e-3)
    print("KERNEL_OK")
</pallas_src>

<mosaic_0001>
module attributes {stable_mosaic.version = 11 : i64} {
  func.func @_mha_kernel(%arg0: i32, %arg1: memref<256x32xf32, #tpu.memory_space<vmem>>, %arg2: memref<8x32x128xf32, #tpu.memory_space<vmem>>, %arg3: memref<32x96xf32, #tpu.memory_space<vmem>>, %arg4: memref<1x96xf32, #tpu.memory_space<vmem>>, %arg5: memref<32x128xf32, #tpu.memory_space<vmem>>, %arg6: memref<128x32xf32, #tpu.memory_space<vmem>>, %arg7: memref<256x32xf32, #tpu.memory_space<vmem>>) attributes {dimension_semantics = [#tpu.dimension_semantics<parallel>], iteration_bounds = array<i64: 2>, scalar_prefetch = 0 : i64, scratch_operands = 0 : i64, tpu.core_type = #tpu.core_type<tc>, window_params = [{transform_indices = @transform_0, window_bounds = array<i64: 256, 32>}, {transform_indices = @transform_1, window_bounds = array<i64: 8, 32, 128>}, {pipeline_mode = #tpu.pipeline_mode<synchronous>, transform_indices = @transform_2, window_bounds = array<i64: 32, 96>}, {pipeline_mode = #tpu.pipeline_mode<synchronous>, transform_indices = @transform_3, window_bounds = array<i64: 1, 96>}, {pipeline_mode = #tpu.pipeline_mode<synchronous>, transform_indices = @transform_4, window_bounds = array<i64: 32, 128>}, {pipeline_mode = #tpu.pipeline_mode<synchronous>, transform_indices = @transform_5, window_bounds = array<i64: 128, 32>}, {transform_indices = @transform_6, window_bounds = array<i64: 256, 32>}]} {
    %c0 = arith.constant 0 : index
    %c0_0 = arith.constant 0 : index
    %0 = vector.load %arg1[%c0, %c0_0] : memref<256x32xf32, #tpu.memory_space<vmem>>, vector<256x32xf32>
    %c0_1 = arith.constant 0 : index
    %c0_2 = arith.constant 0 : index
    %1 = vector.load %arg3[%c0_1, %c0_2] : memref<32x96xf32, #tpu.memory_space<vmem>>, vector<32x96xf32>
    %cst = arith.constant dense<0.000000e+00> : vector<256x96xf32>
    %2 = tpu.matmul %0, %1, %cst {dimension_numbers = #tpu.dot_dimension_numbers<[1], [0], [0], [1], [0, 0, 1, 1], [], []>} : vector<256x32xf32>, vector<32x96xf32>, vector<256x96xf32> -> vector<256x96xf32>
    %c0_3 = arith.constant 0 : index
    %c0_4 = arith.constant 0 : index
    %3 = vector.load %arg4[%c0_3, %c0_4] : memref<1x96xf32, #tpu.memory_space<vmem>>, vector<1x96xf32>
    %4 = vector.broadcast %3 : vector<1x96xf32> to vector<256x96xf32>
    %5 = arith.addf %2, %4 : vector<256x96xf32>
    %c0_5 = arith.constant 0 : index
    %c0_6 = arith.constant 0 : index
    %6 = vector.load %arg5[%c0_5, %c0_6] : memref<32x128xf32, #tpu.memory_space<vmem>>, vector<32x128xf32>
    %c0_7 = arith.constant 0 : index
    %c0_8 = arith.constant 0 : index
    %7 = vector.load %arg6[%c0_7, %c0_8] : memref<128x32xf32, #tpu.memory_space<vmem>>, vector<128x32xf32>
    %8 = vector.extract_strided_slice %5 {offsets = [0, 0], sizes = [32, 32], strides = [1, 1]} : vector<256x96xf32> to vector<32x32xf32>
    %9 = vector.extract_strided_slice %5 {offsets = [0, 32], sizes = [32, 32], strides = [1, 1]} : vector<256x96xf32> to vector<32x32xf32>
    %10 = vector.extract_strided_slice %5 {offsets = [0, 64], sizes = [32, 32], strides = [1, 1]} : vector<256x96xf32> to vector<32x32xf32>
    %11 = tpu.transpose %9, [1, 0] : vector<32x32xf32> -> vector<32x32xf32>
    %12 = tpu.concatenate %11, %11, %11, %11 in 1 : vector<32x32xf32>, vector<32x32xf32>, vector<32x32xf32>, vector<32x32xf32> -> vector<32x128xf32>
    %13 = arith.mulf %12, %6 : vector<32x128xf32>
    %cst_9 = arith.constant dense<0.000000e+00> : vector<32x128xf32>
    %14 = tpu.matmul %8, %13, %cst_9 {dimension_numbers = #tpu.dot_dimension_numbers<[1], [0], [0], [1], [0, 0, 1, 1], [], []>} : vector<32x32xf32>, vector<32x128xf32>, vector<32x128xf32> -> vector<32x128xf32>
    %cst_10 = arith.constant -5.000000e+00 : f32
    %cst_11 = arith.constant 5.000000e+00 : f32
    %15 = vector.broadcast %cst_10 : f32 to vector<32x128xf32>
    %16 = arith.maximumf %15, %14 : vector<32x128xf32>
    %17 = vector.broadcast %cst_11 : f32 to vector<32x128xf32>
    %18 = arith.minimumf %17, %16 : vector<32x128xf32>
    %19 = math.exp %18 : vector<32x128xf32>
    %c0_12 = arith.constant 0 : index
    %c0_13 = arith.constant 0 : index
    %c0_14 = arith.constant 0 : index
    %20 = vector.load %arg2[%c0_12, %c0_13, %c0_14] : memref<8x32x128xf32, #tpu.memory_space<vmem>>, vector<1x32x128xf32>
    %21 = vector.shape_cast %20 : vector<1x32x128xf32> to vector<32x128xf32>
    %22 = arith.mulf %19, %21 : vector<32x128xf32>
    %23 = tpu.concatenate %10, %10, %10, %10 in 0 : vector<32x32xf32>, vector<32x32xf32>, vector<32x32xf32>, vector<32x32xf32> -> vector<128x32xf32>
    %24 = arith.mulf %23, %7 : vector<128x32xf32>
    %25 = tpu.concatenate %24, %7 in 1 : vector<128x32xf32>, vector<128x32xf32> -> vector<128x64xf32>
    %cst_15 = arith.constant dense<0.000000e+00> : vector<32x64xf32>
    %26 = tpu.matmul %22, %25, %cst_15 {dimension_numbers = #tpu.dot_dimension_numbers<[1], [0], [0], [1], [0, 0, 1, 1], [], []>} : vector<32x128xf32>, vector<128x64xf32>, vector<32x64xf32> -> vector<32x64xf32>
    %27 = vector.extract_strided_slice %26 {offsets = [0, 0], sizes = [32, 32], strides = [1, 1]} : vector<32x64xf32> to vector<32x32xf32>
    %28 = vector.extract_strided_slice %26 {offsets = [0, 32], sizes = [32, 32], strides = [1, 1]} : vector<32x64xf32> to vector<32x32xf32>
    %cst_16 = arith.constant 0.000000e+00 : f32
    %29 = vector.broadcast %cst_16 : f32 to vector<32x32xf32>
    %30 = arith.cmpf ogt, %28, %29 : vector<32x32xf32>
    %cst_17 = arith.constant 1.000000e+00 : f32
    %31 = vector.broadcast %cst_17 : f32 to vector<32x32xf32>
    %32 = arith.select %30, %28, %31 : vector<32x32xi1>, vector<32x32xf32>
    %cst_18 = arith.constant 0.000000e+00 : f32
    %33 = vector.broadcast %cst_18 : f32 to vector<32x32xf32>
    %34 = arith.cmpf ogt, %28, %33 : vector<32x32xf32>
    %35 = arith.divf %27, %32 : vector<32x32xf32>
    %36 = arith.select %34, %35, %27 : vector<32x32xi1>, vector<32x32xf32>
    %37 = vector.extract_strided_slice %5 {offsets = [32, 0], sizes = [32, 32], strides = [1, 1]} : vector<256x96xf32> to vector<32x32xf32>
    %38 = vector.extract_strided_slice %5 {offsets = [32, 32], sizes = [32, 32], strides = [1, 1]} : vector<256x96xf32> to vector<32x32xf32>
    %39 = vector.extract_strided_slice %5 {offsets = [32, 64], sizes = [32, 32], strides = [1, 1]} : vector<256x96xf32> to vector<32x32xf32>
    %40 = tpu.transpose %38, [1, 0] : vector<32x32xf32> -> vector<32x32xf32>
    %41 = tpu.concatenate %40, %40, %40, %40 in 1 : vector<32x32xf32>, vector<32x32xf32>, vector<32x32xf32>, vector<32x32xf32> -> vector<32x128xf32>
    %42 = arith.mulf %41, %6 : vector<32x128xf32>
    %cst_19 = arith.constant dense<0.000000e+00> : vector<32x128xf32>
    %43 = tpu.matmul %37, %42, %cst_19 {dimension_numbers = #tpu.dot_dimension_numbers<[1], [0], [0], [1], [0, 0, 1, 1], [], []>} : vector<32x32xf32>, vector<32x128xf32>, vector<32x128xf32> -> vector<32x128xf32>
    %cst_20 = arith.constant -5.000000e+00 : f32
    %cst_21 = arith.constant 5.000000e+00 : f32
    %44 = vector.broadcast %cst_20 : f32 to vector<32x128xf32>
    %45 = arith.maximumf %44, %43 : vector<32x128xf32>
    %46 = vector.broadcast %cst_21 : f32 to vector<32x128xf32>
    %47 = arith.minimumf %46, %45 : vector<32x128xf32>
    %48 = math.exp %47 : vector<32x128xf32>
    %c1 = arith.constant 1 : index
    %c0_22 = arith.constant 0 : index
    %c0_23 = arith.constant 0 : index
    %49 = vector.load %arg2[%c1, %c0_22, %c0_23] : memref<8x32x128xf32, #tpu.memory_space<vmem>>, vector<1x32x128xf32>
    %50 = vector.shape_cast %49 : vector<1x32x128xf32> to vector<32x128xf32>
    %51 = arith.mulf %48, %50 : vector<32x128xf32>
    %52 = tpu.concatenate %39, %39, %39, %39 in 0 : vector<32x32xf32>, vector<32x32xf32>, vector<32x32xf32>, vector<32x32xf32> -> vector<128x32xf32>
    %53 = arith.mulf %52, %7 : vector<128x32xf32>
    %54 = tpu.concatenate %53, %7 in 1 : vector<128x32xf32>, vector<128x32xf32> -> vector<128x64xf32>
    %cst_24 = arith.constant dense<0.000000e+00> : vector<32x64xf32>
    %55 = tpu.matmul %51, %54, %cst_24 {dimension_numbers = #tpu.dot_dimension_numbers<[1], [0], [0], [1], [0, 0, 1, 1], [], []>} : vector<32x128xf32>, vector<128x64xf32>, vector<32x64xf32> -> vector<32x64xf32>
    %56 = vector.extract_strided_slice %55 {offsets = [0, 0], sizes = [32, 32], strides = [1, 1]} : vector<32x64xf32> to vector<32x32xf32>
    %57 = vector.extract_strided_slice %55 {offsets = [0, 32], sizes = [32, 32], strides = [1, 1]} : vector<32x64xf32> to vector<32x32xf32>
    %cst_25 = arith.constant 0.000000e+00 : f32
    %58 = vector.broadcast %cst_25 : f32 to vector<32x32xf32>
    %59 = arith.cmpf ogt, %57, %58 : vector<32x32xf32>
    %cst_26 = arith.constant 1.000000e+00 : f32
    %60 = vector.broadcast %cst_26 : f32 to vector<32x32xf32>
    %61 = arith.select %59, %57, %60 : vector<32x32xi1>, vector<32x32xf32>
    %cst_27 = arith.constant 0.000000e+00 : f32
    %62 = vector.broadcast %cst_27 : f32 to vector<32x32xf32>
    %63 = arith.cmpf ogt, %57, %62 : vector<32x32xf32>
    %64 = arith.divf %56, %61 : vector<32x32xf32>
    %65 = arith.select %63, %64, %56 : vector<32x32xi1>, vector<32x32xf32>
    %66 = vector.extract_strided_slice %5 {offsets = [64, 0], sizes = [32, 32], strides = [1, 1]} : vector<256x96xf32> to vector<32x32xf32>
    %67 = vector.extract_strided_slice %5 {offsets = [64, 32], sizes = [32, 32], strides = [1, 1]} : vector<256x96xf32> to vector<32x32xf32>
    %68 = vector.extract_strided_slice %5 {offsets = [64, 64], sizes = [32, 32], strides = [1, 1]} : vector<256x96xf32> to vector<32x32xf32>
    %69 = tpu.transpose %67, [1, 0] : vector<32x32xf32> -> vector<32x32xf32>
    %70 = tpu.concatenate %69, %69, %69, %69 in 1 : vector<32x32xf32>, vector<32x32xf32>, vector<32x32xf32>, vector<32x32xf32> -> vector<32x128xf32>
    %71 = arith.mulf %70, %6 : vector<32x128xf32>
    %cst_28 = arith.constant dense<0.000000e+00> : vector<32x128xf32>
    %72 = tpu.matmul %66, %71, %cst_28 {dimension_numbers = #tpu.dot_dimension_numbers<[1], [0], [0], [1], [0, 0, 1, 1], [], []>} : vector<32x32xf32>, vector<32x128xf32>, vector<32x128xf32> -> vector<32x128xf32>
    %cst_29 = arith.constant -5.000000e+00 : f32
    %cst_30 = arith.constant 5.000000e+00 : f32
    %73 = vector.broadcast %cst_29 : f32 to vector<32x128xf32>
    %74 = arith.maximumf %73, %72 : vector<32x128xf32>
    %75 = vector.broadcast %cst_30 : f32 to vector<32x128xf32>
    %76 = arith.minimumf %75, %74 : vector<32x128xf32>
    %77 = math.exp %76 : vector<32x128xf32>
    %c2 = arith.constant 2 : index
    %c0_31 = arith.constant 0 : index
    %c0_32 = arith.constant 0 : index
    %78 = vector.load %arg2[%c2, %c0_31, %c0_32] : memref<8x32x128xf32, #tpu.memory_space<vmem>>, vector<1x32x128xf32>
    %79 = vector.shape_cast %78 : vector<1x32x128xf32> to vector<32x128xf32>
    %80 = arith.mulf %77, %79 : vector<32x128xf32>
    %81 = tpu.concatenate %68, %68, %68, %68 in 0 : vector<32x32xf32>, vector<32x32xf32>, vector<32x32xf32>, vector<32x32xf32> -> vector<128x32xf32>
    %82 = arith.mulf %81, %7 : vector<128x32xf32>
    %83 = tpu.concatenate %82, %7 in 1 : vector<128x32xf32>, vector<128x32xf32> -> vector<128x64xf32>
    %cst_33 = arith.constant dense<0.000000e+00> : vector<32x64xf32>
    %84 = tpu.matmul %80, %83, %cst_33 {dimension_numbers = #tpu.dot_dimension_numbers<[1], [0], [0], [1], [0, 0, 1, 1], [], []>} : vector<32x128xf32>, vector<128x64xf32>, vector<32x64xf32> -> vector<32x64xf32>
    %85 = vector.extract_strided_slice %84 {offsets = [0, 0], sizes = [32, 32], strides = [1, 1]} : vector<32x64xf32> to vector<32x32xf32>
    %86 = vector.extract_strided_slice %84 {offsets = [0, 32], sizes = [32, 32], strides = [1, 1]} : vector<32x64xf32> to vector<32x32xf32>
    %cst_34 = arith.constant 0.000000e+00 : f32
    %87 = vector.broadcast %cst_34 : f32 to vector<32x32xf32>
    %88 = arith.cmpf ogt, %86, %87 : vector<32x32xf32>
    %cst_35 = arith.constant 1.000000e+00 : f32
    %89 = vector.broadcast %cst_35 : f32 to vector<32x32xf32>
    %90 = arith.select %88, %86, %89 : vector<32x32xi1>, vector<32x32xf32>
    %cst_36 = arith.constant 0.000000e+00 : f32
    %91 = vector.broadcast %cst_36 : f32 to vector<32x32xf32>
    %92 = arith.cmpf ogt, %86, %91 : vector<32x32xf32>
    %93 = arith.divf %85, %90 : vector<32x32xf32>
    %94 = arith.select %92, %93, %85 : vector<32x32xi1>, vector<32x32xf32>
    %95 = vector.extract_strided_slice %5 {offsets = [96, 0], sizes = [32, 32], strides = [1, 1]} : vector<256x96xf32> to vector<32x32xf32>
    %96 = vector.extract_strided_slice %5 {offsets = [96, 32], sizes = [32, 32], strides = [1, 1]} : vector<256x96xf32> to vector<32x32xf32>
    %97 = vector.extract_strided_slice %5 {offsets = [96, 64], sizes = [32, 32], strides = [1, 1]} : vector<256x96xf32> to vector<32x32xf32>
    %98 = tpu.transpose %96, [1, 0] : vector<32x32xf32> -> vector<32x32xf32>
    %99 = tpu.concatenate %98, %98, %98, %98 in 1 : vector<32x32xf32>, vector<32x32xf32>, vector<32x32xf32>, vector<32x32xf32> -> vector<32x128xf32>
    %100 = arith.mulf %99, %6 : vector<32x128xf32>
    %cst_37 = arith.constant dense<0.000000e+00> : vector<32x128xf32>
    %101 = tpu.matmul %95, %100, %cst_37 {dimension_numbers = #tpu.dot_dimension_numbers<[1], [0], [0], [1], [0, 0, 1, 1], [], []>} : vector<32x32xf32>, vector<32x128xf32>, vector<32x128xf32> -> vector<32x128xf32>
    %cst_38 = arith.constant -5.000000e+00 : f32
    %cst_39 = arith.constant 5.000000e+00 : f32
    %102 = vector.broadcast %cst_38 : f32 to vector<32x128xf32>
    %103 = arith.maximumf %102, %101 : vector<32x128xf32>
    %104 = vector.broadcast %cst_39 : f32 to vector<32x128xf32>
    %105 = arith.minimumf %104, %103 : vector<32x128xf32>
    %106 = math.exp %105 : vector<32x128xf32>
    %c3 = arith.constant 3 : index
    %c0_40 = arith.constant 0 : index
    %c0_41 = arith.constant 0 : index
    %107 = vector.load %arg2[%c3, %c0_40, %c0_41] : memref<8x32x128xf32, #tpu.memory_space<vmem>>, vector<1x32x128xf32>
    %108 = vector.shape_cast %107 : vector<1x32x128xf32> to vector<32x128xf32>
    %109 = arith.mulf %106, %108 : vector<32x128xf32>
    %110 = tpu.concatenate %97, %97, %97, %97 in 0 : vector<32x32xf32>, vector<32x32xf32>, vector<32x32xf32>, vector<32x32xf32> -> vector<128x32xf32>
    %111 = arith.mulf %110, %7 : vector<128x32xf32>
    %112 = tpu.concatenate %111, %7 in 1 : vector<128x32xf32>, vector<128x32xf32> -> vector<128x64xf32>
    %cst_42 = arith.constant dense<0.000000e+00> : vector<32x64xf32>
    %113 = tpu.matmul %109, %112, %cst_42 {dimension_numbers = #tpu.dot_dimension_numbers<[1], [0], [0], [1], [0, 0, 1, 1], [], []>} : vector<32x128xf32>, vector<128x64xf32>, vector<32x64xf32> -> vector<32x64xf32>
    %114 = vector.extract_strided_slice %113 {offsets = [0, 0], sizes = [32, 32], strides = [1, 1]} : vector<32x64xf32> to vector<32x32xf32>
    %115 = vector.extract_strided_slice %113 {offsets = [0, 32], sizes = [32, 32], strides = [1, 1]} : vector<32x64xf32> to vector<32x32xf32>
    %cst_43 = arith.constant 0.000000e+00 : f32
    %116 = vector.broadcast %cst_43 : f32 to vector<32x32xf32>
    %117 = arith.cmpf ogt, %115, %116 : vector<32x32xf32>
    %cst_44 = arith.constant 1.000000e+00 : f32
    %118 = vector.broadcast %cst_44 : f32 to vector<32x32xf32>
    %119 = arith.select %117, %115, %118 : vector<32x32xi1>, vector<32x32xf32>
    %cst_45 = arith.constant 0.000000e+00 : f32
    %120 = vector.broadcast %cst_45 : f32 to vector<32x32xf32>
    %121 = arith.cmpf ogt, %115, %120 : vector<32x32xf32>
    %122 = arith.divf %114, %119 : vector<32x32xf32>
    %123 = arith.select %121, %122, %114 : vector<32x32xi1>, vector<32x32xf32>
    %124 = vector.extract_strided_slice %5 {offsets = [128, 0], sizes = [32, 32], strides = [1, 1]} : vector<256x96xf32> to vector<32x32xf32>
    %125 = vector.extract_strided_slice %5 {offsets = [128, 32], sizes = [32, 32], strides = [1, 1]} : vector<256x96xf32> to vector<32x32xf32>
    %126 = vector.extract_strided_slice %5 {offsets = [128, 64], sizes = [32, 32], strides = [1, 1]} : vector<256x96xf32> to vector<32x32xf32>
    %127 = tpu.transpose %125, [1, 0] : vector<32x32xf32> -> vector<32x32xf32>
    %128 = tpu.concatenate %127, %127, %127, %127 in 1 : vector<32x32xf32>, vector<32x32xf32>, vector<32x32xf32>, vector<32x32xf32> -> vector<32x128xf32>
    %129 = arith.mulf %128, %6 : vector<32x128xf32>
    %cst_46 = arith.constant dense<0.000000e+00> : vector<32x128xf32>
    %130 = tpu.matmul %124, %129, %cst_46 {dimension_numbers = #tpu.dot_dimension_numbers<[1], [0], [0], [1], [0, 0, 1, 1], [], []>} : vector<32x32xf32>, vector<32x128xf32>, vector<32x128xf32> -> vector<32x128xf32>
    %cst_47 = arith.constant -5.000000e+00 : f32
    %cst_48 = arith.constant 5.000000e+00 : f32
    %131 = vector.broadcast %cst_47 : f32 to vector<32x128xf32>
    %132 = arith.maximumf %131, %130 : vector<32x128xf32>
    %133 = vector.broadcast %cst_48 : f32 to vector<32x128xf32>
    %134 = arith.minimumf %133, %132 : vector<32x128xf32>
    %135 = math.exp %134 : vector<32x128xf32>
    %c4 = arith.constant 4 : index
    %c0_49 = arith.constant 0 : index
    %c0_50 = arith.constant 0 : index
    %136 = vector.load %arg2[%c4, %c0_49, %c0_50] : memref<8x32x128xf32, #tpu.memory_space<vmem>>, vector<1x32x128xf32>
    %137 = vector.shape_cast %136 : vector<1x32x128xf32> to vector<32x128xf32>
    %138 = arith.mulf %135, %137 : vector<32x128xf32>
    %139 = tpu.concatenate %126, %126, %126, %126 in 0 : vector<32x32xf32>, vector<32x32xf32>, vector<32x32xf32>, vector<32x32xf32> -> vector<128x32xf32>
    %140 = arith.mulf %139, %7 : vector<128x32xf32>
    %141 = tpu.concatenate %140, %7 in 1 : vector<128x32xf32>, vector<128x32xf32> -> vector<128x64xf32>
    %cst_51 = arith.constant dense<0.000000e+00> : vector<32x64xf32>
    %142 = tpu.matmul %138, %141, %cst_51 {dimension_numbers = #tpu.dot_dimension_numbers<[1], [0], [0], [1], [0, 0, 1, 1], [], []>} : vector<32x128xf32>, vector<128x64xf32>, vector<32x64xf32> -> vector<32x64xf32>
    %143 = vector.extract_strided_slice %142 {offsets = [0, 0], sizes = [32, 32], strides = [1, 1]} : vector<32x64xf32> to vector<32x32xf32>
    %144 = vector.extract_strided_slice %142 {offsets = [0, 32], sizes = [32, 32], strides = [1, 1]} : vector<32x64xf32> to vector<32x32xf32>
    %cst_52 = arith.constant 0.000000e+00 : f32
    %145 = vector.broadcast %cst_52 : f32 to vector<32x32xf32>
    %146 = arith.cmpf ogt, %144, %145 : vector<32x32xf32>
    %cst_53 = arith.constant 1.000000e+00 : f32
    %147 = vector.broadcast %cst_53 : f32 to vector<32x32xf32>
    %148 = arith.select %146, %144, %147 : vector<32x32xi1>, vector<32x32xf32>
    %cst_54 = arith.constant 0.000000e+00 : f32
    %149 = vector.broadcast %cst_54 : f32 to vector<32x32xf32>
    %150 = arith.cmpf ogt, %144, %149 : vector<32x32xf32>
    %151 = arith.divf %143, %148 : vector<32x32xf32>
    %152 = arith.select %150, %151, %143 : vector<32x32xi1>, vector<32x32xf32>
    %153 = vector.extract_strided_slice %5 {offsets = [160, 0], sizes = [32, 32], strides = [1, 1]} : vector<256x96xf32> to vector<32x32xf32>
    %154 = vector.extract_strided_slice %5 {offsets = [160, 32], sizes = [32, 32], strides = [1, 1]} : vector<256x96xf32> to vector<32x32xf32>
    %155 = vector.extract_strided_slice %5 {offsets = [160, 64], sizes = [32, 32], strides = [1, 1]} : vector<256x96xf32> to vector<32x32xf32>
    %156 = tpu.transpose %154, [1, 0] : vector<32x32xf32> -> vector<32x32xf32>
    %157 = tpu.concatenate %156, %156, %156, %156 in 1 : vector<32x32xf32>, vector<32x32xf32>, vector<32x32xf32>, vector<32x32xf32> -> vector<32x128xf32>
    %158 = arith.mulf %157, %6 : vector<32x128xf32>
    %cst_55 = arith.constant dense<0.000000e+00> : vector<32x128xf32>
    %159 = tpu.matmul %153, %158, %cst_55 {dimension_numbers = #tpu.dot_dimension_numbers<[1], [0], [0], [1], [0, 0, 1, 1], [], []>} : vector<32x32xf32>, vector<32x128xf32>, vector<32x128xf32> -> vector<32x128xf32>
    %cst_56 = arith.constant -5.000000e+00 : f32
    %cst_57 = arith.constant 5.000000e+00 : f32
    %160 = vector.broadcast %cst_56 : f32 to vector<32x128xf32>
    %161 = arith.maximumf %160, %159 : vector<32x128xf32>
    %162 = vector.broadcast %cst_57 : f32 to vector<32x128xf32>
    %163 = arith.minimumf %162, %161 : vector<32x128xf32>
    %164 = math.exp %163 : vector<32x128xf32>
    %c5 = arith.constant 5 : index
    %c0_58 = arith.constant 0 : index
    %c0_59 = arith.constant 0 : index
    %165 = vector.load %arg2[%c5, %c0_58, %c0_59] : memref<8x32x128xf32, #tpu.memory_space<vmem>>, vector<1x32x128xf32>
    %166 = vector.shape_cast %165 : vector<1x32x128xf32> to vector<32x128xf32>
    %167 = arith.mulf %164, %166 : vector<32x128xf32>
    %168 = tpu.concatenate %155, %155, %155, %155 in 0 : vector<32x32xf32>, vector<32x32xf32>, vector<32x32xf32>, vector<32x32xf32> -> vector<128x32xf32>
    %169 = arith.mulf %168, %7 : vector<128x32xf32>
    %170 = tpu.concatenate %169, %7 in 1 : vector<128x32xf32>, vector<128x32xf32> -> vector<128x64xf32>
    %cst_60 = arith.constant dense<0.000000e+00> : vector<32x64xf32>
    %171 = tpu.matmul %167, %170, %cst_60 {dimension_numbers = #tpu.dot_dimension_numbers<[1], [0], [0], [1], [0, 0, 1, 1], [], []>} : vector<32x128xf32>, vector<128x64xf32>, vector<32x64xf32> -> vector<32x64xf32>
    %172 = vector.extract_strided_slice %171 {offsets = [0, 0], sizes = [32, 32], strides = [1, 1]} : vector<32x64xf32> to vector<32x32xf32>
    %173 = vector.extract_strided_slice %171 {offsets = [0, 32], sizes = [32, 32], strides = [1, 1]} : vector<32x64xf32> to vector<32x32xf32>
    %cst_61 = arith.constant 0.000000e+00 : f32
    %174 = vector.broadcast %cst_61 : f32 to vector<32x32xf32>
    %175 = arith.cmpf ogt, %173, %174 : vector<32x32xf32>
    %cst_62 = arith.constant 1.000000e+00 : f32
    %176 = vector.broadcast %cst_62 : f32 to vector<32x32xf32>
    %177 = arith.select %175, %173, %176 : vector<32x32xi1>, vector<32x32xf32>
    %cst_63 = arith.constant 0.000000e+00 : f32
    %178 = vector.broadcast %cst_63 : f32 to vector<32x32xf32>
    %179 = arith.cmpf ogt, %173, %178 : vector<32x32xf32>
    %180 = arith.divf %172, %177 : vector<32x32xf32>
    %181 = arith.select %179, %180, %172 : vector<32x32xi1>, vector<32x32xf32>
    %182 = vector.extract_strided_slice %5 {offsets = [192, 0], sizes = [32, 32], strides = [1, 1]} : vector<256x96xf32> to vector<32x32xf32>
    %183 = vector.extract_strided_slice %5 {offsets = [192, 32], sizes = [32, 32], strides = [1, 1]} : vector<256x96xf32> to vector<32x32xf32>
    %184 = vector.extract_strided_slice %5 {offsets = [192, 64], sizes = [32, 32], strides = [1, 1]} : vector<256x96xf32> to vector<32x32xf32>
    %185 = tpu.transpose %183, [1, 0] : vector<32x32xf32> -> vector<32x32xf32>
    %186 = tpu.concatenate %185, %185, %185, %185 in 1 : vector<32x32xf32>, vector<32x32xf32>, vector<32x32xf32>, vector<32x32xf32> -> vector<32x128xf32>
    %187 = arith.mulf %186, %6 : vector<32x128xf32>
    %cst_64 = arith.constant dense<0.000000e+00> : vector<32x128xf32>
    %188 = tpu.matmul %182, %187, %cst_64 {dimension_numbers = #tpu.dot_dimension_numbers<[1], [0], [0], [1], [0, 0, 1, 1], [], []>} : vector<32x32xf32>, vector<32x128xf32>, vector<32x128xf32> -> vector<32x128xf32>
    %cst_65 = arith.constant -5.000000e+00 : f32
    %cst_66 = arith.constant 5.000000e+00 : f32
    %189 = vector.broadcast %cst_65 : f32 to vector<32x128xf32>
    %190 = arith.maximumf %189, %188 : vector<32x128xf32>
    %191 = vector.broadcast %cst_66 : f32 to vector<32x128xf32>
    %192 = arith.minimumf %191, %190 : vector<32x128xf32>
    %193 = math.exp %192 : vector<32x128xf32>
    %c6 = arith.constant 6 : index
    %c0_67 = arith.constant 0 : index
    %c0_68 = arith.constant 0 : index
    %194 = vector.load %arg2[%c6, %c0_67, %c0_68] : memref<8x32x128xf32, #tpu.memory_space<vmem>>, vector<1x32x128xf32>
    %195 = vector.shape_cast %194 : vector<1x32x128xf32> to vector<32x128xf32>
    %196 = arith.mulf %193, %195 : vector<32x128xf32>
    %197 = tpu.concatenate %184, %184, %184, %184 in 0 : vector<32x32xf32>, vector<32x32xf32>, vector<32x32xf32>, vector<32x32xf32> -> vector<128x32xf32>
    %198 = arith.mulf %197, %7 : vector<128x32xf32>
    %199 = tpu.concatenate %198, %7 in 1 : vector<128x32xf32>, vector<128x32xf32> -> vector<128x64xf32>
    %cst_69 = arith.constant dense<0.000000e+00> : vector<32x64xf32>
    %200 = tpu.matmul %196, %199, %cst_69 {dimension_numbers = #tpu.dot_dimension_numbers<[1], [0], [0], [1], [0, 0, 1, 1], [], []>} : vector<32x128xf32>, vector<128x64xf32>, vector<32x64xf32> -> vector<32x64xf32>
    %201 = vector.extract_strided_slice %200 {offsets = [0, 0], sizes = [32, 32], strides = [1, 1]} : vector<32x64xf32> to vector<32x32xf32>
    %202 = vector.extract_strided_slice %200 {offsets = [0, 32], sizes = [32, 32], strides = [1, 1]} : vector<32x64xf32> to vector<32x32xf32>
    %cst_70 = arith.constant 0.000000e+00 : f32
    %203 = vector.broadcast %cst_70 : f32 to vector<32x32xf32>
    %204 = arith.cmpf ogt, %202, %203 : vector<32x32xf32>
    %cst_71 = arith.constant 1.000000e+00 : f32
    %205 = vector.broadcast %cst_71 : f32 to vector<32x32xf32>
    %206 = arith.select %204, %202, %205 : vector<32x32xi1>, vector<32x32xf32>
    %cst_72 = arith.constant 0.000000e+00 : f32
    %207 = vector.broadcast %cst_72 : f32 to vector<32x32xf32>
    %208 = arith.cmpf ogt, %202, %207 : vector<32x32xf32>
    %209 = arith.divf %201, %206 : vector<32x32xf32>
    %210 = arith.select %208, %209, %201 : vector<32x32xi1>, vector<32x32xf32>
    %211 = vector.extract_strided_slice %5 {offsets = [224, 0], sizes = [32, 32], strides = [1, 1]} : vector<256x96xf32> to vector<32x32xf32>
    %212 = vector.extract_strided_slice %5 {offsets = [224, 32], sizes = [32, 32], strides = [1, 1]} : vector<256x96xf32> to vector<32x32xf32>
    %213 = vector.extract_strided_slice %5 {offsets = [224, 64], sizes = [32, 32], strides = [1, 1]} : vector<256x96xf32> to vector<32x32xf32>
    %214 = tpu.transpose %212, [1, 0] : vector<32x32xf32> -> vector<32x32xf32>
    %215 = tpu.concatenate %214, %214, %214, %214 in 1 : vector<32x32xf32>, vector<32x32xf32>, vector<32x32xf32>, vector<32x32xf32> -> vector<32x128xf32>
    %216 = arith.mulf %215, %6 : vector<32x128xf32>
    %cst_73 = arith.constant dense<0.000000e+00> : vector<32x128xf32>
    %217 = tpu.matmul %211, %216, %cst_73 {dimension_numbers = #tpu.dot_dimension_numbers<[1], [0], [0], [1], [0, 0, 1, 1], [], []>} : vector<32x32xf32>, vector<32x128xf32>, vector<32x128xf32> -> vector<32x128xf32>
    %cst_74 = arith.constant -5.000000e+00 : f32
    %cst_75 = arith.constant 5.000000e+00 : f32
    %218 = vector.broadcast %cst_74 : f32 to vector<32x128xf32>
    %219 = arith.maximumf %218, %217 : vector<32x128xf32>
    %220 = vector.broadcast %cst_75 : f32 to vector<32x128xf32>
    %221 = arith.minimumf %220, %219 : vector<32x128xf32>
    %222 = math.exp %221 : vector<32x128xf32>
    %c7 = arith.constant 7 : index
    %c0_76 = arith.constant 0 : index
    %c0_77 = arith.constant 0 : index
    %223 = vector.load %arg2[%c7, %c0_76, %c0_77] : memref<8x32x128xf32, #tpu.memory_space<vmem>>, vector<1x32x128xf32>
    %224 = vector.shape_cast %223 : vector<1x32x128xf32> to vector<32x128xf32>
    %225 = arith.mulf %222, %224 : vector<32x128xf32>
    %226 = tpu.concatenate %213, %213, %213, %213 in 0 : vector<32x32xf32>, vector<32x32xf32>, vector<32x32xf32>, vector<32x32xf32> -> vector<128x32xf32>
    %227 = arith.mulf %226, %7 : vector<128x32xf32>
    %228 = tpu.concatenate %227, %7 in 1 : vector<128x32xf32>, vector<128x32xf32> -> vector<128x64xf32>
    %cst_78 = arith.constant dense<0.000000e+00> : vector<32x64xf32>
    %229 = tpu.matmul %225, %228, %cst_78 {dimension_numbers = #tpu.dot_dimension_numbers<[1], [0], [0], [1], [0, 0, 1, 1], [], []>} : vector<32x128xf32>, vector<128x64xf32>, vector<32x64xf32> -> vector<32x64xf32>
    %230 = vector.extract_strided_slice %229 {offsets = [0, 0], sizes = [32, 32], strides = [1, 1]} : vector<32x64xf32> to vector<32x32xf32>
    %231 = vector.extract_strided_slice %229 {offsets = [0, 32], sizes = [32, 32], strides = [1, 1]} : vector<32x64xf32> to vector<32x32xf32>
    %cst_79 = arith.constant 0.000000e+00 : f32
    %232 = vector.broadcast %cst_79 : f32 to vector<32x32xf32>
    %233 = arith.cmpf ogt, %231, %232 : vector<32x32xf32>
    %cst_80 = arith.constant 1.000000e+00 : f32
    %234 = vector.broadcast %cst_80 : f32 to vector<32x32xf32>
    %235 = arith.select %233, %231, %234 : vector<32x32xi1>, vector<32x32xf32>
    %cst_81 = arith.constant 0.000000e+00 : f32
    %236 = vector.broadcast %cst_81 : f32 to vector<32x32xf32>
    %237 = arith.cmpf ogt, %231, %236 : vector<32x32xf32>
    %238 = arith.divf %230, %235 : vector<32x32xf32>
    %239 = arith.select %237, %238, %230 : vector<32x32xi1>, vector<32x32xf32>
    %240 = tpu.concatenate %36, %65, %94, %123, %152, %181, %210, %239 in 0 : vector<32x32xf32>, vector<32x32xf32>, vector<32x32xf32>, vector<32x32xf32>, vector<32x32xf32>, vector<32x32xf32>, vector<32x32xf32>, vector<32x32xf32> -> vector<256x32xf32>
    %c0_82 = arith.constant 0 : index
    %c0_83 = arith.constant 0 : index
    %241 = vector.load %arg7[%c0_82, %c0_83] : memref<256x32xf32, #tpu.memory_space<vmem>>, vector<256x32xf32>
    tpu.vector_store %arg7[%c0_82, %c0_83], %240 {strides = array<i32>} : memref<256x32xf32, #tpu.memory_space<vmem>>, vector<256x32xf32>,
    return
  }
  func.func @transform_0(%arg0: i32) -> (i32, i32) {
    %c0_i32 = arith.constant 0 : i32
    %c0_i32_0 = arith.constant 0 : i32
    return %arg0, %c0_i32 : i32, i32
  }
  func.func @transform_1(%arg0: i32) -> (i32, i32, i32) {
    %c0_i32 = arith.constant 0 : i32
    %c0_i32_0 = arith.constant 0 : i32
    %c0_i32_1 = arith.constant 0 : i32
    return %arg0, %c0_i32, %c0_i32_0 : i32, i32, i32
  }
  func.func @transform_2(%arg0: i32) -> (i32, i32) {
    %c0_i32 = arith.constant 0 : i32
    %c0_i32_0 = arith.constant 0 : i32
    %c0_i32_1 = arith.constant 0 : i32
    return %c0_i32, %c0_i32_0 : i32, i32
  }
  func.func @transform_3(%arg0: i32) -> (i32, i32) {
    %c0_i32 = arith.constant 0 : i32
    %c0_i32_0 = arith.constant 0 : i32
    %c0_i32_1 = arith.constant 0 : i32
    return %c0_i32, %c0_i32_0 : i32, i32
  }
  func.func @transform_4(%arg0: i32) -> (i32, i32) {
    %c0_i32 = arith.constant 0 : i32
    %c0_i32_0 = arith.constant 0 : i32
    %c0_i32_1 = arith.constant 0 : i32
    return %c0_i32, %c0_i32_0 : i32, i32
  }
  func.func @transform_5(%arg0: i32) -> (i32, i32) {
    %c0_i32 = arith.constant 0 : i32
    %c0_i32_0 = arith.constant 0 : i32
    %c0_i32_1 = arith.constant 0 : i32
    return %c0_i32, %c0_i32_0 : i32, i32
  }
  func.func @transform_6(%arg0: i32) -> (i32, i32) {
    %c0_i32 = arith.constant 0 : i32
    %c0_i32_0 = arith.constant 0 : i32
    return %arg0, %c0_i32 : i32, i32
  }
}

</mosaic_0001>

<bundles_post_ra>
// kernel: tile.9
= control target key start
LH: loop header
LB: loop body
LE: loop exit
PB: predicated region body
PF: predicated region fallthrough
CT: control target
= control target key end

     0   :  { %vm2563_vm0 = vcmask 1047556   ;;  %s6519_s10 = smov 96   ;;  %vm2565_vm1 = vcmask 261120   ;;  %vm3142_vm2 = vcmask 1048320   ;;  %vm3845_vm3 = vcmask 785920   ;;  %s9711_s0 = inlined_call_operand.vmem [shape: f32[16,32,4,32], index: 0, kind: input, shape index: {}]   ;;  %s9712_s1 = inlined_call_operand.vmem [shape: f32[16,32,128], index: 1, kind: output, shape index: {}]  }
   0x1   :  { %v6257_v0 = vld [vmem:[%s9711_s0 + $0x1c] sm:$0xf]  ;;  %v6258_v1 = vld [vmem:[%s9711_s0 + $0x18] sm:$0xf]  ;;  %v6259_v2 = vld [vmem:[%s9711_s0 + $0x14] sm:$0xf] }
   0x2   :  { %2529 = vst [vmem:[#allocation0 + $0x38] sm:$0xf] %v6257_v0  ;;  %2534 = vst [vmem:[#allocation0 + $0x30] sm:$0xf] %v6258_v1  ;;  %v6260_v3 = vld [vmem:[%s9711_s0 + $0x10] sm:$0xf] }
   0x3   :  { %2539 = vst [vmem:[#allocation0 + $0x28] sm:$0xf] %v6259_v2  ;;  %v6261_v4 = vld [vmem:[%s9711_s0 + $0xc] sm:$0xf]  ;;  %v6262_v5 = vld [vmem:[%s9711_s0 + $0x8] sm:$0xf] }
   0x4   :  { %2544 = vst [vmem:[#allocation0 + $0x20] sm:$0xf] %v6260_v3  ;;  %2549 = vst [vmem:[#allocation0 + $0x18] sm:$0xf] %v6261_v4  ;;  %v6263_v6 = vld [vmem:[%s9711_s0 + $0x4] sm:$0xf] }
   0x5   :  { %2554 = vst [vmem:[#allocation0 + $0x10] sm:$0xf] %v6262_v5  ;;  %v2559_v7 = vld [vmem:[%s9711_s0] sm:$0xf]  ;;  %2558 = vst [vmem:[#allocation0 + $0x8] sm:$0xf] %v6263_v6 }
   0x6   :  { %2560 = vst [vmem:[#allocation0] sm:$0xf] %v2559_v7  ;;  %v6193_v8 = vld [vmem:[%s9711_s0 + $0x11c] sm:$0xf]  ;;  %v6194_v9 = vld [vmem:[%s9711_s0 + $0x118] sm:$0xf] }
   0x7   :  { %v6195_v10 = vld [vmem:[%s9711_s0 + $0x114] sm:$0xf]  ;;  %2209 = vst [vmem:[#allocation0 + $0x238] sm:$0xf] %v6193_v8  ;;  %2214 = vst [vmem:[#allocation0 + $0x230] sm:$0xf] %v6194_v9 }
   0x8   :  { %2219 = vst [vmem:[#allocation0 + $0x228] sm:$0xf] %v6195_v10  ;;  %v6196_v11 = vld [vmem:[%s9711_s0 + $0x110] sm:$0xf]  ;;  %v6197_v12 = vld [vmem:[%s9711_s0 + $0x10c] sm:$0xf] }
   0x9   :  { %v6198_v13 = vld [vmem:[%s9711_s0 + $0x108] sm:$0xf]  ;;  %2224 = vst [vmem:[#allocation0 + $0x220] sm:$0xf] %v6196_v11  ;;  %2229 = vst [vmem:[#allocation0 + $0x218] sm:$0xf] %v6197_v12 }
   0xa   :  { %2234 = vst [vmem:[#allocation0 + $0x210] sm:$0xf] %v6198_v13  ;;  %v6199_v14 = vld [vmem:[%s9711_s0 + $0x104] sm:$0xf]  ;;  %v6200_v15 = vld [vmem:[%s9711_s0 + $0x100] sm:$0xf] }
   0xb   :  { %v6225_v16 = vld [vmem:[%s9711_s0 + $0x9c] sm:$0xf]  ;;  %2239 = vst [vmem:[#allocation0 + $0x208] sm:$0xf] %v6199_v14  ;;  %2244 = vst [vmem:[#allocation0 + $0x200] sm:$0xf] %v6200_v15 }
   0xc   :  { %2369 = vst [vmem:[#allocation0 + $0x138] sm:$0xf] %v6225_v16  ;;  %v6226_v17 = vld [vmem:[%s9711_s0 + $0x98] sm:$0xf]  ;;  %v6227_v18 = vld [vmem:[%s9711_s0 + $0x94] sm:$0xf] }
   0xd   :  { %v6228_v19 = vld [vmem:[%s9711_s0 + $0x90] sm:$0xf]  ;;  %2374 = vst [vmem:[#allocation0 + $0x130] sm:$0xf] %v6226_v17  ;;  %2379 = vst [vmem:[#allocation0 + $0x128] sm:$0xf] %v6227_v18 }
   0xe   :  { %2384 = vst [vmem:[#allocation0 + $0x120] sm:$0xf] %v6228_v19  ;;  %v6229_v20 = vld [vmem:[%s9711_s0 + $0x8c] sm:$0xf]  ;;  %v6230_v21 = vld [vmem:[%s9711_s0 + $0x88] sm:$0xf] }
   0xf   :  { %v6231_v22 = vld [vmem:[%s9711_s0 + $0x84] sm:$0xf]  ;;  %2389 = vst [vmem:[#allocation0 + $0x118] sm:$0xf] %v6229_v20  ;;  %2394 = vst [vmem:[#allocation0 + $0x110] sm:$0xf] %v6230_v21 }
  0x10   :  { %2399 = vst [vmem:[#allocation0 + $0x108] sm:$0xf] %v6231_v22  ;;  %v6232_v23 = vld [vmem:[%s9711_s0 + $0x80] sm:$0xf]  ;;  %v6161_v24 = vld [vmem:[%s9711_s0 + $0x19c] sm:$0xf] }
  0x11   :  { %v6162_v25 = vld [vmem:[%s9711_s0 + $0x198] sm:$0xf]  ;;  %2404 = vst [vmem:[#allocation0 + $0x100] sm:$0xf] %v6232_v23  ;;  %2049 = vst [vmem:[#allocation0 + $0x338] sm:$0xf] %v6161_v24 }
  0x12   :  { %v3137_v26 = vld [vmem:[#allocation0 + $0x3] ss:$8 sm:$0xf0]   ;;  %2054 = vst [vmem:[#allocation0 + $0x330] sm:$0xf] %v6162_v25  ;;  %vm4548_vm4 = vcmask 523520  }
  0x13   :  { %v6163_v27 = vld [vmem:[%s9711_s0 + $0x194] sm:$0xf]  ;;  %v3135_v28 = vld [vmem:[#allocation0 + $0x3] ss:$8 sm:$0xf]  }
  0x14   :  { %2059 = vst [vmem:[#allocation0 + $0x328] sm:$0xf] %v6163_v27  ;;  %v6164_v29 = vld [vmem:[%s9711_s0 + $0x190] sm:$0xf]  ;;  %v3139_v30 = vsel %vm2563_vm0, %v3137_v26, %v3135_v28  ;;  %v6165_v31 = vld [vmem:[%s9711_s0 + $0x18c] sm:$0xf] }
  0x15   :  { %2064 = vst [vmem:[#allocation0 + $0x320] sm:$0xf] %v6164_v29  ;;  %v6166_v32 = vld [vmem:[%s9711_s0 + $0x188] sm:$0xf]  ;;  %v6167_v33 = vld [vmem:[%s9711_s0 + $0x184] sm:$0xf]  ;;  %3140 = vrot.lane.b32.xlu0 %v3139_v30, %s6519_s10 }
  0x16   :  { %v3158_v34 = vld [vmem:[#allocation0 + $0x203] ss:$8 sm:$0xf0]   ;;  %2069 = vst [vmem:[#allocation0 + $0x318] sm:$0xf] %v6165_v31 }
  0x17   :  { %2074 = vst [vmem:[#allocation0 + $0x310] sm:$0xf] %v6166_v32  ;;  %2079 = vst [vmem:[#allocation0 + $0x308] sm:$0xf] %v6167_v33  ;;  %v6168_v35 = vld [vmem:[%s9711_s0 + $0x180] sm:$0xf] }
  0x18   :  { %v3156_v36 = vld [vmem:[#allocation0 + $0x203] ss:$8 sm:$0xf]   ;;  %2084 = vst [vmem:[#allocation0 + $0x300] sm:$0xf] %v6168_v35 }
  0x19   :  { %v6129_v37 = vld [vmem:[%s9711_s0 + $0x21c] sm:$0xf]  ;;  %v3160_v38 = vsel %vm2563_vm0, %v3158_v34, %v3156_v36  ;;  %v3147_v39 = vld [vmem:[#allocation0 + $0x103] ss:$8 sm:$0xf0]  }
  0x1a   :  { %1889 = vst [vmem:[#allocation0 + $0x438] sm:$0xf] %v6129_v37  ;;  %v6130_v40 = vld [vmem:[%s9711_s0 + $0x218] sm:$0xf]  ;;  %3161 = vrot.lane.b32.xlu1 %v3160_v38, %s6519_s10  ;;  %v6131_v41 = vld [vmem:[%s9711_s0 + $0x214] sm:$0xf] }
  0x1b   :  { %1894 = vst [vmem:[#allocation0 + $0x430] sm:$0xf] %v6130_v40  ;;  %v6132_v42 = vld [vmem:[%s9711_s0 + $0x210] sm:$0xf]  ;;  %v6133_v43 = vld [vmem:[%s9711_s0 + $0x20c] sm:$0xf] }
  0x1c   :  { %v3145_v44 = vld [vmem:[#allocation0 + $0x103] ss:$8 sm:$0xf]   ;;  %1899 = vst [vmem:[#allocation0 + $0x428] sm:$0xf] %v6131_v41 }
  0x1d   :  { %1904 = vst [vmem:[#allocation0 + $0x420] sm:$0xf] %v6132_v42  ;;  %1909 = vst [vmem:[#allocation0 + $0x418] sm:$0xf] %v6133_v43  ;;  %v6134_v45 = vld [vmem:[%s9711_s0 + $0x208] sm:$0xf]  ;;  %v3149_v46 = vsel %vm2563_vm0, %v3147_v39, %v3145_v44 }
  0x1e   :  { %1914 = vst [vmem:[#allocation0 + $0x410] sm:$0xf] %v6134_v45  ;;  %v6135_v47 = vld [vmem:[%s9711_s0 + $0x204] sm:$0xf]  ;;  %v6136_v48 = vld [vmem:[%s9711_s0 + $0x200] sm:$0xf]  ;;  %3150 = vrot.lane.b32.xlu0 %v3149_v46, %s6519_s10 }
  0x1f   :  { %v6097_v49 = vld [vmem:[%s9711_s0 + $0x29c] sm:$0xf]  ;;  %v3169_v50 = vld [vmem:[#allocation0 + $0x303] ss:$8 sm:$0xf0]  }
  0x20   :  { %1919 = vst [vmem:[#allocation0 + $0x408] sm:$0xf] %v6135_v47  ;;  %1924 = vst [vmem:[#allocation0 + $0x400] sm:$0xf] %v6136_v48  ;;  %v6098_v51 = vld [vmem:[%s9711_s0 + $0x298] sm:$0xf] }
  0x21   :  { %1729 = vst [vmem:[#allocation0 + $0x538] sm:$0xf] %v6097_v49  ;;  %1734 = vst [vmem:[#allocation0 + $0x530] sm:$0xf] %v6098_v51  ;;  %v6099_v52 = vld [vmem:[%s9711_s0 + $0x294] sm:$0xf] }
  0x22   :  { %v6100_v53 = vld [vmem:[%s9711_s0 + $0x290] sm:$0xf]  ;;  %v6101_v54 = vld [vmem:[%s9711_s0 + $0x28c] sm:$0xf]  ;;  %1739 = vst [vmem:[#allocation0 + $0x528] sm:$0xf] %v6099_v52 }
  0x23   :  { %v3167_v55 = vld [vmem:[#allocation0 + $0x303] ss:$8 sm:$0xf]   ;;  %1744 = vst [vmem:[#allocation0 + $0x520] sm:$0xf] %v6100_v53 }
  0x24   :  { %1749 = vst [vmem:[#allocation0 + $0x518] sm:$0xf] %v6101_v54  ;;  %v6102_v56 = vld [vmem:[%s9711_s0 + $0x288] sm:$0xf]  ;;  %v3171_v57 = vsel %vm2563_vm0, %v3169_v50, %v3167_v55  ;;  %v6103_v58 = vld [vmem:[%s9711_s0 + $0x284] sm:$0xf] }
  0x25   :  { %1754 = vst [vmem:[#allocation0 + $0x510] sm:$0xf] %v6102_v56  ;;  %v6104_v59 = vld [vmem:[%s9711_s0 + $0x280] sm:$0xf]  ;;  %v6065_v60 = vld [vmem:[%s9711_s0 + $0x31c] sm:$0xf]  ;;  %3172 = vrot.lane.b32.xlu1 %v3171_v57, %s6519_s10 }
  0x26   :  { %1759 = vst [vmem:[#allocation0 + $0x508] sm:$0xf] %v6103_v58  ;;  %1764 = vst [vmem:[#allocation0 + $0x500] sm:$0xf] %v6104_v59  ;;  %v6066_v61 = vld [vmem:[%s9711_s0 + $0x318] sm:$0xf] }
  0x27   :  { %1569 = vst [vmem:[#allocation0 + $0x638] sm:$0xf] %v6065_v60  ;;  %v6067_v62 = vld [vmem:[%s9711_s0 + $0x314] sm:$0xf]  ;;  %v6068_v63 = vld [vmem:[%s9711_s0 + $0x310] sm:$0xf] }
  0x28   :  { %v3180_v0 = vld [vmem:[#allocation0 + $0x403] ss:$8 sm:$0xf0]   ;;  %1574 = vst [vmem:[#allocation0 + $0x630] sm:$0xf] %v6066_v61 }
  0x29   :  { %1579 = vst [vmem:[#allocation0 + $0x628] sm:$0xf] %v6067_v62  ;;  %1584 = vst [vmem:[#allocation0 + $0x620] sm:$0xf] %v6068_v63  ;;  %v6069_v1 = vld [vmem:[%s9711_s0 + $0x30c] sm:$0xf] }
  0x2a   :  { %1589 = vst [vmem:[#allocation0 + $0x618] sm:$0xf] %v6069_v1  ;;  %v6070_v2 = vld [vmem:[%s9711_s0 + $0x308] sm:$0xf]  ;;  %v6071_v3 = vld [vmem:[%s9711_s0 + $0x304] sm:$0xf] }
  0x2b   :  { %v6072_v4 = vld [vmem:[%s9711_s0 + $0x300] sm:$0xf]  ;;  %1594 = vst [vmem:[#allocation0 + $0x610] sm:$0xf] %v6070_v2  ;;  %1599 = vst [vmem:[#allocation0 + $0x608] sm:$0xf] %v6071_v3 }
  0x2c   :  { %v3178_v5 = vld [vmem:[#allocation0 + $0x403] ss:$8 sm:$0xf]   ;;  %1604 = vst [vmem:[#allocation0 + $0x600] sm:$0xf] %v6072_v4 }
  0x2d   :  { %v6033_v6 = vld [vmem:[%s9711_s0 + $0x39c] sm:$0xf]  ;;  %v3182_v7 = vsel %vm2563_vm0, %v3180_v0, %v3178_v5  ;;  %v6034_v8 = vld [vmem:[%s9711_s0 + $0x398] sm:$0xf]  ;;  %v6035_v9 = vld [vmem:[%s9711_s0 + $0x394] sm:$0xf] }
  0x2e   :  { %1409 = vst [vmem:[#allocation0 + $0x738] sm:$0xf] %v6033_v6  ;;  %v6036_v10 = vld [vmem:[%s9711_s0 + $0x390] sm:$0xf]  ;;  %3183 = vrot.lane.b32.xlu0 %v3182_v7, %s6519_s10  ;;  %1414 = vst [vmem:[#allocation0 + $0x730] sm:$0xf] %v6034_v8 }
  0x2f   :  { %v3191_v11 = vld [vmem:[#allocation0 + $0x503] ss:$8 sm:$0xf0]   ;;  %1419 = vst [vmem:[#allocation0 + $0x728] sm:$0xf] %v6035_v9 }
  0x30   :  { %1424 = vst [vmem:[#allocation0 + $0x720] sm:$0xf] %v6036_v10  ;;  %v6037_v12 = vld [vmem:[%s9711_s0 + $0x38c] sm:$0xf]  ;;  %v6038_v13 = vld [vmem:[%s9711_s0 + $0x388] sm:$0xf] }
  0x31   :  { %1429 = vst [vmem:[#allocation0 + $0x718] sm:$0xf] %v6037_v12  ;;  %v6039_v14 = vld [vmem:[%s9711_s0 + $0x384] sm:$0xf]  ;;  %v6040_v15 = vld [vmem:[%s9711_s0 + $0x380] sm:$0xf] }
  0x32   :  { %v3189_v16 = vld [vmem:[#allocation0 + $0x503] ss:$8 sm:$0xf]   ;;  %1434 = vst [vmem:[#allocation0 + $0x710] sm:$0xf] %v6038_v13 }
  0x33   :  { %1439 = vst [vmem:[#allocation0 + $0x708] sm:$0xf] %v6039_v14  ;;  %1444 = vst [vmem:[#allocation0 + $0x700] sm:$0xf] %v6040_v15  ;;  %v6001_v17 = vld [vmem:[%s9711_s0 + $0x41c] sm:$0xf]  ;;  %v3193_v18 = vsel %vm2563_vm0, %v3191_v11, %v3189_v16 }
  0x34   :  { %v3202_v19 = vld [vmem:[#allocation0 + $0x603] ss:$8 sm:$0xf0]   ;;  %1249 = vst [vmem:[#allocation0 + $0x838] sm:$0xf] %v6001_v17  ;;  %3194 = vrot.lane.b32.xlu1 %v3193_v18, %s6519_s10 }
  0x35   :  { %v6002_v20 = vld [vmem:[%s9711_s0 + $0x418] sm:$0xf]  ;;  %v6003_v21 = vld [vmem:[%s9711_s0 + $0x414] sm:$0xf]  ;;  %v6004_v22 = vld [vmem:[%s9711_s0 + $0x410] sm:$0xf] }
  0x36   :  { %1254 = vst [vmem:[#allocation0 + $0x830] sm:$0xf] %v6002_v20  ;;  %v6005_v23 = vld [vmem:[%s9711_s0 + $0x40c] sm:$0xf]  ;;  %1259 = vst [vmem:[#allocation0 + $0x828] sm:$0xf] %v6003_v21 }
  0x37   :  { %v3200_v24 = vld [vmem:[#allocation0 + $0x603] ss:$8 sm:$0xf]   ;;  %1264 = vst [vmem:[#allocation0 + $0x820] sm:$0xf] %v6004_v22 }
  0x38   :  { %1269 = vst [vmem:[#allocation0 + $0x818] sm:$0xf] %v6005_v23  ;;  %v6006_v25 = vld [vmem:[%s9711_s0 + $0x408] sm:$0xf]  ;;  %v3204_v26 = vsel %vm2563_vm0, %v3202_v19, %v3200_v24  ;;  %v6007_v27 = vld [vmem:[%s9711_s0 + $0x404] sm:$0xf] }
  0x39   :  { %1274 = vst [vmem:[#allocation0 + $0x810] sm:$0xf] %v6006_v25  ;;  %v6008_v28 = vld [vmem:[%s9711_s0 + $0x400] sm:$0xf]  ;;  %v5969_v29 = vld [vmem:[%s9711_s0 + $0x49c] sm:$0xf]  ;;  %3205 = vrot.lane.b32.xlu0 %v3204_v26, %s6519_s10 }
  0x3a   :  { %v3213_v30 = vld [vmem:[#allocation0 + $0x703] ss:$8 sm:$0xf0]   ;;  %1279 = vst [vmem:[#allocation0 + $0x808] sm:$0xf] %v6007_v27 }
  0x3b   :  { %1284 = vst [vmem:[#allocation0 + $0x800] sm:$0xf] %v6008_v28  ;;  %1089 = vst [vmem:[#allocation0 + $0x938] sm:$0xf] %v5969_v29  ;;  %v5970_v31 = vld [vmem:[%s9711_s0 + $0x498] sm:$0xf] }
  0x3c   :  { %1094 = vst [vmem:[#allocation0 + $0x930] sm:$0xf] %v5970_v31  ;;  %v5971_v32 = vld [vmem:[%s9711_s0 + $0x494] sm:$0xf]  ;;  %v5972_v33 = vld [vmem:[%s9711_s0 + $0x490] sm:$0xf] }
  0x3d   :  { %v5973_v34 = vld [vmem:[%s9711_s0 + $0x48c] sm:$0xf]  ;;  %v3211_v35 = vld [vmem:[#allocation0 + $0x703] ss:$8 sm:$0xf]  }
  0x3e   :  { %1099 = vst [vmem:[#allocation0 + $0x928] sm:$0xf] %v5971_v32  ;;  %1104 = vst [vmem:[#allocation0 + $0x920] sm:$0xf] %v5972_v33  ;;  %v5974_v36 = vld [vmem:[%s9711_s0 + $0x488] sm:$0xf]  ;;  %v3215_v37 = vsel %vm2563_vm0, %v3213_v30, %v3211_v35 }
  0x3f   :  { %1109 = vst [vmem:[#allocation0 + $0x918] sm:$0xf] %v5973_v34  ;;  %1114 = vst [vmem:[#allocation0 + $0x910] sm:$0xf] %v5974_v36  ;;  %v5975_v38 = vld [vmem:[%s9711_s0 + $0x484] sm:$0xf]  ;;  %3216 = vrot.lane.b32.xlu1 %v3215_v37, %s6519_s10 }
  0x40   :  { %v5976_v39 = vld [vmem:[%s9711_s0 + $0x480] sm:$0xf]  ;;  %v5937_v40 = vld [vmem:[%s9711_s0 + $0x51c] sm:$0xf]  ;;  %1119 = vst [vmem:[#allocation0 + $0x908] sm:$0xf] %v5975_v38 }
  0x41   :  { %1124 = vst [vmem:[#allocation0 + $0x900] sm:$0xf] %v5976_v39  ;;  %929 = vst [vmem:[#allocation0 + $0xa38] sm:$0xf] %v5937_v40  ;;  %v5938_v41 = vld [vmem:[%s9711_s0 + $0x518] sm:$0xf] }
  0x42   :  { %v5939_v42 = vld [vmem:[%s9711_s0 + $0x514] sm:$0xf]  ;;  %v5940_v43 = vld [vmem:[%s9711_s0 + $0x510] sm:$0xf]  ;;  %934 = vst [vmem:[#allocation0 + $0xa30] sm:$0xf] %v5938_v41 }
  0x43   :  { %v3224_v44 = vld [vmem:[#allocation0 + $0x803] ss:$8 sm:$0xf0]   ;;  %939 = vst [vmem:[#allocation0 + $0xa28] sm:$0xf] %v5939_v42 }
  0x44   :  { %944 = vst [vmem:[#allocation0 + $0xa20] sm:$0xf] %v5940_v43  ;;  %v5941_v45 = vld [vmem:[%s9711_s0 + $0x50c] sm:$0xf]  ;;  %v5942_v46 = vld [vmem:[%s9711_s0 + $0x508] sm:$0xf] }
  0x45   :  { %949 = vst [vmem:[#allocation0 + $0xa18] sm:$0xf] %v5941_v45  ;;  %v5943_v47 = vld [vmem:[%s9711_s0 + $0x504] sm:$0xf]  ;;  %v5944_v48 = vld [vmem:[%s9711_s0 + $0x500] sm:$0xf] }
  0x46   :  { %v3222_v49 = vld [vmem:[#allocation0 + $0x803] ss:$8 sm:$0xf]   ;;  %954 = vst [vmem:[#allocation0 + $0xa10] sm:$0xf] %v5942_v46 }
  0x47   :  { %959 = vst [vmem:[#allocation0 + $0xa08] sm:$0xf] %v5943_v47  ;;  %964 = vst [vmem:[#allocation0 + $0xa00] sm:$0xf] %v5944_v48  ;;  %v5905_v50 = vld [vmem:[%s9711_s0 + $0x59c] sm:$0xf]  ;;  %v3226_v51 = vsel %vm2563_vm0, %v3224_v44, %v3222_v49 }
  0x48   :  { %769 = vst [vmem:[#allocation0 + $0xb38] sm:$0xf] %v5905_v50  ;;  %v5906_v52 = vld [vmem:[%s9711_s0 + $0x598] sm:$0xf]  ;;  %v5907_v53 = vld [vmem:[%s9711_s0 + $0x594] sm:$0xf]  ;;  %3227 = vrot.lane.b32.xlu0 %v3226_v51, %s6519_s10 }
  0x49   :  { %v5908_v54 = vld [vmem:[%s9711_s0 + $0x590] sm:$0xf]  ;;  %774 = vst [vmem:[#allocation0 + $0xb30] sm:$0xf] %v5906_v52  ;;  %779 = vst [vmem:[#allocation0 + $0xb28] sm:$0xf] %v5907_v53 }
  0x4a   :  { %v3235_v55 = vld [vmem:[#allocation0 + $0x903] ss:$8 sm:$0xf0]   ;;  %784 = vst [vmem:[#allocation0 + $0xb20] sm:$0xf] %v5908_v54 }
  0x4b   :  { %v5909_v56 = vld [vmem:[%s9711_s0 + $0x58c] sm:$0xf]  ;;  %v5910_v57 = vld [vmem:[%s9711_s0 + $0x588] sm:$0xf]  ;;  %v5911_v58 = vld [vmem:[%s9711_s0 + $0x584] sm:$0xf] }
  0x4c   :  { %789 = vst [vmem:[#allocation0 + $0xb18] sm:$0xf] %v5909_v56  ;;  %v5912_v59 = vld [vmem:[%s9711_s0 + $0x580] sm:$0xf]  ;;  %794 = vst [vmem:[#allocation0 + $0xb10] sm:$0xf] %v5910_v57 }
  0x4d   :  { %v3233_v60 = vld [vmem:[#allocation0 + $0x903] ss:$8 sm:$0xf]   ;;  %799 = vst [vmem:[#allocation0 + $0xb08] sm:$0xf] %v5911_v58 }
  0x4e   :  { %804 = vst [vmem:[#allocation0 + $0xb00] sm:$0xf] %v5912_v59  ;;  %v5873_v61 = vld [vmem:[%s9711_s0 + $0x61c] sm:$0xf]  ;;  %v3237_v62 = vsel %vm2563_vm0, %v3235_v55, %v3233_v60  ;;  %v5874_v0 = vld [vmem:[%s9711_s0 + $0x618] sm:$0xf] }
  0x4f   :  { %v3246_v63 = vld [vmem:[#allocation0 + $0xa03] ss:$8 sm:$0xf0]   ;;  %609 = vst [vmem:[#allocation0 + $0xc38] sm:$0xf] %v5873_v61  ;;  %3238 = vrot.lane.b32.xlu1 %v3237_v62, %s6519_s10 }
  0x50   :  { %614 = vst [vmem:[#allocation0 + $0xc30] sm:$0xf] %v5874_v0  ;;  %v5875_v1 = vld [vmem:[%s9711_s0 + $0x614] sm:$0xf]  ;;  %v5876_v2 = vld [vmem:[%s9711_s0 + $0x610] sm:$0xf] }
  0x51   :  { %v5877_v3 = vld [vmem:[%s9711_s0 + $0x60c] sm:$0xf]  ;;  %v3244_v4 = vld [vmem:[#allocation0 + $0xa03] ss:$8 sm:$0xf]  }
  0x52   :  { %619 = vst [vmem:[#allocation0 + $0xc28] sm:$0xf] %v5875_v1  ;;  %624 = vst [vmem:[#allocation0 + $0xc20] sm:$0xf] %v5876_v2  ;;  %v5878_v5 = vld [vmem:[%s9711_s0 + $0x608] sm:$0xf]  ;;  %v3248_v6 = vsel %vm2563_vm0, %v3246_v63, %v3244_v4 }
  0x53   :  { %629 = vst [vmem:[#allocation0 + $0xc18] sm:$0xf] %v5877_v3  ;;  %634 = vst [vmem:[#allocation0 + $0xc10] sm:$0xf] %v5878_v5  ;;  %v5879_v7 = vld [vmem:[%s9711_s0 + $0x604] sm:$0xf]  ;;  %3249 = vrot.lane.b32.xlu0 %v3248_v6, %s6519_s10 }
  0x54   :  { %v5880_v8 = vld [vmem:[%s9711_s0 + $0x600] sm:$0xf]  ;;  %v5841_v9 = vld [vmem:[%s9711_s0 + $0x69c] sm:$0xf]  ;;  %639 = vst [vmem:[#allocation0 + $0xc08] sm:$0xf] %v5879_v7 }
  0x55   :  { %v3257_v10 = vld [vmem:[#allocation0 + $0xb03] ss:$8 sm:$0xf0]   ;;  %644 = vst [vmem:[#allocation0 + $0xc00] sm:$0xf] %v5880_v8 }
  0x56   :  { %449 = vst [vmem:[#allocation0 + $0xd38] sm:$0xf] %v5841_v9  ;;  %v5842_v11 = vld [vmem:[%s9711_s0 + $0x698] sm:$0xf]  ;;  %v5843_v12 = vld [vmem:[%s9711_s0 + $0x694] sm:$0xf] }
  0x57   :  { %454 = vst [vmem:[#allocation0 + $0xd30] sm:$0xf] %v5842_v11  ;;  %v5844_v13 = vld [vmem:[%s9711_s0 + $0x690] sm:$0xf]  ;;  %v5845_v14 = vld [vmem:[%s9711_s0 + $0x68c] sm:$0xf] }
  0x58   :  { %v3255_v15 = vld [vmem:[#allocation0 + $0xb03] ss:$8 sm:$0xf]   ;;  %459 = vst [vmem:[#allocation0 + $0xd28] sm:$0xf] %v5843_v12 }
  0x59   :  { %464 = vst [vmem:[#allocation0 + $0xd20] sm:$0xf] %v5844_v13  ;;  %469 = vst [vmem:[#allocation0 + $0xd18] sm:$0xf] %v5845_v14  ;;  %v5846_v16 = vld [vmem:[%s9711_s0 + $0x688] sm:$0xf]  ;;  %v3259_v17 = vsel %vm2563_vm0, %v3257_v10, %v3255_v15 }
  0x5a   :  { %474 = vst [vmem:[#allocation0 + $0xd10] sm:$0xf] %v5846_v16  ;;  %v5847_v18 = vld [vmem:[%s9711_s0 + $0x684] sm:$0xf]  ;;  %v5848_v19 = vld [vmem:[%s9711_s0 + $0x680] sm:$0xf]  ;;  %3260 = vrot.lane.b32.xlu1 %v3259_v17, %s6519_s10 }
  0x5b   :  { %v5809_v20 = vld [vmem:[%s9711_s0 + $0x71c] sm:$0xf]  ;;  %479 = vst [vmem:[#allocation0 + $0xd08] sm:$0xf] %v5847_v18  ;;  %484 = vst [vmem:[#allocation0 + $0xd00] sm:$0xf] %v5848_v19 }
  0x5c   :  { %289 = vst [vmem:[#allocation0 + $0xe38] sm:$0xf] %v5809_v20  ;;  %v5810_v21 = vld [vmem:[%s9711_s0 + $0x718] sm:$0xf]  ;;  %v5811_v22 = vld [vmem:[%s9711_s0 + $0x714] sm:$0xf] }
  0x5d   :  { %v5812_v23 = vld [vmem:[%s9711_s0 + $0x710] sm:$0xf]  ;;  %294 = vst [vmem:[#allocation0 + $0xe30] sm:$0xf] %v5810_v21  ;;  %299 = vst [vmem:[#allocation0 + $0xe28] sm:$0xf] %v5811_v22 }
  0x5e   :  { %v3268_v24 = vld [vmem:[#allocation0 + $0xc03] ss:$8 sm:$0xf0]   ;;  %304 = vst [vmem:[#allocation0 + $0xe20] sm:$0xf] %v5812_v23 }
  0x5f   :  { %v5813_v25 = vld [vmem:[%s9711_s0 + $0x70c] sm:$0xf]  ;;  %v5814_v26 = vld [vmem:[%s9711_s0 + $0x708] sm:$0xf]  ;;  %v5815_v27 = vld [vmem:[%s9711_s0 + $0x704] sm:$0xf] }
  0x60   :  { %309 = vst [vmem:[#allocation0 + $0xe18] sm:$0xf] %v5813_v25  ;;  %v5816_v28 = vld [vmem:[%s9711_s0 + $0x700] sm:$0xf]  ;;  %314 = vst [vmem:[#allocation0 + $0xe10] sm:$0xf] %v5814_v26 }
  0x61   :  { %v3266_v29 = vld [vmem:[#allocation0 + $0xc03] ss:$8 sm:$0xf]   ;;  %319 = vst [vmem:[#allocation0 + $0xe08] sm:$0xf] %v5815_v27 }
  0x62   :  { %324 = vst [vmem:[#allocation0 + $0xe00] sm:$0xf] %v5816_v28  ;;  %v5777_v30 = vld [vmem:[%s9711_s0 + $0x79c] sm:$0xf]  ;;  %v3270_v31 = vsel %vm2563_vm0, %v3268_v24, %v3266_v29  ;;  %v5778_v32 = vld [vmem:[%s9711_s0 + $0x798] sm:$0xf] }
  0x63   :  { %129 = vst [vmem:[#allocation0 + $0xf38] sm:$0xf] %v5777_v30  ;;  %v5779_v33 = vld [vmem:[%s9711_s0 + $0x794] sm:$0xf]  ;;  %v5780_v34 = vld [vmem:[%s9711_s0 + $0x790] sm:$0xf]  ;;  %3271 = vrot.lane.b32.xlu0 %v3270_v31, %s6519_s10 }
  0x64   :  { %v3279_v35 = vld [vmem:[#allocation0 + $0xd03] ss:$8 sm:$0xf0]   ;;  %134 = vst [vmem:[#allocation0 + $0xf30] sm:$0xf] %v5778_v32 }
  0x65   :  { %139 = vst [vmem:[#allocation0 + $0xf28] sm:$0xf] %v5779_v33  ;;  %144 = vst [vmem:[#allocation0 + $0xf20] sm:$0xf] %v5780_v34  ;;  %v5781_v36 = vld [vmem:[%s9711_s0 + $0x78c] sm:$0xf] }
  0x66   :  { %149 = vst [vmem:[#allocation0 + $0xf18] sm:$0xf] %v5781_v36  ;;  %v5782_v37 = vld [vmem:[%s9711_s0 + $0x788] sm:$0xf]  ;;  %v5783_v38 = vld [vmem:[%s9711_s0 + $0x784] sm:$0xf] }
  0x67   :  { %v5784_v39 = vld [vmem:[%s9711_s0 + $0x780] sm:$0xf]  ;;  %154 = vst [vmem:[#allocation0 + $0xf10] sm:$0xf] %v5782_v37  ;;  %159 = vst [vmem:[#allocation0 + $0xf08] sm:$0xf] %v5783_v38 }
  0x68   :  { %v3277_v40 = vld [vmem:[#allocation0 + $0xd03] ss:$8 sm:$0xf]   ;;  %164 = vst [vmem:[#allocation0 + $0xf00] sm:$0xf] %v5784_v39 }
  0x69   :  { %v6249_v41 = vld [vmem:[%s9711_s0 + $0x3c] sm:$0xf]  ;;  %v3281_v42 = vsel %vm2563_vm0, %v3279_v35, %v3277_v40  ;;  %v3290_v43 = vld [vmem:[#allocation0 + $0xe03] ss:$8 sm:$0xf0]  }
  0x6a   :  { %2489 = vst [vmem:[#allocation0 + $0x78] sm:$0xf] %v6249_v41  ;;  %v6250_v44 = vld [vmem:[%s9711_s0 + $0x38] sm:$0xf]  ;;  %3282 = vrot.lane.b32.xlu1 %v3281_v42, %s6519_s10  ;;  %v6251_v45 = vld [vmem:[%s9711_s0 + $0x34] sm:$0xf] }
  0x6b   :  { %2494 = vst [vmem:[#allocation0 + $0x70] sm:$0xf] %v6250_v44  ;;  %v6252_v46 = vld [vmem:[%s9711_s0 + $0x30] sm:$0xf]  ;;  %v6253_v47 = vld [vmem:[%s9711_s0 + $0x2c] sm:$0xf] }
  0x6c   :  { %v3288_v48 = vld [vmem:[#allocation0 + $0xe03] ss:$8 sm:$0xf]   ;;  %2499 = vst [vmem:[#allocation0 + $0x68] sm:$0xf] %v6251_v45 }
  0x6d   :  { %2504 = vst [vmem:[#allocation0 + $0x60] sm:$0xf] %v6252_v46  ;;  %2509 = vst [vmem:[#allocation0 + $0x58] sm:$0xf] %v6253_v47  ;;  %v6254_v49 = vld [vmem:[%s9711_s0 + $0x28] sm:$0xf]  ;;  %v3292_v50 = vsel %vm2563_vm0, %v3290_v43, %v3288_v48 }
  0x6e   :  { %2514 = vst [vmem:[#allocation0 + $0x50] sm:$0xf] %v6254_v49  ;;  %v6255_v51 = vld [vmem:[%s9711_s0 + $0x24] sm:$0xf]  ;;  %v6256_v52 = vld [vmem:[%s9711_s0 + $0x20] sm:$0xf]  ;;  %3293 = vrot.lane.b32.xlu0 %v3292_v50, %s6519_s10 }
  0x6f   :  { %v6217_v53 = vld [vmem:[%s9711_s0 + $0xbc] sm:$0xf]  ;;  %v3301_v54 = vld [vmem:[#allocation0 + $0xf03] ss:$8 sm:$0xf0]  }
  0x70   :  { %2519 = vst [vmem:[#allocation0 + $0x48] sm:$0xf] %v6255_v51  ;;  %2524 = vst [vmem:[#allocation0 + $0x40] sm:$0xf] %v6256_v52  ;;  %v6218_v55 = vld [vmem:[%s9711_s0 + $0xb8] sm:$0xf] }
  0x71   :  { %2329 = vst [vmem:[#allocation0 + $0x178] sm:$0xf] %v6217_v53  ;;  %2334 = vst [vmem:[#allocation0 + $0x170] sm:$0xf] %v6218_v55  ;;  %v6219_v56 = vld [vmem:[%s9711_s0 + $0xb4] sm:$0xf] }
  0x72   :  { %v6220_v57 = vld [vmem:[%s9711_s0 + $0xb0] sm:$0xf]  ;;  %v6221_v58 = vld [vmem:[%s9711_s0 + $0xac] sm:$0xf]  ;;  %2339 = vst [vmem:[#allocation0 + $0x168] sm:$0xf] %v6219_v56 }
  0x73   :  { %v3299_v59 = vld [vmem:[#allocation0 + $0xf03] ss:$8 sm:$0xf]   ;;  %2344 = vst [vmem:[#allocation0 + $0x160] sm:$0xf] %v6220_v57 }
  0x74   :  { %2349 = vst [vmem:[#allocation0 + $0x158] sm:$0xf] %v6221_v58  ;;  %v6222_v60 = vld [vmem:[%s9711_s0 + $0xa8] sm:$0xf]  ;;  %v3303_v61 = vsel %vm2563_vm0, %v3301_v54, %v3299_v59  ;;  %v6223_v62 = vld [vmem:[%s9711_s0 + $0xa4] sm:$0xf] }
  0x75   :  { %2354 = vst [vmem:[#allocation0 + $0x150] sm:$0xf] %v6222_v60  ;;  %v6224_v63 = vld [vmem:[%s9711_s0 + $0xa0] sm:$0xf]  ;;  %v6185_v0 = vld [vmem:[%s9711_s0 + $0x13c] sm:$0xf]  ;;  %3304 = vrot.lane.b32.xlu1 %v3303_v61, %s6519_s10 }
  0x76   :  { %2359 = vst [vmem:[#allocation0 + $0x148] sm:$0xf] %v6223_v62  ;;  %2364 = vst [vmem:[#allocation0 + $0x140] sm:$0xf] %v6224_v63  ;;  %v6186_v1 = vld [vmem:[%s9711_s0 + $0x138] sm:$0xf] }
  0x77   :  { %2169 = vst [vmem:[#allocation0 + $0x278] sm:$0xf] %v6185_v0  ;;  %v6187_v2 = vld [vmem:[%s9711_s0 + $0x134] sm:$0xf]  ;;  %v6188_v3 = vld [vmem:[%s9711_s0 + $0x130] sm:$0xf] }
  0x78   :  { %v3312_v4 = vld [vmem:[#allocation0 + $0x43] ss:$8 sm:$0xf0]   ;;  %2174 = vst [vmem:[#allocation0 + $0x270] sm:$0xf] %v6186_v1 }
  0x79   :  { %2179 = vst [vmem:[#allocation0 + $0x268] sm:$0xf] %v6187_v2  ;;  %2184 = vst [vmem:[#allocation0 + $0x260] sm:$0xf] %v6188_v3  ;;  %v6189_v5 = vld [vmem:[%s9711_s0 + $0x12c] sm:$0xf] }
  0x7a   :  { %2189 = vst [vmem:[#allocation0 + $0x258] sm:$0xf] %v6189_v5  ;;  %v6190_v6 = vld [vmem:[%s9711_s0 + $0x128] sm:$0xf]  ;;  %v6191_v7 = vld [vmem:[%s9711_s0 + $0x124] sm:$0xf] }
  0x7b   :  { %v6192_v8 = vld [vmem:[%s9711_s0 + $0x120] sm:$0xf]  ;;  %2194 = vst [vmem:[#allocation0 + $0x250] sm:$0xf] %v6190_v6  ;;  %2199 = vst [vmem:[#allocation0 + $0x248] sm:$0xf] %v6191_v7 }
  0x7c   :  { %v3310_v9 = vld [vmem:[#allocation0 + $0x43] ss:$8 sm:$0xf]   ;;  %2204 = vst [vmem:[#allocation0 + $0x240] sm:$0xf] %v6192_v8 }
  0x7d   :  { %v6153_v10 = vld [vmem:[%s9711_s0 + $0x1bc] sm:$0xf]  ;;  %v3314_v11 = vsel %vm2563_vm0, %v3312_v4, %v3310_v9  ;;  %v6154_v12 = vld [vmem:[%s9711_s0 + $0x1b8] sm:$0xf]  ;;  %v6155_v13 = vld [vmem:[%s9711_s0 + $0x1b4] sm:$0xf] }
  0x7e   :  { %2009 = vst [vmem:[#allocation0 + $0x378] sm:$0xf] %v6153_v10  ;;  %v6156_v14 = vld [vmem:[%s9711_s0 + $0x1b0] sm:$0xf]  ;;  %3315 = vrot.lane.b32.xlu0 %v3314_v11, %s6519_s10  ;;  %2014 = vst [vmem:[#allocation0 + $0x370] sm:$0xf] %v6154_v12 }
  0x7f   :  { %v3323_v15 = vld [vmem:[#allocation0 + $0x143] ss:$8 sm:$0xf0]   ;;  %2019 = vst [vmem:[#allocation0 + $0x368] sm:$0xf] %v6155_v13 }
  0x80   :  { %2024 = vst [vmem:[#allocation0 + $0x360] sm:$0xf] %v6156_v14  ;;  %v6157_v16 = vld [vmem:[%s9711_s0 + $0x1ac] sm:$0xf]  ;;  %v6158_v17 = vld [vmem:[%s9711_s0 + $0x1a8] sm:$0xf] }
  0x81   :  { %2029 = vst [vmem:[#allocation0 + $0x358] sm:$0xf] %v6157_v16  ;;  %v6159_v18 = vld [vmem:[%s9711_s0 + $0x1a4] sm:$0xf]  ;;  %v6160_v19 = vld [vmem:[%s9711_s0 + $0x1a0] sm:$0xf] }
  0x82   :  { %v3321_v20 = vld [vmem:[#allocation0 + $0x143] ss:$8 sm:$0xf]   ;;  %2034 = vst [vmem:[#allocation0 + $0x350] sm:$0xf] %v6158_v17 }
  0x83   :  { %2039 = vst [vmem:[#allocation0 + $0x348] sm:$0xf] %v6159_v18  ;;  %2044 = vst [vmem:[#allocation0 + $0x340] sm:$0xf] %v6160_v19  ;;  %v6121_v21 = vld [vmem:[%s9711_s0 + $0x23c] sm:$0xf]  ;;  %v3325_v22 = vsel %vm2563_vm0, %v3323_v15, %v3321_v20 }
  0x84   :  { %v3334_v23 = vld [vmem:[#allocation0 + $0x243] ss:$8 sm:$0xf0]   ;;  %1849 = vst [vmem:[#allocation0 + $0x478] sm:$0xf] %v6121_v21  ;;  %3326 = vrot.lane.b32.xlu1 %v3325_v22, %s6519_s10 }
  0x85   :  { %v6122_v24 = vld [vmem:[%s9711_s0 + $0x238] sm:$0xf]  ;;  %v6123_v25 = vld [vmem:[%s9711_s0 + $0x234] sm:$0xf]  ;;  %v6124_v26 = vld [vmem:[%s9711_s0 + $0x230] sm:$0xf] }
  0x86   :  { %1854 = vst [vmem:[#allocation0 + $0x470] sm:$0xf] %v6122_v24  ;;  %v6125_v27 = vld [vmem:[%s9711_s0 + $0x22c] sm:$0xf]  ;;  %1859 = vst [vmem:[#allocation0 + $0x468] sm:$0xf] %v6123_v25 }
  0x87   :  { %v3332_v28 = vld [vmem:[#allocation0 + $0x243] ss:$8 sm:$0xf]   ;;  %1864 = vst [vmem:[#allocation0 + $0x460] sm:$0xf] %v6124_v26 }
  0x88   :  { %1869 = vst [vmem:[#allocation0 + $0x458] sm:$0xf] %v6125_v27  ;;  %v6126_v29 = vld [vmem:[%s9711_s0 + $0x228] sm:$0xf]  ;;  %v3336_v30 = vsel %vm2563_vm0, %v3334_v23, %v3332_v28  ;;  %v6127_v31 = vld [vmem:[%s9711_s0 + $0x224] sm:$0xf] }
  0x89   :  { %1874 = vst [vmem:[#allocation0 + $0x450] sm:$0xf] %v6126_v29  ;;  %v6128_v32 = vld [vmem:[%s9711_s0 + $0x220] sm:$0xf]  ;;  %v6089_v33 = vld [vmem:[%s9711_s0 + $0x2bc] sm:$0xf]  ;;  %3337 = vrot.lane.b32.xlu0 %v3336_v30, %s6519_s10 }
  0x8a   :  { %v3345_v34 = vld [vmem:[#allocation0 + $0x343] ss:$8 sm:$0xf0]   ;;  %1879 = vst [vmem:[#allocation0 + $0x448] sm:$0xf] %v6127_v31 }
  0x8b   :  { %1884 = vst [vmem:[#allocation0 + $0x440] sm:$0xf] %v6128_v32  ;;  %1689 = vst [vmem:[#allocation0 + $0x578] sm:$0xf] %v6089_v33  ;;  %v6090_v35 = vld [vmem:[%s9711_s0 + $0x2b8] sm:$0xf] }
  0x8c   :  { %1694 = vst [vmem:[#allocation0 + $0x570] sm:$0xf] %v6090_v35  ;;  %v6091_v36 = vld [vmem:[%s9711_s0 + $0x2b4] sm:$0xf]  ;;  %v6092_v37 = vld [vmem:[%s9711_s0 + $0x2b0] sm:$0xf] }
  0x8d   :  { %v6093_v38 = vld [vmem:[%s9711_s0 + $0x2ac] sm:$0xf]  ;;  %v3343_v39 = vld [vmem:[#allocation0 + $0x343] ss:$8 sm:$0xf]  }
  0x8e   :  { %1699 = vst [vmem:[#allocation0 + $0x568] sm:$0xf] %v6091_v36  ;;  %1704 = vst [vmem:[#allocation0 + $0x560] sm:$0xf] %v6092_v37  ;;  %v6094_v40 = vld [vmem:[%s9711_s0 + $0x2a8] sm:$0xf]  ;;  %v3347_v41 = vsel %vm2563_vm0, %v3345_v34, %v3343_v39 }
  0x8f   :  { %1709 = vst [vmem:[#allocation0 + $0x558] sm:$0xf] %v6093_v38  ;;  %1714 = vst [vmem:[#allocation0 + $0x550] sm:$0xf] %v6094_v40  ;;  %v6095_v42 = vld [vmem:[%s9711_s0 + $0x2a4] sm:$0xf]  ;;  %3348 = vrot.lane.b32.xlu1 %v3347_v41, %s6519_s10 }
  0x90   :  { %v6096_v43 = vld [vmem:[%s9711_s0 + $0x2a0] sm:$0xf]  ;;  %v6057_v44 = vld [vmem:[%s9711_s0 + $0x33c] sm:$0xf]  ;;  %1719 = vst [vmem:[#allocation0 + $0x548] sm:$0xf] %v6095_v42 }
  0x91   :  { %1724 = vst [vmem:[#allocation0 + $0x540] sm:$0xf] %v6096_v43  ;;  %1529 = vst [vmem:[#allocation0 + $0x678] sm:$0xf] %v6057_v44  ;;  %v6058_v45 = vld [vmem:[%s9711_s0 + $0x338] sm:$0xf] }
  0x92   :  { %v6059_v46 = vld [vmem:[%s9711_s0 + $0x334] sm:$0xf]  ;;  %v6060_v47 = vld [vmem:[%s9711_s0 + $0x330] sm:$0xf]  ;;  %1534 = vst [vmem:[#allocation0 + $0x670] sm:$0xf] %v6058_v45 }
  0x93   :  { %v3356_v48 = vld [vmem:[#allocation0 + $0x443] ss:$8 sm:$0xf0]   ;;  %1539 = vst [vmem:[#allocation0 + $0x668] sm:$0xf] %v6059_v46 }
  0x94   :  { %1544 = vst [vmem:[#allocation0 + $0x660] sm:$0xf] %v6060_v47  ;;  %v6061_v49 = vld [vmem:[%s9711_s0 + $0x32c] sm:$0xf]  ;;  %v6062_v50 = vld [vmem:[%s9711_s0 + $0x328] sm:$0xf] }
  0x95   :  { %1549 = vst [vmem:[#allocation0 + $0x658] sm:$0xf] %v6061_v49  ;;  %v6063_v51 = vld [vmem:[%s9711_s0 + $0x324] sm:$0xf]  ;;  %v6064_v52 = vld [vmem:[%s9711_s0 + $0x320] sm:$0xf] }
  0x96   :  { %v3354_v53 = vld [vmem:[#allocation0 + $0x443] ss:$8 sm:$0xf]   ;;  %1554 = vst [vmem:[#allocation0 + $0x650] sm:$0xf] %v6062_v50 }
  0x97   :  { %1559 = vst [vmem:[#allocation0 + $0x648] sm:$0xf] %v6063_v51  ;;  %1564 = vst [vmem:[#allocation0 + $0x640] sm:$0xf] %v6064_v52  ;;  %v6025_v54 = vld [vmem:[%s9711_s0 + $0x3bc] sm:$0xf]  ;;  %v3358_v55 = vsel %vm2563_vm0, %v3356_v48, %v3354_v53 }
  0x98   :  { %1369 = vst [vmem:[#allocation0 + $0x778] sm:$0xf] %v6025_v54  ;;  %v6026_v56 = vld [vmem:[%s9711_s0 + $0x3b8] sm:$0xf]  ;;  %v6027_v57 = vld [vmem:[%s9711_s0 + $0x3b4] sm:$0xf]  ;;  %3359 = vrot.lane.b32.xlu0 %v3358_v55, %s6519_s10 }
  0x99   :  { %v6028_v58 = vld [vmem:[%s9711_s0 + $0x3b0] sm:$0xf]  ;;  %1374 = vst [vmem:[#allocation0 + $0x770] sm:$0xf] %v6026_v56  ;;  %1379 = vst [vmem:[#allocation0 + $0x768] sm:$0xf] %v6027_v57 }
  0x9a   :  { %v3367_v59 = vld [vmem:[#allocation0 + $0x543] ss:$8 sm:$0xf0]   ;;  %1384 = vst [vmem:[#allocation0 + $0x760] sm:$0xf] %v6028_v58 }
  0x9b   :  { %v6029_v60 = vld [vmem:[%s9711_s0 + $0x3ac] sm:$0xf]  ;;  %v6030_v61 = vld [vmem:[%s9711_s0 + $0x3a8] sm:$0xf]  ;;  %v6031_v62 = vld [vmem:[%s9711_s0 + $0x3a4] sm:$0xf] }
  0x9c   :  { %1389 = vst [vmem:[#allocation0 + $0x758] sm:$0xf] %v6029_v60  ;;  %v6032_v63 = vld [vmem:[%s9711_s0 + $0x3a0] sm:$0xf]  ;;  %1394 = vst [vmem:[#allocation0 + $0x750] sm:$0xf] %v6030_v61 }
  0x9d   :  { %v3365_v0 = vld [vmem:[#allocation0 + $0x543] ss:$8 sm:$0xf]   ;;  %1399 = vst [vmem:[#allocation0 + $0x748] sm:$0xf] %v6031_v62 }
  0x9e   :  { %1404 = vst [vmem:[#allocation0 + $0x740] sm:$0xf] %v6032_v63  ;;  %v5993_v1 = vld [vmem:[%s9711_s0 + $0x43c] sm:$0xf]  ;;  %v3369_v2 = vsel %vm2563_vm0, %v3367_v59, %v3365_v0  ;;  %v5994_v4 = vld [vmem:[%s9711_s0 + $0x438] sm:$0xf] }
  0x9f   :  { %v3378_v3 = vld [vmem:[#allocation0 + $0x643] ss:$8 sm:$0xf0]   ;;  %1209 = vst [vmem:[#allocation0 + $0x878] sm:$0xf] %v5993_v1  ;;  %3370 = vrot.lane.b32.xlu1 %v3369_v2, %s6519_s10 }
  0xa0   :  { %1214 = vst [vmem:[#allocation0 + $0x870] sm:$0xf] %v5994_v4  ;;  %v5995_v5 = vld [vmem:[%s9711_s0 + $0x434] sm:$0xf]  ;;  %v5996_v6 = vld [vmem:[%s9711_s0 + $0x430] sm:$0xf] }
  0xa1   :  { %v5997_v7 = vld [vmem:[%s9711_s0 + $0x42c] sm:$0xf]  ;;  %v3376_v8 = vld [vmem:[#allocation0 + $0x643] ss:$8 sm:$0xf]  }
  0xa2   :  { %1219 = vst [vmem:[#allocation0 + $0x868] sm:$0xf] %v5995_v5  ;;  %1224 = vst [vmem:[#allocation0 + $0x860] sm:$0xf] %v5996_v6  ;;  %v5998_v9 = vld [vmem:[%s9711_s0 + $0x428] sm:$0xf]  ;;  %v3380_v10 = vsel %vm2563_vm0, %v3378_v3, %v3376_v8 }
  0xa3   :  { %1229 = vst [vmem:[#allocation0 + $0x858] sm:$0xf] %v5997_v7  ;;  %1234 = vst [vmem:[#allocation0 + $0x850] sm:$0xf] %v5998_v9  ;;  %v5999_v11 = vld [vmem:[%s9711_s0 + $0x424] sm:$0xf]  ;;  %3381 = vrot.lane.b32.xlu0 %v3380_v10, %s6519_s10 }
  0xa4   :  { %v6000_v12 = vld [vmem:[%s9711_s0 + $0x420] sm:$0xf]  ;;  %v5961_v13 = vld [vmem:[%s9711_s0 + $0x4bc] sm:$0xf]  ;;  %1239 = vst [vmem:[#allocation0 + $0x848] sm:$0xf] %v5999_v11 }
  0xa5   :  { %v3389_v14 = vld [vmem:[#allocation0 + $0x743] ss:$8 sm:$0xf0]   ;;  %1244 = vst [vmem:[#allocation0 + $0x840] sm:$0xf] %v6000_v12 }
  0xa6   :  { %1049 = vst [vmem:[#allocation0 + $0x978] sm:$0xf] %v5961_v13  ;;  %v5962_v15 = vld [vmem:[%s9711_s0 + $0x4b8] sm:$0xf]  ;;  %v5963_v16 = vld [vmem:[%s9711_s0 + $0x4b4] sm:$0xf] }
  0xa7   :  { %1054 = vst [vmem:[#allocation0 + $0x970] sm:$0xf] %v5962_v15  ;;  %v5964_v17 = vld [vmem:[%s9711_s0 + $0x4b0] sm:$0xf]  ;;  %v5965_v18 = vld [vmem:[%s9711_s0 + $0x4ac] sm:$0xf] }
  0xa8   :  { %v3387_v19 = vld [vmem:[#allocation0 + $0x743] ss:$8 sm:$0xf]   ;;  %1059 = vst [vmem:[#allocation0 + $0x968] sm:$0xf] %v5963_v16 }
  0xa9   :  { %1064 = vst [vmem:[#allocation0 + $0x960] sm:$0xf] %v5964_v17  ;;  %1069 = vst [vmem:[#allocation0 + $0x958] sm:$0xf] %v5965_v18  ;;  %v5966_v20 = vld [vmem:[%s9711_s0 + $0x4a8] sm:$0xf]  ;;  %v3391_v21 = vsel %vm2563_vm0, %v3389_v14, %v3387_v19 }
  0xaa   :  { %1074 = vst [vmem:[#allocation0 + $0x950] sm:$0xf] %v5966_v20  ;;  %v5967_v22 = vld [vmem:[%s9711_s0 + $0x4a4] sm:$0xf]  ;;  %v5968_v23 = vld [vmem:[%s9711_s0 + $0x4a0] sm:$0xf]  ;;  %3392 = vrot.lane.b32.xlu1 %v3391_v21, %s6519_s10 }
  0xab   :  { %v5929_v24 = vld [vmem:[%s9711_s0 + $0x53c] sm:$0xf]  ;;  %1079 = vst [vmem:[#allocation0 + $0x948] sm:$0xf] %v5967_v22  ;;  %1084 = vst [vmem:[#allocation0 + $0x940] sm:$0xf] %v5968_v23 }
  0xac   :  { %889 = vst [vmem:[#allocation0 + $0xa78] sm:$0xf] %v5929_v24  ;;  %v5930_v25 = vld [vmem:[%s9711_s0 + $0x538] sm:$0xf]  ;;  %v5931_v26 = vld [vmem:[%s9711_s0 + $0x534] sm:$0xf] }
  0xad   :  { %v5932_v27 = vld [vmem:[%s9711_s0 + $0x530] sm:$0xf]  ;;  %894 = vst [vmem:[#allocation0 + $0xa70] sm:$0xf] %v5930_v25  ;;  %899 = vst [vmem:[#allocation0 + $0xa68] sm:$0xf] %v5931_v26 }
  0xae   :  { %v3400_v28 = vld [vmem:[#allocation0 + $0x843] ss:$8 sm:$0xf0]   ;;  %904 = vst [vmem:[#allocation0 + $0xa60] sm:$0xf] %v5932_v27 }
  0xaf   :  { %v5933_v29 = vld [vmem:[%s9711_s0 + $0x52c] sm:$0xf]  ;;  %v5934_v30 = vld [vmem:[%s9711_s0 + $0x528] sm:$0xf]  ;;  %v5935_v31 = vld [vmem:[%s9711_s0 + $0x524] sm:$0xf] }
  0xb0   :  { %909 = vst [vmem:[#allocation0 + $0xa58] sm:$0xf] %v5933_v29  ;;  %v5936_v32 = vld [vmem:[%s9711_s0 + $0x520] sm:$0xf]  ;;  %914 = vst [vmem:[#allocation0 + $0xa50] sm:$0xf] %v5934_v30  ;;  %v7365_v29 = vpop.permute.xlu0 %3140  }
  0xb1   :  { %v3398_v33 = vld [vmem:[#allocation0 + $0x843] ss:$8 sm:$0xf]   ;;  %919 = vst [vmem:[#allocation0 + $0xa48] sm:$0xf] %v5935_v31 }
  0xb2   :  { %924 = vst [vmem:[#allocation0 + $0xa40] sm:$0xf] %v5936_v32  ;;  %v5897_v34 = vld [vmem:[%s9711_s0 + $0x5bc] sm:$0xf]  ;;  %v3402_v35 = vsel %vm2563_vm0, %v3400_v28, %v3398_v33  ;;  %v5898_v36 = vld [vmem:[%s9711_s0 + $0x5b8] sm:$0xf] }
  0xb3   :  { %729 = vst [vmem:[#allocation0 + $0xb78] sm:$0xf] %v5897_v34  ;;  %v5899_v37 = vld [vmem:[%s9711_s0 + $0x5b4] sm:$0xf]  ;;  %v5900_v38 = vld [vmem:[%s9711_s0 + $0x5b0] sm:$0xf]  ;;  %3403 = vrot.lane.b32.xlu0 %v3402_v35, %s6519_s10 }
  0xb4   :  { %v3411_v39 = vld [vmem:[#allocation0 + $0x943] ss:$8 sm:$0xf0]   ;;  %734 = vst [vmem:[#allocation0 + $0xb70] sm:$0xf] %v5898_v36 }
  0xb5   :  { %739 = vst [vmem:[#allocation0 + $0xb68] sm:$0xf] %v5899_v37  ;;  %744 = vst [vmem:[#allocation0 + $0xb60] sm:$0xf] %v5900_v38  ;;  %v5901_v40 = vld [vmem:[%s9711_s0 + $0x5ac] sm:$0xf] }
  0xb6   :  { %749 = vst [vmem:[#allocation0 + $0xb58] sm:$0xf] %v5901_v40  ;;  %v5902_v41 = vld [vmem:[%s9711_s0 + $0x5a8] sm:$0xf]  ;;  %v5903_v42 = vld [vmem:[%s9711_s0 + $0x5a4] sm:$0xf] }
  0xb7   :  { %v5904_v43 = vld [vmem:[%s9711_s0 + $0x5a0] sm:$0xf]  ;;  %754 = vst [vmem:[#allocation0 + $0xb50] sm:$0xf] %v5902_v41  ;;  %759 = vst [vmem:[#allocation0 + $0xb48] sm:$0xf] %v5903_v42 }
  0xb8   :  { %v3409_v44 = vld [vmem:[#allocation0 + $0x943] ss:$8 sm:$0xf]   ;;  %764 = vst [vmem:[#allocation0 + $0xb40] sm:$0xf] %v5904_v43 }
  0xb9   :  { %v5865_v45 = vld [vmem:[%s9711_s0 + $0x63c] sm:$0xf]  ;;  %v3413_v46 = vsel %vm2563_vm0, %v3411_v39, %v3409_v44  ;;  %v3422_v47 = vld [vmem:[#allocation0 + $0xa43] ss:$8 sm:$0xf0]   ;;  %v7390_v39 = vpop.permute.xlu1 %3161  }
  0xba   :  { %569 = vst [vmem:[#allocation0 + $0xc78] sm:$0xf] %v5865_v45  ;;  %v5866_v48 = vld [vmem:[%s9711_s0 + $0x638] sm:$0xf]  ;;  %3414 = vrot.lane.b32.xlu1 %v3413_v46, %s6519_s10  ;;  %v5867_v49 = vld [vmem:[%s9711_s0 + $0x634] sm:$0xf] }
  0xbb   :  { %574 = vst [vmem:[#allocation0 + $0xc70] sm:$0xf] %v5866_v48  ;;  %v5868_v50 = vld [vmem:[%s9711_s0 + $0x630] sm:$0xf]  ;;  %v5869_v51 = vld [vmem:[%s9711_s0 + $0x62c] sm:$0xf] }
  0xbc   :  { %v3420_v52 = vld [vmem:[#allocation0 + $0xa43] ss:$8 sm:$0xf]   ;;  %579 = vst [vmem:[#allocation0 + $0xc68] sm:$0xf] %v5867_v49 }
  0xbd   :  { %584 = vst [vmem:[#allocation0 + $0xc60] sm:$0xf] %v5868_v50  ;;  %589 = vst [vmem:[#allocation0 + $0xc58] sm:$0xf] %v5869_v51  ;;  %v5870_v53 = vld [vmem:[%s9711_s0 + $0x628] sm:$0xf]  ;;  %v3424_v54 = vsel %vm2563_vm0, %v3422_v47, %v3420_v52  ;;  %v7408_v47 = vpop.permute.xlu0 %3150  }
  0xbe   :  { %594 = vst [vmem:[#allocation0 + $0xc50] sm:$0xf] %v5870_v53  ;;  %v5871_v55 = vld [vmem:[%s9711_s0 + $0x624] sm:$0xf]  ;;  %v5872_v56 = vld [vmem:[%s9711_s0 + $0x620] sm:$0xf]  ;;  %3425 = vrot.lane.b32.xlu0 %v3424_v54, %s6519_s10 }
  0xbf   :  { %v5833_v57 = vld [vmem:[%s9711_s0 + $0x6bc] sm:$0xf]  ;;  %v3433_v58 = vld [vmem:[#allocation0 + $0xb43] ss:$8 sm:$0xf0]  }
  0xc0   :  { %599 = vst [vmem:[#allocation0 + $0xc48] sm:$0xf] %v5871_v55  ;;  %604 = vst [vmem:[#allocation0 + $0xc40] sm:$0xf] %v5872_v56  ;;  %v5834_v59 = vld [vmem:[%s9711_s0 + $0x6b8] sm:$0xf] }
  0xc1   :  { %409 = vst [vmem:[#allocation0 + $0xd78] sm:$0xf] %v5833_v57  ;;  %414 = vst [vmem:[#allocation0 + $0xd70] sm:$0xf] %v5834_v59  ;;  %v5835_v60 = vld [vmem:[%s9711_s0 + $0x6b4] sm:$0xf] }
  0xc2   :  { %v5836_v61 = vld [vmem:[%s9711_s0 + $0x6b0] sm:$0xf]  ;;  %v5837_v62 = vld [vmem:[%s9711_s0 + $0x6ac] sm:$0xf]  ;;  %419 = vst [vmem:[#allocation0 + $0xd68] sm:$0xf] %v5835_v60  ;;  %v7442_v60 = vpop.permute.xlu1 %3172  }
  0xc3   :  { %v3431_v63 = vld [vmem:[#allocation0 + $0xb43] ss:$8 sm:$0xf]   ;;  %424 = vst [vmem:[#allocation0 + $0xd60] sm:$0xf] %v5836_v61 }
  0xc4   :  { %429 = vst [vmem:[#allocation0 + $0xd58] sm:$0xf] %v5837_v62  ;;  %v5838_v0 = vld [vmem:[%s9711_s0 + $0x6a8] sm:$0xf]  ;;  %v3435_v1 = vsel %vm2563_vm0, %v3433_v58, %v3431_v63  ;;  %v5839_v2 = vld [vmem:[%s9711_s0 + $0x6a4] sm:$0xf] }
  0xc5   :  { %434 = vst [vmem:[#allocation0 + $0xd50] sm:$0xf] %v5838_v0  ;;  %v5840_v3 = vld [vmem:[%s9711_s0 + $0x6a0] sm:$0xf]  ;;  %v5801_v4 = vld [vmem:[%s9711_s0 + $0x73c] sm:$0xf]  ;;  %3436 = vrot.lane.b32.xlu1 %v3435_v1, %s6519_s10 }
  0xc6   :  { %439 = vst [vmem:[#allocation0 + $0xd48] sm:$0xf] %v5839_v2  ;;  %444 = vst [vmem:[#allocation0 + $0xd40] sm:$0xf] %v5840_v3  ;;  %v5802_v5 = vld [vmem:[%s9711_s0 + $0x738] sm:$0xf] }
  0xc7   :  { %249 = vst [vmem:[#allocation0 + $0xe78] sm:$0xf] %v5801_v4  ;;  %v5803_v6 = vld [vmem:[%s9711_s0 + $0x734] sm:$0xf]  ;;  %v5804_v7 = vld [vmem:[%s9711_s0 + $0x730] sm:$0xf] }
  0xc8   :  { %v3444_v8 = vld [vmem:[#allocation0 + $0xc43] ss:$8 sm:$0xf0]   ;;  %254 = vst [vmem:[#allocation0 + $0xe70] sm:$0xf] %v5802_v5 }
  0xc9   :  { %259 = vst [vmem:[#allocation0 + $0xe68] sm:$0xf] %v5803_v6  ;;  %264 = vst [vmem:[#allocation0 + $0xe60] sm:$0xf] %v5804_v7  ;;  %v5805_v9 = vld [vmem:[%s9711_s0 + $0x72c] sm:$0xf] }
  0xca   :  { %269 = vst [vmem:[#allocation0 + $0xe58] sm:$0xf] %v5805_v9  ;;  %v5806_v10 = vld [vmem:[%s9711_s0 + $0x728] sm:$0xf]  ;;  %v5807_v11 = vld [vmem:[%s9711_s0 + $0x724] sm:$0xf] }
  0xcb   :  { %v5808_v12 = vld [vmem:[%s9711_s0 + $0x720] sm:$0xf]  ;;  %274 = vst [vmem:[#allocation0 + $0xe50] sm:$0xf] %v5806_v10  ;;  %279 = vst [vmem:[#allocation0 + $0xe48] sm:$0xf] %v5807_v11  ;;  %v7473_v10 = vpop.permute.xlu0 %3183  }
  0xcc   :  { %v3442_v13 = vld [vmem:[#allocation0 + $0xc43] ss:$8 sm:$0xf]   ;;  %284 = vst [vmem:[#allocation0 + $0xe40] sm:$0xf] %v5808_v12 }
  0xcd   :  { %v5769_v14 = vld [vmem:[%s9711_s0 + $0x7bc] sm:$0xf]  ;;  %v3446_v15 = vsel %vm2563_vm0, %v3444_v8, %v3442_v13  ;;  %v5770_v16 = vld [vmem:[%s9711_s0 + $0x7b8] sm:$0xf]  ;;  %v5771_v17 = vld [vmem:[%s9711_s0 + $0x7b4] sm:$0xf] }
  0xce   :  { %89 = vst [vmem:[#allocation0 + $0xf78] sm:$0xf] %v5769_v14  ;;  %v5772_v18 = vld [vmem:[%s9711_s0 + $0x7b0] sm:$0xf]  ;;  %3447 = vrot.lane.b32.xlu0 %v3446_v15, %s6519_s10  ;;  %94 = vst [vmem:[#allocation0 + $0xf70] sm:$0xf] %v5770_v16 }
  0xcf   :  { %v3455_v19 = vld [vmem:[#allocation0 + $0xd43] ss:$8 sm:$0xf0]   ;;  %99 = vst [vmem:[#allocation0 + $0xf68] sm:$0xf] %v5771_v17 }
  0xd0   :  { %104 = vst [vmem:[#allocation0 + $0xf60] sm:$0xf] %v5772_v18  ;;  %v5773_v20 = vld [vmem:[%s9711_s0 + $0x7ac] sm:$0xf]  ;;  %v5774_v21 = vld [vmem:[%s9711_s0 + $0x7a8] sm:$0xf] }
  0xd1   :  { %109 = vst [vmem:[#allocation0 + $0xf58] sm:$0xf] %v5773_v20  ;;  %v5775_v22 = vld [vmem:[%s9711_s0 + $0x7a4] sm:$0xf]  ;;  %v5776_v23 = vld [vmem:[%s9711_s0 + $0x7a0] sm:$0xf] }
  0xd2   :  { %v3453_v24 = vld [vmem:[#allocation0 + $0xd43] ss:$8 sm:$0xf]   ;;  %114 = vst [vmem:[#allocation0 + $0xf50] sm:$0xf] %v5774_v21 }
  0xd3   :  { %119 = vst [vmem:[#allocation0 + $0xf48] sm:$0xf] %v5775_v22  ;;  %124 = vst [vmem:[#allocation0 + $0xf40] sm:$0xf] %v5776_v23  ;;  %v6241_v25 = vld [vmem:[%s9711_s0 + $0x5c] sm:$0xf]  ;;  %v3457_v26 = vsel %vm2563_vm0, %v3455_v19, %v3453_v24  ;;  %v7502_v23 = vpop.permute.xlu1 %3194  }
  0xd4   :  { %v3466_v27 = vld [vmem:[#allocation0 + $0xe43] ss:$8 sm:$0xf0]   ;;  %2449 = vst [vmem:[#allocation0 + $0xb8] sm:$0xf] %v6241_v25  ;;  %3458 = vrot.lane.b32.xlu1 %v3457_v26, %s6519_s10 }
  0xd5   :  { %v6242_v28 = vld [vmem:[%s9711_s0 + $0x58] sm:$0xf]  ;;  %v6243_v30 = vld [vmem:[%s9711_s0 + $0x54] sm:$0xf]  ;;  %v6244_v31 = vld [vmem:[%s9711_s0 + $0x50] sm:$0xf] }
  0xd6   :  { %2454 = vst [vmem:[#allocation0 + $0xb0] sm:$0xf] %v6242_v28  ;;  %v6245_v32 = vld [vmem:[%s9711_s0 + $0x4c] sm:$0xf]  ;;  %2459 = vst [vmem:[#allocation0 + $0xa8] sm:$0xf] %v6243_v30 }
  0xd7   :  { %v3464_v33 = vld [vmem:[#allocation0 + $0xe43] ss:$8 sm:$0xf]   ;;  %2464 = vst [vmem:[#allocation0 + $0xa0] sm:$0xf] %v6244_v31 }
  0xd8   :  { %2469 = vst [vmem:[#allocation0 + $0x98] sm:$0xf] %v6245_v32  ;;  %v6246_v34 = vld [vmem:[%s9711_s0 + $0x48] sm:$0xf]  ;;  %v3468_v35 = vsel %vm2563_vm0, %v3466_v27, %v3464_v33  ;;  %v6247_v36 = vld [vmem:[%s9711_s0 + $0x44] sm:$0xf]  ;;  %v7520_v32 = vpop.permute.xlu0 %3205  }
  0xd9   :  { %2474 = vst [vmem:[#allocation0 + $0x90] sm:$0xf] %v6246_v34  ;;  %v6248_v37 = vld [vmem:[%s9711_s0 + $0x40] sm:$0xf]  ;;  %v6209_v38 = vld [vmem:[%s9711_s0 + $0xdc] sm:$0xf]  ;;  %3469 = vrot.lane.b32.xlu0 %v3468_v35, %s6519_s10 }
  0xda   :  { %v3477_v40 = vld [vmem:[#allocation0 + $0xf43] ss:$8 sm:$0xf0]   ;;  %2479 = vst [vmem:[#allocation0 + $0x88] sm:$0xf] %v6247_v36 }
  0xdb   :  { %2484 = vst [vmem:[#allocation0 + $0x80] sm:$0xf] %v6248_v37  ;;  %2289 = vst [vmem:[#allocation0 + $0x1b8] sm:$0xf] %v6209_v38  ;;  %v6210_v41 = vld [vmem:[%s9711_s0 + $0xd8] sm:$0xf] }
  0xdc   :  { %2294 = vst [vmem:[#allocation0 + $0x1b0] sm:$0xf] %v6210_v41  ;;  %v6211_v42 = vld [vmem:[%s9711_s0 + $0xd4] sm:$0xf]  ;;  %v6212_v43 = vld [vmem:[%s9711_s0 + $0xd0] sm:$0xf] }
  0xdd   :  { %v6213_v44 = vld [vmem:[%s9711_s0 + $0xcc] sm:$0xf]  ;;  %v3475_v45 = vld [vmem:[#allocation0 + $0xf43] ss:$8 sm:$0xf]  }
  0xde   :  { %2299 = vst [vmem:[#allocation0 + $0x1a8] sm:$0xf] %v6211_v42  ;;  %2304 = vst [vmem:[#allocation0 + $0x1a0] sm:$0xf] %v6212_v43  ;;  %v6214_v46 = vld [vmem:[%s9711_s0 + $0xc8] sm:$0xf]  ;;  %v3479_v48 = vsel %vm2563_vm0, %v3477_v40, %v3475_v45 }
  0xdf   :  { %2309 = vst [vmem:[#allocation0 + $0x198] sm:$0xf] %v6213_v44  ;;  %2314 = vst [vmem:[#allocation0 + $0x190] sm:$0xf] %v6214_v46  ;;  %v6215_v49 = vld [vmem:[%s9711_s0 + $0xc4] sm:$0xf]  ;;  %3480 = vrot.lane.b32.xlu1 %v3479_v48, %s6519_s10  ;;  %v7554_v46 = vpop.permute.xlu1 %3216  }
  0xe0   :  { %v6216_v50 = vld [vmem:[%s9711_s0 + $0xc0] sm:$0xf]  ;;  %v6177_v51 = vld [vmem:[%s9711_s0 + $0x15c] sm:$0xf]  ;;  %2319 = vst [vmem:[#allocation0 + $0x188] sm:$0xf] %v6215_v49 }
  0xe1   :  { %2324 = vst [vmem:[#allocation0 + $0x180] sm:$0xf] %v6216_v50  ;;  %2129 = vst [vmem:[#allocation0 + $0x2b8] sm:$0xf] %v6177_v51  ;;  %v6178_v52 = vld [vmem:[%s9711_s0 + $0x158] sm:$0xf] }
  0xe2   :  { %v6179_v53 = vld [vmem:[%s9711_s0 + $0x154] sm:$0xf]  ;;  %v6180_v54 = vld [vmem:[%s9711_s0 + $0x150] sm:$0xf]  ;;  %2134 = vst [vmem:[#allocation0 + $0x2b0] sm:$0xf] %v6178_v52 }
  0xe3   :  { %v3488_v55 = vld [vmem:[#allocation0 + $0x83] ss:$8 sm:$0xf0]   ;;  %2139 = vst [vmem:[#allocation0 + $0x2a8] sm:$0xf] %v6179_v53 }
  0xe4   :  { %2144 = vst [vmem:[#allocation0 + $0x2a0] sm:$0xf] %v6180_v54  ;;  %v6181_v56 = vld [vmem:[%s9711_s0 + $0x14c] sm:$0xf]  ;;  %v6182_v57 = vld [vmem:[%s9711_s0 + $0x148] sm:$0xf] }
  0xe5   :  { %2149 = vst [vmem:[#allocation0 + $0x298] sm:$0xf] %v6181_v56  ;;  %v6183_v58 = vld [vmem:[%s9711_s0 + $0x144] sm:$0xf]  ;;  %v6184_v59 = vld [vmem:[%s9711_s0 + $0x140] sm:$0xf] }
  0xe6   :  { %v3486_v61 = vld [vmem:[#allocation0 + $0x83] ss:$8 sm:$0xf]   ;;  %2154 = vst [vmem:[#allocation0 + $0x290] sm:$0xf] %v6182_v57 }
  0xe7   :  { %2159 = vst [vmem:[#allocation0 + $0x288] sm:$0xf] %v6183_v58  ;;  %2164 = vst [vmem:[#allocation0 + $0x280] sm:$0xf] %v6184_v59  ;;  %v6145_v62 = vld [vmem:[%s9711_s0 + $0x1dc] sm:$0xf]  ;;  %v3490_v63 = vsel %vm2563_vm0, %v3488_v55, %v3486_v61 }
  0xe8   :  { %1969 = vst [vmem:[#allocation0 + $0x3b8] sm:$0xf] %v6145_v62  ;;  %v6146_v0 = vld [vmem:[%s9711_s0 + $0x1d8] sm:$0xf]  ;;  %v6147_v1 = vld [vmem:[%s9711_s0 + $0x1d4] sm:$0xf]  ;;  %3491 = vrot.lane.b32.xlu0 %v3490_v63, %s6519_s10  ;;  %v7585_v62 = vpop.permute.xlu0 %3227  }
  0xe9   :  { %v6148_v2 = vld [vmem:[%s9711_s0 + $0x1d0] sm:$0xf]  ;;  %1974 = vst [vmem:[#allocation0 + $0x3b0] sm:$0xf] %v6146_v0  ;;  %1979 = vst [vmem:[#allocation0 + $0x3a8] sm:$0xf] %v6147_v1 }
  0xea   :  { %v3499_v3 = vld [vmem:[#allocation0 + $0x183] ss:$8 sm:$0xf0]   ;;  %1984 = vst [vmem:[#allocation0 + $0x3a0] sm:$0xf] %v6148_v2 }
  0xeb   :  { %v6149_v4 = vld [vmem:[%s9711_s0 + $0x1cc] sm:$0xf]  ;;  %v6150_v5 = vld [vmem:[%s9711_s0 + $0x1c8] sm:$0xf]  ;;  %v6151_v6 = vld [vmem:[%s9711_s0 + $0x1c4] sm:$0xf] }
  0xec   :  { %1989 = vst [vmem:[#allocation0 + $0x398] sm:$0xf] %v6149_v4  ;;  %v6152_v7 = vld [vmem:[%s9711_s0 + $0x1c0] sm:$0xf]  ;;  %1994 = vst [vmem:[#allocation0 + $0x390] sm:$0xf] %v6150_v5 }
  0xed   :  { %v3497_v8 = vld [vmem:[#allocation0 + $0x183] ss:$8 sm:$0xf]   ;;  %1999 = vst [vmem:[#allocation0 + $0x388] sm:$0xf] %v6151_v6 }
  0xee   :  { %2004 = vst [vmem:[#allocation0 + $0x380] sm:$0xf] %v6152_v7  ;;  %v6113_v9 = vld [vmem:[%s9711_s0 + $0x25c] sm:$0xf]  ;;  %v3501_v11 = vsel %vm2563_vm0, %v3499_v3, %v3497_v8  ;;  %v6114_v13 = vld [vmem:[%s9711_s0 + $0x258] sm:$0xf] }
  0xef   :  { %v3510_v12 = vld [vmem:[#allocation0 + $0x283] ss:$8 sm:$0xf0]   ;;  %1809 = vst [vmem:[#allocation0 + $0x4b8] sm:$0xf] %v6113_v9  ;;  %3502 = vrot.lane.b32.xlu1 %v3501_v11, %s6519_s10 }
  0xf0   :  { %1814 = vst [vmem:[#allocation0 + $0x4b0] sm:$0xf] %v6114_v13  ;;  %v6115_v14 = vld [vmem:[%s9711_s0 + $0x254] sm:$0xf]  ;;  %v6116_v15 = vld [vmem:[%s9711_s0 + $0x250] sm:$0xf] }
  0xf1   :  { %v6117_v16 = vld [vmem:[%s9711_s0 + $0x24c] sm:$0xf]  ;;  %v3508_v17 = vld [vmem:[#allocation0 + $0x283] ss:$8 sm:$0xf]  }
  0xf2   :  { %1819 = vst [vmem:[#allocation0 + $0x4a8] sm:$0xf] %v6115_v14  ;;  %1824 = vst [vmem:[#allocation0 + $0x4a0] sm:$0xf] %v6116_v15  ;;  %v6118_v18 = vld [vmem:[%s9711_s0 + $0x248] sm:$0xf]  ;;  %v3512_v19 = vsel %vm2563_vm0, %v3510_v12, %v3508_v17  ;;  %v7614_v12 = vpop.permute.xlu1 %3238  }
  0xf3   :  { %1829 = vst [vmem:[#allocation0 + $0x498] sm:$0xf] %v6117_v16  ;;  %1834 = vst [vmem:[#allocation0 + $0x490] sm:$0xf] %v6118_v18  ;;  %v6119_v20 = vld [vmem:[%s9711_s0 + $0x244] sm:$0xf]  ;;  %3513 = vrot.lane.b32.xlu0 %v3512_v19, %s6519_s10 }
  0xf4   :  { %v6120_v21 = vld [vmem:[%s9711_s0 + $0x240] sm:$0xf]  ;;  %v6081_v22 = vld [vmem:[%s9711_s0 + $0x2dc] sm:$0xf]  ;;  %1839 = vst [vmem:[#allocation0 + $0x488] sm:$0xf] %v6119_v20  ;;  %v7632_v20 = vpop.permute.xlu0 %3249  }
  0xf5   :  { %v3521_v24 = vld [vmem:[#allocation0 + $0x383] ss:$8 sm:$0xf0]   ;;  %1844 = vst [vmem:[#allocation0 + $0x480] sm:$0xf] %v6120_v21 }
  0xf6   :  { %1649 = vst [vmem:[#allocation0 + $0x5b8] sm:$0xf] %v6081_v22  ;;  %v6082_v25 = vld [vmem:[%s9711_s0 + $0x2d8] sm:$0xf]  ;;  %v6083_v26 = vld [vmem:[%s9711_s0 + $0x2d4] sm:$0xf] }
  0xf7   :  { %1654 = vst [vmem:[#allocation0 + $0x5b0] sm:$0xf] %v6082_v25  ;;  %v6084_v27 = vld [vmem:[%s9711_s0 + $0x2d0] sm:$0xf]  ;;  %v6085_v28 = vld [vmem:[%s9711_s0 + $0x2cc] sm:$0xf] }
  0xf8   :  { %v3519_v30 = vld [vmem:[#allocation0 + $0x383] ss:$8 sm:$0xf]   ;;  %1659 = vst [vmem:[#allocation0 + $0x5a8] sm:$0xf] %v6083_v26 }
  0xf9   :  { %1664 = vst [vmem:[#allocation0 + $0x5a0] sm:$0xf] %v6084_v27  ;;  %1669 = vst [vmem:[#allocation0 + $0x598] sm:$0xf] %v6085_v28  ;;  %v6086_v31 = vld [vmem:[%s9711_s0 + $0x2c8] sm:$0xf]  ;;  %v3523_v33 = vsel %vm2563_vm0, %v3521_v24, %v3519_v30 }
  0xfa   :  { %1674 = vst [vmem:[#allocation0 + $0x590] sm:$0xf] %v6086_v31  ;;  %v6087_v34 = vld [vmem:[%s9711_s0 + $0x2c4] sm:$0xf]  ;;  %v6088_v35 = vld [vmem:[%s9711_s0 + $0x2c0] sm:$0xf]  ;;  %3524 = vrot.lane.b32.xlu1 %v3523_v33, %s6519_s10 }
  0xfb   :  { %v6049_v36 = vld [vmem:[%s9711_s0 + $0x35c] sm:$0xf]  ;;  %1679 = vst [vmem:[#allocation0 + $0x588] sm:$0xf] %v6087_v34  ;;  %1684 = vst [vmem:[#allocation0 + $0x580] sm:$0xf] %v6088_v35 }
  0xfc   :  { %1489 = vst [vmem:[#allocation0 + $0x6b8] sm:$0xf] %v6049_v36  ;;  %v6050_v37 = vld [vmem:[%s9711_s0 + $0x358] sm:$0xf]  ;;  %v6051_v38 = vld [vmem:[%s9711_s0 + $0x354] sm:$0xf]  ;;  %v7666_v36 = vpop.permute.xlu1 %3260  }
  0xfd   :  { %v6052_v40 = vld [vmem:[%s9711_s0 + $0x350] sm:$0xf]  ;;  %1494 = vst [vmem:[#allocation0 + $0x6b0] sm:$0xf] %v6050_v37  ;;  %1499 = vst [vmem:[#allocation0 + $0x6a8] sm:$0xf] %v6051_v38 }
  0xfe   :  { %v3532_v41 = vld [vmem:[#allocation0 + $0x483] ss:$8 sm:$0xf0]   ;;  %1504 = vst [vmem:[#allocation0 + $0x6a0] sm:$0xf] %v6052_v40 }
  0xff   :  { %v6053_v42 = vld [vmem:[%s9711_s0 + $0x34c] sm:$0xf]  ;;  %v6054_v43 = vld [vmem:[%s9711_s0 + $0x348] sm:$0xf]  ;;  %v6055_v44 = vld [vmem:[%s9711_s0 + $0x344] sm:$0xf] }
 0x100   :  { %1509 = vst [vmem:[#allocation0 + $0x698] sm:$0xf] %v6053_v42  ;;  %v6056_v45 = vld [vmem:[%s9711_s0 + $0x340] sm:$0xf]  ;;  %1514 = vst [vmem:[#allocation0 + $0x690] sm:$0xf] %v6054_v43 }
 0x101   :  { %v3530_v48 = vld [vmem:[#allocation0 + $0x483] ss:$8 sm:$0xf]   ;;  %1519 = vst [vmem:[#allocation0 + $0x688] sm:$0xf] %v6055_v44 }
 0x102   :  { %1524 = vst [vmem:[#allocation0 + $0x680] sm:$0xf] %v6056_v45  ;;  %v6017_v49 = vld [vmem:[%s9711_s0 + $0x3dc] sm:$0xf]  ;;  %v3534_v50 = vsel %vm2563_vm0, %v3532_v41, %v3530_v48  ;;  %v6018_v51 = vld [vmem:[%s9711_s0 + $0x3d8] sm:$0xf] }
 0x103   :  { %1329 = vst [vmem:[#allocation0 + $0x7b8] sm:$0xf] %v6017_v49  ;;  %v6019_v52 = vld [vmem:[%s9711_s0 + $0x3d4] sm:$0xf]  ;;  %v6020_v53 = vld [vmem:[%s9711_s0 + $0x3d0] sm:$0xf]  ;;  %3535 = vrot.lane.b32.xlu0 %v3534_v50, %s6519_s10 }
 0x104   :  { %v3543_v54 = vld [vmem:[#allocation0 + $0x583] ss:$8 sm:$0xf0]   ;;  %1334 = vst [vmem:[#allocation0 + $0x7b0] sm:$0xf] %v6018_v51 }
 0x105   :  { %1339 = vst [vmem:[#allocation0 + $0x7a8] sm:$0xf] %v6019_v52  ;;  %1344 = vst [vmem:[#allocation0 + $0x7a0] sm:$0xf] %v6020_v53  ;;  %v6021_v55 = vld [vmem:[%s9711_s0 + $0x3cc] sm:$0xf]  ;;  %v7697_v53 = vpop.permute.xlu0 %3271  }
 0x106   :  { %1349 = vst [vmem:[#allocation0 + $0x798] sm:$0xf] %v6021_v55  ;;  %v6022_v56 = vld [vmem:[%s9711_s0 + $0x3c8] sm:$0xf]  ;;  %v6023_v57 = vld [vmem:[%s9711_s0 + $0x3c4] sm:$0xf] }
 0x107   :  { %v6024_v58 = vld [vmem:[%s9711_s0 + $0x3c0] sm:$0xf]  ;;  %1354 = vst [vmem:[#allocation0 + $0x790] sm:$0xf] %v6022_v56  ;;  %1359 = vst [vmem:[#allocation0 + $0x788] sm:$0xf] %v6023_v57 }
 0x108   :  { %v3541_v59 = vld [vmem:[#allocation0 + $0x583] ss:$8 sm:$0xf]   ;;  %1364 = vst [vmem:[#allocation0 + $0x780] sm:$0xf] %v6024_v58 }
 0x109   :  { %v5985_v61 = vld [vmem:[%s9711_s0 + $0x45c] sm:$0xf]  ;;  %v3545_v63 = vsel %vm2563_vm0, %v3543_v54, %v3541_v59  ;;  %v3554_v0 = vld [vmem:[#allocation0 + $0x683] ss:$8 sm:$0xf0]  }
 0x10a   :  { %1169 = vst [vmem:[#allocation0 + $0x8b8] sm:$0xf] %v5985_v61  ;;  %v5986_v1 = vld [vmem:[%s9711_s0 + $0x458] sm:$0xf]  ;;  %3546 = vrot.lane.b32.xlu1 %v3545_v63, %s6519_s10  ;;  %v5987_v2 = vld [vmem:[%s9711_s0 + $0x454] sm:$0xf] }
 0x10b   :  { %1174 = vst [vmem:[#allocation0 + $0x8b0] sm:$0xf] %v5986_v1  ;;  %v5988_v3 = vld [vmem:[%s9711_s0 + $0x450] sm:$0xf]  ;;  %v5989_v4 = vld [vmem:[%s9711_s0 + $0x44c] sm:$0xf] }
 0x10c   :  { %v3552_v5 = vld [vmem:[#allocation0 + $0x683] ss:$8 sm:$0xf]   ;;  %1179 = vst [vmem:[#allocation0 + $0x8a8] sm:$0xf] %v5987_v2 }
 0x10d   :  { %1184 = vst [vmem:[#allocation0 + $0x8a0] sm:$0xf] %v5988_v3  ;;  %1189 = vst [vmem:[#allocation0 + $0x898] sm:$0xf] %v5989_v4  ;;  %v5990_v6 = vld [vmem:[%s9711_s0 + $0x448] sm:$0xf]  ;;  %v3556_v7 = vsel %vm2563_vm0, %v3554_v0, %v3552_v5  ;;  %v7726_v4 = vpop.permute.xlu1 %3282  }
 0x10e   :  { %1194 = vst [vmem:[#allocation0 + $0x890] sm:$0xf] %v5990_v6  ;;  %v5991_v8 = vld [vmem:[%s9711_s0 + $0x444] sm:$0xf]  ;;  %v5992_v9 = vld [vmem:[%s9711_s0 + $0x440] sm:$0xf]  ;;  %3557 = vrot.lane.b32.xlu0 %v3556_v7, %s6519_s10 }
 0x10f   :  { %v5953_v11 = vld [vmem:[%s9711_s0 + $0x4dc] sm:$0xf]  ;;  %v3565_v13 = vld [vmem:[#allocation0 + $0x783] ss:$8 sm:$0xf0]  }
 0x110   :  { %1199 = vst [vmem:[#allocation0 + $0x888] sm:$0xf] %v5991_v8  ;;  %1204 = vst [vmem:[#allocation0 + $0x880] sm:$0xf] %v5992_v9  ;;  %v5954_v14 = vld [vmem:[%s9711_s0 + $0x4d8] sm:$0xf] }
 0x111   :  { %1009 = vst [vmem:[#allocation0 + $0x9b8] sm:$0xf] %v5953_v11  ;;  %1014 = vst [vmem:[#allocation0 + $0x9b0] sm:$0xf] %v5954_v14  ;;  %v5955_v15 = vld [vmem:[%s9711_s0 + $0x4d4] sm:$0xf]  ;;  %v7744_v14 = vpop.permute.xlu0 %3293  }
 0x112   :  { %v5956_v16 = vld [vmem:[%s9711_s0 + $0x4d0] sm:$0xf]  ;;  %v5957_v17 = vld [vmem:[%s9711_s0 + $0x4cc] sm:$0xf]  ;;  %1019 = vst [vmem:[#allocation0 + $0x9a8] sm:$0xf] %v5955_v15 }
 0x113   :  { %v3563_v18 = vld [vmem:[#allocation0 + $0x783] ss:$8 sm:$0xf]   ;;  %1024 = vst [vmem:[#allocation0 + $0x9a0] sm:$0xf] %v5956_v16 }
 0x114   :  { %1029 = vst [vmem:[#allocation0 + $0x998] sm:$0xf] %v5957_v17  ;;  %v5958_v19 = vld [vmem:[%s9711_s0 + $0x4c8] sm:$0xf]  ;;  %v3567_v21 = vsel %vm2563_vm0, %v3565_v13, %v3563_v18  ;;  %v5959_v22 = vld [vmem:[%s9711_s0 + $0x4c4] sm:$0xf] }
 0x115   :  { %1034 = vst [vmem:[#allocation0 + $0x990] sm:$0xf] %v5958_v19  ;;  %v5960_v24 = vld [vmem:[%s9711_s0 + $0x4c0] sm:$0xf]  ;;  %v5921_v25 = vld [vmem:[%s9711_s0 + $0x55c] sm:$0xf]  ;;  %3568 = vrot.lane.b32.xlu1 %v3567_v21, %s6519_s10 }
 0x116   :  { %1039 = vst [vmem:[#allocation0 + $0x988] sm:$0xf] %v5959_v22  ;;  %1044 = vst [vmem:[#allocation0 + $0x980] sm:$0xf] %v5960_v24  ;;  %v5922_v26 = vld [vmem:[%s9711_s0 + $0x558] sm:$0xf] }
 0x117   :  { %849 = vst [vmem:[#allocation0 + $0xab8] sm:$0xf] %v5921_v25  ;;  %v5923_v27 = vld [vmem:[%s9711_s0 + $0x554] sm:$0xf]  ;;  %v5924_v28 = vld [vmem:[%s9711_s0 + $0x550] sm:$0xf] }
 0x118   :  { %v3576_v30 = vld [vmem:[#allocation0 + $0x883] ss:$8 sm:$0xf0]   ;;  %854 = vst [vmem:[#allocation0 + $0xab0] sm:$0xf] %v5922_v26 }
 0x119   :  { %859 = vst [vmem:[#allocation0 + $0xaa8] sm:$0xf] %v5923_v27  ;;  %864 = vst [vmem:[#allocation0 + $0xaa0] sm:$0xf] %v5924_v28  ;;  %v5925_v31 = vld [vmem:[%s9711_s0 + $0x54c] sm:$0xf] }
 0x11a   :  { %869 = vst [vmem:[#allocation0 + $0xa98] sm:$0xf] %v5925_v31  ;;  %v5926_v33 = vld [vmem:[%s9711_s0 + $0x548] sm:$0xf]  ;;  %v5927_v34 = vld [vmem:[%s9711_s0 + $0x544] sm:$0xf] }
 0x11b   :  { %v5928_v35 = vld [vmem:[%s9711_s0 + $0x540] sm:$0xf]  ;;  %874 = vst [vmem:[#allocation0 + $0xa90] sm:$0xf] %v5926_v33  ;;  %879 = vst [vmem:[#allocation0 + $0xa88] sm:$0xf] %v5927_v34 }
 0x11c   :  { %v3574_v37 = vld [vmem:[#allocation0 + $0x883] ss:$8 sm:$0xf]   ;;  %884 = vst [vmem:[#allocation0 + $0xa80] sm:$0xf] %v5928_v35 }
 0x11d   :  { %v5889_v38 = vld [vmem:[%s9711_s0 + $0x5dc] sm:$0xf]  ;;  %v3578_v40 = vsel %vm2563_vm0, %v3576_v30, %v3574_v37  ;;  %v5890_v41 = vld [vmem:[%s9711_s0 + $0x5d8] sm:$0xf]  ;;  %v5891_v42 = vld [vmem:[%s9711_s0 + $0x5d4] sm:$0xf]  ;;  %v7778_v30 = vpop.permute.xlu1 %3304  }
 0x11e   :  { %689 = vst [vmem:[#allocation0 + $0xbb8] sm:$0xf] %v5889_v38  ;;  %v5892_v43 = vld [vmem:[%s9711_s0 + $0x5d0] sm:$0xf]  ;;  %3579 = vrot.lane.b32.xlu0 %v3578_v40, %s6519_s10  ;;  %694 = vst [vmem:[#allocation0 + $0xbb0] sm:$0xf] %v5890_v41 }
 0x11f   :  { %v3587_v44 = vld [vmem:[#allocation0 + $0x983] ss:$8 sm:$0xf0]   ;;  %699 = vst [vmem:[#allocation0 + $0xba8] sm:$0xf] %v5891_v42 }
 0x120   :  { %704 = vst [vmem:[#allocation0 + $0xba0] sm:$0xf] %v5892_v43  ;;  %v5893_v45 = vld [vmem:[%s9711_s0 + $0x5cc] sm:$0xf]  ;;  %v5894_v48 = vld [vmem:[%s9711_s0 + $0x5c8] sm:$0xf] }
 0x121   :  { %709 = vst [vmem:[#allocation0 + $0xb98] sm:$0xf] %v5893_v45  ;;  %v5895_v49 = vld [vmem:[%s9711_s0 + $0x5c4] sm:$0xf]  ;;  %v5896_v50 = vld [vmem:[%s9711_s0 + $0x5c0] sm:$0xf] }
 0x122   :  { %v3585_v51 = vld [vmem:[#allocation0 + $0x983] ss:$8 sm:$0xf]   ;;  %714 = vst [vmem:[#allocation0 + $0xb90] sm:$0xf] %v5894_v48 }
 0x123   :  { %719 = vst [vmem:[#allocation0 + $0xb88] sm:$0xf] %v5895_v49  ;;  %724 = vst [vmem:[#allocation0 + $0xb80] sm:$0xf] %v5896_v50  ;;  %v5857_v52 = vld [vmem:[%s9711_s0 + $0x65c] sm:$0xf]  ;;  %v3589_v54 = vsel %vm2563_vm0, %v3587_v44, %v3585_v51  ;;  %v7809_v49 = vpop.permute.xlu0 %3315  }
 0x124   :  { %v3598_v55 = vld [vmem:[#allocation0 + $0xa83] ss:$8 sm:$0xf0]   ;;  %529 = vst [vmem:[#allocation0 + $0xcb8] sm:$0xf] %v5857_v52  ;;  %3590 = vrot.lane.b32.xlu1 %v3589_v54, %s6519_s10 }
 0x125   :  { %v5858_v56 = vld [vmem:[%s9711_s0 + $0x658] sm:$0xf]  ;;  %v5859_v57 = vld [vmem:[%s9711_s0 + $0x654] sm:$0xf]  ;;  %v5860_v58 = vld [vmem:[%s9711_s0 + $0x650] sm:$0xf] }
 0x126   :  { %534 = vst [vmem:[#allocation0 + $0xcb0] sm:$0xf] %v5858_v56  ;;  %v5861_v59 = vld [vmem:[%s9711_s0 + $0x64c] sm:$0xf]  ;;  %539 = vst [vmem:[#allocation0 + $0xca8] sm:$0xf] %v5859_v57 }
 0x127   :  { %v3596_v61 = vld [vmem:[#allocation0 + $0xa83] ss:$8 sm:$0xf]   ;;  %544 = vst [vmem:[#allocation0 + $0xca0] sm:$0xf] %v5860_v58 }
 0x128   :  { %549 = vst [vmem:[#allocation0 + $0xc98] sm:$0xf] %v5861_v59  ;;  %v5862_v63 = vld [vmem:[%s9711_s0 + $0x648] sm:$0xf]  ;;  %v3600_v0 = vsel %vm2563_vm0, %v3598_v55, %v3596_v61  ;;  %v5863_v1 = vld [vmem:[%s9711_s0 + $0x644] sm:$0xf] }
 0x129   :  { %554 = vst [vmem:[#allocation0 + $0xc90] sm:$0xf] %v5862_v63  ;;  %v5864_v2 = vld [vmem:[%s9711_s0 + $0x640] sm:$0xf]  ;;  %v5825_v3 = vld [vmem:[%s9711_s0 + $0x6dc] sm:$0xf]  ;;  %3601 = vrot.lane.b32.xlu0 %v3600_v0, %s6519_s10 }
 0x12a   :  { %v3609_v5 = vld [vmem:[#allocation0 + $0xb83] ss:$8 sm:$0xf0]   ;;  %559 = vst [vmem:[#allocation0 + $0xc88] sm:$0xf] %v5863_v1  ;;  %v7838_v1 = vpop.permute.xlu1 %3326  }
 0x12b   :  { %564 = vst [vmem:[#allocation0 + $0xc80] sm:$0xf] %v5864_v2  ;;  %369 = vst [vmem:[#allocation0 + $0xdb8] sm:$0xf] %v5825_v3  ;;  %v5826_v6 = vld [vmem:[%s9711_s0 + $0x6d8] sm:$0xf] }
 0x12c   :  { %374 = vst [vmem:[#allocation0 + $0xdb0] sm:$0xf] %v5826_v6  ;;  %v5827_v7 = vld [vmem:[%s9711_s0 + $0x6d4] sm:$0xf]  ;;  %v5828_v8 = vld [vmem:[%s9711_s0 + $0x6d0] sm:$0xf] }
 0x12d   :  { %v5829_v9 = vld [vmem:[%s9711_s0 + $0x6cc] sm:$0xf]  ;;  %v3607_v11 = vld [vmem:[#allocation0 + $0xb83] ss:$8 sm:$0xf]  }
 0x12e   :  { %379 = vst [vmem:[#allocation0 + $0xda8] sm:$0xf] %v5827_v7  ;;  %384 = vst [vmem:[#allocation0 + $0xda0] sm:$0xf] %v5828_v8  ;;  %v5830_v13 = vld [vmem:[%s9711_s0 + $0x6c8] sm:$0xf]  ;;  %v3611_v15 = vsel %vm2563_vm0, %v3609_v5, %v3607_v11  ;;  %v7856_v11 = vpop.permute.xlu0 %3337  }
 0x12f   :  { %389 = vst [vmem:[#allocation0 + $0xd98] sm:$0xf] %v5829_v9  ;;  %394 = vst [vmem:[#allocation0 + $0xd90] sm:$0xf] %v5830_v13  ;;  %v5831_v16 = vld [vmem:[%s9711_s0 + $0x6c4] sm:$0xf]  ;;  %3612 = vrot.lane.b32.xlu1 %v3611_v15, %s6519_s10 }
 0x130   :  { %v5832_v17 = vld [vmem:[%s9711_s0 + $0x6c0] sm:$0xf]  ;;  %v5793_v18 = vld [vmem:[%s9711_s0 + $0x75c] sm:$0xf]  ;;  %399 = vst [vmem:[#allocation0 + $0xd88] sm:$0xf] %v5831_v16 }
 0x131   :  { %404 = vst [vmem:[#allocation0 + $0xd80] sm:$0xf] %v5832_v17  ;;  %209 = vst [vmem:[#allocation0 + $0xeb8] sm:$0xf] %v5793_v18  ;;  %v5794_v19 = vld [vmem:[%s9711_s0 + $0x758] sm:$0xf] }
 0x132   :  { %v5795_v21 = vld [vmem:[%s9711_s0 + $0x754] sm:$0xf]  ;;  %v5796_v22 = vld [vmem:[%s9711_s0 + $0x750] sm:$0xf]  ;;  %214 = vst [vmem:[#allocation0 + $0xeb0] sm:$0xf] %v5794_v19 }
 0x133   :  { %v3620_v24 = vld [vmem:[#allocation0 + $0xc83] ss:$8 sm:$0xf0]   ;;  %219 = vst [vmem:[#allocation0 + $0xea8] sm:$0xf] %v5795_v21 }
 0x134   :  { %224 = vst [vmem:[#allocation0 + $0xea0] sm:$0xf] %v5796_v22  ;;  %v5797_v25 = vld [vmem:[%s9711_s0 + $0x74c] sm:$0xf]  ;;  %v5798_v26 = vld [vmem:[%s9711_s0 + $0x748] sm:$0xf] }
 0x135   :  { %229 = vst [vmem:[#allocation0 + $0xe98] sm:$0xf] %v5797_v25  ;;  %v5799_v27 = vld [vmem:[%s9711_s0 + $0x744] sm:$0xf]  ;;  %v5800_v28 = vld [vmem:[%s9711_s0 + $0x740] sm:$0xf] }
 0x136   :  { %v3618_v31 = vld [vmem:[#allocation0 + $0xc83] ss:$8 sm:$0xf]   ;;  %234 = vst [vmem:[#allocation0 + $0xe90] sm:$0xf] %v5798_v26 }
 0x137   :  { %239 = vst [vmem:[#allocation0 + $0xe88] sm:$0xf] %v5799_v27  ;;  %244 = vst [vmem:[#allocation0 + $0xe80] sm:$0xf] %v5800_v28  ;;  %v5761_v33 = vld [vmem:[%s9711_s0 + $0x7dc] sm:$0xf]  ;;  %v3622_v34 = vsel %vm2563_vm0, %v3620_v24, %v3618_v31  ;;  %v7890_v28 = vpop.permute.xlu1 %3348  }
 0x138   :  { %49 = vst [vmem:[#allocation0 + $0xfb8] sm:$0xf] %v5761_v33  ;;  %v5762_v35 = vld [vmem:[%s9711_s0 + $0x7d8] sm:$0xf]  ;;  %v5763_v37 = vld [vmem:[%s9711_s0 + $0x7d4] sm:$0xf]  ;;  %3623 = vrot.lane.b32.xlu0 %v3622_v34, %s6519_s10 }
 0x139   :  { %v5764_v38 = vld [vmem:[%s9711_s0 + $0x7d0] sm:$0xf]  ;;  %54 = vst [vmem:[#allocation0 + $0xfb0] sm:$0xf] %v5762_v35  ;;  %59 = vst [vmem:[#allocation0 + $0xfa8] sm:$0xf] %v5763_v37 }
 0x13a   :  { %v3631_v40 = vld [vmem:[#allocation0 + $0xd83] ss:$8 sm:$0xf0]   ;;  %64 = vst [vmem:[#allocation0 + $0xfa0] sm:$0xf] %v5764_v38 }
 0x13b   :  { %v5765_v41 = vld [vmem:[%s9711_s0 + $0x7cc] sm:$0xf]  ;;  %v5766_v42 = vld [vmem:[%s9711_s0 + $0x7c8] sm:$0xf]  ;;  %v5767_v43 = vld [vmem:[%s9711_s0 + $0x7c4] sm:$0xf] }
 0x13c   :  { %69 = vst [vmem:[#allocation0 + $0xf98] sm:$0xf] %v5765_v41  ;;  %v5768_v44 = vld [vmem:[%s9711_s0 + $0x7c0] sm:$0xf]  ;;  %74 = vst [vmem:[#allocation0 + $0xf90] sm:$0xf] %v5766_v42 }
 0x13d   :  { %v3629_v45 = vld [vmem:[#allocation0 + $0xd83] ss:$8 sm:$0xf]   ;;  %79 = vst [vmem:[#allocation0 + $0xf88] sm:$0xf] %v5767_v43 }
 0x13e   :  { %84 = vst [vmem:[#allocation0 + $0xf80] sm:$0xf] %v5768_v44  ;;  %v6233_v48 = vld [vmem:[%s9711_s0 + $0x7c] sm:$0xf]  ;;  %v3633_v50 = vsel %vm2563_vm0, %v3631_v40, %v3629_v45  ;;  %v6234_v52 = vld [vmem:[%s9711_s0 + $0x78] sm:$0xf] }
 0x13f   :  { %v3642_v51 = vld [vmem:[#allocation0 + $0xe83] ss:$8 sm:$0xf0]   ;;  %2409 = vst [vmem:[#allocation0 + $0xf8] sm:$0xf] %v6233_v48  ;;  %3634 = vrot.lane.b32.xlu1 %v3633_v50, %s6519_s10  ;;  %v7921_v50 = vpop.permute.xlu0 %3359  }
 0x140   :  { %2414 = vst [vmem:[#allocation0 + $0xf0] sm:$0xf] %v6234_v52  ;;  %v6235_v54 = vld [vmem:[%s9711_s0 + $0x74] sm:$0xf]  ;;  %v6236_v55 = vld [vmem:[%s9711_s0 + $0x70] sm:$0xf] }
 0x141   :  { %v6237_v56 = vld [vmem:[%s9711_s0 + $0x6c] sm:$0xf]  ;;  %v3640_v57 = vld [vmem:[#allocation0 + $0xe83] ss:$8 sm:$0xf]  }
 0x142   :  { %2419 = vst [vmem:[#allocation0 + $0xe8] sm:$0xf] %v6235_v54  ;;  %2424 = vst [vmem:[#allocation0 + $0xe0] sm:$0xf] %v6236_v55  ;;  %v6238_v58 = vld [vmem:[%s9711_s0 + $0x68] sm:$0xf]  ;;  %v3644_v59 = vsel %vm2563_vm0, %v3642_v51, %v3640_v57 }
 0x143   :  { %2429 = vst [vmem:[#allocation0 + $0xd8] sm:$0xf] %v6237_v56  ;;  %2434 = vst [vmem:[#allocation0 + $0xd0] sm:$0xf] %v6238_v58  ;;  %v6239_v61 = vld [vmem:[%s9711_s0 + $0x64] sm:$0xf]  ;;  %3645 = vrot.lane.b32.xlu0 %v3644_v59, %s6519_s10 }
 0x144   :  { %v6240_v63 = vld [vmem:[%s9711_s0 + $0x60] sm:$0xf]  ;;  %v6201_v0 = vld [vmem:[%s9711_s0 + $0xfc] sm:$0xf]  ;;  %2439 = vst [vmem:[#allocation0 + $0xc8] sm:$0xf] %v6239_v61 }
 0x145   :  { %v3653_v2 = vld [vmem:[#allocation0 + $0xf83] ss:$8 sm:$0xf0]   ;;  %2444 = vst [vmem:[#allocation0 + $0xc0] sm:$0xf] %v6240_v63 }
 0x146   :  { %2249 = vst [vmem:[#allocation0 + $0x1f8] sm:$0xf] %v6201_v0  ;;  %v6202_v3 = vld [vmem:[%s9711_s0 + $0xf8] sm:$0xf]  ;;  %v6203_v5 = vld [vmem:[%s9711_s0 + $0xf4] sm:$0xf] }
 0x147   :  { %2254 = vst [vmem:[#allocation0 + $0x1f0] sm:$0xf] %v6202_v3  ;;  %v6204_v6 = vld [vmem:[%s9711_s0 + $0xf0] sm:$0xf]  ;;  %v6205_v7 = vld [vmem:[%s9711_s0 + $0xec] sm:$0xf]  ;;  %v7950_v3 = vpop.permute.xlu1 %3370  }
 0x148   :  { %v3651_v8 = vld [vmem:[#allocation0 + $0xf83] ss:$8 sm:$0xf]   ;;  %2259 = vst [vmem:[#allocation0 + $0x1e8] sm:$0xf] %v6203_v5 }
 0x149   :  { %2264 = vst [vmem:[#allocation0 + $0x1e0] sm:$0xf] %v6204_v6  ;;  %2269 = vst [vmem:[#allocation0 + $0x1d8] sm:$0xf] %v6205_v7  ;;  %v6206_v9 = vld [vmem:[%s9711_s0 + $0xe8] sm:$0xf]  ;;  %v3655_v13 = vsel %vm2563_vm0, %v3653_v2, %v3651_v8 }
 0x14a   :  { %2274 = vst [vmem:[#allocation0 + $0x1d0] sm:$0xf] %v6206_v9  ;;  %v6207_v15 = vld [vmem:[%s9711_s0 + $0xe4] sm:$0xf]  ;;  %v6208_v16 = vld [vmem:[%s9711_s0 + $0xe0] sm:$0xf]  ;;  %3656 = vrot.lane.b32.xlu1 %v3655_v13, %s6519_s10 }
 0x14b   :  { %v6169_v17 = vld [vmem:[%s9711_s0 + $0x17c] sm:$0xf]  ;;  %2279 = vst [vmem:[#allocation0 + $0x1c8] sm:$0xf] %v6207_v15  ;;  %2284 = vst [vmem:[#allocation0 + $0x1c0] sm:$0xf] %v6208_v16  ;;  %v7968_v16 = vpop.permute.xlu0 %3381  }
 0x14c   :  { %2089 = vst [vmem:[#allocation0 + $0x2f8] sm:$0xf] %v6169_v17  ;;  %v6170_v18 = vld [vmem:[%s9711_s0 + $0x178] sm:$0xf]  ;;  %v6171_v19 = vld [vmem:[%s9711_s0 + $0x174] sm:$0xf] }
 0x14d   :  { %v6172_v21 = vld [vmem:[%s9711_s0 + $0x170] sm:$0xf]  ;;  %2094 = vst [vmem:[#allocation0 + $0x2f0] sm:$0xf] %v6170_v18  ;;  %2099 = vst [vmem:[#allocation0 + $0x2e8] sm:$0xf] %v6171_v19 }
 0x14e   :  { %v3664_v22 = vld [vmem:[#allocation0 + $0xc3] ss:$8 sm:$0xf0]   ;;  %2104 = vst [vmem:[#allocation0 + $0x2e0] sm:$0xf] %v6172_v21 }
 0x14f   :  { %v6173_v24 = vld [vmem:[%s9711_s0 + $0x16c] sm:$0xf]  ;;  %v6174_v25 = vld [vmem:[%s9711_s0 + $0x168] sm:$0xf]  ;;  %v6175_v26 = vld [vmem:[%s9711_s0 + $0x164] sm:$0xf] }
 0x150   :  { %2109 = vst [vmem:[#allocation0 + $0x2d8] sm:$0xf] %v6173_v24  ;;  %v6176_v27 = vld [vmem:[%s9711_s0 + $0x160] sm:$0xf]  ;;  %2114 = vst [vmem:[#allocation0 + $0x2d0] sm:$0xf] %v6174_v25 }
 0x151   :  { %v3662_v31 = vld [vmem:[#allocation0 + $0xc3] ss:$8 sm:$0xf]   ;;  %2119 = vst [vmem:[#allocation0 + $0x2c8] sm:$0xf] %v6175_v26 }
 0x152   :  { %2124 = vst [vmem:[#allocation0 + $0x2c0] sm:$0xf] %v6176_v27  ;;  %v6137_v33 = vld [vmem:[%s9711_s0 + $0x1fc] sm:$0xf]  ;;  %v3666_v34 = vsel %vm2563_vm0, %v3664_v22, %v3662_v31  ;;  %v6138_v35 = vld [vmem:[%s9711_s0 + $0x1f8] sm:$0xf] }
 0x153   :  { %1929 = vst [vmem:[#allocation0 + $0x3f8] sm:$0xf] %v6137_v33  ;;  %v6139_v37 = vld [vmem:[%s9711_s0 + $0x1f4] sm:$0xf]  ;;  %v6140_v38 = vld [vmem:[%s9711_s0 + $0x1f0] sm:$0xf]  ;;  %3667 = vrot.lane.b32.xlu0 %v3666_v34, %s6519_s10 }
 0x154   :  { %v3675_v40 = vld [vmem:[#allocation0 + $0x1c3] ss:$8 sm:$0xf0]   ;;  %1934 = vst [vmem:[#allocation0 + $0x3f0] sm:$0xf] %v6138_v35  ;;  %v8002_v35 = vpop.permute.xlu1 %3392  }
 0x155   :  { %1939 = vst [vmem:[#allocation0 + $0x3e8] sm:$0xf] %v6139_v37  ;;  %1944 = vst [vmem:[#allocation0 + $0x3e0] sm:$0xf] %v6140_v38  ;;  %v6141_v41 = vld [vmem:[%s9711_s0 + $0x1ec] sm:$0xf] }
 0x156   :  { %1949 = vst [vmem:[#allocation0 + $0x3d8] sm:$0xf] %v6141_v41  ;;  %v6142_v42 = vld [vmem:[%s9711_s0 + $0x1e8] sm:$0xf]  ;;  %v6143_v43 = vld [vmem:[%s9711_s0 + $0x1e4] sm:$0xf] }
 0x157   :  { %v6144_v44 = vld [vmem:[%s9711_s0 + $0x1e0] sm:$0xf]  ;;  %1954 = vst [vmem:[#allocation0 + $0x3d0] sm:$0xf] %v6142_v42  ;;  %1959 = vst [vmem:[#allocation0 + $0x3c8] sm:$0xf] %v6143_v43 }
 0x158   :  { %v3673_v45 = vld [vmem:[#allocation0 + $0x1c3] ss:$8 sm:$0xf]   ;;  %1964 = vst [vmem:[#allocation0 + $0x3c0] sm:$0xf] %v6144_v44 }
 0x159   :  { %v6105_v48 = vld [vmem:[%s9711_s0 + $0x27c] sm:$0xf]  ;;  %v3677_v51 = vsel %vm2563_vm0, %v3675_v40, %v3673_v45  ;;  %v3686_v52 = vld [vmem:[#allocation0 + $0x2c3] ss:$8 sm:$0xf0]  }
 0x15a   :  { %1769 = vst [vmem:[#allocation0 + $0x4f8] sm:$0xf] %v6105_v48  ;;  %v6106_v54 = vld [vmem:[%s9711_s0 + $0x278] sm:$0xf]  ;;  %3678 = vrot.lane.b32.xlu1 %v3677_v51, %s6519_s10  ;;  %v6107_v55 = vld [vmem:[%s9711_s0 + $0x274] sm:$0xf] }
 0x15b   :  { %1774 = vst [vmem:[#allocation0 + $0x4f0] sm:$0xf] %v6106_v54  ;;  %v6108_v56 = vld [vmem:[%s9711_s0 + $0x270] sm:$0xf]  ;;  %v6109_v57 = vld [vmem:[%s9711_s0 + $0x26c] sm:$0xf] }
 0x15c   :  { %v3684_v58 = vld [vmem:[#allocation0 + $0x2c3] ss:$8 sm:$0xf]   ;;  %1779 = vst [vmem:[#allocation0 + $0x4e8] sm:$0xf] %v6107_v55 }
 0x15d   :  { %1784 = vst [vmem:[#allocation0 + $0x4e0] sm:$0xf] %v6108_v56  ;;  %1789 = vst [vmem:[#allocation0 + $0x4d8] sm:$0xf] %v6109_v57  ;;  %v6110_v59 = vld [vmem:[%s9711_s0 + $0x268] sm:$0xf]  ;;  %v3688_v61 = vsel %vm2563_vm0, %v3686_v52, %v3684_v58  ;;  %v8033_v56 = vpop.permute.xlu0 %3403  }
 0x15e   :  { %1794 = vst [vmem:[#allocation0 + $0x4d0] sm:$0xf] %v6110_v59  ;;  %v6111_v63 = vld [vmem:[%s9711_s0 + $0x264] sm:$0xf]  ;;  %v6112_v0 = vld [vmem:[%s9711_s0 + $0x260] sm:$0xf]  ;;  %3689 = vrot.lane.b32.xlu0 %v3688_v61, %s6519_s10 }
 0x15f   :  { %v6073_v2 = vld [vmem:[%s9711_s0 + $0x2fc] sm:$0xf]  ;;  %v3697_v5 = vld [vmem:[#allocation0 + $0x3c3] ss:$8 sm:$0xf0]  }
 0x160   :  { %1799 = vst [vmem:[#allocation0 + $0x4c8] sm:$0xf] %v6111_v63  ;;  %1804 = vst [vmem:[#allocation0 + $0x4c0] sm:$0xf] %v6112_v0  ;;  %v6074_v6 = vld [vmem:[%s9711_s0 + $0x2f8] sm:$0xf] }
 0x161   :  { %1609 = vst [vmem:[#allocation0 + $0x5f8] sm:$0xf] %v6073_v2  ;;  %1614 = vst [vmem:[#allocation0 + $0x5f0] sm:$0xf] %v6074_v6  ;;  %v6075_v7 = vld [vmem:[%s9711_s0 + $0x2f4] sm:$0xf] }
 0x162   :  { %v6076_v8 = vld [vmem:[%s9711_s0 + $0x2f0] sm:$0xf]  ;;  %v6077_v9 = vld [vmem:[%s9711_s0 + $0x2ec] sm:$0xf]  ;;  %1619 = vst [vmem:[#allocation0 + $0x5e8] sm:$0xf] %v6075_v7 }
 0x163   :  { %v3695_v13 = vld [vmem:[#allocation0 + $0x3c3] ss:$8 sm:$0xf]   ;;  %1624 = vst [vmem:[#allocation0 + $0x5e0] sm:$0xf] %v6076_v8 }
 0x164   :  { %1629 = vst [vmem:[#allocation0 + $0x5d8] sm:$0xf] %v6077_v9  ;;  %v6078_v15 = vld [vmem:[%s9711_s0 + $0x2e8] sm:$0xf]  ;;  %v3699_v17 = vsel %vm2563_vm0, %v3697_v5, %v3695_v13  ;;  %v6079_v18 = vld [vmem:[%s9711_s0 + $0x2e4] sm:$0xf]  ;;  %v8062_v13 = vpop.permute.xlu1 %3414  }
 0x165   :  { %1634 = vst [vmem:[#allocation0 + $0x5d0] sm:$0xf] %v6078_v15  ;;  %v6080_v19 = vld [vmem:[%s9711_s0 + $0x2e0] sm:$0xf]  ;;  %v6041_v21 = vld [vmem:[%s9711_s0 + $0x37c] sm:$0xf]  ;;  %3700 = vrot.lane.b32.xlu1 %v3699_v17, %s6519_s10 }
 0x166   :  { %1639 = vst [vmem:[#allocation0 + $0x5c8] sm:$0xf] %v6079_v18  ;;  %1644 = vst [vmem:[#allocation0 + $0x5c0] sm:$0xf] %v6080_v19  ;;  %v6042_v22 = vld [vmem:[%s9711_s0 + $0x378] sm:$0xf] }
 0x167   :  { %1449 = vst [vmem:[#allocation0 + $0x6f8] sm:$0xf] %v6041_v21  ;;  %v6043_v24 = vld [vmem:[%s9711_s0 + $0x374] sm:$0xf]  ;;  %v6044_v25 = vld [vmem:[%s9711_s0 + $0x370] sm:$0xf] }
 0x168   :  { %v3708_v26 = vld [vmem:[#allocation0 + $0x4c3] ss:$8 sm:$0xf0]   ;;  %1454 = vst [vmem:[#allocation0 + $0x6f0] sm:$0xf] %v6042_v22 }
 0x169   :  { %1459 = vst [vmem:[#allocation0 + $0x6e8] sm:$0xf] %v6043_v24  ;;  %1464 = vst [vmem:[#allocation0 + $0x6e0] sm:$0xf] %v6044_v25  ;;  %v6045_v27 = vld [vmem:[%s9711_s0 + $0x36c] sm:$0xf]  ;;  %v8080_v25 = vpop.permute.xlu0 %3425  }
 0x16a   :  { %1469 = vst [vmem:[#allocation0 + $0x6d8] sm:$0xf] %v6045_v27  ;;  %v6046_v31 = vld [vmem:[%s9711_s0 + $0x368] sm:$0xf]  ;;  %v6047_v33 = vld [vmem:[%s9711_s0 + $0x364] sm:$0xf] }
 0x16b   :  { %v6048_v34 = vld [vmem:[%s9711_s0 + $0x360] sm:$0xf]  ;;  %1474 = vst [vmem:[#allocation0 + $0x6d0] sm:$0xf] %v6046_v31  ;;  %1479 = vst [vmem:[#allocation0 + $0x6c8] sm:$0xf] %v6047_v33 }
 0x16c   :  { %v3706_v37 = vld [vmem:[#allocation0 + $0x4c3] ss:$8 sm:$0xf]   ;;  %1484 = vst [vmem:[#allocation0 + $0x6c0] sm:$0xf] %v6048_v34 }
 0x16d   :  { %v6009_v38 = vld [vmem:[%s9711_s0 + $0x3fc] sm:$0xf]  ;;  %v3710_v40 = vsel %vm2563_vm0, %v3708_v26, %v3706_v37  ;;  %v6010_v41 = vld [vmem:[%s9711_s0 + $0x3f8] sm:$0xf]  ;;  %v6011_v42 = vld [vmem:[%s9711_s0 + $0x3f4] sm:$0xf] }
 0x16e   :  { %1289 = vst [vmem:[#allocation0 + $0x7f8] sm:$0xf] %v6009_v38  ;;  %v6012_v43 = vld [vmem:[%s9711_s0 + $0x3f0] sm:$0xf]  ;;  %3711 = vrot.lane.b32.xlu0 %v3710_v40, %s6519_s10  ;;  %1294 = vst [vmem:[#allocation0 + $0x7f0] sm:$0xf] %v6010_v41 }
 0x16f   :  { %v3719_v44 = vld [vmem:[#allocation0 + $0x5c3] ss:$8 sm:$0xf0]   ;;  %1299 = vst [vmem:[#allocation0 + $0x7e8] sm:$0xf] %v6011_v42 }
 0x170   :  { %1304 = vst [vmem:[#allocation0 + $0x7e0] sm:$0xf] %v6012_v43  ;;  %v6013_v45 = vld [vmem:[%s9711_s0 + $0x3ec] sm:$0xf]  ;;  %v6014_v48 = vld [vmem:[%s9711_s0 + $0x3e8] sm:$0xf] }
 0x171   :  { %1309 = vst [vmem:[#allocation0 + $0x7d8] sm:$0xf] %v6013_v45  ;;  %v6015_v51 = vld [vmem:[%s9711_s0 + $0x3e4] sm:$0xf]  ;;  %v6016_v52 = vld [vmem:[%s9711_s0 + $0x3e0] sm:$0xf] }
 0x172   :  { %v3717_v54 = vld [vmem:[#allocation0 + $0x5c3] ss:$8 sm:$0xf]   ;;  %1314 = vst [vmem:[#allocation0 + $0x7d0] sm:$0xf] %v6014_v48 }
 0x173   :  { %1319 = vst [vmem:[#allocation0 + $0x7c8] sm:$0xf] %v6015_v51  ;;  %1324 = vst [vmem:[#allocation0 + $0x7c0] sm:$0xf] %v6016_v52  ;;  %v5977_v55 = vld [vmem:[%s9711_s0 + $0x47c] sm:$0xf]  ;;  %v3721_v57 = vsel %vm2563_vm0, %v3719_v44, %v3717_v54  ;;  %v8101_v44 = vpop.permute.xlu1 %3436  }
 0x174   :  { %v3730_v58 = vld [vmem:[#allocation0 + $0x6c3] ss:$8 sm:$0xf0]   ;;  %1129 = vst [vmem:[#allocation0 + $0x8f8] sm:$0xf] %v5977_v55  ;;  %3722 = vrot.lane.b32.xlu1 %v3721_v57, %s6519_s10 }
 0x175   :  { %v5978_v59 = vld [vmem:[%s9711_s0 + $0x478] sm:$0xf]  ;;  %v5979_v61 = vld [vmem:[%s9711_s0 + $0x474] sm:$0xf]  ;;  %v5980_v63 = vld [vmem:[%s9711_s0 + $0x470] sm:$0xf] }
 0x176   :  { %1134 = vst [vmem:[#allocation0 + $0x8f0] sm:$0xf] %v5978_v59  ;;  %v5981_v0 = vld [vmem:[%s9711_s0 + $0x46c] sm:$0xf]  ;;  %1139 = vst [vmem:[#allocation0 + $0x8e8] sm:$0xf] %v5979_v61 }
 0x177   :  { %v3728_v2 = vld [vmem:[#allocation0 + $0x6c3] ss:$8 sm:$0xf]   ;;  %1144 = vst [vmem:[#allocation0 + $0x8e0] sm:$0xf] %v5980_v63 }
 0x178   :  { %1149 = vst [vmem:[#allocation0 + $0x8d8] sm:$0xf] %v5981_v0  ;;  %v5982_v5 = vld [vmem:[%s9711_s0 + $0x468] sm:$0xf]  ;;  %v3732_v6 = vsel %vm2563_vm0, %v3730_v58, %v3728_v2  ;;  %v5983_v7 = vld [vmem:[%s9711_s0 + $0x464] sm:$0xf]  ;;  %v8147_v2 = vpop.permute.xlu0 %3447  }
 0x179   :  { %1154 = vst [vmem:[#allocation0 + $0x8d0] sm:$0xf] %v5982_v5  ;;  %v5984_v8 = vld [vmem:[%s9711_s0 + $0x460] sm:$0xf]  ;;  %v5945_v9 = vld [vmem:[%s9711_s0 + $0x4fc] sm:$0xf]  ;;  %3733 = vrot.lane.b32.xlu0 %v3732_v6, %s6519_s10 }
 0x17a   :  { %v3741_v15 = vld [vmem:[#allocation0 + $0x7c3] ss:$8 sm:$0xf0]   ;;  %1159 = vst [vmem:[#allocation0 + $0x8c8] sm:$0xf] %v5983_v7 }
 0x17b   :  { %1164 = vst [vmem:[#allocation0 + $0x8c0] sm:$0xf] %v5984_v8  ;;  %969 = vst [vmem:[#allocation0 + $0x9f8] sm:$0xf] %v5945_v9  ;;  %v5946_v17 = vld [vmem:[%s9711_s0 + $0x4f8] sm:$0xf] }
 0x17c   :  { %974 = vst [vmem:[#allocation0 + $0x9f0] sm:$0xf] %v5946_v17  ;;  %v5947_v18 = vld [vmem:[%s9711_s0 + $0x4f4] sm:$0xf]  ;;  %v5948_v19 = vld [vmem:[%s9711_s0 + $0x4f0] sm:$0xf] }
 0x17d   :  { %v5949_v21 = vld [vmem:[%s9711_s0 + $0x4ec] sm:$0xf]  ;;  %v3739_v22 = vld [vmem:[#allocation0 + $0x7c3] ss:$8 sm:$0xf]  }
 0x17e   :  { %979 = vst [vmem:[#allocation0 + $0x9e8] sm:$0xf] %v5947_v18  ;;  %984 = vst [vmem:[#allocation0 + $0x9e0] sm:$0xf] %v5948_v19  ;;  %v5950_v24 = vld [vmem:[%s9711_s0 + $0x4e8] sm:$0xf]  ;;  %v3743_v26 = vsel %vm2563_vm0, %v3741_v15, %v3739_v22 }
 0x17f   :  { %989 = vst [vmem:[#allocation0 + $0x9d8] sm:$0xf] %v5949_v21  ;;  %994 = vst [vmem:[#allocation0 + $0x9d0] sm:$0xf] %v5950_v24  ;;  %v5951_v27 = vld [vmem:[%s9711_s0 + $0x4e4] sm:$0xf]  ;;  %3744 = vrot.lane.b32.xlu1 %v3743_v26, %s6519_s10  ;;  %v8170_v26 = vpop.permute.xlu1 %3458  }
 0x180   :  { %v5952_v31 = vld [vmem:[%s9711_s0 + $0x4e0] sm:$0xf]  ;;  %v5913_v33 = vld [vmem:[%s9711_s0 + $0x57c] sm:$0xf]  ;;  %999 = vst [vmem:[#allocation0 + $0x9c8] sm:$0xf] %v5951_v27 }
 0x181   :  { %1004 = vst [vmem:[#allocation0 + $0x9c0] sm:$0xf] %v5952_v31  ;;  %v2561_v34 = vld [vmem:[#allocation0] ss:$8 sm:$0xf]  }
 0x182   :  { %v2562_v37 = vld [vmem:[#allocation0] ss:$8 sm:$0xf0]   ;;  %809 = vst [vmem:[#allocation0 + $0xaf8] sm:$0xf] %v5913_v33 }
 0x183   :  { %v3752_v38 = vld [vmem:[#allocation0 + $0x8c3] ss:$8 sm:$0xf0]   ;;  %v2564_v40 = vsel %vm2563_vm0, %v2562_v37, %v2561_v34  ;;  %v2631_v41 = vld [vmem:[#allocation0 + $0x200] ss:$8 sm:$0xf]  }
 0x184   :  { %2566 = vst.msk [vmem:[%s9712_s1] sm:$0xff] %vm2565_vm1, %v2564_v40   ;;  %v2633_v42 = vld [vmem:[#allocation0 + $0x200] ss:$8 sm:$0xf0]   ;;  %v5915_v48 = vld [vmem:[%s9711_s0 + $0x574] sm:$0xf]  ;;  %v8206_v40 = vpop.permute.xlu0 %3469  }
 0x185   :  { %v5914_v43 = vld [vmem:[%s9711_s0 + $0x578] sm:$0xf]  ;;  %3143 = vst.msk [vmem:[%s9712_s1] sm:$0xff] %vm3142_vm2, %v7365_v29   ;;  %v2635_v29 = vsel %vm2563_vm0, %v2633_v42, %v2631_v41  ;;  %819 = vst [vmem:[#allocation0 + $0xae8] sm:$0xf] %v5915_v48 }
 0x186   :  { %v3750_v45 = vld [vmem:[#allocation0 + $0x8c3] ss:$8 sm:$0xf]   ;;  %814 = vst [vmem:[#allocation0 + $0xaf0] sm:$0xf] %v5914_v43  ;;  %6271 = vst.msk [vmem:[%s9712_s1 + $0x40] sm:$0xff] %vm2565_vm1, %v2635_v29  }
 0x187   :  { %v3754_v51 = vsel %vm2563_vm0, %v3752_v38, %v3750_v45  ;;  %v5916_v52 = vld [vmem:[%s9711_s0 + $0x570] sm:$0xf]  ;;  %v5917_v54 = vld [vmem:[%s9711_s0 + $0x56c] sm:$0xf]  ;;  %v5918_v55 = vld [vmem:[%s9711_s0 + $0x568] sm:$0xf] }
 0x188   :  { %3755 = vrot.lane.b32.xlu0 %v3754_v51, %s6519_s10  ;;  %v3763_v57 = vld [vmem:[#allocation0 + $0x9c3] ss:$8 sm:$0xf0]   ;;  %6328 = vst.msk [vmem:[%s9712_s1 + $0x40] sm:$0xff] %vm3142_vm2, %v7390_v39   ;;  %824 = vst [vmem:[#allocation0 + $0xae0] sm:$0xf] %v5916_v52 }
 0x189   :  { %829 = vst [vmem:[#allocation0 + $0xad8] sm:$0xf] %v5917_v54  ;;  %834 = vst [vmem:[#allocation0 + $0xad0] sm:$0xf] %v5918_v55  ;;  %v5919_v39 = vld [vmem:[%s9711_s0 + $0x564] sm:$0xf] }
 0x18a   :  { %839 = vst [vmem:[#allocation0 + $0xac8] sm:$0xf] %v5919_v39  ;;  %v5920_v58 = vld [vmem:[%s9711_s0 + $0x560] sm:$0xf]  ;;  %v5881_v59 = vld [vmem:[%s9711_s0 + $0x5fc] sm:$0xf] }
 0x18b   :  { %v5882_v61 = vld [vmem:[%s9711_s0 + $0x5f8] sm:$0xf]  ;;  %844 = vst [vmem:[#allocation0 + $0xac0] sm:$0xf] %v5920_v58  ;;  %649 = vst [vmem:[#allocation0 + $0xbf8] sm:$0xf] %v5881_v59  ;;  %v8235_v58 = vpop.permute.xlu1 %3480  }
 0x18c   :  { %v3761_v63 = vld [vmem:[#allocation0 + $0x9c3] ss:$8 sm:$0xf]   ;;  %654 = vst [vmem:[#allocation0 + $0xbf0] sm:$0xf] %v5882_v61 }
 0x18d   :  { %v5883_v0 = vld [vmem:[%s9711_s0 + $0x5f4] sm:$0xf]  ;;  %v3765_v5 = vsel %vm2563_vm0, %v3763_v57, %v3761_v63  ;;  %v5884_v6 = vld [vmem:[%s9711_s0 + $0x5f0] sm:$0xf]  ;;  %v5885_v7 = vld [vmem:[%s9711_s0 + $0x5ec] sm:$0xf] }
 0x18e   :  { %659 = vst [vmem:[#allocation0 + $0xbe8] sm:$0xf] %v5883_v0  ;;  %v5886_v8 = vld [vmem:[%s9711_s0 + $0x5e8] sm:$0xf]  ;;  %3766 = vrot.lane.b32.xlu1 %v3765_v5, %s6519_s10  ;;  %664 = vst [vmem:[#allocation0 + $0xbe0] sm:$0xf] %v5884_v6 }
 0x18f   :  { %669 = vst [vmem:[#allocation0 + $0xbd8] sm:$0xf] %v5885_v7  ;;  %674 = vst [vmem:[#allocation0 + $0xbd0] sm:$0xf] %v5886_v8  ;;  %v5887_v9 = vld [vmem:[%s9711_s0 + $0x5e4] sm:$0xf] }
 0x190   :  { %v5888_v15 = vld [vmem:[%s9711_s0 + $0x5e0] sm:$0xf]  ;;  %v5849_v17 = vld [vmem:[%s9711_s0 + $0x67c] sm:$0xf]  ;;  %679 = vst [vmem:[#allocation0 + $0xbc8] sm:$0xf] %v5887_v9 }
 0x191   :  { %684 = vst [vmem:[#allocation0 + $0xbc0] sm:$0xf] %v5888_v15  ;;  %v2595_v18 = vld [vmem:[#allocation0 + $0x100] ss:$8 sm:$0xf]  }
 0x192   :  { %v2597_v19 = vld [vmem:[#allocation0 + $0x100] ss:$8 sm:$0xf0]   ;;  %489 = vst [vmem:[#allocation0 + $0xcf8] sm:$0xf] %v5849_v17 }
 0x193   :  { %v2599_v21 = vsel %vm2563_vm0, %v2597_v19, %v2595_v18  ;;  %v2667_v22 = vld [vmem:[#allocation0 + $0x300] ss:$8 sm:$0xf]   ;;  %v3774_v27 = vld [vmem:[#allocation0 + $0xac3] ss:$8 sm:$0xf0]   ;;  %v8264_v19 = vpop.permute.xlu0 %3491  }
 0x194   :  { %v2669_v24 = vld [vmem:[#allocation0 + $0x300] ss:$8 sm:$0xf0]   ;;  %6267 = vst.msk [vmem:[%s9712_s1 + $0x20] sm:$0xff] %vm2565_vm1, %v2599_v21   ;;  %v5853_v37 = vld [vmem:[%s9711_s0 + $0x66c] sm:$0xf] }
 0x195   :  { %v2671_v31 = vsel %vm2563_vm0, %v2669_v24, %v2667_v22  ;;  %v5850_v33 = vld [vmem:[%s9711_s0 + $0x678] sm:$0xf]  ;;  %6327 = vst.msk [vmem:[%s9712_s1 + $0x20] sm:$0xff] %vm3142_vm2, %v7408_v47   ;;  %v5851_v47 = vld [vmem:[%s9711_s0 + $0x674] sm:$0xf] }
 0x196   :  { %6275 = vst.msk [vmem:[%s9712_s1 + $0x60] sm:$0xff] %vm2565_vm1, %v2671_v31   ;;  %494 = vst [vmem:[#allocation0 + $0xcf0] sm:$0xf] %v5850_v33  ;;  %v5852_v34 = vld [vmem:[%s9711_s0 + $0x670] sm:$0xf] }
 0x197   :  { %v3772_v38 = vld [vmem:[#allocation0 + $0xac3] ss:$8 sm:$0xf]   ;;  %6329 = vst.msk [vmem:[%s9712_s1 + $0x60] sm:$0xff] %vm3142_vm2, %v7442_v60   ;;  %499 = vst [vmem:[#allocation0 + $0xce8] sm:$0xf] %v5851_v47 }
 0x198   :  { %504 = vst [vmem:[#allocation0 + $0xce0] sm:$0xf] %v5852_v34  ;;  %509 = vst [vmem:[#allocation0 + $0xcd8] sm:$0xf] %v5853_v37  ;;  %v5854_v60 = vld [vmem:[%s9711_s0 + $0x668] sm:$0xf]  ;;  %v3776_v41 = vsel %vm2563_vm0, %v3774_v27, %v3772_v38 }
 0x199   :  { %514 = vst [vmem:[#allocation0 + $0xcd0] sm:$0xf] %v5854_v60  ;;  %v5855_v42 = vld [vmem:[%s9711_s0 + $0x664] sm:$0xf]  ;;  %v5856_v43 = vld [vmem:[%s9711_s0 + $0x660] sm:$0xf]  ;;  %3777 = vrot.lane.b32.xlu0 %v3776_v41, %s6519_s10  ;;  %v8301_v60 = vpop.permute.xlu1 %3502  }
 0x19a   :  { %v5817_v45 = vld [vmem:[%s9711_s0 + $0x6fc] sm:$0xf]  ;;  %v3785_v29 = vld [vmem:[#allocation0 + $0xbc3] ss:$8 sm:$0xf0]  }
 0x19b   :  { %519 = vst [vmem:[#allocation0 + $0xcc8] sm:$0xf] %v5855_v42  ;;  %524 = vst [vmem:[#allocation0 + $0xcc0] sm:$0xf] %v5856_v43  ;;  %v5818_v48 = vld [vmem:[%s9711_s0 + $0x6f8] sm:$0xf] }
 0x19c   :  { %329 = vst [vmem:[#allocation0 + $0xdf8] sm:$0xf] %v5817_v45  ;;  %v3783_v51 = vld [vmem:[#allocation0 + $0xbc3] ss:$8 sm:$0xf]  }
 0x19d   :  { %334 = vst [vmem:[#allocation0 + $0xdf0] sm:$0xf] %v5818_v48  ;;  %v5819_v52 = vld [vmem:[%s9711_s0 + $0x6f4] sm:$0xf]  ;;  %v3787_v54 = vsel %vm2563_vm0, %v3785_v29, %v3783_v51  ;;  %v5820_v55 = vld [vmem:[%s9711_s0 + $0x6f0] sm:$0xf] }
 0x19e   :  { %339 = vst [vmem:[#allocation0 + $0xde8] sm:$0xf] %v5819_v52  ;;  %v5821_v57 = vld [vmem:[%s9711_s0 + $0x6ec] sm:$0xf]  ;;  %v5822_v39 = vld [vmem:[%s9711_s0 + $0x6e8] sm:$0xf]  ;;  %3788 = vrot.lane.b32.xlu1 %v3787_v54, %s6519_s10  ;;  %v8320_v54 = vpop.permute.xlu0 %3513  }
 0x19f   :  { %344 = vst [vmem:[#allocation0 + $0xde0] sm:$0xf] %v5820_v55  ;;  %349 = vst [vmem:[#allocation0 + $0xdd8] sm:$0xf] %v5821_v57  ;;  %v5823_v59 = vld [vmem:[%s9711_s0 + $0x6e4] sm:$0xf] }
 0x1a0   :  { %354 = vst [vmem:[#allocation0 + $0xdd0] sm:$0xf] %v5822_v39  ;;  %v5824_v61 = vld [vmem:[%s9711_s0 + $0x6e0] sm:$0xf]  ;;  %v5785_v63 = vld [vmem:[%s9711_s0 + $0x77c] sm:$0xf] }
 0x1a1   :  { %359 = vst [vmem:[#allocation0 + $0xdc8] sm:$0xf] %v5823_v59  ;;  %364 = vst [vmem:[#allocation0 + $0xdc0] sm:$0xf] %v5824_v61  ;;  %v5786_v15 = vld [vmem:[%s9711_s0 + $0x778] sm:$0xf] }
 0x1a2   :  { %v2703_v0 = vld [vmem:[#allocation0 + $0x400] ss:$8 sm:$0xf]   ;;  %169 = vst [vmem:[#allocation0 + $0xef8] sm:$0xf] %v5785_v63 }
 0x1a3   :  { %v2705_v5 = vld [vmem:[#allocation0 + $0x400] ss:$8 sm:$0xf0]   ;;  %v3796_v6 = vld [vmem:[#allocation0 + $0xcc3] ss:$8 sm:$0xf0]  }
 0x1a4   :  { %v2707_v7 = vsel %vm2563_vm0, %v2705_v5, %v2703_v0  ;;  %v2739_v8 = vld [vmem:[#allocation0 + $0x500] ss:$8 sm:$0xf]   ;;  %v3794_v17 = vld [vmem:[#allocation0 + $0xcc3] ss:$8 sm:$0xf]  }
 0x1a5   :  { %6279 = vst.msk [vmem:[%s9712_s1 + $0x80] sm:$0xff] %vm2565_vm1, %v2707_v7   ;;  %v2741_v9 = vld [vmem:[#allocation0 + $0x500] ss:$8 sm:$0xf0]   ;;  %174 = vst [vmem:[#allocation0 + $0xef0] sm:$0xf] %v5786_v15  ;;  %v3798_v21 = vsel %vm2563_vm0, %v3796_v6, %v3794_v17 }
 0x1a6   :  { %6330 = vst.msk [vmem:[%s9712_s1 + $0x80] sm:$0xff] %vm3142_vm2, %v7473_v10   ;;  %v2743_v10 = vsel %vm2563_vm0, %v2741_v9, %v2739_v8  ;;  %v5787_v18 = vld [vmem:[%s9711_s0 + $0x774] sm:$0xf]  ;;  %v5788_v22 = vld [vmem:[%s9711_s0 + $0x770] sm:$0xf]  ;;  %3799 = vrot.lane.b32.xlu0 %v3798_v21, %s6519_s10 }
 0x1a7   :  { %6283 = vst.msk [vmem:[%s9712_s1 + $0xa0] sm:$0xff] %vm2565_vm1, %v2743_v10   ;;  %179 = vst [vmem:[#allocation0 + $0xee8] sm:$0xf] %v5787_v18  ;;  %v5789_v24 = vld [vmem:[%s9711_s0 + $0x76c] sm:$0xf] }
 0x1a8   :  { %v5790_v27 = vld [vmem:[%s9711_s0 + $0x768] sm:$0xf]  ;;  %6331 = vst.msk [vmem:[%s9712_s1 + $0xa0] sm:$0xff] %vm3142_vm2, %v7502_v23   ;;  %184 = vst [vmem:[#allocation0 + $0xee0] sm:$0xf] %v5788_v22 }
 0x1a9   :  { %189 = vst [vmem:[#allocation0 + $0xed8] sm:$0xf] %v5789_v24  ;;  %194 = vst [vmem:[#allocation0 + $0xed0] sm:$0xf] %v5790_v27  ;;  %v5791_v23 = vld [vmem:[%s9711_s0 + $0x764] sm:$0xf] }
 0x1aa   :  { %v5792_v31 = vld [vmem:[%s9711_s0 + $0x760] sm:$0xf]  ;;  %v5753_v33 = vld [vmem:[%s9711_s0 + $0x7fc] sm:$0xf]  ;;  %199 = vst [vmem:[#allocation0 + $0xec8] sm:$0xf] %v5791_v23 }
 0x1ab   :  { %v3807_v47 = vld [vmem:[#allocation0 + $0xdc3] ss:$8 sm:$0xf0]   ;;  %204 = vst [vmem:[#allocation0 + $0xec0] sm:$0xf] %v5792_v31 }
 0x1ac   :  { %9 = vst [vmem:[#allocation0 + $0xff8] sm:$0xf] %v5753_v33  ;;  %v5754_v34 = vld [vmem:[%s9711_s0 + $0x7f8] sm:$0xf]  ;;  %v5755_v38 = vld [vmem:[%s9711_s0 + $0x7f4] sm:$0xf] }
 0x1ad   :  { %v3805_v37 = vld [vmem:[#allocation0 + $0xdc3] ss:$8 sm:$0xf]   ;;  %14 = vst [vmem:[#allocation0 + $0xff0] sm:$0xf] %v5754_v34 }
 0x1ae   :  { %v3809_v41 = vsel %vm2563_vm0, %v3807_v47, %v3805_v37  ;;  %19 = vst [vmem:[#allocation0 + $0xfe8] sm:$0xf] %v5755_v38  ;;  %v5756_v42 = vld [vmem:[%s9711_s0 + $0x7f0] sm:$0xf]  ;;  %v5757_v43 = vld [vmem:[%s9711_s0 + $0x7ec] sm:$0xf]  ;;  %v8365_v47 = vpop.permute.xlu0 %3535  }
 0x1af   :  { %v5758_v45 = vld [vmem:[%s9711_s0 + $0x7e8] sm:$0xf]  ;;  %3810 = vrot.lane.b32.xlu1 %v3809_v41, %s6519_s10  ;;  %24 = vst [vmem:[#allocation0 + $0xfe0] sm:$0xf] %v5756_v42  ;;  %29 = vst [vmem:[#allocation0 + $0xfd8] sm:$0xf] %v5757_v43 }
 0x1b0   :  { %34 = vst [vmem:[#allocation0 + $0xfd0] sm:$0xf] %v5758_v45  ;;  %v5759_v29 = vld [vmem:[%s9711_s0 + $0x7e4] sm:$0xf]  ;;  %v5760_v48 = vld [vmem:[%s9711_s0 + $0x7e0] sm:$0xf] }
 0x1b1   :  { %39 = vst [vmem:[#allocation0 + $0xfc8] sm:$0xf] %v5759_v29  ;;  %44 = vst [vmem:[#allocation0 + $0xfc0] sm:$0xf] %v5760_v48 }
 0x1b2   :  { %v2775_v51 = vld [vmem:[#allocation0 + $0x600] ss:$8 sm:$0xf]   ;;  %v3818_v59 = vld [vmem:[#allocation0 + $0xec3] ss:$8 sm:$0xf0]  }
 0x1b3   :  { %v2777_v52 = vld [vmem:[#allocation0 + $0x600] ss:$8 sm:$0xf0]   ;;  %v3838_v63 = vld [vmem:[#allocation0 + $0x2] ss:$8 sm:$0xf]  }
 0x1b4   :  { %v2779_v55 = vsel %vm2563_vm0, %v2777_v52, %v2775_v51  ;;  %v2811_v57 = vld [vmem:[#allocation0 + $0x700] ss:$8 sm:$0xf]   ;;  %v3816_v0 = vld [vmem:[#allocation0 + $0xec3] ss:$8 sm:$0xf]  }
 0x1b5   :  { %v2813_v39 = vld [vmem:[#allocation0 + $0x700] ss:$8 sm:$0xf0]   ;;  %6287 = vst.msk [vmem:[%s9712_s1 + $0xc0] sm:$0xff] %vm2565_vm1, %v2779_v55   ;;  %v3820_v5 = vsel %vm2563_vm0, %v3818_v59, %v3816_v0 }
 0x1b6   :  { %v2815_v61 = vsel %vm2563_vm0, %v2813_v39, %v2811_v57  ;;  %6332 = vst.msk [vmem:[%s9712_s1 + $0xc0] sm:$0xff] %vm3142_vm2, %v7520_v32   ;;  %v3840_v32 = vld [vmem:[#allocation0 + $0x2] ss:$8 sm:$0xf0]   ;;  %3821 = vrot.lane.b32.xlu0 %v3820_v5, %s6519_s10 }
 0x1b7   :  { %6291 = vst.msk [vmem:[%s9712_s1 + $0xe0] sm:$0xff] %vm2565_vm1, %v2815_v61   ;;  %v3848_v6 = vld [vmem:[#allocation0 + $0x102] ss:$8 sm:$0xf]   ;;  %v3842_v17 = vsel %vm2563_vm0, %v3840_v32, %v3838_v63 }
 0x1b8   :  { %6333 = vst.msk [vmem:[%s9712_s1 + $0xe0] sm:$0xff] %vm3142_vm2, %v7554_v46   ;;  %v8343_v46 = vpop.permute.xlu1 %3524   ;;  %v3850_v7 = vld [vmem:[#allocation0 + $0x102] ss:$8 sm:$0xf0]  }
 0x1b9   :  { %v2847_v8 = vld [vmem:[#allocation0 + $0x800] ss:$8 sm:$0xf]   ;;  %v3829_v15 = vld [vmem:[#allocation0 + $0xfc3] ss:$8 sm:$0xf0]   ;;  %v3852_v34 = vsel %vm2563_vm0, %v3850_v7, %v3848_v6  ;;  %v8406_v6 = vpop.permute.xlu0 %3557  }
 0x1ba   :  { %v2849_v9 = vld [vmem:[#allocation0 + $0x800] ss:$8 sm:$0xf0]   ;;  %v3827_v21 = vld [vmem:[#allocation0 + $0xfc3] ss:$8 sm:$0xf]  }
 0x1bb   :  { %v2851_v10 = vsel %vm2563_vm0, %v2849_v9, %v2847_v8  ;;  %v2883_v18 = vld [vmem:[#allocation0 + $0x900] ss:$8 sm:$0xf]   ;;  %v3831_v24 = vsel %vm2563_vm0, %v3829_v15, %v3827_v21  ;;  %v3859_v27 = vld [vmem:[#allocation0 + $0x202] ss:$8 sm:$0xf]  }
 0x1bc   :  { %6295 = vst.msk [vmem:[%s9712_s1 + $0x100] sm:$0xff] %vm2565_vm1, %v2851_v10   ;;  %v2885_v22 = vld [vmem:[#allocation0 + $0x900] ss:$8 sm:$0xf0]   ;;  %3832 = vrot.lane.b32.xlu1 %v3831_v24, %s6519_s10  ;;  %s6520_s10 = smov 64   ;;  %v8391_v52 = vpop.permute.xlu1 %3546  }
 0x1bd   :  { %6334 = vst.msk [vmem:[%s9712_s1 + $0x100] sm:$0xff] %vm3142_vm2, %v7585_v62   ;;  %v2887_v62 = vsel %vm2563_vm0, %v2885_v22, %v2883_v18  ;;  %v3861_v23 = vld [vmem:[#allocation0 + $0x202] ss:$8 sm:$0xf0]   ;;  %3843 = vrot.lane.b32.xlu0 %v3842_v17, %s6520_s10 }
 0x1be   :  { %6299 = vst.msk [vmem:[%s9712_s1 + $0x120] sm:$0xff] %vm2565_vm1, %v2887_v62   ;;  %v3870_v31 = vld [vmem:[#allocation0 + $0x302] ss:$8 sm:$0xf]  }
 0x1bf   :  { %v3872_v33 = vld [vmem:[#allocation0 + $0x302] ss:$8 sm:$0xf0]   ;;  %6335 = vst.msk [vmem:[%s9712_s1 + $0x120] sm:$0xff] %vm3142_vm2, %v7614_v12   ;;  %v3863_v12 = vsel %vm2563_vm0, %v3861_v23, %v3859_v27 }
 0x1c0   :  { %v2919_v37 = vld [vmem:[#allocation0 + $0xa00] ss:$8 sm:$0xf]   ;;  %v3881_v29 = vld [vmem:[#allocation0 + $0x402] ss:$8 sm:$0xf]   ;;  %3853 = vrot.lane.b32.xlu1 %v3852_v34, %s6520_s10  ;;  %v3874_v55 = vsel %vm2563_vm0, %v3872_v33, %v3870_v31  ;;  %v8432_v62 = vpop.permute.xlu1 %3568  }
 0x1c1   :  { %v2921_v38 = vld [vmem:[#allocation0 + $0xa00] ss:$8 sm:$0xf0]   ;;  %v3883_v48 = vld [vmem:[#allocation0 + $0x402] ss:$8 sm:$0xf0]   ;;  %3864 = vrot.lane.b32.xlu0 %v3863_v12, %s6520_s10 }
 0x1c2   :  { %v2923_v41 = vsel %vm2563_vm0, %v2921_v38, %v2919_v37  ;;  %v2955_v42 = vld [vmem:[#allocation0 + $0xb00] ss:$8 sm:$0xf]   ;;  %v3894_v51 = vld [vmem:[#allocation0 + $0x502] ss:$8 sm:$0xf0]  }
 0x1c3   :  { %v2957_v43 = vld [vmem:[#allocation0 + $0xb00] ss:$8 sm:$0xf0]   ;;  %6303 = vst.msk [vmem:[%s9712_s1 + $0x140] sm:$0xff] %vm2565_vm1, %v2923_v41  }
 0x1c4   :  { %v2959_v45 = vsel %vm2563_vm0, %v2957_v43, %v2955_v42  ;;  %6336 = vst.msk [vmem:[%s9712_s1 + $0x140] sm:$0xff] %vm3142_vm2, %v7632_v20   ;;  %v3892_v20 = vld [vmem:[#allocation0 + $0x502] ss:$8 sm:$0xf]   ;;  %3875 = vrot.lane.b32.xlu1 %v3874_v55, %s6520_s10 }
 0x1c5   :  { %6307 = vst.msk [vmem:[%s9712_s1 + $0x160] sm:$0xff] %vm2565_vm1, %v2959_v45   ;;  %v2991_v57 = vld [vmem:[#allocation0 + $0xc00] ss:$8 sm:$0xf]   ;;  %v3896_v8 = vsel %vm2563_vm0, %v3894_v51, %v3892_v20  ;;  %v8469_v45 = vpop.permute.xlu0 %3579  }
 0x1c6   :  { %6337 = vst.msk [vmem:[%s9712_s1 + $0x160] sm:$0xff] %vm3142_vm2, %v7666_v36   ;;  %v3885_v36 = vsel %vm2563_vm0, %v3883_v48, %v3881_v29  ;;  %v2993_v39 = vld [vmem:[#allocation0 + $0xc00] ss:$8 sm:$0xf0]  }
 0x1c7   :  { %v2995_v59 = vsel %vm2563_vm0, %v2993_v39, %v2991_v57  ;;  %v3027_v61 = vld [vmem:[#allocation0 + $0xd00] ss:$8 sm:$0xf]   ;;  %v3903_v32 = vld [vmem:[#allocation0 + $0x602] ss:$8 sm:$0xf]   ;;  %3886 = vrot.lane.b32.xlu0 %v3885_v36, %s6520_s10 }
 0x1c8   :  { %v3029_v63 = vld [vmem:[#allocation0 + $0xd00] ss:$8 sm:$0xf0]   ;;  %6311 = vst.msk [vmem:[%s9712_s1 + $0x180] sm:$0xff] %vm2565_vm1, %v2995_v59   ;;  %3897 = vrot.lane.b32.xlu1 %v3896_v8, %s6520_s10 }
 0x1c9   :  { %v3031_v0 = vsel %vm2563_vm0, %v3029_v63, %v3027_v61  ;;  %v3905_v5 = vld [vmem:[#allocation0 + $0x602] ss:$8 sm:$0xf0]   ;;  %6338 = vst.msk [vmem:[%s9712_s1 + $0x180] sm:$0xff] %vm3142_vm2, %v7697_v53   ;;  %v8495_v63 = vpop.permute.xlu1 %3590  }
 0x1ca   :  { %6315 = vst.msk [vmem:[%s9712_s1 + $0x1a0] sm:$0xff] %vm2565_vm1, %v3031_v0   ;;  %v3914_v53 = vld [vmem:[#allocation0 + $0x702] ss:$8 sm:$0xf]  }
 0x1cb   :  { %v3916_v7 = vld [vmem:[#allocation0 + $0x702] ss:$8 sm:$0xf0]   ;;  %6339 = vst.msk [vmem:[%s9712_s1 + $0x1a0] sm:$0xff] %vm3142_vm2, %v7726_v4   ;;  %v3907_v4 = vsel %vm2563_vm0, %v3905_v5, %v3903_v32 }
 0x1cc   :  { %v3063_v9 = vld [vmem:[#allocation0 + $0xe00] ss:$8 sm:$0xf]   ;;  %v3925_v22 = vld [vmem:[#allocation0 + $0x802] ss:$8 sm:$0xf]   ;;  %3908 = vrot.lane.b32.xlu0 %v3907_v4, %s6520_s10  ;;  %v3918_v23 = vsel %vm2563_vm0, %v3916_v7, %v3914_v53 }
 0x1cd   :  { %v3065_v15 = vld [vmem:[#allocation0 + $0xe00] ss:$8 sm:$0xf0]   ;;  %v3927_v24 = vld [vmem:[#allocation0 + $0x802] ss:$8 sm:$0xf0]   ;;  %3919 = vrot.lane.b32.xlu1 %v3918_v23, %s6520_s10 }
 0x1ce   :  { %v3067_v17 = vsel %vm2563_vm0, %v3065_v15, %v3063_v9  ;;  %v3099_v10 = vld [vmem:[#allocation0 + $0xf00] ss:$8 sm:$0xf]   ;;  %v3938_v27 = vld [vmem:[#allocation0 + $0x902] ss:$8 sm:$0xf0]  }
 0x1cf   :  { %v3101_v18 = vld [vmem:[#allocation0 + $0xf00] ss:$8 sm:$0xf0]   ;;  %6319 = vst.msk [vmem:[%s9712_s1 + $0x1c0] sm:$0xff] %vm2565_vm1, %v3067_v17   ;;  %v8510_v17 = vpop.permute.xlu0 %3601  }
 0x1d0   :  { %v3103_v21 = vsel %vm2563_vm0, %v3101_v18, %v3099_v10  ;;  %6340 = vst.msk [vmem:[%s9712_s1 + $0x1c0] sm:$0xff] %vm3142_vm2, %v7744_v14   ;;  %v3936_v14 = vld [vmem:[#allocation0 + $0x902] ss:$8 sm:$0xf]  }
 0x1d1   :  { %6323 = vst.msk [vmem:[%s9712_s1 + $0x1e0] sm:$0xff] %vm2565_vm1, %v3103_v21   ;;  %v2568_v31 = vld [vmem:[#allocation0 + $0x40] ss:$8 sm:$0xf]   ;;  %v3940_v29 = vsel %vm2563_vm0, %v3938_v27, %v3936_v14 }
 0x1d2   :  { %6341 = vst.msk [vmem:[%s9712_s1 + $0x1e0] sm:$0xff] %vm3142_vm2, %v7778_v30   ;;  %v3929_v30 = vsel %vm2563_vm0, %v3927_v24, %v3925_v22  ;;  %v2570_v33 = vld [vmem:[#allocation0 + $0x40] ss:$8 sm:$0xf0]   ;;  %3941 = vrot.lane.b32.xlu1 %v3940_v29, %s6520_s10 }
 0x1d3   :  { %v2572_v34 = vsel %vm2563_vm0, %v2570_v33, %v2568_v31  ;;  %v2604_v12 = vld [vmem:[#allocation0 + $0x140] ss:$8 sm:$0xf]   ;;  %v3947_v41 = vld [vmem:[#allocation0 + $0xa02] ss:$8 sm:$0xf]   ;;  %3930 = vrot.lane.b32.xlu0 %v3929_v30, %s6520_s10  ;;  %v8536_v33 = vpop.permute.xlu1 %3612  }
 0x1d4   :  { %v2606_v37 = vld [vmem:[#allocation0 + $0x140] ss:$8 sm:$0xf0]   ;;  %6264 = vst.msk [vmem:[%s9712_s1 + $0x8] sm:$0xff] %vm2565_vm1, %v2572_v34  }
 0x1d5   :  { %v2608_v38 = vsel %vm2563_vm0, %v2606_v37, %v2604_v12  ;;  %v3949_v42 = vld [vmem:[#allocation0 + $0xa02] ss:$8 sm:$0xf0]   ;;  %6342 = vst.msk [vmem:[%s9712_s1 + $0x8] sm:$0xff] %vm3142_vm2, %v7809_v49  }
 0x1d6   :  { %6268 = vst.msk [vmem:[%s9712_s1 + $0x28] sm:$0xff] %vm2565_vm1, %v2608_v38   ;;  %v3958_v49 = vld [vmem:[#allocation0 + $0xb02] ss:$8 sm:$0xf]  }
 0x1d7   :  { %v3960_v43 = vld [vmem:[#allocation0 + $0xb02] ss:$8 sm:$0xf0]   ;;  %6343 = vst.msk [vmem:[%s9712_s1 + $0x28] sm:$0xff] %vm3142_vm2, %v7838_v1   ;;  %v3951_v1 = vsel %vm2563_vm0, %v3949_v42, %v3947_v41 }
 0x1d8   :  { %v2640_v48 = vld [vmem:[#allocation0 + $0x240] ss:$8 sm:$0xf]   ;;  %v3969_v39 = vld [vmem:[#allocation0 + $0xc02] ss:$8 sm:$0xf]   ;;  %3952 = vrot.lane.b32.xlu0 %v3951_v1, %s6520_s10  ;;  %v3962_v0 = vsel %vm2563_vm0, %v3960_v43, %v3958_v49 }
 0x1d9   :  { %v2642_v20 = vld [vmem:[#allocation0 + $0x240] ss:$8 sm:$0xf0]   ;;  %v3971_v59 = vld [vmem:[#allocation0 + $0xc02] ss:$8 sm:$0xf0]   ;;  %3963 = vrot.lane.b32.xlu1 %v3962_v0, %s6520_s10 }
 0x1da   :  { %v2644_v51 = vsel %vm2563_vm0, %v2642_v20, %v2640_v48  ;;  %v2676_v55 = vld [vmem:[#allocation0 + $0x340] ss:$8 sm:$0xf]   ;;  %v3982_v61 = vld [vmem:[#allocation0 + $0xd02] ss:$8 sm:$0xf0]   ;;  %v8573_v20 = vpop.permute.xlu0 %3623  }
 0x1db   :  { %v2678_v36 = vld [vmem:[#allocation0 + $0x340] ss:$8 sm:$0xf0]   ;;  %6272 = vst.msk [vmem:[%s9712_s1 + $0x48] sm:$0xff] %vm2565_vm1, %v2644_v51  }
 0x1dc   :  { %v2680_v57 = vsel %vm2563_vm0, %v2678_v36, %v2676_v55  ;;  %6344 = vst.msk [vmem:[%s9712_s1 + $0x48] sm:$0xff] %vm3142_vm2, %v7856_v11   ;;  %v3980_v11 = vld [vmem:[#allocation0 + $0xd02] ss:$8 sm:$0xf]  }
 0x1dd   :  { %6276 = vst.msk [vmem:[%s9712_s1 + $0x68] sm:$0xff] %vm2565_vm1, %v2680_v57   ;;  %v2712_v32 = vld [vmem:[#allocation0 + $0x440] ss:$8 sm:$0xf]   ;;  %v3984_v18 = vsel %vm2563_vm0, %v3982_v61, %v3980_v11 }
 0x1de   :  { %6345 = vst.msk [vmem:[%s9712_s1 + $0x68] sm:$0xff] %vm3142_vm2, %v7890_v28   ;;  %v3973_v28 = vsel %vm2563_vm0, %v3971_v59, %v3969_v39  ;;  %v2714_v5 = vld [vmem:[#allocation0 + $0x440] ss:$8 sm:$0xf0]   ;;  %3985 = vrot.lane.b32.xlu1 %v3984_v18, %s6520_s10  ;;  %v8614_v18 = vpop.permute.xlu0 %3645  }
 0x1df   :  { %v2716_v53 = vsel %vm2563_vm0, %v2714_v5, %v2712_v32  ;;  %v2748_v7 = vld [vmem:[#allocation0 + $0x540] ss:$8 sm:$0xf]   ;;  %v3991_v9 = vld [vmem:[#allocation0 + $0xe02] ss:$8 sm:$0xf]   ;;  %3974 = vrot.lane.b32.xlu0 %v3973_v28, %s6520_s10  ;;  %v8599_v32 = vpop.permute.xlu1 %3634  }
 0x1e0   :  { %v2750_v8 = vld [vmem:[#allocation0 + $0x540] ss:$8 sm:$0xf0]   ;;  %6280 = vst.msk [vmem:[%s9712_s1 + $0x88] sm:$0xff] %vm2565_vm1, %v2716_v53  }
 0x1e1   :  { %v2752_v4 = vsel %vm2563_vm0, %v2750_v8, %v2748_v7  ;;  %v3993_v15 = vld [vmem:[#allocation0 + $0xe02] ss:$8 sm:$0xf0]   ;;  %6346 = vst.msk [vmem:[%s9712_s1 + $0x88] sm:$0xff] %vm3142_vm2, %v7921_v50  }
 0x1e2   :  { %6284 = vst.msk [vmem:[%s9712_s1 + $0xa8] sm:$0xff] %vm2565_vm1, %v2752_v4   ;;  %v4002_v50 = vld [vmem:[#allocation0 + $0xf02] ss:$8 sm:$0xf]  }
 0x1e3   :  { %v4004_v10 = vld [vmem:[#allocation0 + $0xf02] ss:$8 sm:$0xf0]   ;;  %6347 = vst.msk [vmem:[%s9712_s1 + $0xa8] sm:$0xff] %vm3142_vm2, %v7950_v3   ;;  %v3995_v3 = vsel %vm2563_vm0, %v3993_v15, %v3991_v9 }
 0x1e4   :  { %v2784_v21 = vld [vmem:[#allocation0 + $0x640] ss:$8 sm:$0xf]   ;;  %v4013_v30 = vld [vmem:[#allocation0 + $0x42] ss:$8 sm:$0xf]   ;;  %3996 = vrot.lane.b32.xlu0 %v3995_v3, %s6520_s10  ;;  %v4006_v12 = vsel %vm2563_vm0, %v4004_v10, %v4002_v50 }
 0x1e5   :  { %v2786_v22 = vld [vmem:[#allocation0 + $0x640] ss:$8 sm:$0xf0]   ;;  %v4015_v31 = vld [vmem:[#allocation0 + $0x42] ss:$8 sm:$0xf0]   ;;  %4007 = vrot.lane.b32.xlu1 %v4006_v12, %s6520_s10 }
 0x1e6   :  { %v2788_v24 = vsel %vm2563_vm0, %v2786_v22, %v2784_v21  ;;  %v2820_v14 = vld [vmem:[#allocation0 + $0x740] ss:$8 sm:$0xf]   ;;  %v4026_v34 = vld [vmem:[#allocation0 + $0x142] ss:$8 sm:$0xf0]  }
 0x1e7   :  { %v2822_v27 = vld [vmem:[#allocation0 + $0x740] ss:$8 sm:$0xf0]   ;;  %6288 = vst.msk [vmem:[%s9712_s1 + $0xc8] sm:$0xff] %vm2565_vm1, %v2788_v24  }
 0x1e8   :  { %v2824_v23 = vsel %vm2563_vm0, %v2822_v27, %v2820_v14  ;;  %6348 = vst.msk [vmem:[%s9712_s1 + $0xc8] sm:$0xff] %vm3142_vm2, %v7968_v16   ;;  %v4024_v16 = vld [vmem:[#allocation0 + $0x142] ss:$8 sm:$0xf]  }
 0x1e9   :  { %6292 = vst.msk [vmem:[%s9712_s1 + $0xe8] sm:$0xff] %vm2565_vm1, %v2824_v23   ;;  %v2856_v37 = vld [vmem:[#allocation0 + $0x840] ss:$8 sm:$0xf]   ;;  %v4028_v51 = vsel %vm2563_vm0, %v4026_v34, %v4024_v16  ;;  %v8640_v34 = vpop.permute.xlu1 %3656  }
 0x1ea   :  { %6349 = vst.msk [vmem:[%s9712_s1 + $0xe8] sm:$0xff] %vm3142_vm2, %v8002_v35   ;;  %v4017_v35 = vsel %vm2563_vm0, %v4015_v31, %v4013_v30  ;;  %v2858_v38 = vld [vmem:[#allocation0 + $0x840] ss:$8 sm:$0xf0]   ;;  %4029 = vrot.lane.b32.xlu1 %v4028_v51, %s6520_s10 }
 0x1eb   :  { %v2860_v41 = vsel %vm2563_vm0, %v2858_v38, %v2856_v37  ;;  %v2892_v42 = vld [vmem:[#allocation0 + $0x940] ss:$8 sm:$0xf]   ;;  %v4035_v29 = vld [vmem:[#allocation0 + $0x242] ss:$8 sm:$0xf]   ;;  %4018 = vrot.lane.b32.xlu0 %v4017_v35, %s6520_s10 }
 0x1ec   :  { %v2894_v49 = vld [vmem:[#allocation0 + $0x940] ss:$8 sm:$0xf0]   ;;  %6296 = vst.msk [vmem:[%s9712_s1 + $0x108] sm:$0xff] %vm2565_vm1, %v2860_v41  }
 0x1ed   :  { %v2896_v43 = vsel %vm2563_vm0, %v2894_v49, %v2892_v42  ;;  %v4037_v1 = vld [vmem:[#allocation0 + $0x242] ss:$8 sm:$0xf0]   ;;  %6350 = vst.msk [vmem:[%s9712_s1 + $0x108] sm:$0xff] %vm3142_vm2, %v8033_v56  }
 0x1ee   :  { %6300 = vst.msk [vmem:[%s9712_s1 + $0x128] sm:$0xff] %vm2565_vm1, %v2896_v43   ;;  %v4046_v56 = vld [vmem:[#allocation0 + $0x342] ss:$8 sm:$0xf]  }
 0x1ef   :  { %v4048_v48 = vld [vmem:[#allocation0 + $0x342] ss:$8 sm:$0xf0]   ;;  %6351 = vst.msk [vmem:[%s9712_s1 + $0x128] sm:$0xff] %vm3142_vm2, %v8062_v13   ;;  %v4039_v13 = vsel %vm2563_vm0, %v4037_v1, %v4035_v29 }
 0x1f0   :  { %v2928_v55 = vld [vmem:[#allocation0 + $0xa40] ss:$8 sm:$0xf]   ;;  %v4057_v61 = vld [vmem:[#allocation0 + $0x442] ss:$8 sm:$0xf]   ;;  %4040 = vrot.lane.b32.xlu0 %v4039_v13, %s6520_s10  ;;  %v4050_v5 = vsel %vm2563_vm0, %v4048_v48, %v4046_v56  ;;  %v8677_v48 = vpop.permute.xlu0 %3667  }
 0x1f1   :  { %v2930_v36 = vld [vmem:[#allocation0 + $0xa40] ss:$8 sm:$0xf0]   ;;  %v4059_v0 = vld [vmem:[#allocation0 + $0x442] ss:$8 sm:$0xf0]   ;;  %4051 = vrot.lane.b32.xlu1 %v4050_v5, %s6520_s10 }
 0x1f2   :  { %v2932_v57 = vsel %vm2563_vm0, %v2930_v36, %v2928_v55  ;;  %v2964_v39 = vld [vmem:[#allocation0 + $0xb40] ss:$8 sm:$0xf]   ;;  %v4070_v28 = vld [vmem:[#allocation0 + $0x542] ss:$8 sm:$0xf0]  }
 0x1f3   :  { %v2966_v59 = vld [vmem:[#allocation0 + $0xb40] ss:$8 sm:$0xf0]   ;;  %6304 = vst.msk [vmem:[%s9712_s1 + $0x148] sm:$0xff] %vm2565_vm1, %v2932_v57  }
 0x1f4   :  { %v2968_v11 = vsel %vm2563_vm0, %v2966_v59, %v2964_v39  ;;  %6352 = vst.msk [vmem:[%s9712_s1 + $0x148] sm:$0xff] %vm3142_vm2, %v8080_v25   ;;  %v4068_v25 = vld [vmem:[#allocation0 + $0x542] ss:$8 sm:$0xf]  }
 0x1f5   :  { %6308 = vst.msk [vmem:[%s9712_s1 + $0x168] sm:$0xff] %vm2565_vm1, %v2968_v11   ;;  %v3000_v53 = vld [vmem:[#allocation0 + $0xc40] ss:$8 sm:$0xf]   ;;  %v4072_v21 = vsel %vm2563_vm0, %v4070_v28, %v4068_v25  ;;  %v8703_v25 = vpop.permute.xlu1 %3678  }
 0x1f6   :  { %6353 = vst.msk [vmem:[%s9712_s1 + $0x168] sm:$0xff] %vm3142_vm2, %v8101_v44   ;;  %v4061_v44 = vsel %vm2563_vm0, %v4059_v0, %v4057_v61  ;;  %v3002_v7 = vld [vmem:[#allocation0 + $0xc40] ss:$8 sm:$0xf0]   ;;  %4073 = vrot.lane.b32.xlu1 %v4072_v21, %s6520_s10 }
 0x1f7   :  { %v3004_v8 = vsel %vm2563_vm0, %v3002_v7, %v3000_v53  ;;  %v3036_v4 = vld [vmem:[#allocation0 + $0xd40] ss:$8 sm:$0xf]   ;;  %v4079_v50 = vld [vmem:[#allocation0 + $0x642] ss:$8 sm:$0xf]   ;;  %4062 = vrot.lane.b32.xlu0 %v4061_v44, %s6520_s10 }
 0x1f8   :  { %v3038_v9 = vld [vmem:[#allocation0 + $0xd40] ss:$8 sm:$0xf0]   ;;  %6312 = vst.msk [vmem:[%s9712_s1 + $0x188] sm:$0xff] %vm2565_vm1, %v3004_v8  }
 0x1f9   :  { %v3040_v15 = vsel %vm2563_vm0, %v3038_v9, %v3036_v4  ;;  %v4081_v10 = vld [vmem:[#allocation0 + $0x642] ss:$8 sm:$0xf0]   ;;  %6354 = vst.msk [vmem:[%s9712_s1 + $0x188] sm:$0xff] %vm3142_vm2, %v8147_v2  }
 0x1fa   :  { %6316 = vst.msk [vmem:[%s9712_s1 + $0x1a8] sm:$0xff] %vm2565_vm1, %v3040_v15   ;;  %v4090_v2 = vld [vmem:[#allocation0 + $0x742] ss:$8 sm:$0xf]  }
 0x1fb   :  { %v4092_v3 = vld [vmem:[#allocation0 + $0x742] ss:$8 sm:$0xf0]   ;;  %6355 = vst.msk [vmem:[%s9712_s1 + $0x1a8] sm:$0xff] %vm3142_vm2, %v8170_v26   ;;  %v4083_v26 = vsel %vm2563_vm0, %v4081_v10, %v4079_v50  ;;  %v8718_v50 = vpop.permute.xlu0 %3689  }
 0x1fc   :  { %v3072_v22 = vld [vmem:[#allocation0 + $0xe40] ss:$8 sm:$0xf]   ;;  %v4101_v31 = vld [vmem:[#allocation0 + $0x842] ss:$8 sm:$0xf]   ;;  %4084 = vrot.lane.b32.xlu0 %v4083_v26, %s6520_s10  ;;  %v4094_v35 = vsel %vm2563_vm0, %v4092_v3, %v4090_v2 }
 0x1fd   :  { %v3074_v24 = vld [vmem:[#allocation0 + $0xe40] ss:$8 sm:$0xf0]   ;;  %v4103_v16 = vld [vmem:[#allocation0 + $0x842] ss:$8 sm:$0xf0]   ;;  %4095 = vrot.lane.b32.xlu1 %v4094_v35, %s6520_s10 }
 0x1fe   :  { %v3076_v14 = vsel %vm2563_vm0, %v3074_v24, %v3072_v22  ;;  %v3108_v27 = vld [vmem:[#allocation0 + $0xf40] ss:$8 sm:$0xf]   ;;  %v4114_v12 = vld [vmem:[#allocation0 + $0x942] ss:$8 sm:$0xf0]  }
 0x1ff   :  { %v3110_v23 = vld [vmem:[#allocation0 + $0xf40] ss:$8 sm:$0xf0]   ;;  %6320 = vst.msk [vmem:[%s9712_s1 + $0x1c8] sm:$0xff] %vm2565_vm1, %v3076_v14  }
 0x200   :  { %v3112_v30 = vsel %vm2563_vm0, %v3110_v23, %v3108_v27  ;;  %6356 = vst.msk [vmem:[%s9712_s1 + $0x1c8] sm:$0xff] %vm3142_vm2, %v8206_v40   ;;  %v4112_v40 = vld [vmem:[#allocation0 + $0x942] ss:$8 sm:$0xf]  }
 0x201   :  { %6324 = vst.msk [vmem:[%s9712_s1 + $0x1e8] sm:$0xff] %vm2565_vm1, %v3112_v30   ;;  %v2577_v37 = vld [vmem:[#allocation0 + $0x80] ss:$8 sm:$0xf]   ;;  %v4116_v51 = vsel %vm2563_vm0, %v4114_v12, %v4112_v40  ;;  %v8744_v30 = vpop.permute.xlu1 %3700  }
 0x202   :  { %6357 = vst.msk [vmem:[%s9712_s1 + $0x1e8] sm:$0xff] %vm3142_vm2, %v8235_v58   ;;  %v4105_v58 = vsel %vm2563_vm0, %v4103_v16, %v4101_v31  ;;  %v2579_v38 = vld [vmem:[#allocation0 + $0x80] ss:$8 sm:$0xf0]   ;;  %4117 = vrot.lane.b32.xlu1 %v4116_v51, %s6520_s10 }
 0x203   :  { %v2581_v41 = vsel %vm2563_vm0, %v2579_v38, %v2577_v37  ;;  %v2613_v42 = vld [vmem:[#allocation0 + $0x180] ss:$8 sm:$0xf]   ;;  %v4123_v29 = vld [vmem:[#allocation0 + $0xa42] ss:$8 sm:$0xf]   ;;  %4106 = vrot.lane.b32.xlu0 %v4105_v58, %s6520_s10 }
 0x204   :  { %v2615_v49 = vld [vmem:[#allocation0 + $0x180] ss:$8 sm:$0xf0]   ;;  %6265 = vst.msk [vmem:[%s9712_s1 + $0x10] sm:$0xff] %vm2565_vm1, %v2581_v41  }
 0x205   :  { %v2617_v43 = vsel %vm2563_vm0, %v2615_v49, %v2613_v42  ;;  %v4125_v1 = vld [vmem:[#allocation0 + $0xa42] ss:$8 sm:$0xf0]   ;;  %6358 = vst.msk [vmem:[%s9712_s1 + $0x10] sm:$0xff] %vm3142_vm2, %v8264_v19  }
 0x206   :  { %6269 = vst.msk [vmem:[%s9712_s1 + $0x30] sm:$0xff] %vm2565_vm1, %v2617_v43   ;;  %v4134_v19 = vld [vmem:[#allocation0 + $0xb42] ss:$8 sm:$0xf]   ;;  %v8781_v43 = vpop.permute.xlu0 %3711  }
 0x207   :  { %v4136_v56 = vld [vmem:[#allocation0 + $0xb42] ss:$8 sm:$0xf0]   ;;  %6359 = vst.msk [vmem:[%s9712_s1 + $0x30] sm:$0xff] %vm3142_vm2, %v8301_v60   ;;  %v4127_v60 = vsel %vm2563_vm0, %v4125_v1, %v4123_v29 }
 0x208   :  { %v2649_v13 = vld [vmem:[#allocation0 + $0x280] ss:$8 sm:$0xf]   ;;  %v4145_v11 = vld [vmem:[#allocation0 + $0xc42] ss:$8 sm:$0xf]   ;;  %4128 = vrot.lane.b32.xlu0 %v4127_v60, %s6520_s10  ;;  %v4138_v28 = vsel %vm2563_vm0, %v4136_v56, %v4134_v19 }
 0x209   :  { %v2651_v55 = vld [vmem:[#allocation0 + $0x280] ss:$8 sm:$0xf0]   ;;  %v4147_v61 = vld [vmem:[#allocation0 + $0xc42] ss:$8 sm:$0xf0]   ;;  %4139 = vrot.lane.b32.xlu1 %v4138_v28, %s6520_s10 }
 0x20a   :  { %v2653_v36 = vsel %vm2563_vm0, %v2651_v55, %v2649_v13  ;;  %v2685_v57 = vld [vmem:[#allocation0 + $0x380] ss:$8 sm:$0xf]   ;;  %v4158_v0 = vld [vmem:[#allocation0 + $0xd42] ss:$8 sm:$0xf0]  }
 0x20b   :  { %v2687_v39 = vld [vmem:[#allocation0 + $0x380] ss:$8 sm:$0xf0]   ;;  %6273 = vst.msk [vmem:[%s9712_s1 + $0x50] sm:$0xff] %vm2565_vm1, %v2653_v36  }
 0x20c   :  { %v2689_v59 = vsel %vm2563_vm0, %v2687_v39, %v2685_v57  ;;  %6360 = vst.msk [vmem:[%s9712_s1 + $0x50] sm:$0xff] %vm3142_vm2, %v8320_v54   ;;  %v4156_v54 = vld [vmem:[#allocation0 + $0xd42] ss:$8 sm:$0xf]   ;;  %v8807_v39 = vpop.permute.xlu1 %3722  }
 0x20d   :  { %6277 = vst.msk [vmem:[%s9712_s1 + $0x70] sm:$0xff] %vm2565_vm1, %v2689_v59   ;;  %v2721_v5 = vld [vmem:[#allocation0 + $0x480] ss:$8 sm:$0xf]   ;;  %v4160_v2 = vsel %vm2563_vm0, %v4158_v0, %v4156_v54 }
 0x20e   :  { %6361 = vst.msk [vmem:[%s9712_s1 + $0x70] sm:$0xff] %vm3142_vm2, %v8343_v46   ;;  %v4149_v46 = vsel %vm2563_vm0, %v4147_v61, %v4145_v11  ;;  %v2723_v44 = vld [vmem:[#allocation0 + $0x480] ss:$8 sm:$0xf0]   ;;  %4161 = vrot.lane.b32.xlu1 %v4160_v2, %s6520_s10 }
 0x20f   :  { %v2725_v53 = vsel %vm2563_vm0, %v2723_v44, %v2721_v5  ;;  %v2757_v7 = vld [vmem:[#allocation0 + $0x580] ss:$8 sm:$0xf]   ;;  %v4167_v9 = vld [vmem:[#allocation0 + $0xe42] ss:$8 sm:$0xf]   ;;  %4150 = vrot.lane.b32.xlu0 %v4149_v46, %s6520_s10 }
 0x210   :  { %v2759_v8 = vld [vmem:[#allocation0 + $0x580] ss:$8 sm:$0xf0]   ;;  %6281 = vst.msk [vmem:[%s9712_s1 + $0x90] sm:$0xff] %vm2565_vm1, %v2725_v53   ;;  %v8822_v53 = vpop.permute.xlu0 %3733  }
 0x211   :  { %v2761_v4 = vsel %vm2563_vm0, %v2759_v8, %v2757_v7  ;;  %v4169_v15 = vld [vmem:[#allocation0 + $0xe42] ss:$8 sm:$0xf0]   ;;  %6362 = vst.msk [vmem:[%s9712_s1 + $0x90] sm:$0xff] %vm3142_vm2, %v8365_v47  }
 0x212   :  { %6285 = vst.msk [vmem:[%s9712_s1 + $0xb0] sm:$0xff] %vm2565_vm1, %v2761_v4   ;;  %v4178_v47 = vld [vmem:[#allocation0 + $0xf42] ss:$8 sm:$0xf]  }
 0x213   :  { %v4180_v10 = vld [vmem:[#allocation0 + $0xf42] ss:$8 sm:$0xf0]   ;;  %6363 = vst.msk [vmem:[%s9712_s1 + $0xb0] sm:$0xff] %vm3142_vm2, %v8391_v52   ;;  %v4171_v52 = vsel %vm2563_vm0, %v4169_v15, %v4167_v9 }
 0x214   :  { %v2793_v3 = vld [vmem:[#allocation0 + $0x680] ss:$8 sm:$0xf]   ;;  %v4189_v27 = vld [vmem:[#allocation0 + $0x82] ss:$8 sm:$0xf]   ;;  %4172 = vrot.lane.b32.xlu0 %v4171_v52, %s6520_s10  ;;  %v4182_v16 = vsel %vm2563_vm0, %v4180_v10, %v4178_v47 }
 0x215   :  { %v2795_v21 = vld [vmem:[#allocation0 + $0x680] ss:$8 sm:$0xf0]   ;;  %v4191_v23 = vld [vmem:[#allocation0 + $0x82] ss:$8 sm:$0xf0]   ;;  %4183 = vrot.lane.b32.xlu1 %v4182_v16, %s6520_s10 }
 0x216   :  { %v2797_v26 = vsel %vm2563_vm0, %v2795_v21, %v2793_v3  ;;  %v2829_v22 = vld [vmem:[#allocation0 + $0x780] ss:$8 sm:$0xf]   ;;  %v4202_v31 = vld [vmem:[#allocation0 + $0x182] ss:$8 sm:$0xf0]   ;;  %v8848_v21 = vpop.permute.xlu1 %3744  }
 0x217   :  { %v2831_v24 = vld [vmem:[#allocation0 + $0x780] ss:$8 sm:$0xf0]   ;;  %6289 = vst.msk [vmem:[%s9712_s1 + $0xd0] sm:$0xff] %vm2565_vm1, %v2797_v26  }
 0x218   :  { %v2833_v14 = vsel %vm2563_vm0, %v2831_v24, %v2829_v22  ;;  %6364 = vst.msk [vmem:[%s9712_s1 + $0xd0] sm:$0xff] %vm3142_vm2, %v8406_v6   ;;  %v4200_v6 = vld [vmem:[#allocation0 + $0x182] ss:$8 sm:$0xf]  }
 0x219   :  { %6293 = vst.msk [vmem:[%s9712_s1 + $0xf0] sm:$0xff] %vm2565_vm1, %v2833_v14   ;;  %v2865_v40 = vld [vmem:[#allocation0 + $0x880] ss:$8 sm:$0xf]   ;;  %v4204_v29 = vsel %vm2563_vm0, %v4202_v31, %v4200_v6 }
 0x21a   :  { %6365 = vst.msk [vmem:[%s9712_s1 + $0xf0] sm:$0xff] %vm3142_vm2, %v8432_v62   ;;  %v4193_v62 = vsel %vm2563_vm0, %v4191_v23, %v4189_v27  ;;  %v2867_v12 = vld [vmem:[#allocation0 + $0x880] ss:$8 sm:$0xf0]   ;;  %4205 = vrot.lane.b32.xlu1 %v4204_v29, %s6520_s10 }
 0x21b   :  { %v2869_v35 = vsel %vm2563_vm0, %v2867_v12, %v2865_v40  ;;  %v2901_v58 = vld [vmem:[#allocation0 + $0x980] ss:$8 sm:$0xf]   ;;  %v4211_v41 = vld [vmem:[#allocation0 + $0x282] ss:$8 sm:$0xf]   ;;  %4194 = vrot.lane.b32.xlu0 %v4193_v62, %s6520_s10  ;;  %v8885_v12 = vpop.permute.xlu0 %3755  }
 0x21c   :  { %v2903_v37 = vld [vmem:[#allocation0 + $0x980] ss:$8 sm:$0xf0]   ;;  %6297 = vst.msk [vmem:[%s9712_s1 + $0x110] sm:$0xff] %vm2565_vm1, %v2869_v35  }
 0x21d   :  { %v2905_v38 = vsel %vm2563_vm0, %v2903_v37, %v2901_v58  ;;  %v4213_v42 = vld [vmem:[#allocation0 + $0x282] ss:$8 sm:$0xf0]   ;;  %6366 = vst.msk [vmem:[%s9712_s1 + $0x110] sm:$0xff] %vm3142_vm2, %v8469_v45  }
 0x21e   :  { %6301 = vst.msk [vmem:[%s9712_s1 + $0x130] sm:$0xff] %vm2565_vm1, %v2905_v38   ;;  %v4222_v45 = vld [vmem:[#allocation0 + $0x382] ss:$8 sm:$0xf]  }
 0x21f   :  { %v4224_v49 = vld [vmem:[#allocation0 + $0x382] ss:$8 sm:$0xf0]   ;;  %6367 = vst.msk [vmem:[%s9712_s1 + $0x130] sm:$0xff] %vm3142_vm2, %v8495_v63   ;;  %v4215_v63 = vsel %vm2563_vm0, %v4213_v42, %v4211_v41 }
 0x220   :  { %v2937_v1 = vld [vmem:[#allocation0 + $0xa80] ss:$8 sm:$0xf]   ;;  %v4233_v55 = vld [vmem:[#allocation0 + $0x482] ss:$8 sm:$0xf]   ;;  %4216 = vrot.lane.b32.xlu0 %v4215_v63, %s6520_s10  ;;  %v4226_v59 = vsel %vm2563_vm0, %v4224_v49, %v4222_v45 }
 0x221   :  { %v2939_v19 = vld [vmem:[#allocation0 + $0xa80] ss:$8 sm:$0xf0]   ;;  %v4235_v36 = vld [vmem:[#allocation0 + $0x482] ss:$8 sm:$0xf0]   ;;  %4227 = vrot.lane.b32.xlu1 %v4226_v59, %s6520_s10 }
 0x222   :  { %v2941_v56 = vsel %vm2563_vm0, %v2939_v19, %v2937_v1  ;;  %v2973_v51 = vld [vmem:[#allocation0 + $0xb80] ss:$8 sm:$0xf]   ;;  %v4246_v57 = vld [vmem:[#allocation0 + $0x582] ss:$8 sm:$0xf0]   ;;  %v3767_v1 = vpop.permute.xlu1 %3766  }
 0x223   :  { %v2975_v60 = vld [vmem:[#allocation0 + $0xb80] ss:$8 sm:$0xf0]   ;;  %6305 = vst.msk [vmem:[%s9712_s1 + $0x150] sm:$0xff] %vm2565_vm1, %v2941_v56  }
 0x224   :  { %v2977_v13 = vsel %vm2563_vm0, %v2975_v60, %v2973_v51  ;;  %6368 = vst.msk [vmem:[%s9712_s1 + $0x150] sm:$0xff] %vm3142_vm2, %v8510_v17   ;;  %v4244_v17 = vld [vmem:[#allocation0 + $0x582] ss:$8 sm:$0xf]  }
 0x225   :  { %6309 = vst.msk [vmem:[%s9712_s1 + $0x170] sm:$0xff] %vm2565_vm1, %v2977_v13   ;;  %v3009_v11 = vld [vmem:[#allocation0 + $0xc80] ss:$8 sm:$0xf]   ;;  %v4248_v8 = vsel %vm2563_vm0, %v4246_v57, %v4244_v17 }
 0x226   :  { %6369 = vst.msk [vmem:[%s9712_s1 + $0x170] sm:$0xff] %vm3142_vm2, %v8536_v33   ;;  %v4237_v33 = vsel %vm2563_vm0, %v4235_v36, %v4233_v55  ;;  %v3011_v61 = vld [vmem:[#allocation0 + $0xc80] ss:$8 sm:$0xf0]   ;;  %4249 = vrot.lane.b32.xlu1 %v4248_v8, %s6520_s10 }
 0x227   :  { %v3013_v54 = vsel %vm2563_vm0, %v3011_v61, %v3009_v11  ;;  %v3045_v0 = vld [vmem:[#allocation0 + $0xd80] ss:$8 sm:$0xf]   ;;  %v4255_v5 = vld [vmem:[#allocation0 + $0x682] ss:$8 sm:$0xf]   ;;  %4238 = vrot.lane.b32.xlu0 %v4237_v33, %s6520_s10 }
 0x228   :  { %v3047_v28 = vld [vmem:[#allocation0 + $0xd80] ss:$8 sm:$0xf0]   ;;  %6313 = vst.msk [vmem:[%s9712_s1 + $0x190] sm:$0xff] %vm2565_vm1, %v3013_v54  }
 0x229   :  { %v3049_v46 = vsel %vm2563_vm0, %v3047_v28, %v3045_v0  ;;  %v4257_v44 = vld [vmem:[#allocation0 + $0x682] ss:$8 sm:$0xf0]   ;;  %6370 = vst.msk [vmem:[%s9712_s1 + $0x190] sm:$0xff] %vm3142_vm2, %v8573_v20  }
 0x22a   :  { %6317 = vst.msk [vmem:[%s9712_s1 + $0x1b0] sm:$0xff] %vm2565_vm1, %v3049_v46   ;;  %v4266_v20 = vld [vmem:[#allocation0 + $0x782] ss:$8 sm:$0xf]  }
 0x22b   :  { %v4268_v7 = vld [vmem:[#allocation0 + $0x782] ss:$8 sm:$0xf0]   ;;  %6371 = vst.msk [vmem:[%s9712_s1 + $0x1b0] sm:$0xff] %vm3142_vm2, %v8599_v32   ;;  %v4259_v32 = vsel %vm2563_vm0, %v4257_v44, %v4255_v5 }
 0x22c   :  { %v3081_v4 = vld [vmem:[#allocation0 + $0xe80] ss:$8 sm:$0xf]   ;;  %v4277_v52 = vld [vmem:[#allocation0 + $0x882] ss:$8 sm:$0xf]   ;;  %4260 = vrot.lane.b32.xlu0 %v4259_v32, %s6520_s10  ;;  %v4270_v22 = vsel %vm2563_vm0, %v4268_v7, %v4266_v20  ;;  %v3778_v20 = vpop.permute.xlu0 %3777  }
 0x22d   :  { %v3083_v9 = vld [vmem:[#allocation0 + $0xe80] ss:$8 sm:$0xf0]   ;;  %v4279_v3 = vld [vmem:[#allocation0 + $0x882] ss:$8 sm:$0xf0]   ;;  %4271 = vrot.lane.b32.xlu1 %v4270_v22, %s6520_s10 }
 0x22e   :  { %v3085_v15 = vsel %vm2563_vm0, %v3083_v9, %v3081_v4  ;;  %v3117_v47 = vld [vmem:[#allocation0 + $0xf80] ss:$8 sm:$0xf]   ;;  %v4290_v26 = vld [vmem:[#allocation0 + $0x982] ss:$8 sm:$0xf0]  }
 0x22f   :  { %v3119_v10 = vld [vmem:[#allocation0 + $0xf80] ss:$8 sm:$0xf0]   ;;  %6321 = vst.msk [vmem:[%s9712_s1 + $0x1d0] sm:$0xff] %vm2565_vm1, %v3085_v15  }
 0x230   :  { %v3121_v2 = vsel %vm2563_vm0, %v3119_v10, %v3117_v47  ;;  %6372 = vst.msk [vmem:[%s9712_s1 + $0x1d0] sm:$0xff] %vm3142_vm2, %v8614_v18   ;;  %v4288_v18 = vld [vmem:[#allocation0 + $0x982] ss:$8 sm:$0xf]  }
 0x231   :  { %6325 = vst.msk [vmem:[%s9712_s1 + $0x1f0] sm:$0xff] %vm2565_vm1, %v3121_v2   ;;  %v2586_v24 = vld [vmem:[#allocation0 + $0xc0] ss:$8 sm:$0xf]   ;;  %v4292_v35 = vsel %vm2563_vm0, %v4290_v26, %v4288_v18  ;;  %v3789_v2 = vpop.permute.xlu1 %3788  }
 0x232   :  { %6373 = vst.msk [vmem:[%s9712_s1 + $0x1f0] sm:$0xff] %vm3142_vm2, %v8640_v34   ;;  %v4281_v34 = vsel %vm2563_vm0, %v4279_v3, %v4277_v52  ;;  %v2588_v14 = vld [vmem:[#allocation0 + $0xc0] ss:$8 sm:$0xf0]   ;;  %4293 = vrot.lane.b32.xlu1 %v4292_v35, %s6520_s10 }
 0x233   :  { %v2590_v27 = vsel %vm2563_vm0, %v2588_v14, %v2586_v24  ;;  %v2622_v23 = vld [vmem:[#allocation0 + $0x1c0] ss:$8 sm:$0xf]   ;;  %v4299_v16 = vld [vmem:[#allocation0 + $0xa82] ss:$8 sm:$0xf]   ;;  %4282 = vrot.lane.b32.xlu0 %v4281_v34, %s6520_s10 }
 0x234   :  { %v2624_v6 = vld [vmem:[#allocation0 + $0x1c0] ss:$8 sm:$0xf0]   ;;  %6266 = vst.msk [vmem:[%s9712_s1 + $0x18] sm:$0xff] %vm2565_vm1, %v2590_v27  }
 0x235   :  { %v2626_v31 = vsel %vm2563_vm0, %v2624_v6, %v2622_v23  ;;  %v4301_v62 = vld [vmem:[#allocation0 + $0xa82] ss:$8 sm:$0xf0]   ;;  %6374 = vst.msk [vmem:[%s9712_s1 + $0x18] sm:$0xff] %vm3142_vm2, %v8677_v48  }
 0x236   :  { %6270 = vst.msk [vmem:[%s9712_s1 + $0x38] sm:$0xff] %vm2565_vm1, %v2626_v31   ;;  %v4310_v48 = vld [vmem:[#allocation0 + $0xb82] ss:$8 sm:$0xf]  }
 0x237   :  { %v4312_v40 = vld [vmem:[#allocation0 + $0xb82] ss:$8 sm:$0xf0]   ;;  %6375 = vst.msk [vmem:[%s9712_s1 + $0x38] sm:$0xff] %vm3142_vm2, %v8703_v25   ;;  %v4303_v25 = vsel %vm2563_vm0, %v4301_v62, %v4299_v16 }
 0x238   :  { %v2658_v58 = vld [vmem:[#allocation0 + $0x2c0] ss:$8 sm:$0xf]   ;;  %v4321_v49 = vld [vmem:[#allocation0 + $0xc82] ss:$8 sm:$0xf]   ;;  %4304 = vrot.lane.b32.xlu0 %v4303_v25, %s6520_s10  ;;  %v4314_v19 = vsel %vm2563_vm0, %v4312_v40, %v4310_v48 }
 0x239   :  { %v2660_v37 = vld [vmem:[#allocation0 + $0x2c0] ss:$8 sm:$0xf0]   ;;  %v4323_v29 = vld [vmem:[#allocation0 + $0xc82] ss:$8 sm:$0xf0]   ;;  %4315 = vrot.lane.b32.xlu1 %v4314_v19, %s6520_s10 }
 0x23a   :  { %v2662_v38 = vsel %vm2563_vm0, %v2660_v37, %v2658_v58  ;;  %v2694_v41 = vld [vmem:[#allocation0 + $0x3c0] ss:$8 sm:$0xf]   ;;  %v4334_v63 = vld [vmem:[#allocation0 + $0xd82] ss:$8 sm:$0xf0]  }
 0x23b   :  { %v2696_v42 = vld [vmem:[#allocation0 + $0x3c0] ss:$8 sm:$0xf0]   ;;  %6274 = vst.msk [vmem:[%s9712_s1 + $0x58] sm:$0xff] %vm2565_vm1, %v2662_v38  }
 0x23c   :  { %v2698_v45 = vsel %vm2563_vm0, %v2696_v42, %v2694_v41  ;;  %6376 = vst.msk [vmem:[%s9712_s1 + $0x58] sm:$0xff] %vm3142_vm2, %v8718_v50   ;;  %v4332_v50 = vld [vmem:[#allocation0 + $0xd82] ss:$8 sm:$0xf]  }
 0x23d   :  { %6278 = vst.msk [vmem:[%s9712_s1 + $0x78] sm:$0xff] %vm2565_vm1, %v2698_v45   ;;  %v2730_v56 = vld [vmem:[#allocation0 + $0x4c0] ss:$8 sm:$0xf]   ;;  %v4336_v33 = vsel %vm2563_vm0, %v4334_v63, %v4332_v50  ;;  %v3811_v50 = vpop.permute.xlu1 %3810  }
 0x23e   :  { %6377 = vst.msk [vmem:[%s9712_s1 + $0x78] sm:$0xff] %vm3142_vm2, %v8744_v30   ;;  %v4325_v30 = vsel %vm2563_vm0, %v4323_v29, %v4321_v49  ;;  %v2732_v51 = vld [vmem:[#allocation0 + $0x4c0] ss:$8 sm:$0xf0]   ;;  %4337 = vrot.lane.b32.xlu1 %v4336_v33, %s6520_s10 }
 0x23f   :  { %v2734_v60 = vsel %vm2563_vm0, %v2732_v51, %v2730_v56  ;;  %v2766_v13 = vld [vmem:[#allocation0 + $0x5c0] ss:$8 sm:$0xf]   ;;  %v4343_v17 = vld [vmem:[#allocation0 + $0xe82] ss:$8 sm:$0xf]   ;;  %4326 = vrot.lane.b32.xlu0 %v4325_v30, %s6520_s10 }
 0x240   :  { %v2768_v55 = vld [vmem:[#allocation0 + $0x5c0] ss:$8 sm:$0xf0]   ;;  %6282 = vst.msk [vmem:[%s9712_s1 + $0x98] sm:$0xff] %vm2565_vm1, %v2734_v60  }
 0x241   :  { %v2770_v36 = vsel %vm2563_vm0, %v2768_v55, %v2766_v13  ;;  %v4345_v57 = vld [vmem:[#allocation0 + $0xe82] ss:$8 sm:$0xf0]   ;;  %6378 = vst.msk [vmem:[%s9712_s1 + $0x98] sm:$0xff] %vm3142_vm2, %v8781_v43  }
 0x242   :  { %6286 = vst.msk [vmem:[%s9712_s1 + $0xb8] sm:$0xff] %vm2565_vm1, %v2770_v36   ;;  %v4354_v43 = vld [vmem:[#allocation0 + $0xf82] ss:$8 sm:$0xf]  }
 0x243   :  { %v4356_v59 = vld [vmem:[#allocation0 + $0xf82] ss:$8 sm:$0xf0]   ;;  %6379 = vst.msk [vmem:[%s9712_s1 + $0xb8] sm:$0xff] %vm3142_vm2, %v8807_v39   ;;  %v4347_v39 = vsel %vm2563_vm0, %v4345_v57, %v4343_v17 }
 0x244   :  { %v2802_v11 = vld [vmem:[#allocation0 + $0x6c0] ss:$8 sm:$0xf]   ;;  %v4365_v5 = vld [vmem:[#allocation0 + $0xc2] ss:$8 sm:$0xf]   ;;  %4348 = vrot.lane.b32.xlu0 %v4347_v39, %s6520_s10  ;;  %v4358_v8 = vsel %vm2563_vm0, %v4356_v59, %v4354_v43 }
 0x245   :  { %v2804_v61 = vld [vmem:[#allocation0 + $0x6c0] ss:$8 sm:$0xf0]   ;;  %v4367_v44 = vld [vmem:[#allocation0 + $0xc2] ss:$8 sm:$0xf0]   ;;  %4359 = vrot.lane.b32.xlu1 %v4358_v8, %s6520_s10 }
 0x246   :  { %v2806_v54 = vsel %vm2563_vm0, %v2804_v61, %v2802_v11  ;;  %v2838_v0 = vld [vmem:[#allocation0 + $0x7c0] ss:$8 sm:$0xf]   ;;  %v4378_v7 = vld [vmem:[#allocation0 + $0x1c2] ss:$8 sm:$0xf0]   ;;  %v4369_v32 = vsel %vm2563_vm0, %v4367_v44, %v4365_v5  ;;  %v3833_v44 = vpop.permute.xlu1 %3832  }
 0x247   :  { %v2840_v28 = vld [vmem:[#allocation0 + $0x7c0] ss:$8 sm:$0xf0]   ;;  %6290 = vst.msk [vmem:[%s9712_s1 + $0xd8] sm:$0xff] %vm2565_vm1, %v2806_v54  }
 0x248   :  { %v2842_v46 = vsel %vm2563_vm0, %v2840_v28, %v2838_v0  ;;  %6380 = vst.msk [vmem:[%s9712_s1 + $0xd8] sm:$0xff] %vm3142_vm2, %v8822_v53   ;;  %v4376_v53 = vld [vmem:[#allocation0 + $0x1c2] ss:$8 sm:$0xf]   ;;  %4370 = vrot.lane.b32.xlu0 %v4369_v32, %s6520_s10 }
 0x249   :  { %6294 = vst.msk [vmem:[%s9712_s1 + $0xf8] sm:$0xff] %vm2565_vm1, %v2842_v46   ;;  %v2874_v4 = vld [vmem:[#allocation0 + $0x8c0] ss:$8 sm:$0xf]   ;;  %v4380_v22 = vsel %vm2563_vm0, %v4378_v7, %v4376_v53 }
 0x24a   :  { %6381 = vst.msk [vmem:[%s9712_s1 + $0xf8] sm:$0xff] %vm3142_vm2, %v8848_v21   ;;  %v2876_v9 = vld [vmem:[#allocation0 + $0x8c0] ss:$8 sm:$0xf0]   ;;  %4381 = vrot.lane.b32.xlu1 %v4380_v22, %s6520_s10 }
 0x24b   :  { %v2878_v15 = vsel %vm2563_vm0, %v2876_v9, %v2874_v4  ;;  %v2910_v47 = vld [vmem:[#allocation0 + $0x9c0] ss:$8 sm:$0xf]   ;;  %v4387_v3 = vld [vmem:[#allocation0 + $0x2c2] ss:$8 sm:$0xf]  }
 0x24c   :  { %v2912_v10 = vld [vmem:[#allocation0 + $0x9c0] ss:$8 sm:$0xf0]   ;;  %6298 = vst.msk [vmem:[%s9712_s1 + $0x118] sm:$0xff] %vm2565_vm1, %v2878_v15   ;;  %v3854_v15 = vpop.permute.xlu1 %3853  }
 0x24d   :  { %v2914_v52 = vsel %vm2563_vm0, %v2912_v10, %v2910_v47  ;;  %v4389_v21 = vld [vmem:[#allocation0 + $0x2c2] ss:$8 sm:$0xf0]   ;;  %6382 = vst.msk [vmem:[%s9712_s1 + $0x118] sm:$0xff] %vm3142_vm2, %v8885_v12   ;;  %v3800_v12 = vpop.permute.xlu0 %3799  }
 0x24e   :  { %6302 = vst.msk [vmem:[%s9712_s1 + $0x138] sm:$0xff] %vm2565_vm1, %v2914_v52   ;;  %v4398_v18 = vld [vmem:[#allocation0 + $0x3c2] ss:$8 sm:$0xf]   ;;  %v4391_v34 = vsel %vm2563_vm0, %v4389_v21, %v4387_v3 }
 0x24f   :  { %v4400_v26 = vld [vmem:[#allocation0 + $0x3c2] ss:$8 sm:$0xf0]   ;;  %6383 = vst.msk [vmem:[%s9712_s1 + $0x138] sm:$0xff] %vm3142_vm2, %v3767_v1   ;;  %4392 = vrot.lane.b32.xlu0 %v4391_v34, %s6520_s10 }
 0x250   :  { %v2946_v24 = vld [vmem:[#allocation0 + $0xac0] ss:$8 sm:$0xf]   ;;  %v4409_v16 = vld [vmem:[#allocation0 + $0x4c2] ss:$8 sm:$0xf]   ;;  %v4402_v35 = vsel %vm2563_vm0, %v4400_v26, %v4398_v18  ;;  %v3876_v26 = vpop.permute.xlu1 %3875  }
 0x251   :  { %v2948_v14 = vld [vmem:[#allocation0 + $0xac0] ss:$8 sm:$0xf0]   ;;  %v4411_v62 = vld [vmem:[#allocation0 + $0x4c2] ss:$8 sm:$0xf0]   ;;  %4403 = vrot.lane.b32.xlu1 %v4402_v35, %s6520_s10  ;;  %v3822_v11 = vpop.permute.xlu0 %3821  }
 0x252   :  { %v2950_v27 = vsel %vm2563_vm0, %v2948_v14, %v2946_v24  ;;  %v2982_v23 = vld [vmem:[#allocation0 + $0xbc0] ss:$8 sm:$0xf]   ;;  %v4420_v48 = vld [vmem:[#allocation0 + $0x5c2] ss:$8 sm:$0xf]   ;;  %v4413_v25 = vsel %vm2563_vm0, %v4411_v62, %v4409_v16 }
 0x253   :  { %v2984_v6 = vld [vmem:[#allocation0 + $0xbc0] ss:$8 sm:$0xf0]   ;;  %6306 = vst.msk [vmem:[%s9712_s1 + $0x158] sm:$0xff] %vm2565_vm1, %v2950_v27   ;;  %4414 = vrot.lane.b32.xlu0 %v4413_v25, %s6520_s10 }
 0x254   :  { %v2986_v31 = vsel %vm2563_vm0, %v2984_v6, %v2982_v23  ;;  %6384 = vst.msk [vmem:[%s9712_s1 + $0x158] sm:$0xff] %vm3142_vm2, %v3778_v20   ;;  %v4422_v40 = vld [vmem:[#allocation0 + $0x5c2] ss:$8 sm:$0xf0]  }
 0x255   :  { %6310 = vst.msk [vmem:[%s9712_s1 + $0x178] sm:$0xff] %vm2565_vm1, %v2986_v31   ;;  %v3018_v58 = vld [vmem:[#allocation0 + $0xcc0] ss:$8 sm:$0xf]   ;;  %v4424_v19 = vsel %vm2563_vm0, %v4422_v40, %v4420_v48  ;;  %v3844_v20 = vpop.permute.xlu0 %3843   ;;  %v3898_v31 = vpop.permute.xlu1 %3897  }
 0x256   :  { %6385 = vst.msk [vmem:[%s9712_s1 + $0x178] sm:$0xff] %vm3142_vm2, %v3789_v2   ;;  %v3020_v37 = vld [vmem:[#allocation0 + $0xcc0] ss:$8 sm:$0xf0]   ;;  %4425 = vrot.lane.b32.xlu1 %v4424_v19, %s6520_s10 }
 0x257   :  { %v3022_v38 = vsel %vm2563_vm0, %v3020_v37, %v3018_v58  ;;  %v3054_v41 = vld [vmem:[#allocation0 + $0xdc0] ss:$8 sm:$0xf]   ;;  %v4431_v49 = vld [vmem:[#allocation0 + $0x6c2] ss:$8 sm:$0xf]  }
 0x258   :  { %v3056_v42 = vld [vmem:[#allocation0 + $0xdc0] ss:$8 sm:$0xf0]   ;;  %6314 = vst.msk [vmem:[%s9712_s1 + $0x198] sm:$0xff] %vm2565_vm1, %v3022_v38  }
 0x259   :  { %v3058_v45 = vsel %vm2563_vm0, %v3056_v42, %v3054_v41  ;;  %v4433_v29 = vld [vmem:[#allocation0 + $0x6c2] ss:$8 sm:$0xf0]   ;;  %6386 = vst.msk [vmem:[%s9712_s1 + $0x198] sm:$0xff] %vm3142_vm2, %v3800_v12   ;;  %v3865_v47 = vpop.permute.xlu0 %3864   ;;  %v3920_v58 = vpop.permute.xlu1 %3919  }
 0x25a   :  { %6318 = vst.msk [vmem:[%s9712_s1 + $0x1b8] sm:$0xff] %vm2565_vm1, %v3058_v45   ;;  %v4442_v63 = vld [vmem:[#allocation0 + $0x7c2] ss:$8 sm:$0xf]   ;;  %v4435_v30 = vsel %vm2563_vm0, %v4433_v29, %v4431_v49 }
 0x25b   :  { %v4444_v1 = vld [vmem:[#allocation0 + $0x7c2] ss:$8 sm:$0xf0]   ;;  %6387 = vst.msk [vmem:[%s9712_s1 + $0x1b8] sm:$0xff] %vm3142_vm2, %v3811_v50   ;;  %4436 = vrot.lane.b32.xlu0 %v4435_v30, %s6520_s10 }
 0x25c   :  { %v3090_v56 = vld [vmem:[#allocation0 + $0xec0] ss:$8 sm:$0xf]   ;;  %v4453_v17 = vld [vmem:[#allocation0 + $0x8c2] ss:$8 sm:$0xf]   ;;  %v4446_v43 = vsel %vm2563_vm0, %v4444_v1, %v4442_v63 }
 0x25d   :  { %v3092_v51 = vld [vmem:[#allocation0 + $0xec0] ss:$8 sm:$0xf0]   ;;  %v4455_v57 = vld [vmem:[#allocation0 + $0x8c2] ss:$8 sm:$0xf0]   ;;  %4447 = vrot.lane.b32.xlu1 %v4446_v43, %s6520_s10  ;;  %v3887_v22 = vpop.permute.xlu0 %3886   ;;  %v3942_v50 = vpop.permute.xlu1 %3941  }
 0x25e   :  { %v3094_v60 = vsel %vm2563_vm0, %v3092_v51, %v3090_v56  ;;  %v3126_v13 = vld [vmem:[#allocation0 + $0xfc0] ss:$8 sm:$0xf]   ;;  %v4457_v59 = vsel %vm2563_vm0, %v4455_v57, %v4453_v17  ;;  %v4464_v33 = vld [vmem:[#allocation0 + $0x9c2] ss:$8 sm:$0xf]  }
 0x25f   :  { %v3128_v55 = vld [vmem:[#allocation0 + $0xfc0] ss:$8 sm:$0xf0]   ;;  %6322 = vst.msk [vmem:[%s9712_s1 + $0x1d8] sm:$0xff] %vm2565_vm1, %v3094_v60   ;;  %4458 = vrot.lane.b32.xlu0 %v4457_v59, %s6520_s10 }
 0x260   :  { %v3130_v36 = vsel %vm2563_vm0, %v3128_v55, %v3126_v13  ;;  %v4466_v39 = vld [vmem:[#allocation0 + $0x9c2] ss:$8 sm:$0xf0]   ;;  %6388 = vst.msk [vmem:[%s9712_s1 + $0x1d8] sm:$0xff] %vm3142_vm2, %v3822_v11  }
 0x261   :  { %6326 = vst.msk [vmem:[%s9712_s1 + $0x1f8] sm:$0xff] %vm2565_vm1, %v3130_v36   ;;  %v4475_v61 = vld [vmem:[#allocation0 + $0xac2] ss:$8 sm:$0xf]   ;;  %v4468_v0 = vsel %vm2563_vm0, %v4466_v39, %v4464_v33  ;;  %v3909_v16 = vpop.permute.xlu0 %3908   ;;  %v3964_v13 = vpop.permute.xlu1 %3963  }
 0x262   :  { %v4477_v54 = vld [vmem:[#allocation0 + $0xac2] ss:$8 sm:$0xf0]   ;;  %6389 = vst.msk [vmem:[%s9712_s1 + $0x1f8] sm:$0xff] %vm3142_vm2, %v3833_v44   ;;  %4469 = vrot.lane.b32.xlu1 %v4468_v0, %s6520_s10 }
 0x263   :  { %v4479_v28 = vsel %vm2563_vm0, %v4477_v54, %v4475_v61  ;;  %v4486_v46 = vld [vmem:[#allocation0 + $0xbc2] ss:$8 sm:$0xf]   ;;  %3846 = vst.msk [vmem:[%s9712_s1] sm:$0xff] %vm3845_vm3, %v3844_v20   ;;  %6390 = vst.msk [vmem:[%s9712_s1 + $0x20] sm:$0xff] %vm3845_vm3, %v3854_v15  }
 0x264   :  { %v4488_v5 = vld [vmem:[#allocation0 + $0xbc2] ss:$8 sm:$0xf0]   ;;  %4480 = vrot.lane.b32.xlu0 %v4479_v28, %s6520_s10  ;;  %6391 = vst.msk [vmem:[%s9712_s1 + $0x40] sm:$0xff] %vm3845_vm3, %v3865_v47   ;;  %6392 = vst.msk [vmem:[%s9712_s1 + $0x60] sm:$0xff] %vm3845_vm3, %v3876_v26  }
 0x265   :  { %v4497_v53 = vld [vmem:[#allocation0 + $0xcc2] ss:$8 sm:$0xf]   ;;  %v4490_v8 = vsel %vm2563_vm0, %v4488_v5, %v4486_v46  ;;  %v4541_v34 = vld [vmem:[#allocation0 + $0x1] ss:$8 sm:$0xf]   ;;  %v3931_v37 = vpop.permute.xlu0 %3930   ;;  %v3986_v39 = vpop.permute.xlu1 %3985  }
 0x266   :  { %v4499_v7 = vld [vmem:[#allocation0 + $0xcc2] ss:$8 sm:$0xf0]   ;;  %4491 = vrot.lane.b32.xlu1 %v4490_v8, %s6520_s10  ;;  %v4543_v24 = vld [vmem:[#allocation0 + $0x1] ss:$8 sm:$0xf0]  }
 0x267   :  { %v4501_v32 = vsel %vm2563_vm0, %v4499_v7, %v4497_v53  ;;  %v4508_v4 = vld [vmem:[#allocation0 + $0xdc2] ss:$8 sm:$0xf]   ;;  %6393 = vst.msk [vmem:[%s9712_s1 + $0x80] sm:$0xff] %vm3845_vm3, %v3887_v22   ;;  %v4545_v27 = vsel %vm2563_vm0, %v4543_v24, %v4541_v34  ;;  %6394 = vst.msk [vmem:[%s9712_s1 + $0xa0] sm:$0xff] %vm3845_vm3, %v3898_v31  }
 0x268   :  { %v4510_v9 = vld [vmem:[#allocation0 + $0xdc2] ss:$8 sm:$0xf0]   ;;  %4502 = vrot.lane.b32.xlu0 %v4501_v32, %s6520_s10  ;;  %v4551_v23 = vld [vmem:[#allocation0 + $0x101] ss:$8 sm:$0xf]  }
 0x269   :  { %v4519_v10 = vld [vmem:[#allocation0 + $0xec2] ss:$8 sm:$0xf]   ;;  %v4512_v52 = vsel %vm2563_vm0, %v4510_v9, %v4508_v4  ;;  %v4553_v6 = vld [vmem:[#allocation0 + $0x101] ss:$8 sm:$0xf0]   ;;  %v3953_v63 = vpop.permute.xlu0 %3952   ;;  %v4008_v44 = vpop.permute.xlu1 %4007  }
 0x26a   :  { %v4521_v2 = vld [vmem:[#allocation0 + $0xec2] ss:$8 sm:$0xf0]   ;;  %4513 = vrot.lane.b32.xlu1 %v4512_v52, %s6520_s10  ;;  %v4562_v62 = vld [vmem:[#allocation0 + $0x201] ss:$8 sm:$0xf]   ;;  %v4555_v40 = vsel %vm2563_vm0, %v4553_v6, %v4551_v23 }
 0x26b   :  { %v4523_v3 = vsel %vm2563_vm0, %v4521_v2, %v4519_v10  ;;  %v4530_v21 = vld [vmem:[#allocation0 + $0xfc2] ss:$8 sm:$0xf]   ;;  %v4564_v48 = vld [vmem:[#allocation0 + $0x201] ss:$8 sm:$0xf0]  }
 0x26c   :  { %v4532_v18 = vld [vmem:[#allocation0 + $0xfc2] ss:$8 sm:$0xf0]   ;;  %4524 = vrot.lane.b32.xlu0 %v4523_v3, %s6520_s10  ;;  %6395 = vst.msk [vmem:[%s9712_s1 + $0xc0] sm:$0xff] %vm3845_vm3, %v3909_v16   ;;  %v4566_v12 = vsel %vm2563_vm0, %v4564_v48, %v4562_v62  ;;  %6396 = vst.msk [vmem:[%s9712_s1 + $0xe0] sm:$0xff] %vm3845_vm3, %v3920_v58  }
 0x26d   :  { %v4534_v14 = vsel %vm2563_vm0, %v4532_v18, %v4530_v21  ;;  %v4573_v35 = vld [vmem:[#allocation0 + $0x301] ss:$8 sm:$0xf]   ;;  %6397 = vst.msk [vmem:[%s9712_s1 + $0x100] sm:$0xff] %vm3845_vm3, %v3931_v37   ;;  %6398 = vst.msk [vmem:[%s9712_s1 + $0x120] sm:$0xff] %vm3845_vm3, %v3942_v50   ;;  %v3975_v55 = vpop.permute.xlu0 %3974   ;;  %v4030_v15 = vpop.permute.xlu1 %4029  }
 0x26e   :  { %4535 = vrot.lane.b32.xlu1 %v4534_v14, %s6520_s10  ;;  %s6521_s10 = smov 32   ;;  %v4575_v25 = vld [vmem:[#allocation0 + $0x301] ss:$8 sm:$0xf0]   ;;  %6399 = vst.msk [vmem:[%s9712_s1 + $0x140] sm:$0xff] %vm3845_vm3, %v3953_v63   ;;  %6400 = vst.msk [vmem:[%s9712_s1 + $0x160] sm:$0xff] %vm3845_vm3, %v3964_v13  }
 0x26f   :  { %v4584_v38 = vld [vmem:[#allocation0 + $0x401] ss:$8 sm:$0xf]   ;;  %v4577_v42 = vsel %vm2563_vm0, %v4575_v25, %v4573_v35  ;;  %6401 = vst.msk [vmem:[%s9712_s1 + $0x180] sm:$0xff] %vm3845_vm3, %v3975_v55   ;;  %6402 = vst.msk [vmem:[%s9712_s1 + $0x1a0] sm:$0xff] %vm3845_vm3, %v3986_v39  }
 0x270   :  { %4546 = vrot.lane.b32.xlu0 %v4545_v27, %s6521_s10  ;;  %v4586_v41 = vld [vmem:[#allocation0 + $0x401] ss:$8 sm:$0xf0]   ;;  %6404 = vst.msk [vmem:[%s9712_s1 + $0x1e0] sm:$0xff] %vm3845_vm3, %v4008_v44   ;;  %6406 = vst.msk [vmem:[%s9712_s1 + $0x28] sm:$0xff] %vm3845_vm3, %v4030_v15  }
 0x271   :  { %v4588_v45 = vsel %vm2563_vm0, %v4586_v41, %v4584_v38  ;;  %v4595_v49 = vld [vmem:[#allocation0 + $0x501] ss:$8 sm:$0xf]   ;;  %v3997_v11 = vpop.permute.xlu0 %3996   ;;  %v4052_v26 = vpop.permute.xlu1 %4051  }
 0x272   :  { %4556 = vrot.lane.b32.xlu1 %v4555_v40, %s6521_s10  ;;  %v4597_v29 = vld [vmem:[#allocation0 + $0x501] ss:$8 sm:$0xf0]   ;;  %6403 = vst.msk [vmem:[%s9712_s1 + $0x1c0] sm:$0xff] %vm3845_vm3, %v3997_v11   ;;  %6408 = vst.msk [vmem:[%s9712_s1 + $0x68] sm:$0xff] %vm3845_vm3, %v4052_v26  }
 0x273   :  { %v4606_v1 = vld [vmem:[#allocation0 + $0x601] ss:$8 sm:$0xf]   ;;  %v4599_v30 = vsel %vm2563_vm0, %v4597_v29, %v4595_v49 }
 0x274   :  { %4567 = vrot.lane.b32.xlu0 %v4566_v12, %s6521_s10  ;;  %v4608_v19 = vld [vmem:[#allocation0 + $0x601] ss:$8 sm:$0xf0]  }
 0x275   :  { %v4610_v56 = vsel %vm2563_vm0, %v4608_v19, %v4606_v1  ;;  %v4617_v51 = vld [vmem:[#allocation0 + $0x701] ss:$8 sm:$0xf]   ;;  %v4019_v20 = vpop.permute.xlu0 %4018   ;;  %v4074_v31 = vpop.permute.xlu1 %4073  }
 0x276   :  { %4578 = vrot.lane.b32.xlu1 %v4577_v42, %s6521_s10  ;;  %v4619_v60 = vld [vmem:[#allocation0 + $0x701] ss:$8 sm:$0xf0]   ;;  %6405 = vst.msk [vmem:[%s9712_s1 + $0x8] sm:$0xff] %vm3845_vm3, %v4019_v20   ;;  %6410 = vst.msk [vmem:[%s9712_s1 + $0xa8] sm:$0xff] %vm3845_vm3, %v4074_v31  }
 0x277   :  { %v4628_v36 = vld [vmem:[#allocation0 + $0x801] ss:$8 sm:$0xf]   ;;  %v4621_v57 = vsel %vm2563_vm0, %v4619_v60, %v4617_v51 }
 0x278   :  { %4589 = vrot.lane.b32.xlu0 %v4588_v45, %s6521_s10  ;;  %v4630_v17 = vld [vmem:[#allocation0 + $0x801] ss:$8 sm:$0xf0]  }
 0x279   :  { %v4632_v43 = vsel %vm2563_vm0, %v4630_v17, %v4628_v36  ;;  %v4639_v59 = vld [vmem:[#allocation0 + $0x901] ss:$8 sm:$0xf]   ;;  %v4041_v47 = vpop.permute.xlu0 %4040   ;;  %v4096_v58 = vpop.permute.xlu1 %4095  }
 0x27a   :  { %4600 = vrot.lane.b32.xlu1 %v4599_v30, %s6521_s10  ;;  %v4641_v33 = vld [vmem:[#allocation0 + $0x901] ss:$8 sm:$0xf0]   ;;  %6407 = vst.msk [vmem:[%s9712_s1 + $0x48] sm:$0xff] %vm3845_vm3, %v4041_v47   ;;  %6412 = vst.msk [vmem:[%s9712_s1 + $0xe8] sm:$0xff] %vm3845_vm3, %v4096_v58  }
 0x27b   :  { %v4650_v61 = vld [vmem:[#allocation0 + $0xa01] ss:$8 sm:$0xf]   ;;  %v4643_v0 = vsel %vm2563_vm0, %v4641_v33, %v4639_v59 }
 0x27c   :  { %4611 = vrot.lane.b32.xlu0 %v4610_v56, %s6521_s10  ;;  %v4652_v54 = vld [vmem:[#allocation0 + $0xa01] ss:$8 sm:$0xf0]  }
 0x27d   :  { %v4654_v28 = vsel %vm2563_vm0, %v4652_v54, %v4650_v61  ;;  %v4661_v46 = vld [vmem:[#allocation0 + $0xb01] ss:$8 sm:$0xf]   ;;  %v4063_v22 = vpop.permute.xlu0 %4062   ;;  %v4118_v50 = vpop.permute.xlu1 %4117  }
 0x27e   :  { %4622 = vrot.lane.b32.xlu1 %v4621_v57, %s6521_s10  ;;  %v4663_v5 = vld [vmem:[#allocation0 + $0xb01] ss:$8 sm:$0xf0]   ;;  %6409 = vst.msk [vmem:[%s9712_s1 + $0x88] sm:$0xff] %vm3845_vm3, %v4063_v22   ;;  %6414 = vst.msk [vmem:[%s9712_s1 + $0x128] sm:$0xff] %vm3845_vm3, %v4118_v50  }
 0x27f   :  { %v4672_v53 = vld [vmem:[#allocation0 + $0xc01] ss:$8 sm:$0xf]   ;;  %v4665_v8 = vsel %vm2563_vm0, %v4663_v5, %v4661_v46 }
 0x280   :  { %4633 = vrot.lane.b32.xlu0 %v4632_v43, %s6521_s10  ;;  %v4674_v7 = vld [vmem:[#allocation0 + $0xc01] ss:$8 sm:$0xf0]  }
 0x281   :  { %v4676_v32 = vsel %vm2563_vm0, %v4674_v7, %v4672_v53  ;;  %v4683_v4 = vld [vmem:[#allocation0 + $0xd01] ss:$8 sm:$0xf]   ;;  %v4085_v16 = vpop.permute.xlu0 %4084   ;;  %v4140_v13 = vpop.permute.xlu1 %4139  }
 0x282   :  { %4644 = vrot.lane.b32.xlu1 %v4643_v0, %s6521_s10  ;;  %v4685_v9 = vld [vmem:[#allocation0 + $0xd01] ss:$8 sm:$0xf0]   ;;  %6411 = vst.msk [vmem:[%s9712_s1 + $0xc8] sm:$0xff] %vm3845_vm3, %v4085_v16   ;;  %6416 = vst.msk [vmem:[%s9712_s1 + $0x168] sm:$0xff] %vm3845_vm3, %v4140_v13  }
 0x283   :  { %v4694_v10 = vld [vmem:[#allocation0 + $0xe01] ss:$8 sm:$0xf]   ;;  %v4687_v52 = vsel %vm2563_vm0, %v4685_v9, %v4683_v4 }
 0x284   :  { %4655 = vrot.lane.b32.xlu0 %v4654_v28, %s6521_s10  ;;  %v4696_v2 = vld [vmem:[#allocation0 + $0xe01] ss:$8 sm:$0xf0]  }
 0x285   :  { %v4698_v3 = vsel %vm2563_vm0, %v4696_v2, %v4694_v10  ;;  %v4705_v21 = vld [vmem:[#allocation0 + $0xf01] ss:$8 sm:$0xf]   ;;  %v4107_v37 = vpop.permute.xlu0 %4106   ;;  %v4162_v39 = vpop.permute.xlu1 %4161  }
 0x286   :  { %4666 = vrot.lane.b32.xlu1 %v4665_v8, %s6521_s10  ;;  %v4707_v18 = vld [vmem:[#allocation0 + $0xf01] ss:$8 sm:$0xf0]   ;;  %6413 = vst.msk [vmem:[%s9712_s1 + $0x108] sm:$0xff] %vm3845_vm3, %v4107_v37   ;;  %6418 = vst.msk [vmem:[%s9712_s1 + $0x1a8] sm:$0xff] %vm3845_vm3, %v4162_v39  }
 0x287   :  { %v4716_v34 = vld [vmem:[#allocation0 + $0x41] ss:$8 sm:$0xf]   ;;  %v4709_v14 = vsel %vm2563_vm0, %v4707_v18, %v4705_v21 }
 0x288   :  { %4677 = vrot.lane.b32.xlu0 %v4676_v32, %s6521_s10  ;;  %v4718_v24 = vld [vmem:[#allocation0 + $0x41] ss:$8 sm:$0xf0]  }
 0x289   :  { %v4720_v27 = vsel %vm2563_vm0, %v4718_v24, %v4716_v34  ;;  %v4727_v23 = vld [vmem:[#allocation0 + $0x141] ss:$8 sm:$0xf]   ;;  %v4129_v63 = vpop.permute.xlu0 %4128   ;;  %v4184_v44 = vpop.permute.xlu1 %4183  }
 0x28a   :  { %4688 = vrot.lane.b32.xlu1 %v4687_v52, %s6521_s10  ;;  %v4729_v6 = vld [vmem:[#allocation0 + $0x141] ss:$8 sm:$0xf0]   ;;  %6415 = vst.msk [vmem:[%s9712_s1 + $0x148] sm:$0xff] %vm3845_vm3, %v4129_v63   ;;  %6420 = vst.msk [vmem:[%s9712_s1 + $0x1e8] sm:$0xff] %vm3845_vm3, %v4184_v44  }
 0x28b   :  { %v4738_v62 = vld [vmem:[#allocation0 + $0x241] ss:$8 sm:$0xf]   ;;  %v4731_v40 = vsel %vm2563_vm0, %v4729_v6, %v4727_v23 }
 0x28c   :  { %4699 = vrot.lane.b32.xlu0 %v4698_v3, %s6521_s10  ;;  %v4740_v48 = vld [vmem:[#allocation0 + $0x241] ss:$8 sm:$0xf0]  }
 0x28d   :  { %v4742_v12 = vsel %vm2563_vm0, %v4740_v48, %v4738_v62  ;;  %v4749_v35 = vld [vmem:[#allocation0 + $0x341] ss:$8 sm:$0xf]   ;;  %v4151_v55 = vpop.permute.xlu0 %4150   ;;  %v4206_v15 = vpop.permute.xlu1 %4205  }
 0x28e   :  { %4710 = vrot.lane.b32.xlu1 %v4709_v14, %s6521_s10  ;;  %v4751_v25 = vld [vmem:[#allocation0 + $0x341] ss:$8 sm:$0xf0]   ;;  %6417 = vst.msk [vmem:[%s9712_s1 + $0x188] sm:$0xff] %vm3845_vm3, %v4151_v55   ;;  %6422 = vst.msk [vmem:[%s9712_s1 + $0x30] sm:$0xff] %vm3845_vm3, %v4206_v15  }
 0x28f   :  { %v4760_v38 = vld [vmem:[#allocation0 + $0x441] ss:$8 sm:$0xf]   ;;  %v4753_v42 = vsel %vm2563_vm0, %v4751_v25, %v4749_v35 }
 0x290   :  { %4721 = vrot.lane.b32.xlu0 %v4720_v27, %s6521_s10  ;;  %v4762_v41 = vld [vmem:[#allocation0 + $0x441] ss:$8 sm:$0xf0]  }
 0x291   :  { %v4764_v45 = vsel %vm2563_vm0, %v4762_v41, %v4760_v38  ;;  %v4771_v49 = vld [vmem:[#allocation0 + $0x541] ss:$8 sm:$0xf]   ;;  %v4173_v11 = vpop.permute.xlu0 %4172  }
 0x292   :  { %4732 = vrot.lane.b32.xlu1 %v4731_v40, %s6521_s10  ;;  %v4773_v29 = vld [vmem:[#allocation0 + $0x541] ss:$8 sm:$0xf0]   ;;  %6419 = vst.msk [vmem:[%s9712_s1 + $0x1c8] sm:$0xff] %vm3845_vm3, %v4173_v11  }
 0x293   :  { %v4782_v1 = vld [vmem:[#allocation0 + $0x641] ss:$8 sm:$0xf]   ;;  %v4775_v30 = vsel %vm2563_vm0, %v4773_v29, %v4771_v49  ;;  %v4228_v26 = vpop.permute.xlu1 %4227  }
 0x294   :  { %4743 = vrot.lane.b32.xlu0 %v4742_v12, %s6521_s10  ;;  %v4784_v19 = vld [vmem:[#allocation0 + $0x641] ss:$8 sm:$0xf0]   ;;  %6424 = vst.msk [vmem:[%s9712_s1 + $0x70] sm:$0xff] %vm3845_vm3, %v4228_v26  }
 0x295   :  { %v4786_v56 = vsel %vm2563_vm0, %v4784_v19, %v4782_v1  ;;  %v4793_v51 = vld [vmem:[#allocation0 + $0x741] ss:$8 sm:$0xf]   ;;  %v4195_v20 = vpop.permute.xlu0 %4194  }
 0x296   :  { %4754 = vrot.lane.b32.xlu1 %v4753_v42, %s6521_s10  ;;  %v4795_v60 = vld [vmem:[#allocation0 + $0x741] ss:$8 sm:$0xf0]   ;;  %6421 = vst.msk [vmem:[%s9712_s1 + $0x10] sm:$0xff] %vm3845_vm3, %v4195_v20  }
 0x297   :  { %v4804_v36 = vld [vmem:[#allocation0 + $0x841] ss:$8 sm:$0xf]   ;;  %v4797_v57 = vsel %vm2563_vm0, %v4795_v60, %v4793_v51 }
 0x298   :  { %4765 = vrot.lane.b32.xlu0 %v4764_v45, %s6521_s10  ;;  %v4806_v17 = vld [vmem:[#allocation0 + $0x841] ss:$8 sm:$0xf0]   ;;  %v4250_v31 = vpop.permute.xlu1 %4249  }
 0x299   :  { %v4808_v43 = vsel %vm2563_vm0, %v4806_v17, %v4804_v36  ;;  %v4815_v59 = vld [vmem:[#allocation0 + $0x941] ss:$8 sm:$0xf]   ;;  %v4217_v47 = vpop.permute.xlu0 %4216   ;;  %6426 = vst.msk [vmem:[%s9712_s1 + $0xb0] sm:$0xff] %vm3845_vm3, %v4250_v31  }
 0x29a   :  { %4776 = vrot.lane.b32.xlu1 %v4775_v30, %s6521_s10  ;;  %v4817_v33 = vld [vmem:[#allocation0 + $0x941] ss:$8 sm:$0xf0]   ;;  %6423 = vst.msk [vmem:[%s9712_s1 + $0x50] sm:$0xff] %vm3845_vm3, %v4217_v47  }
 0x29b   :  { %v4826_v61 = vld [vmem:[#allocation0 + $0xa41] ss:$8 sm:$0xf]   ;;  %v4819_v0 = vsel %vm2563_vm0, %v4817_v33, %v4815_v59 }
 0x29c   :  { %4787 = vrot.lane.b32.xlu0 %v4786_v56, %s6521_s10  ;;  %v4828_v54 = vld [vmem:[#allocation0 + $0xa41] ss:$8 sm:$0xf0]  }
 0x29d   :  { %v4830_v28 = vsel %vm2563_vm0, %v4828_v54, %v4826_v61  ;;  %v4837_v46 = vld [vmem:[#allocation0 + $0xb41] ss:$8 sm:$0xf]   ;;  %v4239_v22 = vpop.permute.xlu0 %4238  }
 0x29e   :  { %4798 = vrot.lane.b32.xlu1 %v4797_v57, %s6521_s10  ;;  %v4839_v5 = vld [vmem:[#allocation0 + $0xb41] ss:$8 sm:$0xf0]   ;;  %6425 = vst.msk [vmem:[%s9712_s1 + $0x90] sm:$0xff] %vm3845_vm3, %v4239_v22  }
 0x29f   :  { %v4848_v53 = vld [vmem:[#allocation0 + $0xc41] ss:$8 sm:$0xf]   ;;  %v4841_v8 = vsel %vm2563_vm0, %v4839_v5, %v4837_v46  ;;  %v4272_v58 = vpop.permute.xlu1 %4271  }
 0x2a0   :  { %4809 = vrot.lane.b32.xlu0 %v4808_v43, %s6521_s10  ;;  %v4850_v7 = vld [vmem:[#allocation0 + $0xc41] ss:$8 sm:$0xf0]   ;;  %6428 = vst.msk [vmem:[%s9712_s1 + $0xf0] sm:$0xff] %vm3845_vm3, %v4272_v58  }
 0x2a1   :  { %v4852_v32 = vsel %vm2563_vm0, %v4850_v7, %v4848_v53  ;;  %v4859_v4 = vld [vmem:[#allocation0 + $0xd41] ss:$8 sm:$0xf]   ;;  %v4261_v16 = vpop.permute.xlu0 %4260  }
 0x2a2   :  { %4820 = vrot.lane.b32.xlu1 %v4819_v0, %s6521_s10  ;;  %v4861_v9 = vld [vmem:[#allocation0 + $0xd41] ss:$8 sm:$0xf0]   ;;  %6427 = vst.msk [vmem:[%s9712_s1 + $0xd0] sm:$0xff] %vm3845_vm3, %v4261_v16  }
 0x2a3   :  { %v4870_v10 = vld [vmem:[#allocation0 + $0xe41] ss:$8 sm:$0xf]   ;;  %v4863_v52 = vsel %vm2563_vm0, %v4861_v9, %v4859_v4 }
 0x2a4   :  { %4831 = vrot.lane.b32.xlu0 %v4830_v28, %s6521_s10  ;;  %v4872_v2 = vld [vmem:[#allocation0 + $0xe41] ss:$8 sm:$0xf0]   ;;  %v4294_v50 = vpop.permute.xlu1 %4293  }
 0x2a5   :  { %v4874_v3 = vsel %vm2563_vm0, %v4872_v2, %v4870_v10  ;;  %v4881_v21 = vld [vmem:[#allocation0 + $0xf41] ss:$8 sm:$0xf]   ;;  %v4283_v37 = vpop.permute.xlu0 %4282   ;;  %6430 = vst.msk [vmem:[%s9712_s1 + $0x130] sm:$0xff] %vm3845_vm3, %v4294_v50  }
 0x2a6   :  { %4842 = vrot.lane.b32.xlu1 %v4841_v8, %s6521_s10  ;;  %v4883_v18 = vld [vmem:[#allocation0 + $0xf41] ss:$8 sm:$0xf0]   ;;  %6429 = vst.msk [vmem:[%s9712_s1 + $0x110] sm:$0xff] %vm3845_vm3, %v4283_v37  }
 0x2a7   :  { %v4892_v34 = vld [vmem:[#allocation0 + $0x81] ss:$8 sm:$0xf]   ;;  %v4885_v14 = vsel %vm2563_vm0, %v4883_v18, %v4881_v21 }
 0x2a8   :  { %4853 = vrot.lane.b32.xlu0 %v4852_v32, %s6521_s10  ;;  %v4894_v24 = vld [vmem:[#allocation0 + $0x81] ss:$8 sm:$0xf0]  }
 0x2a9   :  { %v4896_v27 = vsel %vm2563_vm0, %v4894_v24, %v4892_v34  ;;  %v4903_v23 = vld [vmem:[#allocation0 + $0x181] ss:$8 sm:$0xf]  }
 0x2aa   :  { %4864 = vrot.lane.b32.xlu1 %v4863_v52, %s6521_s10  ;;  %v4905_v6 = vld [vmem:[#allocation0 + $0x181] ss:$8 sm:$0xf0]   ;;  %v4305_v63 = vpop.permute.xlu0 %4304  }
 0x2ab   :  { %v4914_v62 = vld [vmem:[#allocation0 + $0x281] ss:$8 sm:$0xf]   ;;  %v4907_v40 = vsel %vm2563_vm0, %v4905_v6, %v4903_v23  ;;  %6431 = vst.msk [vmem:[%s9712_s1 + $0x150] sm:$0xff] %vm3845_vm3, %v4305_v63   ;;  %v4316_v13 = vpop.permute.xlu1 %4315  }
 0x2ac   :  { %4875 = vrot.lane.b32.xlu0 %v4874_v3, %s6521_s10  ;;  %v4916_v48 = vld [vmem:[#allocation0 + $0x281] ss:$8 sm:$0xf0]   ;;  %6432 = vst.msk [vmem:[%s9712_s1 + $0x170] sm:$0xff] %vm3845_vm3, %v4316_v13  }
 0x2ad   :  { %v4918_v12 = vsel %vm2563_vm0, %v4916_v48, %v4914_v62  ;;  %v4925_v35 = vld [vmem:[#allocation0 + $0x381] ss:$8 sm:$0xf]  }
 0x2ae   :  { %4886 = vrot.lane.b32.xlu1 %v4885_v14, %s6521_s10  ;;  %v4927_v25 = vld [vmem:[#allocation0 + $0x381] ss:$8 sm:$0xf0]  }
 0x2af   :  { %v4936_v38 = vld [vmem:[#allocation0 + $0x481] ss:$8 sm:$0xf]   ;;  %v4929_v42 = vsel %vm2563_vm0, %v4927_v25, %v4925_v35 }
 0x2b0   :  { %4897 = vrot.lane.b32.xlu0 %v4896_v27, %s6521_s10  ;;  %v4938_v41 = vld [vmem:[#allocation0 + $0x481] ss:$8 sm:$0xf0]   ;;  %v4338_v39 = vpop.permute.xlu1 %4337  }
 0x2b1   :  { %v4940_v45 = vsel %vm2563_vm0, %v4938_v41, %v4936_v38  ;;  %v4947_v49 = vld [vmem:[#allocation0 + $0x581] ss:$8 sm:$0xf]   ;;  %v4327_v55 = vpop.permute.xlu0 %4326   ;;  %6434 = vst.msk [vmem:[%s9712_s1 + $0x1b0] sm:$0xff] %vm3845_vm3, %v4338_v39  }
 0x2b2   :  { %4908 = vrot.lane.b32.xlu1 %v4907_v40, %s6521_s10  ;;  %v4949_v29 = vld [vmem:[#allocation0 + $0x581] ss:$8 sm:$0xf0]   ;;  %6433 = vst.msk [vmem:[%s9712_s1 + $0x190] sm:$0xff] %vm3845_vm3, %v4327_v55  }
 0x2b3   :  { %v4958_v1 = vld [vmem:[#allocation0 + $0x681] ss:$8 sm:$0xf]   ;;  %v4951_v30 = vsel %vm2563_vm0, %v4949_v29, %v4947_v49 }
 0x2b4   :  { %4919 = vrot.lane.b32.xlu0 %v4918_v12, %s6521_s10  ;;  %v4960_v19 = vld [vmem:[#allocation0 + $0x681] ss:$8 sm:$0xf0]  }
 0x2b5   :  { %v4962_v56 = vsel %vm2563_vm0, %v4960_v19, %v4958_v1  ;;  %v4969_v51 = vld [vmem:[#allocation0 + $0x781] ss:$8 sm:$0xf]  }
 0x2b6   :  { %4930 = vrot.lane.b32.xlu1 %v4929_v42, %s6521_s10  ;;  %v4971_v60 = vld [vmem:[#allocation0 + $0x781] ss:$8 sm:$0xf0]   ;;  %v4349_v11 = vpop.permute.xlu0 %4348  }
 0x2b7   :  { %v4980_v36 = vld [vmem:[#allocation0 + $0x881] ss:$8 sm:$0xf]   ;;  %v4973_v57 = vsel %vm2563_vm0, %v4971_v60, %v4969_v51  ;;  %6435 = vst.msk [vmem:[%s9712_s1 + $0x1d0] sm:$0xff] %vm3845_vm3, %v4349_v11   ;;  %v4360_v44 = vpop.permute.xlu1 %4359  }
 0x2b8   :  { %4941 = vrot.lane.b32.xlu0 %v4940_v45, %s6521_s10  ;;  %v4982_v17 = vld [vmem:[#allocation0 + $0x881] ss:$8 sm:$0xf0]   ;;  %6436 = vst.msk [vmem:[%s9712_s1 + $0x1f0] sm:$0xff] %vm3845_vm3, %v4360_v44  }
 0x2b9   :  { %v4984_v43 = vsel %vm2563_vm0, %v4982_v17, %v4980_v36  ;;  %v4991_v59 = vld [vmem:[#allocation0 + $0x981] ss:$8 sm:$0xf]  }
 0x2ba   :  { %4952 = vrot.lane.b32.xlu1 %v4951_v30, %s6521_s10  ;;  %v4993_v33 = vld [vmem:[#allocation0 + $0x981] ss:$8 sm:$0xf0]   ;;  %v4371_v20 = vpop.permute.xlu0 %4370  }
 0x2bb   :  { %v5002_v61 = vld [vmem:[#allocation0 + $0xa81] ss:$8 sm:$0xf]   ;;  %v4995_v0 = vsel %vm2563_vm0, %v4993_v33, %v4991_v59  ;;  %6437 = vst.msk [vmem:[%s9712_s1 + $0x18] sm:$0xff] %vm3845_vm3, %v4371_v20  }
 0x2bc   :  { %4963 = vrot.lane.b32.xlu0 %v4962_v56, %s6521_s10  ;;  %v5004_v54 = vld [vmem:[#allocation0 + $0xa81] ss:$8 sm:$0xf0]   ;;  %v4382_v15 = vpop.permute.xlu1 %4381  }
 0x2bd   :  { %v5006_v28 = vsel %vm2563_vm0, %v5004_v54, %v5002_v61  ;;  %v5013_v46 = vld [vmem:[#allocation0 + $0xb81] ss:$8 sm:$0xf]   ;;  %6438 = vst.msk [vmem:[%s9712_s1 + $0x38] sm:$0xff] %vm3845_vm3, %v4382_v15  }
 0x2be   :  { %4974 = vrot.lane.b32.xlu1 %v4973_v57, %s6521_s10  ;;  %v5015_v5 = vld [vmem:[#allocation0 + $0xb81] ss:$8 sm:$0xf0]  }
 0x2bf   :  { %v5024_v53 = vld [vmem:[#allocation0 + $0xc81] ss:$8 sm:$0xf]   ;;  %v5017_v8 = vsel %vm2563_vm0, %v5015_v5, %v5013_v46 }
 0x2c0   :  { %4985 = vrot.lane.b32.xlu0 %v4984_v43, %s6521_s10  ;;  %v5026_v7 = vld [vmem:[#allocation0 + $0xc81] ss:$8 sm:$0xf0]  }
 0x2c1   :  { %v5028_v32 = vsel %vm2563_vm0, %v5026_v7, %v5024_v53  ;;  %v5035_v4 = vld [vmem:[#allocation0 + $0xd81] ss:$8 sm:$0xf]   ;;  %v4393_v47 = vpop.permute.xlu0 %4392  }
 0x2c2   :  { %4996 = vrot.lane.b32.xlu1 %v4995_v0, %s6521_s10  ;;  %v5037_v9 = vld [vmem:[#allocation0 + $0xd81] ss:$8 sm:$0xf0]   ;;  %6439 = vst.msk [vmem:[%s9712_s1 + $0x58] sm:$0xff] %vm3845_vm3, %v4393_v47  }
 0x2c3   :  { %v5046_v10 = vld [vmem:[#allocation0 + $0xe81] ss:$8 sm:$0xf]   ;;  %v5039_v52 = vsel %vm2563_vm0, %v5037_v9, %v5035_v4  ;;  %v4404_v26 = vpop.permute.xlu1 %4403  }
 0x2c4   :  { %5007 = vrot.lane.b32.xlu0 %v5006_v28, %s6521_s10  ;;  %v5048_v2 = vld [vmem:[#allocation0 + $0xe81] ss:$8 sm:$0xf0]   ;;  %6440 = vst.msk [vmem:[%s9712_s1 + $0x78] sm:$0xff] %vm3845_vm3, %v4404_v26  }
 0x2c5   :  { %v5050_v3 = vsel %vm2563_vm0, %v5048_v2, %v5046_v10  ;;  %v5057_v21 = vld [vmem:[#allocation0 + $0xf81] ss:$8 sm:$0xf]   ;;  %v4415_v22 = vpop.permute.xlu0 %4414  }
 0x2c6   :  { %5018 = vrot.lane.b32.xlu1 %v5017_v8, %s6521_s10  ;;  %v5059_v18 = vld [vmem:[#allocation0 + $0xf81] ss:$8 sm:$0xf0]   ;;  %6441 = vst.msk [vmem:[%s9712_s1 + $0x98] sm:$0xff] %vm3845_vm3, %v4415_v22  }
 0x2c7   :  { %v5068_v34 = vld [vmem:[#allocation0 + $0xc1] ss:$8 sm:$0xf]   ;;  %v5061_v14 = vsel %vm2563_vm0, %v5059_v18, %v5057_v21 }
 0x2c8   :  { %5029 = vrot.lane.b32.xlu0 %v5028_v32, %s6521_s10  ;;  %v5070_v24 = vld [vmem:[#allocation0 + $0xc1] ss:$8 sm:$0xf0]   ;;  %v4426_v31 = vpop.permute.xlu1 %4425  }
 0x2c9   :  { %v5072_v27 = vsel %vm2563_vm0, %v5070_v24, %v5068_v34  ;;  %v5079_v23 = vld [vmem:[#allocation0 + $0x1c1] ss:$8 sm:$0xf]   ;;  %6442 = vst.msk [vmem:[%s9712_s1 + $0xb8] sm:$0xff] %vm3845_vm3, %v4426_v31  }
 0x2ca   :  { %5040 = vrot.lane.b32.xlu1 %v5039_v52, %s6521_s10  ;;  %v5081_v6 = vld [vmem:[#allocation0 + $0x1c1] ss:$8 sm:$0xf0]  }
 0x2cb   :  { %v5090_v62 = vld [vmem:[#allocation0 + $0x2c1] ss:$8 sm:$0xf]   ;;  %v5083_v40 = vsel %vm2563_vm0, %v5081_v6, %v5079_v23 }
 0x2cc   :  { %5051 = vrot.lane.b32.xlu0 %v5050_v3, %s6521_s10  ;;  %v5092_v48 = vld [vmem:[#allocation0 + $0x2c1] ss:$8 sm:$0xf0]  }
 0x2cd   :  { %v4437_v16 = vpop.permute.xlu0 %4436   ;;  %v5094_v12 = vsel %vm2563_vm0, %v5092_v48, %v5090_v62  ;;  %v5101_v35 = vld [vmem:[#allocation0 + $0x3c1] ss:$8 sm:$0xf]  }
 0x2ce   :  { %6443 = vst.msk [vmem:[%s9712_s1 + $0xd8] sm:$0xff] %vm3845_vm3, %v4437_v16   ;;  %5062 = vrot.lane.b32.xlu1 %v5061_v14, %s6521_s10  ;;  %v5103_v25 = vld [vmem:[#allocation0 + $0x3c1] ss:$8 sm:$0xf0]  }
 0x2cf   :  { %v4448_v58 = vpop.permute.xlu1 %4447   ;;  %v5112_v38 = vld [vmem:[#allocation0 + $0x4c1] ss:$8 sm:$0xf]   ;;  %v5105_v42 = vsel %vm2563_vm0, %v5103_v25, %v5101_v35 }
 0x2d0   :  { %5073 = vrot.lane.b32.xlu0 %v5072_v27, %s6521_s10  ;;  %v5114_v41 = vld [vmem:[#allocation0 + $0x4c1] ss:$8 sm:$0xf0]   ;;  %6444 = vst.msk [vmem:[%s9712_s1 + $0xf8] sm:$0xff] %vm3845_vm3, %v4448_v58  }
 0x2d1   :  { %v4459_v37 = vpop.permute.xlu0 %4458   ;;  %v5116_v45 = vsel %vm2563_vm0, %v5114_v41, %v5112_v38  ;;  %v5123_v49 = vld [vmem:[#allocation0 + $0x5c1] ss:$8 sm:$0xf]  }
 0x2d2   :  { %6445 = vst.msk [vmem:[%s9712_s1 + $0x118] sm:$0xff] %vm3845_vm3, %v4459_v37   ;;  %5084 = vrot.lane.b32.xlu1 %v5083_v40, %s6521_s10  ;;  %v5125_v29 = vld [vmem:[#allocation0 + $0x5c1] ss:$8 sm:$0xf0]  }
 0x2d3   :  { %v5134_v1 = vld [vmem:[#allocation0 + $0x6c1] ss:$8 sm:$0xf]   ;;  %v5127_v30 = vsel %vm2563_vm0, %v5125_v29, %v5123_v49 }
 0x2d4   :  { %5095 = vrot.lane.b32.xlu0 %v5094_v12, %s6521_s10  ;;  %v4470_v50 = vpop.permute.xlu1 %4469   ;;  %v5136_v19 = vld [vmem:[#allocation0 + $0x6c1] ss:$8 sm:$0xf0]  }
 0x2d5   :  { %6446 = vst.msk [vmem:[%s9712_s1 + $0x138] sm:$0xff] %vm3845_vm3, %v4470_v50   ;;  %v5138_v56 = vsel %vm2563_vm0, %v5136_v19, %v5134_v1  ;;  %v5145_v51 = vld [vmem:[#allocation0 + $0x7c1] ss:$8 sm:$0xf]  }
 0x2d6   :  { %v4481_v63 = vpop.permute.xlu0 %4480   ;;  %5106 = vrot.lane.b32.xlu1 %v5105_v42, %s6521_s10  ;;  %v5147_v60 = vld [vmem:[#allocation0 + $0x7c1] ss:$8 sm:$0xf0]  }
 0x2d7   :  { %6447 = vst.msk [vmem:[%s9712_s1 + $0x158] sm:$0xff] %vm3845_vm3, %v4481_v63   ;;  %v5156_v36 = vld [vmem:[#allocation0 + $0x8c1] ss:$8 sm:$0xf]   ;;  %v5149_v57 = vsel %vm2563_vm0, %v5147_v60, %v5145_v51 }
 0x2d8   :  { %5117 = vrot.lane.b32.xlu0 %v5116_v45, %s6521_s10  ;;  %v4492_v13 = vpop.permute.xlu1 %4491   ;;  %v5158_v17 = vld [vmem:[#allocation0 + $0x8c1] ss:$8 sm:$0xf0]  }
 0x2d9   :  { %6448 = vst.msk [vmem:[%s9712_s1 + $0x178] sm:$0xff] %vm3845_vm3, %v4492_v13   ;;  %v5160_v43 = vsel %vm2563_vm0, %v5158_v17, %v5156_v36  ;;  %v5167_v59 = vld [vmem:[#allocation0 + $0x9c1] ss:$8 sm:$0xf]  }
 0x2da   :  { %v4503_v55 = vpop.permute.xlu0 %4502   ;;  %5128 = vrot.lane.b32.xlu1 %v5127_v30, %s6521_s10  ;;  %v5169_v33 = vld [vmem:[#allocation0 + $0x9c1] ss:$8 sm:$0xf0]  }
 0x2db   :  { %6449 = vst.msk [vmem:[%s9712_s1 + $0x198] sm:$0xff] %vm3845_vm3, %v4503_v55   ;;  %v5178_v61 = vld [vmem:[#allocation0 + $0xac1] ss:$8 sm:$0xf]   ;;  %v5171_v0 = vsel %vm2563_vm0, %v5169_v33, %v5167_v59 }
 0x2dc   :  { %5139 = vrot.lane.b32.xlu0 %v5138_v56, %s6521_s10  ;;  %v4514_v39 = vpop.permute.xlu1 %4513   ;;  %v5180_v54 = vld [vmem:[#allocation0 + $0xac1] ss:$8 sm:$0xf0]  }
 0x2dd   :  { %6450 = vst.msk [vmem:[%s9712_s1 + $0x1b8] sm:$0xff] %vm3845_vm3, %v4514_v39   ;;  %v5182_v28 = vsel %vm2563_vm0, %v5180_v54, %v5178_v61  ;;  %v5189_v46 = vld [vmem:[#allocation0 + $0xbc1] ss:$8 sm:$0xf]  }
 0x2de   :  { %v4525_v11 = vpop.permute.xlu0 %4524   ;;  %5150 = vrot.lane.b32.xlu1 %v5149_v57, %s6521_s10  ;;  %v5191_v5 = vld [vmem:[#allocation0 + $0xbc1] ss:$8 sm:$0xf0]  }
 0x2df   :  { %6451 = vst.msk [vmem:[%s9712_s1 + $0x1d8] sm:$0xff] %vm3845_vm3, %v4525_v11   ;;  %v5200_v53 = vld [vmem:[#allocation0 + $0xcc1] ss:$8 sm:$0xf]   ;;  %v5193_v8 = vsel %vm2563_vm0, %v5191_v5, %v5189_v46 }
 0x2e0   :  { %5161 = vrot.lane.b32.xlu0 %v5160_v43, %s6521_s10  ;;  %v4536_v44 = vpop.permute.xlu1 %4535   ;;  %v5202_v7 = vld [vmem:[#allocation0 + $0xcc1] ss:$8 sm:$0xf0]  }
 0x2e1   :  { %6452 = vst.msk [vmem:[%s9712_s1 + $0x1f8] sm:$0xff] %vm3845_vm3, %v4536_v44   ;;  %v5204_v32 = vsel %vm2563_vm0, %v5202_v7, %v5200_v53  ;;  %v5211_v4 = vld [vmem:[#allocation0 + $0xdc1] ss:$8 sm:$0xf]  }
 0x2e2   :  { %v4547_v20 = vpop.permute.xlu0 %4546   ;;  %5172 = vrot.lane.b32.xlu1 %v5171_v0, %s6521_s10  ;;  %v5213_v9 = vld [vmem:[#allocation0 + $0xdc1] ss:$8 sm:$0xf0]  }
 0x2e3   :  { %4549 = vst.msk [vmem:[%s9712_s1] sm:$0xff] %vm4548_vm4, %v4547_v20   ;;  %v5222_v10 = vld [vmem:[#allocation0 + $0xec1] ss:$8 sm:$0xf]   ;;  %v5215_v52 = vsel %vm2563_vm0, %v5213_v9, %v5211_v4 }
 0x2e4   :  { %5183 = vrot.lane.b32.xlu0 %v5182_v28, %s6521_s10  ;;  %v4557_v15 = vpop.permute.xlu1 %4556   ;;  %v5224_v2 = vld [vmem:[#allocation0 + $0xec1] ss:$8 sm:$0xf0]  }
 0x2e5   :  { %6453 = vst.msk [vmem:[%s9712_s1 + $0x20] sm:$0xff] %vm4548_vm4, %v4557_v15   ;;  %v5226_v3 = vsel %vm2563_vm0, %v5224_v2, %v5222_v10  ;;  %v5233_v26 = vld [vmem:[#allocation0 + $0xfc1] ss:$8 sm:$0xf]  }
 0x2e6   :  { %v4568_v47 = vpop.permute.xlu0 %4567   ;;  %5194 = vrot.lane.b32.xlu1 %v5193_v8, %s6521_s10  ;;  %v5235_v22 = vld [vmem:[#allocation0 + $0xfc1] ss:$8 sm:$0xf0]  }
 0x2e7   :  { %6454 = vst.msk [vmem:[%s9712_s1 + $0x40] sm:$0xff] %vm4548_vm4, %v4568_v47   ;;  %v5237_v34 = vsel %vm2563_vm0, %v5235_v22, %v5233_v26 }
 0x2e8   :  { %5205 = vrot.lane.b32.xlu0 %v5204_v32, %s6521_s10  ;;  %v4579_v21 = vpop.permute.xlu1 %4578  }
 0x2e9   :  { %6455 = vst.msk [vmem:[%s9712_s1 + $0x60] sm:$0xff] %vm4548_vm4, %v4579_v21  }
 0x2ea   :  { %v4590_v18 = vpop.permute.xlu0 %4589   ;;  %5216 = vrot.lane.b32.xlu1 %v5215_v52, %s6521_s10 }
 0x2eb   :  { %6456 = vst.msk [vmem:[%s9712_s1 + $0x80] sm:$0xff] %vm4548_vm4, %v4590_v18  }
 0x2ec   :  { %5227 = vrot.lane.b32.xlu0 %v5226_v3, %s6521_s10  ;;  %v4601_v24 = vpop.permute.xlu1 %4600  }
 0x2ed   :  { %6457 = vst.msk [vmem:[%s9712_s1 + $0xa0] sm:$0xff] %vm4548_vm4, %v4601_v24  }
 0x2ee   :  { %v4612_v14 = vpop.permute.xlu0 %4611   ;;  %5238 = vrot.lane.b32.xlu1 %v5237_v34, %s6521_s10 }
 0x2ef   :  { %6458 = vst.msk [vmem:[%s9712_s1 + $0xc0] sm:$0xff] %vm4548_vm4, %v4612_v14  }
 0x2f0   :  { %v4623_v27 = vpop.permute.xlu1 %4622  }
 0x2f1   :  { %6459 = vst.msk [vmem:[%s9712_s1 + $0xe0] sm:$0xff] %vm4548_vm4, %v4623_v27  }
 0x2f2   :  { %v4634_v23 = vpop.permute.xlu0 %4633  }
 0x2f3   :  { %6460 = vst.msk [vmem:[%s9712_s1 + $0x100] sm:$0xff] %vm4548_vm4, %v4634_v23  }
 0x2f4   :  { %v4645_v6 = vpop.permute.xlu1 %4644  }
 0x2f5   :  { %6461 = vst.msk [vmem:[%s9712_s1 + $0x120] sm:$0xff] %vm4548_vm4, %v4645_v6  }
 0x2f6   :  { %v4656_v31 = vpop.permute.xlu0 %4655  }
 0x2f7   :  { %6462 = vst.msk [vmem:[%s9712_s1 + $0x140] sm:$0xff] %vm4548_vm4, %v4656_v31  }
 0x2f8   :  { %v4667_v16 = vpop.permute.xlu1 %4666  }
 0x2f9   :  { %6463 = vst.msk [vmem:[%s9712_s1 + $0x160] sm:$0xff] %vm4548_vm4, %v4667_v16  }
 0x2fa   :  { %v4678_v62 = vpop.permute.xlu0 %4677  }
 0x2fb   :  { %6464 = vst.msk [vmem:[%s9712_s1 + $0x180] sm:$0xff] %vm4548_vm4, %v4678_v62  }
 0x2fc   :  { %v4689_v48 = vpop.permute.xlu1 %4688  }
 0x2fd   :  { %6465 = vst.msk [vmem:[%s9712_s1 + $0x1a0] sm:$0xff] %vm4548_vm4, %v4689_v48  }
 0x2fe   :  { %v4700_v40 = vpop.permute.xlu0 %4699  }
 0x2ff   :  { %6466 = vst.msk [vmem:[%s9712_s1 + $0x1c0] sm:$0xff] %vm4548_vm4, %v4700_v40  }
 0x300   :  { %v4711_v12 = vpop.permute.xlu1 %4710  }
 0x301   :  { %6467 = vst.msk [vmem:[%s9712_s1 + $0x1e0] sm:$0xff] %vm4548_vm4, %v4711_v12  }
 0x302   :  { %v4722_v35 = vpop.permute.xlu0 %4721  }
 0x303   :  { %6468 = vst.msk [vmem:[%s9712_s1 + $0x8] sm:$0xff] %vm4548_vm4, %v4722_v35  }
 0x304   :  { %v4733_v25 = vpop.permute.xlu1 %4732  }
 0x305   :  { %6469 = vst.msk [vmem:[%s9712_s1 + $0x28] sm:$0xff] %vm4548_vm4, %v4733_v25  }
 0x306   :  { %v4744_v58 = vpop.permute.xlu0 %4743  }
 0x307   :  { %6470 = vst.msk [vmem:[%s9712_s1 + $0x48] sm:$0xff] %vm4548_vm4, %v4744_v58  }
 0x308   :  { %v4755_v37 = vpop.permute.xlu1 %4754  }
 0x309   :  { %6471 = vst.msk [vmem:[%s9712_s1 + $0x68] sm:$0xff] %vm4548_vm4, %v4755_v37  }
 0x30a   :  { %v4766_v38 = vpop.permute.xlu0 %4765  }
 0x30b   :  { %6472 = vst.msk [vmem:[%s9712_s1 + $0x88] sm:$0xff] %vm4548_vm4, %v4766_v38  }
 0x30c   :  { %v4777_v41 = vpop.permute.xlu1 %4776  }
 0x30d   :  { %6473 = vst.msk [vmem:[%s9712_s1 + $0xa8] sm:$0xff] %vm4548_vm4, %v4777_v41  }
 0x30e   :  { %v4788_v42 = vpop.permute.xlu0 %4787  }
 0x30f   :  { %6474 = vst.msk [vmem:[%s9712_s1 + $0xc8] sm:$0xff] %vm4548_vm4, %v4788_v42  }
 0x310   :  { %v4799_v45 = vpop.permute.xlu1 %4798  }
 0x311   :  { %6475 = vst.msk [vmem:[%s9712_s1 + $0xe8] sm:$0xff] %vm4548_vm4, %v4799_v45  }
 0x312   :  { %v4810_v49 = vpop.permute.xlu0 %4809  }
 0x313   :  { %6476 = vst.msk [vmem:[%s9712_s1 + $0x108] sm:$0xff] %vm4548_vm4, %v4810_v49  }
 0x314   :  { %v4821_v29 = vpop.permute.xlu1 %4820  }
 0x315   :  { %6477 = vst.msk [vmem:[%s9712_s1 + $0x128] sm:$0xff] %vm4548_vm4, %v4821_v29  }
 0x316   :  { %v4832_v50 = vpop.permute.xlu0 %4831  }
 0x317   :  { %6478 = vst.msk [vmem:[%s9712_s1 + $0x148] sm:$0xff] %vm4548_vm4, %v4832_v50  }
 0x318   :  { %v4843_v63 = vpop.permute.xlu1 %4842  }
 0x319   :  { %6479 = vst.msk [vmem:[%s9712_s1 + $0x168] sm:$0xff] %vm4548_vm4, %v4843_v63  }
 0x31a   :  { %v4854_v1 = vpop.permute.xlu0 %4853  }
 0x31b   :  { %6480 = vst.msk [vmem:[%s9712_s1 + $0x188] sm:$0xff] %vm4548_vm4, %v4854_v1  }
 0x31c   :  { %v4865_v19 = vpop.permute.xlu1 %4864  }
 0x31d   :  { %6481 = vst.msk [vmem:[%s9712_s1 + $0x1a8] sm:$0xff] %vm4548_vm4, %v4865_v19  }
 0x31e   :  { %v4876_v30 = vpop.permute.xlu0 %4875  }
 0x31f   :  { %6482 = vst.msk [vmem:[%s9712_s1 + $0x1c8] sm:$0xff] %vm4548_vm4, %v4876_v30  }
 0x320   :  { %v4887_v56 = vpop.permute.xlu1 %4886  }
 0x321   :  { %6483 = vst.msk [vmem:[%s9712_s1 + $0x1e8] sm:$0xff] %vm4548_vm4, %v4887_v56  }
 0x322   :  { %v4898_v51 = vpop.permute.xlu0 %4897  }
 0x323   :  { %6484 = vst.msk [vmem:[%s9712_s1 + $0x10] sm:$0xff] %vm4548_vm4, %v4898_v51  }
 0x324   :  { %v4909_v60 = vpop.permute.xlu1 %4908  }
 0x325   :  { %6485 = vst.msk [vmem:[%s9712_s1 + $0x30] sm:$0xff] %vm4548_vm4, %v4909_v60  }
 0x326   :  { %v4920_v13 = vpop.permute.xlu0 %4919  }
 0x327   :  { %6486 = vst.msk [vmem:[%s9712_s1 + $0x50] sm:$0xff] %vm4548_vm4, %v4920_v13  }
 0x328   :  { %v4931_v55 = vpop.permute.xlu1 %4930  }
 0x329   :  { %6487 = vst.msk [vmem:[%s9712_s1 + $0x70] sm:$0xff] %vm4548_vm4, %v4931_v55  }
 0x32a   :  { %v4942_v36 = vpop.permute.xlu0 %4941  }
 0x32b   :  { %6488 = vst.msk [vmem:[%s9712_s1 + $0x90] sm:$0xff] %vm4548_vm4, %v4942_v36  }
 0x32c   :  { %v4953_v17 = vpop.permute.xlu1 %4952  }
 0x32d   :  { %6489 = vst.msk [vmem:[%s9712_s1 + $0xb0] sm:$0xff] %vm4548_vm4, %v4953_v17  }
 0x32e   :  { %v4964_v57 = vpop.permute.xlu0 %4963  }
 0x32f   :  { %6490 = vst.msk [vmem:[%s9712_s1 + $0xd0] sm:$0xff] %vm4548_vm4, %v4964_v57  }
 0x330   :  { %v4975_v43 = vpop.permute.xlu1 %4974  }
 0x331   :  { %6491 = vst.msk [vmem:[%s9712_s1 + $0xf0] sm:$0xff] %vm4548_vm4, %v4975_v43  }
 0x332   :  { %v4986_v59 = vpop.permute.xlu0 %4985  }
 0x333   :  { %6492 = vst.msk [vmem:[%s9712_s1 + $0x110] sm:$0xff] %vm4548_vm4, %v4986_v59  }
 0x334   :  { %v4997_v33 = vpop.permute.xlu1 %4996  }
 0x335   :  { %6493 = vst.msk [vmem:[%s9712_s1 + $0x130] sm:$0xff] %vm4548_vm4, %v4997_v33  }
 0x336   :  { %v5008_v39 = vpop.permute.xlu0 %5007  }
 0x337   :  { %6494 = vst.msk [vmem:[%s9712_s1 + $0x150] sm:$0xff] %vm4548_vm4, %v5008_v39  }
 0x338   :  { %v5019_v11 = vpop.permute.xlu1 %5018  }
 0x339   :  { %6495 = vst.msk [vmem:[%s9712_s1 + $0x170] sm:$0xff] %vm4548_vm4, %v5019_v11  }
 0x33a   :  { %v5030_v61 = vpop.permute.xlu0 %5029  }
 0x33b   :  { %6496 = vst.msk [vmem:[%s9712_s1 + $0x190] sm:$0xff] %vm4548_vm4, %v5030_v61  }
 0x33c   :  { %v5041_v54 = vpop.permute.xlu1 %5040  }
 0x33d   :  { %6497 = vst.msk [vmem:[%s9712_s1 + $0x1b0] sm:$0xff] %vm4548_vm4, %v5041_v54  }
 0x33e   :  { %v5052_v0 = vpop.permute.xlu0 %5051  }
 0x33f   :  { %6498 = vst.msk [vmem:[%s9712_s1 + $0x1d0] sm:$0xff] %vm4548_vm4, %v5052_v0  }
 0x340   :  { %v5063_v28 = vpop.permute.xlu1 %5062  }
 0x341   :  { %6499 = vst.msk [vmem:[%s9712_s1 + $0x1f0] sm:$0xff] %vm4548_vm4, %v5063_v28  }
 0x342   :  { %v5074_v46 = vpop.permute.xlu0 %5073  }
 0x343   :  { %6500 = vst.msk [vmem:[%s9712_s1 + $0x18] sm:$0xff] %vm4548_vm4, %v5074_v46  }
 0x344   :  { %v5085_v5 = vpop.permute.xlu1 %5084  }
 0x345   :  { %6501 = vst.msk [vmem:[%s9712_s1 + $0x38] sm:$0xff] %vm4548_vm4, %v5085_v5  }
 0x346   :  { %v5096_v44 = vpop.permute.xlu0 %5095  }
 0x347   :  { %6502 = vst.msk [vmem:[%s9712_s1 + $0x58] sm:$0xff] %vm4548_vm4, %v5096_v44  }
 0x348   :  { %v5107_v20 = vpop.permute.xlu1 %5106  }
 0x349   :  { %6503 = vst.msk [vmem:[%s9712_s1 + $0x78] sm:$0xff] %vm4548_vm4, %v5107_v20  }
 0x34a   :  { %v5118_v53 = vpop.permute.xlu0 %5117  }
 0x34b   :  { %6504 = vst.msk [vmem:[%s9712_s1 + $0x98] sm:$0xff] %vm4548_vm4, %v5118_v53  }
 0x34c   :  { %v5129_v7 = vpop.permute.xlu1 %5128  }
 0x34d   :  { %6505 = vst.msk [vmem:[%s9712_s1 + $0xb8] sm:$0xff] %vm4548_vm4, %v5129_v7  }
 0x34e   :  { %v5140_v8 = vpop.permute.xlu0 %5139  }
 0x34f   :  { %6506 = vst.msk [vmem:[%s9712_s1 + $0xd8] sm:$0xff] %vm4548_vm4, %v5140_v8  }
 0x350   :  { %v5151_v32 = vpop.permute.xlu1 %5150  }
 0x351   :  { %6507 = vst.msk [vmem:[%s9712_s1 + $0xf8] sm:$0xff] %vm4548_vm4, %v5151_v32  }
 0x352   :  { %v5162_v4 = vpop.permute.xlu0 %5161  }
 0x353   :  { %6508 = vst.msk [vmem:[%s9712_s1 + $0x118] sm:$0xff] %vm4548_vm4, %v5162_v4  }
 0x354   :  { %v5173_v9 = vpop.permute.xlu1 %5172  }
 0x355   :  { %6509 = vst.msk [vmem:[%s9712_s1 + $0x138] sm:$0xff] %vm4548_vm4, %v5173_v9  }
 0x356   :  { %v5184_v15 = vpop.permute.xlu0 %5183  }
 0x357   :  { %6510 = vst.msk [vmem:[%s9712_s1 + $0x158] sm:$0xff] %vm4548_vm4, %v5184_v15  }
 0x358   :  { %v5195_v47 = vpop.permute.xlu1 %5194  }
 0x359   :  { %6511 = vst.msk [vmem:[%s9712_s1 + $0x178] sm:$0xff] %vm4548_vm4, %v5195_v47  }
 0x35a   :  { %v5206_v10 = vpop.permute.xlu0 %5205  }
 0x35b   :  { %6512 = vst.msk [vmem:[%s9712_s1 + $0x198] sm:$0xff] %vm4548_vm4, %v5206_v10  }
 0x35c   :  { %v5217_v2 = vpop.permute.xlu1 %5216  }
 0x35d   :  { %6513 = vst.msk [vmem:[%s9712_s1 + $0x1b8] sm:$0xff] %vm4548_vm4, %v5217_v2  }
 0x35e   :  { %v5228_v52 = vpop.permute.xlu0 %5227  }
 0x35f   :  { %6514 = vst.msk [vmem:[%s9712_s1 + $0x1d8] sm:$0xff] %vm4548_vm4, %v5228_v52  }
 0x360   :  { %v5239_v3 = vpop.permute.xlu1 %5238  }
 0x361   :  { %6515 = vst.msk [vmem:[%s9712_s1 + $0x1f8] sm:$0xff] %vm4548_vm4, %v5239_v3  }

// kernel: mha_forward.1
= control target key start
LH: loop header
LB: loop body
LE: loop exit
PB: predicated region body
PF: predicated region fallthrough
CT: control target
= control target key end

     0   :  { %s5849_s21 = smov 0   ;;  %s8246_s0 = inlined_call_operand.vmem [shape: f32[512,32], index: 0, kind: input, shape index: {}]   ;;  %s8247_s1 = inlined_call_operand.vmem [shape: f32[16,32,128], index: 1, kind: input, shape index: {}]   ;;  %s8248_s2 = inlined_call_operand.vmem [shape: f32[32,96], index: 2, kind: input, shape index: {}]   ;;  %s8249_s3 = inlined_call_operand.vmem [shape: f32[1,96], index: 3, kind: input, shape index: {}]   ;;  %s8250_s4 = inlined_call_operand.vmem [shape: f32[32,128], index: 4, kind: input, shape index: {}]   ;;  %s8251_s5 = inlined_call_operand.vmem [shape: f32[128,32], index: 5, kind: input, shape index: {}]   ;;  %s8252_s6 = inlined_call_operand.vmem [shape: f32[512,32], index: 6, kind: output, shape index: {}]  }
   0x1 LB: > { %s4774_s22 = sadd.s32 4294967295, %s5809_s21   ;;  %p4778_p0 = scmp.ge.s32.totalorder %s5809_s21, 1  ;;  %s5809_s21 = sphi %s5849_s21, %s16_s21  }
   0x2   : > { %p225_p1 = scmp.lt.s32.totalorder %s5809_s21, 3 }
   0x4   : > { %p226_p2 = pnand %p4778_p0, %p225_p1 }
   0x6   : > { %229 = sbr.rel (%p226_p2) target bundleno = 2734 (0xaae), region = 44 }
   0xb   : > { %v315_v0 = vld [vmem:[%s8248_s2 + $0x18] sm:$0xff]  ;;  %v314_v1 = vld [vmem:[%s8248_s2 + $0x10] sm:$0xff]  ;;  %s4779_s27 = sshll.u32 %s4774_s22, 5  ;;  %v313_v2 = vld [vmem:[%s8248_s2 + $0x8] sm:$0xff]  ;;  %vm323_vm0 = vcmask 261120   ;;  %s5811_s14 = smov 96  }
   0xc   : > { %5174 = vmatprep.subr.mxu0 %v315_v0  ;;  %p262_p3 = scmp.lt.s32.totalorder %s4779_s27, 63  ;;  %5646 = vmatprep.subr.mxu1 %v315_v0  ;;  %v312_v3 = vld [vmem:[%s8248_s2] sm:$0xff]  ;;  %s5812_s15 = smov 32   ;;  %v5981_v50 = vld [vmem:[%s8251_s5 + $0x48] sm:$0xff]  ;;  %v5992_v52 = vld [vmem:[%s8251_s5 + $0x38] sm:$0xff]  ;;  %vm762_vm1 = vcmask 785408  }
   0xd   : > { %5175 = vmatpush3.msra.mxu0 %v315_v0  ;;  %5650 = vmatpush3.msra.mxu1 %v315_v0  ;;  %v5912_v19 = vld [vmem:[%s8249_s3] ss:$0 sm:$0xff]  ;;  %s5813_s18 = smov 64   ;;  %v6001_v54 = vld [vmem:[%s8251_s5 + $0x28] sm:$0xff]  ;;  %v6009_v55 = vld [vmem:[%s8251_s5 + $0x18] sm:$0xff]  ;;  %vm757_vm2 = vcmask 523264  }
   0xe   : > { %5176 = vmatprep.subr.mxu0 %v314_v1  ;;  %s8507_s27 = smov (!%p262_p3, %s4779_s27), 63  ;;  %5647 = vmatprep.subr.mxu1 %v314_v1  ;;  %v6017_v56 = vld [vmem:[%s8251_s5 + $0x8] sm:$0xff]  ;;  %s4781_s25 = sshll.u32 %s4774_s22, 3 }
   0xf   : > { %5177 = vmatpush3.msra.mxu0 %v314_v1  ;;  %5651 = vmatpush3.msra.mxu1 %v314_v1  ;;  %s4780_s8 = sshll.u32 %s8507_s27, 3  ;;  %p268_p4 = scmp.lt.s32.totalorder %s4781_s25, 15 }
  0x10   : > { %5178 = vmatprep.subr.mxu0 %v313_v2  ;;  %5648 = vmatprep.subr.mxu1 %v313_v2  ;;  %s5879_s11 = scalar_lea.vmem %s8246_s0, %s4780_s8  ;;  %s8025_s7 = scalar_lea.vmem %s8252_s6, %s4780_s8 }
  0x11   : > { %5179 = vmatpush3.msra.mxu0 %v313_v2  ;;  %5652 = vmatpush3.msra.mxu1 %v313_v2  ;;  %v280_v4 = vld [vmem:[%s5879_s11] sm:$0xff]  ;;  %v281_v5 = vld [vmem:[%s5879_s11 + $0x8] sm:$0xff]  ;;  %v282_v6 = vld [vmem:[%s5879_s11 + $0x10] sm:$0xff]  ;;  %s8509_s25 = smov (!%p268_p4, %s4781_s25), 15 }
  0x12   : > { %5180 = vmatprep.subr.mxu0 %v312_v3  ;;  %5649 = vmatprep.subr.mxu1 %v312_v3  ;;  %v306_v7 = vld [vmem:[%s5879_s11 + $0xd0] sm:$0xff]  ;;  %v307_v8 = vld [vmem:[%s5879_s11 + $0xd8] sm:$0xff]  ;;  %v308_v9 = vld [vmem:[%s5879_s11 + $0xe0] sm:$0xff]  ;;  %s4913_s26 = sshll.u32 %s8509_s25, 5 }
  0x13   : > { %5181 = vmatpush3.msra.mxu0 %v312_v3  ;;  %5182 = vmatprep.mubr.msk.f32.mxu0 %vm323_vm0, %v280_v4  ;;  %v283_v10 = vld [vmem:[%s5879_s11 + $0x18] sm:$0xff]  ;;  %v309_v11 = vld [vmem:[%s5879_s11 + $0xe8] sm:$0xff]  ;;  %v310_v12 = vld [vmem:[%s5879_s11 + $0xf0] sm:$0xff]  ;;  %s6411_s29 = scalar_lea.vmem %s8247_s1, %s4913_s26 }
  0x14   : > { %5183 = vmatmul.mubr.msk.f32.vlgmr.msra.gmra.mxu0 %vm323_vm0, %v281_v5  ;;  %5653 = vmatpush3.msra.mxu1 %v312_v3  ;;  %v311_v13 = vld [vmem:[%s5879_s11 + $0xf8] sm:$0xff]  ;;  %v284_v14 = vld [vmem:[%s5879_s11 + $0x20] sm:$0xff]  ;;  %v285_v15 = vld [vmem:[%s5879_s11 + $0x28] sm:$0xff] }
  0x15   : > { %5185 = vmatprep.mubr.msk.f32.mxu0 %vm323_vm0, %v282_v6  ;;  %5221 = vmatprep.mubr.msk.f32.mxu1 %vm323_vm0, %v306_v7  ;;  %v286_v16 = vld [vmem:[%s5879_s11 + $0x30] sm:$0xff]  ;;  %v287_v17 = vld [vmem:[%s5879_s11 + $0x38] sm:$0xff]  ;;  %v288_v23 = vld [vmem:[%s5879_s11 + $0x40] sm:$0xff] }
  0x16   : > { %5222 = vmatmul.mubr.msk.f32.vlgmr.msra.gmra.mxu1 %vm323_vm0, %v307_v8  ;;  %v289_v24 = vld [vmem:[%s5879_s11 + $0x48] sm:$0xff]  ;;  %v290_v25 = vld [vmem:[%s5879_s11 + $0x50] sm:$0xff]  ;;  %v291_v29 = vld [vmem:[%s5879_s11 + $0x58] sm:$0xff] }
  0x17   : > { %5224 = vmatprep.mubr.msk.f32.mxu1 %vm323_vm0, %v308_v9  ;;  %v292_v30 = vld [vmem:[%s5879_s11 + $0x60] sm:$0xff]  ;;  %v293_v32 = vld [vmem:[%s5879_s11 + $0x68] sm:$0xff]  ;;  %v294_v33 = vld [vmem:[%s5879_s11 + $0x70] sm:$0xff] }
  0x18   : > { %5186 = vmatmul.mubr.msk.f32.gmra.mxu0 %vm323_vm0, %v283_v10  ;;  %v295_v34 = vld [vmem:[%s5879_s11 + $0x78] sm:$0xff]  ;;  %v296_v35 = vld [vmem:[%s5879_s11 + $0x80] sm:$0xff]  ;;  %v297_v36 = vld [vmem:[%s5879_s11 + $0x88] sm:$0xff] }
  0x19   : > { %5188 = vmatprep.mubr.msk.f32.mxu0 %vm323_vm0, %v284_v14  ;;  %v298_v37 = vld [vmem:[%s5879_s11 + $0x90] sm:$0xff]  ;;  %v299_v38 = vld [vmem:[%s5879_s11 + $0x98] sm:$0xff]  ;;  %v300_v40 = vld [vmem:[%s5879_s11 + $0xa0] sm:$0xff] }
  0x1a   : > { %5225 = vmatmul.mubr.msk.f32.gmra.mxu1 %vm323_vm0, %v309_v11  ;;  %v301_v41 = vld [vmem:[%s5879_s11 + $0xa8] sm:$0xff]  ;;  %v302_v44 = vld [vmem:[%s5879_s11 + $0xb0] sm:$0xff]  ;;  %v303_v45 = vld [vmem:[%s5879_s11 + $0xb8] sm:$0xff] }
  0x1b   : > { %5227 = vmatprep.mubr.msk.f32.mxu1 %vm323_vm0, %v310_v12  ;;  %v304_v47 = vld [vmem:[%s5879_s11 + $0xc0] sm:$0xff]  ;;  %v305_v48 = vld [vmem:[%s5879_s11 + $0xc8] sm:$0xff]  ;;  %v6052_v2 = vld [vmem:[%s8251_s5 + $0x78] sm:$0xff] }
  0x1c   : > { %5189 = vmatmul.mubr.msk.f32.gmra.mxu0 %vm323_vm0, %v285_v15  ;;  %v6059_v3 = vld [vmem:[%s8251_s5 + $0x70] sm:$0xff]  ;;  %v6066_v4 = vld [vmem:[%s8251_s5 + $0x68] sm:$0xff]  ;;  %v6073_v5 = vld [vmem:[%s8251_s5 + $0x60] sm:$0xff] }
  0x1d   : > { %5191 = vmatprep.mubr.msk.f32.mxu0 %vm323_vm0, %v286_v16  ;;  %v6080_v6 = vld [vmem:[%s8251_s5 + $0x58] sm:$0xff]  ;;  %v6087_v7 = vld [vmem:[%s8251_s5 + $0x50] sm:$0xff]  ;;  %v6094_v8 = vld [vmem:[%s8251_s5 + $0x40] sm:$0xff] }
  0x1e   : > { %5228 = vmatmul.mubr.msk.f32.gmra.mxu1 %vm323_vm0, %v311_v13  ;;  %v6101_v9 = vld [vmem:[%s8251_s5 + $0x30] sm:$0xff]  ;;  %v6108_v10 = vld [vmem:[%s8251_s5 + $0x20] sm:$0xff] }
  0x1f   : > { %v6115_v11 = vld [vmem:[%s8251_s5 + $0x10] sm:$0xff]  ;;  %v6122_v12 = vld [vmem:[%s8251_s5] sm:$0xff] }
  0x20   : > { %5192 = vmatmul.mubr.msk.f32.gmra.mxu0 %vm323_vm0, %v287_v17 }
  0x21   : > { %5194 = vmatprep.mubr.msk.f32.mxu0 %vm323_vm0, %v288_v23 }
  0x24   : > { %5195 = vmatmul.mubr.msk.f32.gmra.mxu0 %vm323_vm0, %v289_v24 }
  0x25   : > { %5197 = vmatprep.mubr.msk.f32.mxu0 %vm323_vm0, %v290_v25  ;;  %v6131_v25 = vld [vmem:[%s8250_s4 + $0x18] sm:$0xff] }
  0x28   : > { %5198 = vmatmul.mubr.msk.f32.gmra.mxu0 %vm323_vm0, %v291_v29 }
  0x29   : > { %5200 = vmatprep.mubr.msk.f32.mxu0 %vm323_vm0, %v292_v30 }
  0x2c   : > { %5201 = vmatmul.mubr.msk.f32.gmra.mxu0 %vm323_vm0, %v293_v32  ;;  %v6138_v32 = vld [vmem:[%s8250_s4 + $0x10] sm:$0xff] }
  0x2d   : > { %5203 = vmatprep.mubr.msk.f32.mxu0 %vm323_vm0, %v294_v33 }
  0x30   : > { %5204 = vmatmul.mubr.msk.f32.gmra.mxu0 %vm323_vm0, %v295_v34 }
  0x31   : > { %5206 = vmatprep.mubr.msk.f32.mxu0 %vm323_vm0, %v296_v35 }
  0x34   : > { %5207 = vmatmul.mubr.msk.f32.gmra.mxu0 %vm323_vm0, %v297_v36 }
  0x35   : > { %5209 = vmatprep.mubr.msk.f32.mxu0 %vm323_vm0, %v298_v37  ;;  %v6148_v37 = vld [vmem:[%s8250_s4 + $0x8] sm:$0xff] }
  0x38   : > { %5210 = vmatmul.mubr.msk.f32.gmra.mxu0 %vm323_vm0, %v299_v38 }
  0x39   : > { %5212 = vmatprep.mubr.msk.f32.mxu0 %vm323_vm0, %v300_v40 }
  0x3c   : > { %5213 = vmatmul.mubr.msk.f32.gmra.mxu0 %vm323_vm0, %v301_v41 }
  0x3d   : > { %5215 = vmatprep.mubr.msk.f32.mxu0 %vm323_vm0, %v302_v44 }
  0x40   : > { %5216 = vmatmul.mubr.msk.f32.gmra.mxu0 %vm323_vm0, %v303_v45  ;;  %v6159_v45 = vld [vmem:[%s8250_s4] sm:$0xff] }
  0x41   : > { %5218 = vmatprep.mubr.msk.f32.mxu0 %vm323_vm0, %v304_v47 }
  0x44   : > { %5219 = vmatmul.mubr.msk.f32.gmra.mxu0 %vm323_vm0, %v305_v48 }
  0xd4   : > { %v5184_v18 = vpop.f32.mrf.mxu0 }
  0xd5   : > { %v5926_v27 = vadd.f32 %v5184_v18, %v5912_v19 }
  0xd6   : > { %v486_v20 = vpop.f32.mrf.mxu0 }
  0xd7   : > { %v5915_v21 = vadd.f32 %v5912_v19, %v486_v20 }
  0xd8   : > { %v5187_v22 = vpop.f32.mrf.mxu0 }
  0xd9   : > { %669 = vrot.lane.b32.xlu0 %v5915_v21, %s5811_s14  ;;  %5238 = vmatprep.mubr.msk.f32.mxu1 %vm323_vm0, %v5915_v21  ;;  %v5940_v31 = vadd.f32 %v5187_v22, %v5912_v19 }
  0xda   : > { %v496_v26 = vpop.f32.mrf.mxu0 }
  0xdb   : > { %v5929_v28 = vadd.f32 %v5912_v19, %v496_v26 }
  0xdc   : > { %v5190_v58 = vpop.f32.mrf.mxu0 }
  0xdd   : > { %673 = vrot.lane.b32.xlu1 %v5929_v28, %s5811_s14  ;;  %671 = vrot.lane.b32.xlu0 %v5926_v27, %s5811_s14  ;;  %v6035_v62 = vadd.f32 %v5190_v58, %v5912_v19 }
  0xde   : > { %v506_v59 = vpop.f32.mrf.mxu0 }
  0xdf   : > { %v6030_v60 = vadd.f32 %v5912_v19, %v506_v59 }
  0xe0   : > { %v5193_v61 = vpop.f32.mrf.mxu0 }
  0xe1   : > { %675 = vrot.lane.b32.xlu1 %v5940_v31, %s5811_s14  ;;  %v6045_v1 = vadd.f32 %v5193_v61, %v5912_v19 }
  0xe2   : > { %v516_v63 = vpop.f32.mrf.mxu0 }
  0xe3   : > { %v6040_v0 = vadd.f32 %v5912_v19, %v516_v63 }
 0x14b   : > { %v670_v39 = vpop.permute.xlu0 %669 }
 0x14c   : > { %681 = vxpose.xlu0.b32.start [1/4] (short) (narrow) %v670_v39, 32 }
 0x14f   : > { %v672_v42 = vpop.permute.xlu0 %671  ;;  %v674_v43 = vpop.permute.xlu1 %673 }
 0x150   : > { %682 = vxpose.xlu0.b32.cont [2/4] (short) (narrow) %v672_v42, 32 }
 0x153   : > { %v676_v46 = vpop.permute.xlu1 %675 }
 0x154   : > { %683 = vxpose.xlu0.b32.cont [3/4] (short) (narrow) %v674_v43, 32 }
 0x158   : > { %684 = vxpose.xlu0.b32.end [4/4] (short) (narrow) %v676_v46, 32 }
 0x1c8   : > { %v5972_v49 = vpop.trf.xlu0 }
 0x1c9   : > { %741 = vrot.lane.b32.xlu0 %v5972_v49, %s5811_s14  ;;  %717 = vrot.lane.b32.xlu1 %v5972_v49, %s5812_s15 }
 0x1cc   : > { %v5983_v51 = vpop.trf.xlu0 }
 0x1cd   : > { %922 = vrot.lane.b32.xlu0 %v5981_v50, %s5813_s18  ;;  %719 = vrot.lane.b32.xlu1 %v5983_v51, %s5812_s15 }
 0x1d0   : > { %v699_v53 = vpop.trf.xlu0 }
 0x1d1   : > { %918 = vrot.lane.b32.xlu0 %v5992_v52, %s5813_s18  ;;  %731 = vrot.lane.b32.xlu1 %v5983_v51, %s5813_s18 }
 0x1d4   : > { %v700_v57 = vpop.trf.xlu0 }
 0x1d5   : > { %914 = vrot.lane.b32.xlu0 %v6001_v54, %s5813_s18  ;;  %721 = vrot.lane.b32.xlu1 %v699_v53, %s5812_s15 }
 0x1d9   : > { %910 = vrot.lane.b32.xlu0 %v6009_v55, %s5813_s18  ;;  %733 = vrot.lane.b32.xlu1 %v699_v53, %s5813_s18 }
 0x1dd   : > { %906 = vrot.lane.b32.xlu0 %v6017_v56, %s5813_s18  ;;  %745 = vrot.lane.b32.xlu1 %v699_v53, %s5811_s14 }
 0x1e1   : > { %723 = vrot.lane.b32.xlu1 %v700_v57, %s5812_s15 }
 0x1e5   : > { %735 = vrot.lane.b32.xlu1 %v700_v57, %s5813_s18 }
 0x1e9   : > { %747 = vrot.lane.b32.xlu1 %v700_v57, %s5811_s14 }
 0x1ed   : > { %743 = vrot.lane.b32.xlu1 %v5983_v51, %s5811_s14 }
 0x1f1   : > { %729 = vrot.lane.b32.xlu1 %v5972_v49, %s5813_s18 }
 0x1f5   : > { %1253 = vrot.lane.b32.xlu1 %v6030_v60, %s5811_s14 }
 0x1f9   : > { %1255 = vrot.lane.b32.xlu1 %v6035_v62, %s5811_s14 }
 0x1fd   : > { %1257 = vrot.lane.b32.xlu1 %v6040_v0, %s5811_s14 }
 0x201   : > { %1259 = vrot.lane.b32.xlu1 %v6045_v1, %s5811_s14 }
 0x205   : > { %934 = vrot.lane.b32.xlu1 %v6052_v2, %s5813_s18 }
 0x209   : > { %932 = vrot.lane.b32.xlu1 %v6059_v3, %s5813_s18 }
 0x20d   : > { %930 = vrot.lane.b32.xlu1 %v6066_v4, %s5813_s18 }
 0x211   : > { %928 = vrot.lane.b32.xlu1 %v6073_v5, %s5813_s18 }
 0x215   : > { %926 = vrot.lane.b32.xlu1 %v6080_v6, %s5813_s18 }
 0x219   : > { %924 = vrot.lane.b32.xlu1 %v6087_v7, %s5813_s18 }
 0x21d   : > { %920 = vrot.lane.b32.xlu1 %v6094_v8, %s5813_s18 }
 0x221   : > { %916 = vrot.lane.b32.xlu1 %v6101_v9, %s5813_s18 }
 0x225   : > { %912 = vrot.lane.b32.xlu1 %v6108_v10, %s5813_s18 }
 0x229   : > { %908 = vrot.lane.b32.xlu1 %v6115_v11, %s5813_s18 }
 0x22d   : > { %904 = vrot.lane.b32.xlu1 %v6122_v12, %s5813_s18 }
 0x23b   : > { %v718_v13 = vpop.permute.xlu1 %717  ;;  %v742_v46 = vpop.permute.xlu0 %741 }
 0x23c   : > { %v753_v43 = vsel %vm323_vm0, %v5972_v49, %v718_v13 }
 0x23f   : > { %v720_v14 = vpop.permute.xlu1 %719 }
 0x240   : > { %v754_v36 = vsel %vm323_vm0, %v5983_v51, %v720_v14 }
 0x243   : > { %v732_v15 = vpop.permute.xlu1 %731 }
 0x244   : > { %v759_v38 = vsel %vm757_vm2, %v754_v36, %v732_v15 }
 0x247   : > { %v722_v16 = vpop.permute.xlu1 %721 }
 0x248   : > { %v755_v23 = vsel %vm323_vm0, %v699_v53, %v722_v16 }
 0x24b   : > { %v734_v17 = vpop.permute.xlu1 %733 }
 0x24c   : > { %v760_v26 = vsel %vm757_vm2, %v755_v23, %v734_v17 }
 0x24f   : > { %v746_v18 = vpop.permute.xlu1 %745 }
 0x250   : > { %v765_v33 = vsel %vm762_vm1, %v760_v26, %v746_v18  ;;  %v6195_v18 = vpop.permute.xlu0 %922 }
 0x251   : > { %v769_v39 = vmul.f32 %v765_v33, %v6138_v32 }
 0x253   : > { %v724_v20 = vpop.permute.xlu1 %723 }
 0x254   : > { %v756_v24 = vsel %vm323_vm0, %v700_v57, %v724_v20 }
 0x257   : > { %v736_v22 = vpop.permute.xlu1 %735 }
 0x258   : > { %v761_v29 = vsel %vm757_vm2, %v756_v24, %v736_v22 }
 0x25b   : > { %v748_v30 = vpop.permute.xlu1 %747 }
 0x25c   : > { %v766_v34 = vsel %vm762_vm1, %v761_v29, %v748_v30 }
 0x25d   : > { %v770_v35 = vmul.f32 %v766_v34, %v6131_v25 }
 0x25f   : > { %5230 = vmatprep.subr.mxu1 %v770_v35  ;;  %v744_v40 = vpop.permute.xlu1 %743 }
 0x260   : > { %v764_v41 = vsel %vm762_vm1, %v759_v38, %v744_v40  ;;  %5231 = vmatpush3.msra.mxu1 %v770_v35 }
 0x261   : > { %v768_v42 = vmul.f32 %v764_v41, %v6148_v37  ;;  %5232 = vmatprep.subr.mxu1 %v769_v39 }
 0x262   : > { %5233 = vmatpush3.msra.mxu1 %v769_v39 }
 0x263   : > { %5234 = vmatprep.subr.mxu1 %v768_v42  ;;  %v730_v44 = vpop.permute.xlu1 %729 }
 0x264   : > { %v758_v47 = vsel %vm757_vm2, %v753_v43, %v730_v44  ;;  %5235 = vmatpush3.msra.mxu1 %v768_v42 }
 0x265   : > { %v763_v48 = vsel %vm762_vm1, %v758_v47, %v742_v46 }
 0x266   : > { %v767_v51 = vmul.f32 %v763_v48, %v6159_v45 }
 0x267   : > { %v1254_v53 = vpop.permute.xlu1 %1253 }
 0x268   : > { %5236 = vmatprep.subr.mxu1 %v767_v51  ;;  %1265 = vxpose.xlu0.b32.start [1/4] (short) (narrow) %v1254_v53, 32 }
 0x269   : > { %5237 = vmatpush3.msra.mxu1 %v767_v51 }
 0x26a   : > { %5239 = vmatmul.mubr.msk.f32.vlgmr.msra.gmra.mxu1 %vm323_vm0, %v5926_v27 }
 0x26b   : > { %v1256_v49 = vpop.permute.xlu1 %1255  ;;  %5241 = vmatprep.mubr.msk.f32.mxu1 %vm323_vm0, %v5929_v28 }
 0x26c   : > { %1266 = vxpose.xlu0.b32.cont [2/4] (short) (narrow) %v1256_v49, 32 }
 0x26e   : > { %5242 = vmatmul.mubr.msk.f32.gmra.mxu1 %vm323_vm0, %v5940_v31 }
 0x26f   : > { %v1258_v57 = vpop.permute.xlu1 %1257 }
 0x270   : > { %1267 = vxpose.xlu0.b32.cont [3/4] (short) (narrow) %v1258_v57, 32 }
 0x273   : > { %v1260_v58 = vpop.permute.xlu1 %1259 }
 0x274   : > { %1268 = vxpose.xlu0.b32.end [4/4] (short) (narrow) %v1260_v58, 32 }
 0x277   : > { %v6170_v59 = vpop.permute.xlu1 %934 }
 0x278   : > { %v967_v61 = vmul.f32 %v6170_v59, %v5940_v31 }
 0x27a   : > { %1014 = vrot.lane.b32.xlu1 %v967_v61, %s5813_s18 }
 0x27b   : > { %v6175_v63 = vpop.permute.xlu1 %932 }
 0x27c   : > { %v966_v14 = vmul.f32 %v6175_v63, %v5929_v28 }
 0x27e   : > { %1062 = vrot.lane.b32.xlu1 %v6052_v2, %s5812_s15 }
 0x27f   : > { %v6179_v13 = vpop.permute.xlu1 %930 }
 0x280   : > { %v965_v17 = vmul.f32 %v6179_v13, %v5926_v27 }
 0x282   : > { %1012 = vrot.lane.b32.xlu1 %v966_v14, %s5813_s18 }
 0x283   : > { %v6184_v15 = vpop.permute.xlu1 %928 }
 0x284   : > { %v964_v22 = vmul.f32 %v6184_v15, %v5915_v21 }
 0x286   : > { %1060 = vrot.lane.b32.xlu1 %v6059_v3, %s5812_s15  ;;  %v6204_v3 = vpop.permute.xlu0 %918 }
 0x287   : > { %v6188_v16 = vpop.permute.xlu1 %926 }
 0x288   : > { %v963_v24 = vmul.f32 %v6188_v16, %v5940_v31 }
 0x28a   : > { %1010 = vrot.lane.b32.xlu1 %v965_v17, %s5813_s18  ;;  %v6212_v26 = vpop.permute.xlu0 %914 }
 0x28b   : > { %v6193_v2 = vpop.permute.xlu1 %924 }
 0x28e   : > { %1058 = vrot.lane.b32.xlu1 %v6066_v4, %s5812_s15  ;;  %v6223_v30 = vpop.permute.xlu0 %910 }
 0x28f   : > { %v6199_v20 = vpop.permute.xlu1 %920  ;;  %v955_v33 = vmul.f32 %v6223_v30, %v5940_v31 }
 0x290   : > { %v960_v39 = vmul.f32 %v6199_v20, %v5915_v21 }
 0x292   : > { %1008 = vrot.lane.b32.xlu1 %v964_v22, %s5813_s18  ;;  %v6239_v35 = vpop.permute.xlu0 %906 }
 0x293   : > { %v6206_v23 = vpop.permute.xlu1 %916  ;;  %v953_v36 = vmul.f32 %v6239_v35, %v5926_v27 }
 0x294   : > { %v958_v41 = vmul.f32 %v6206_v23, %v5929_v28 }
 0x296   : > { %1056 = vrot.lane.b32.xlu1 %v6073_v5, %s5812_s15  ;;  %v962_v5 = vmul.f32 %v6193_v2, %v5929_v28 }
 0x297   : > { %v6215_v4 = vpop.permute.xlu1 %912 }
 0x298   : > { %v956_v29 = vmul.f32 %v6215_v4, %v5915_v21 }
 0x29a   : > { %1006 = vrot.lane.b32.xlu1 %v963_v24, %s5813_s18 }
 0x29b   : > { %v6231_v34 = vpop.permute.xlu1 %908 }
 0x29d   : > { %1052 = vrot.lane.b32.xlu0 %v6087_v7, %s5812_s15  ;;  %v954_v7 = vmul.f32 %v6231_v34, %v5929_v28 }
 0x29e   : > { %1054 = vrot.lane.b32.xlu1 %v6080_v6, %s5812_s15  ;;  %v961_v6 = vmul.f32 %v6195_v18, %v5926_v27 }
 0x29f   : > { %v6246_v38 = vpop.permute.xlu1 %904 }
 0x2a0   : > { %v952_v40 = vmul.f32 %v6246_v38, %v5915_v21  ;;  %v957_v21 = vmul.f32 %v6212_v26, %v5926_v27 }
 0x2a1   : > { %992 = vrot.lane.b32.xlu0 %v956_v29, %s5813_s18 }
 0x2a2   : > { %1004 = vrot.lane.b32.xlu1 %v962_v5, %s5813_s18 }
 0x2a5   : > { %990 = vrot.lane.b32.xlu0 %v955_v33, %s5813_s18 }
 0x2a6   : > { %1002 = vrot.lane.b32.xlu1 %v961_v6, %s5813_s18 }
 0x2a9   : > { %988 = vrot.lane.b32.xlu0 %v954_v7, %s5813_s18 }
 0x2aa   : > { %1050 = vrot.lane.b32.xlu1 %v5981_v50, %s5812_s15  ;;  %v959_v50 = vmul.f32 %v6204_v3, %v5940_v31  ;;  %v5196_v31 = vpop.f32.mrf.mxu0 }
 0x2ab   : > { %v6342_v17 = vadd.f32 %v5196_v31, %v5912_v19 }
 0x2ad   : > { %986 = vrot.lane.b32.xlu0 %v953_v36, %s5813_s18  ;;  %8347 = vst [vmem:[#allocation4_spill] sm:$0xff] %v6342_v17 }
 0x2ae   : > { %1000 = vrot.lane.b32.xlu1 %v960_v39, %s5813_s18 }
 0x2b1   : > { %984 = vrot.lane.b32.xlu0 %v952_v40, %s5813_s18 }
 0x2b2   : > { %1048 = vrot.lane.b32.xlu1 %v6094_v8, %s5812_s15 }
 0x2b6   : > { %998 = vrot.lane.b32.xlu1 %v959_v50, %s5813_s18 }
 0x2ba   : > { %1046 = vrot.lane.b32.xlu1 %v5992_v52, %s5812_s15 }
 0x2be   : > { %996 = vrot.lane.b32.xlu1 %v958_v41, %s5813_s18 }
 0x2c2   : > { %1044 = vrot.lane.b32.xlu1 %v6101_v9, %s5812_s15 }
 0x2c6   : > { %994 = vrot.lane.b32.xlu1 %v957_v21, %s5813_s18  ;;  %v6378_v21 = vpop.f32.mrf.mxu1 }
 0x2c7   : > { %8352 = vst [vmem:[#allocation9_spill] sm:$0xff] %v6378_v21 }
 0x2c8   : > { %v6380_v31 = vpop.f32.mrf.mxu1 }
 0x2c9   : > { %8353 = vst [vmem:[#allocation10_spill] sm:$0xff] %v6380_v31 }
 0x2ca   : > { %1042 = vrot.lane.b32.xlu1 %v6001_v54, %s5812_s15 }
 0x2ce   : > { %1040 = vrot.lane.b32.xlu1 %v6108_v10, %s5812_s15 }
 0x2d2   : > { %1038 = vrot.lane.b32.xlu1 %v6009_v55, %s5812_s15  ;;  %v526_v55 = vpop.f32.mrf.mxu0 }
 0x2d3   : > { %v6332_v57 = vadd.f32 %v5912_v19, %v526_v55 }
 0x2d4   : > { %v5199_v10 = vpop.f32.mrf.mxu0 }
 0x2d5   : > { %v6366_v7 = vadd.f32 %v5199_v10, %v5912_v19 }
 0x2d6   : > { %1036 = vrot.lane.b32.xlu1 %v6115_v11, %s5812_s15 }
 0x2d7   : > { %8351 = vst [vmem:[#allocation8_spill] sm:$0xff] %v6366_v7 }
 0x2da   : > { %1034 = vrot.lane.b32.xlu1 %v6017_v56, %s5812_s15 }
 0x2de   : > { %1032 = vrot.lane.b32.xlu1 %v6122_v12, %s5812_s15  ;;  %v536_v12 = vpop.f32.mrf.mxu0 }
 0x2df   : > { %v6356_v5 = vadd.f32 %v5912_v19, %v536_v12 }
 0x2e0   : > { %v5202_v44 = vpop.f32.mrf.mxu0 }
 0x2e1   : > { %v6335_v58 = vadd.f32 %v5202_v44, %v5912_v19  ;;  %8349 = vst [vmem:[#allocation6_spill] sm:$0xff] %v6356_v5 }
 0x2e2   : > { %v546_v47 = vpop.f32.mrf.mxu0 }
 0x2e3   : > { %v6321_v48 = vadd.f32 %v5912_v19, %v546_v47  ;;  %8346 = vst [vmem:[#allocation3_spill] sm:$0xff] %v6335_v58 }
 0x2e4   : > { %v6282_v27 = vpop.trf.xlu0  ;;  %v5205_v49 = vpop.f32.mrf.mxu0 }
 0x2e5   : > { %8345 = vst [vmem:[#allocation2_spill] sm:$0xff] %v6321_v48  ;;  %v6359_v33 = vadd.f32 %v5205_v49, %v5912_v19 }
 0x2e6   : > { %v556_v14 = vpop.f32.mrf.mxu0 }
 0x2e7   : > { %v6345_v22 = vadd.f32 %v5912_v19, %v556_v14  ;;  %8350 = vst [vmem:[#allocation7_spill] sm:$0xff] %v6359_v33 }
 0x2e8   : > { %v6284_v28 = vpop.trf.xlu0 }
 0x2e9   : > { %1303 = vrot.lane.b32.xlu1 %v6284_v28, %s5812_s15  ;;  %8348 = vst [vmem:[#allocation5_spill] sm:$0xff] %v6345_v22 }
 0x2ec   : > { %v6288_v52 = vpop.trf.xlu0  ;;  %v1015_v54 = vpop.permute.xlu1 %1014 }
 0x2ed   : > { %1315 = vrot.lane.b32.xlu1 %v6284_v28, %s5813_s18  ;;  %1305 = vrot.lane.b32.xlu0 %v6288_v52, %s5812_s15 }
 0x2f0   : > { %v6294_v56 = vpop.trf.xlu0  ;;  %v6296_v8 = vpop.permute.xlu1 %1062 }
 0x2f1   : > { %1319 = vrot.lane.b32.xlu1 %v6294_v56, %s5813_s18  ;;  %1317 = vrot.lane.b32.xlu0 %v6288_v52, %s5813_s18  ;;  %v1095_v9 = vsel %vm323_vm0, %v1015_v54, %v6296_v8 }
 0x2f2   : > { %5244 = vmatprep.subr.mxu1 %v1095_v9 }
 0x2f3   : > { %5245 = vmatpush3.msra.mxu1 %v1095_v9  ;;  %v6386_v9 = vpop.f32.mrf.mxu1 }
 0x2f4   : > { %v1013_v11 = vpop.permute.xlu1 %1012  ;;  %8354 = vst [vmem:[#allocation11_spill] sm:$0xff] %v6386_v9 }
 0x2f5   : > { %1331 = vrot.lane.b32.xlu1 %v6294_v56, %s5811_s14  ;;  %1329 = vrot.lane.b32.xlu0 %v6288_v52, %s5811_s14 }
 0x2f8   : > { %v6308_v42 = vpop.permute.xlu1 %1060 }
 0x2f9   : > { %1327 = vrot.lane.b32.xlu1 %v6284_v28, %s5811_s14  ;;  %1307 = vrot.lane.b32.xlu0 %v6294_v56, %s5812_s15  ;;  %v1094_v43 = vsel %vm323_vm0, %v1013_v11, %v6308_v42  ;;  %v6388_v11 = vpop.f32.mrf.mxu1 }
 0x2fa   : > { %5246 = vmatprep.subr.mxu1 %v1094_v43  ;;  %8355 = vst [vmem:[#allocation12_spill] sm:$0xff] %v6388_v11 }
 0x2fb   : > { %5247 = vmatpush3.msra.mxu1 %v1094_v43  ;;  %v6394_v44 = vpop.f32.mrf.mxu1 }
 0x2fc   : > { %v1011_v46 = vpop.permute.xlu1 %1010  ;;  %8356 = vst [vmem:[#allocation13_spill] sm:$0xff] %v6394_v44 }
 0x2fd   : > { %1325 = vrot.lane.b32.xlu1 %v6282_v27, %s5811_s14  ;;  %1301 = vrot.lane.b32.xlu0 %v6282_v27, %s5812_s15 }
 0x300   : > { %v6323_v51 = vpop.permute.xlu1 %1058 }
 0x301   : > { %2195 = vrot.lane.b32.xlu1 %v6321_v48, %s5811_s14  ;;  %1313 = vrot.lane.b32.xlu0 %v6282_v27, %s5813_s18  ;;  %v1093_v53 = vsel %vm323_vm0, %v1011_v46, %v6323_v51  ;;  %v6396_v46 = vpop.f32.mrf.mxu1 }
 0x302   : > { %5248 = vmatprep.subr.mxu1 %v1093_v53  ;;  %8357 = vst [vmem:[#allocation14_spill] sm:$0xff] %v6396_v46 }
 0x303   : > { %5249 = vmatpush3.msra.mxu1 %v1093_v53 }
 0x304   : > { %v1009_v61 = vpop.permute.xlu1 %1008 }
 0x305   : > { %2197 = vrot.lane.b32.xlu1 %v6335_v58, %s5811_s14  ;;  %1724 = vrot.lane.b32.xlu0 %v6332_v57, %s5811_s14 }
 0x308   : > { %v6347_v24 = vpop.permute.xlu1 %1056 }
 0x309   : > { %2199 = vrot.lane.b32.xlu1 %v6345_v22, %s5811_s14  ;;  %1726 = vrot.lane.b32.xlu0 %v6342_v17, %s5811_s14  ;;  %v1092_v29 = vsel %vm323_vm0, %v1009_v61, %v6347_v24 }
 0x30a   : > { %5250 = vmatprep.subr.mxu1 %v1092_v29 }
 0x30b   : > { %5251 = vmatpush3.msra.mxu1 %v1092_v29 }
 0x30c   : > { %v1007_v6 = vpop.permute.xlu1 %1006 }
 0x30d   : > { %2201 = vrot.lane.b32.xlu1 %v6359_v33, %s5811_s14  ;;  %1728 = vrot.lane.b32.xlu0 %v6356_v5, %s5811_s14 }
 0x30f   : > { %v6374_v40 = vpop.permute.xlu0 %1052 }
 0x310   : > { %v6368_v36 = vpop.permute.xlu1 %1054 }
 0x311   : > { %1730 = vrot.lane.b32.xlu0 %v6366_v7, %s5811_s14  ;;  %v1091_v39 = vsel %vm323_vm0, %v1007_v6, %v6368_v36 }
 0x312   : > { %5252 = vmatprep.subr.mxu1 %v1091_v39 }
 0x313   : > { %5253 = vmatpush3.msra.mxu1 %v1091_v39 }
 0x314   : > { %v1005_v50 = vpop.permute.xlu1 %1004 }
 0x315   : > { %v1090_v41 = vsel %vm323_vm0, %v1005_v50, %v6374_v40 }
 0x316   : > { %5254 = vmatprep.subr.mxu1 %v1090_v41 }
 0x317   : > { %5255 = vmatpush3.msra.mxu1 %v1090_v41 }
 0x318   : > { %v1003_v19 = vpop.permute.xlu1 %1002 }
 0x31c   : > { %v6382_v54 = vpop.permute.xlu1 %1050 }
 0x31d   : > { %v1089_v55 = vsel %vm323_vm0, %v1003_v19, %v6382_v54 }
 0x31e   : > { %5256 = vmatprep.subr.mxu1 %v1089_v55 }
 0x31f   : > { %5257 = vmatpush3.msra.mxu1 %v1089_v55  ;;  %v993_v55 = vpop.permute.xlu0 %992 }
 0x320   : > { %v1001_v10 = vpop.permute.xlu1 %1000 }
 0x323   : > { %v991_v44 = vpop.permute.xlu0 %990 }
 0x324   : > { %v6390_v12 = vpop.permute.xlu1 %1048 }
 0x325   : > { %v1088_v43 = vsel %vm323_vm0, %v1001_v10, %v6390_v12 }
 0x326   : > { %5258 = vmatprep.subr.mxu1 %v1088_v43 }
 0x327   : > { %5259 = vmatpush3.msra.mxu1 %v1088_v43 }
 0x328   : > { %v999_v47 = vpop.permute.xlu1 %998 }
 0x32a   : > { %v5240_v53 = vpop.f32.mrf.mxu1 }
 0x32c   : > { %v6398_v49 = vpop.permute.xlu1 %1046  ;;  %v845_v61 = vpop.f32.mrf.mxu1 }
 0x32d   : > { %8358 = vst [vmem:[#allocation15_spill] sm:$0xff] %v6398_v49  ;;  %v4823_v14 = vclamps-f32 %v845_v61, 5.0  ;;  %v1087_v29 = vsel %vm323_vm0, %v999_v47, %v6398_v49  ;;  %v4824_v47 = vclamps-f32 %v5240_v53, 5.0 }
 0x32e   : > { %5260 = vmatprep.subr.mxu1 %v1087_v29  ;;  %v5243_v50 = vpop.f32.mrf.mxu1 }
 0x32f   : > { %v872_v6 = vmul.f32 1.442695, %v4823_v14  ;;  %5261 = vmatpush3.msra.mxu1 %v1087_v29  ;;  %v880_v29 = vld [vmem:[%s6411_s29] sm:$0xff]  ;;  %v4826_v21 = vclamps-f32 %v5243_v50, 5.0 }
 0x330   : > { %v997_v39 = vpop.permute.xlu1 %996  ;;  %v855_v10 = vpop.f32.mrf.mxu1 }
 0x331   : > { %5666 = vpow2.f32 %v872_v6  ;;  %v4825_v61 = vclamps-f32 %v855_v10, 5.0  ;;  %v878_v9 = vmul.f32 1.442695, %v4826_v21 }
 0x333   : > { %v876_v46 = vmul.f32 1.442695, %v4825_v61 }
 0x334   : > { %v6404_v41 = vpop.permute.xlu1 %1044 }
 0x335   : > { %8359 = vst [vmem:[#allocation16_spill] sm:$0xff] %v6404_v41  ;;  %v1086_v19 = vsel %vm323_vm0, %v997_v39, %v6404_v41 }
 0x336   : > { %5262 = vmatprep.subr.mxu1 %v1086_v19 }
 0x337   : > { %5263 = vmatpush3.msra.mxu1 %v1086_v19  ;;  %v874_v19 = vmul.f32 1.442695, %v4824_v47 }
 0x338   : > { %v995_v43 = vpop.permute.xlu1 %994 }
 0x339   : > { %5668 = vpow2.f32 %v874_v19 }
 0x33a   : > { %5670 = vpow2.f32 %v876_v46 }
 0x33b   : > { %5672 = vpow2.f32 %v878_v9  ;;  %v881_v9 = vld [vmem:[%s6411_s29 + $0x8] sm:$0xff] }
 0x33c   : > { %v6413_v14 = vpop.permute.xlu1 %1042 }
 0x33d   : > { %8360 = vst [vmem:[#allocation17_spill] sm:$0xff] %v6413_v14  ;;  %v1085_v6 = vsel %vm323_vm0, %v995_v43, %v6413_v14  ;;  %v989_v43 = vpop.permute.xlu0 %988 }
 0x33e   : > { %v5667_v39 = vpop.eup %5666  ;;  %5264 = vmatprep.subr.mxu1 %v1085_v6 }
 0x33f   : > { %5265 = vmatpush3.msra.mxu1 %v1085_v6  ;;  %v884_v53 = vmul.f32 %v5667_v39, %v880_v29  ;;  %v882_v39 = vld [vmem:[%s6411_s29 + $0x10] sm:$0xff] }
 0x340   : > { %v6418_v10 = vpop.permute.xlu1 %1040 }
 0x341   : > { %8361 = vst [vmem:[#allocation18_spill] sm:$0xff] %v6418_v10  ;;  %5276 = vmatprep.mubr.f32.mxu1 %v884_v53  ;;  %v1084_v31 = vsel %vm323_vm0, %v993_v55, %v6418_v10  ;;  %v987_v21 = vpop.permute.xlu0 %986 }
 0x342   : > { %5266 = vmatprep.subr.mxu1 %v1084_v31 }
 0x343   : > { %5267 = vmatpush3.msra.mxu1 %v1084_v31 }
 0x344   : > { %v6422_v11 = vpop.permute.xlu1 %1038 }
 0x345   : > { %8362 = vst [vmem:[#allocation19_spill] sm:$0xff] %v6422_v11  ;;  %v1083_v50 = vsel %vm323_vm0, %v991_v44, %v6422_v11  ;;  %v985_v29 = vpop.permute.xlu0 %984 }
 0x346   : > { %5268 = vmatprep.subr.mxu1 %v1083_v50  ;;  %v5669_v44 = vpop.eup %5668 }
 0x347   : > { %5269 = vmatpush3.msra.mxu1 %v1083_v50  ;;  %v5671_v61 = vpop.eup %5670  ;;  %v885_v53 = vmul.f32 %v5669_v44, %v881_v9 }
 0x348   : > { %v6426_v47 = vpop.permute.xlu1 %1036  ;;  %v886_v50 = vmul.f32 %v5671_v61, %v882_v39 }
 0x349   : > { %8363 = vst [vmem:[#allocation20_spill] sm:$0xff] %v6426_v47  ;;  %v1082_v55 = vsel %vm323_vm0, %v989_v43, %v6426_v47  ;;  %v5673_v43 = vpop.eup %5672 }
 0x34a   : > { %5270 = vmatprep.subr.mxu1 %v1082_v55 }
 0x34b   : > { %5271 = vmatpush3.msra.mxu1 %v1082_v55  ;;  %v883_v55 = vld [vmem:[%s6411_s29 + $0x18] sm:$0xff] }
 0x34c   : > { %v6430_v31 = vpop.permute.xlu1 %1034 }
 0x34d   : > { %8364 = vst [vmem:[#allocation21_spill] sm:$0xff] %v6430_v31  ;;  %v1081_v46 = vsel %vm323_vm0, %v987_v21, %v6430_v31  ;;  %v887_v21 = vmul.f32 %v5673_v43, %v883_v55 }
 0x34e   : > { %5272 = vmatprep.subr.mxu1 %v1081_v46 }
 0x34f   : > { %5273 = vmatpush3.msra.mxu1 %v1081_v46 }
 0x350   : > { %v6435_v6 = vpop.permute.xlu1 %1032 }
 0x351   : > { %v1080_v19 = vsel %vm323_vm0, %v985_v29, %v6435_v6 }
 0x352   : > { %5274 = vmatprep.subr.mxu1 %v1080_v19 }
 0x353   : > { %5275 = vmatpush3.msra.mxu1 %v1080_v19 }
 0x354   : > { %5277 = vmatmul.mubr.f32.vlgmr.msra.gmra.mxu1 %v885_v53 }
 0x355   : > { %5279 = vmatprep.mubr.f32.mxu1 %v886_v50 }
 0x358   : > { %5280 = vmatmul.mubr.f32.gmra.mxu1 %v887_v21 }
 0x359   : > { %5290 = vmatprep.mubr.msk.f32.mxu1 %vm323_vm0, %v6030_v60 }
 0x35b   : > { %v1304_v46 = vpop.permute.xlu1 %1303 }
 0x35c   : > { %v1338_v53 = vsel %vm323_vm0, %v6284_v28, %v1304_v46 }
 0x35f   : > { %v1306_v33 = vpop.permute.xlu0 %1305  ;;  %v1316_v22 = vpop.permute.xlu1 %1315 }
 0x360   : > { %v1339_v9 = vsel %vm323_vm0, %v6288_v52, %v1306_v33  ;;  %v1342_v55 = vsel %vm757_vm2, %v1338_v53, %v1316_v22  ;;  %v1477_v53 = vmul.f32 %v6206_v23, %v6040_v0 }
 0x363   : > { %v1318_v7 = vpop.permute.xlu0 %1317  ;;  %v1320_v58 = vpop.permute.xlu1 %1319 }
 0x364   : > { %v1343_v39 = vsel %vm757_vm2, %v1339_v9, %v1318_v7  ;;  %v1483_v9 = vmul.f32 %v6184_v15, %v6030_v60 }
 0x367   : > { %v1330_v5 = vpop.permute.xlu0 %1329  ;;  %v1332_v29 = vpop.permute.xlu1 %1331 }
 0x368   : > { %v1347_v43 = vsel %vm762_vm1, %v1343_v39, %v1330_v5  ;;  %v1479_v39 = vmul.f32 %v6199_v20, %v6030_v60 }
 0x36b   : > { %v1308_v17 = vpop.permute.xlu0 %1307  ;;  %v1328_v44 = vpop.permute.xlu1 %1327 }
 0x36c   : > { %v1340_v61 = vsel %vm323_vm0, %v6294_v56, %v1308_v17  ;;  %v1346_v33 = vsel %vm762_vm1, %v1342_v55, %v1328_v44  ;;  %v1351_v56 = vmul.f32 %v1347_v43, %v6138_v32  ;;  %v1485_v44 = vmul.f32 %v6175_v63, %v6040_v0 }
 0x36d   : > { %v1344_v19 = vsel %vm757_vm2, %v1340_v61, %v1320_v58  ;;  %v1350_v58 = vmul.f32 %v1346_v33, %v6148_v37  ;;  %v1481_v61 = vmul.f32 %v6193_v2, %v6040_v0  ;;  %v1484_v43 = vmul.f32 %v6179_v13, %v6035_v62 }
 0x36e   : > { %v1348_v50 = vsel %vm762_vm1, %v1344_v19, %v1332_v29  ;;  %v1486_v19 = vmul.f32 %v6170_v59, %v6045_v1  ;;  %v1482_v55 = vmul.f32 %v6188_v16, %v6045_v1  ;;  %v1471_v33 = vmul.f32 %v6246_v38, %v6030_v60 }
 0x36f   : > { %v1302_v21 = vpop.permute.xlu0 %1301  ;;  %v1326_v48 = vpop.permute.xlu1 %1325  ;;  %v1352_v52 = vmul.f32 %v1348_v50, %v6131_v25  ;;  %v1475_v50 = vmul.f32 %v6215_v4, %v6030_v60  ;;  %v1472_v60 = vmul.f32 %v6239_v35, %v6035_v62 }
 0x370   : > { %v1337_v28 = vsel %vm323_vm0, %v6282_v27, %v1302_v21  ;;  %v1473_v21 = vmul.f32 %v6231_v34, %v6040_v0 }
 0x371   : > { %5282 = vmatprep.subr.mxu1 %v1352_v52 }
 0x372   : > { %5283 = vmatpush3.msra.mxu1 %v1352_v52  ;;  %v1480_v52 = vmul.f32 %v6195_v18, %v6035_v62 }
 0x373   : > { %v1314_v17 = vpop.permute.xlu0 %1313  ;;  %v2196_v5 = vpop.permute.xlu1 %2195  ;;  %5284 = vmatprep.subr.mxu1 %v1351_v56 }
 0x374   : > { %v1341_v22 = vsel %vm757_vm2, %v1337_v28, %v1314_v17  ;;  %2207 = vxpose.xlu1.b32.start [1/4] (short) (narrow) %v2196_v5, 32  ;;  %5285 = vmatpush3.msra.mxu1 %v1351_v56  ;;  %v1478_v56 = vmul.f32 %v6204_v3, %v6045_v1 }
 0x375   : > { %v1345_v25 = vsel %vm762_vm1, %v1341_v22, %v1326_v48  ;;  %5286 = vmatprep.subr.mxu1 %v1350_v58 }
 0x376   : > { %5287 = vmatpush3.msra.mxu1 %v1350_v58  ;;  %v1349_v32 = vmul.f32 %v1345_v25, %v6159_v45  ;;  %v1474_v58 = vmul.f32 %v6223_v30, %v6045_v1 }
 0x377   : > { %v1725_v7 = vpop.permute.xlu0 %1724  ;;  %v2198_v46 = vpop.permute.xlu1 %2197 }
 0x378   : > { %1736 = vxpose.xlu0.b32.start [1/4] (short) (narrow) %v1725_v7, 32  ;;  %2208 = vxpose.xlu1.b32.cont [2/4] (short) (narrow) %v2198_v46, 32  ;;  %v5208_v46 = vpop.f32.mrf.mxu0 }
 0x379   : > { %5288 = vmatprep.subr.mxu1 %v1349_v32 }
 0x37a   : > { %5289 = vmatpush3.msra.mxu1 %v1349_v32 }
 0x37b   : > { %5291 = vmatmul.mubr.msk.f32.vlgmr.msra.gmra.mxu1 %vm323_vm0, %v6035_v62  ;;  %v1727_v37 = vpop.permute.xlu0 %1726  ;;  %v2200_v27 = vpop.permute.xlu1 %2199 }
 0x37c   : > { %5293 = vmatprep.mubr.msk.f32.mxu1 %vm323_vm0, %v6040_v0  ;;  %1737 = vxpose.xlu0.b32.cont [2/4] (short) (narrow) %v1727_v37, 32  ;;  %v1476_v0 = vmul.f32 %v6212_v26, %v6035_v62  ;;  %v566_v37 = vpop.f32.mrf.mxu0 }
 0x37d   : > { %2209 = vxpose.xlu1.b32.cont [3/4] (short) (narrow) %v2200_v27, 32 }
 0x37f   : > { %5294 = vmatmul.mubr.msk.f32.gmra.mxu1 %vm323_vm0, %v6045_v1  ;;  %v1729_v45 = vpop.permute.xlu0 %1728  ;;  %v2202_v48 = vpop.permute.xlu1 %2201 }
 0x380   : > { %5342 = vmatprep.mubr.msk.f32.mxu1 %vm323_vm0, %v6332_v57  ;;  %1738 = vxpose.xlu0.b32.cont [3/4] (short) (narrow) %v1729_v45, 32  ;;  %v5211_v45 = vpop.f32.mrf.mxu0 }
 0x381   : > { %2210 = vxpose.xlu1.b32.end [4/4] (short) (narrow) %v2202_v48, 32 }
 0x383   : > { %v1731_v29 = vpop.permute.xlu0 %1730 }
 0x384   : > { %1739 = vxpose.xlu0.b32.end [4/4] (short) (narrow) %v1731_v29, 32  ;;  %v576_v29 = vpop.f32.mrf.mxu0 }
 0x39f   : > { %1531 = vrot.lane.b32.xlu1 %v1485_v44, %s5813_s18 }
 0x3a3   : > { %1527 = vrot.lane.b32.xlu1 %v1483_v9, %s5813_s18 }
 0x3a7   : > { %1523 = vrot.lane.b32.xlu1 %v1481_v61, %s5813_s18  ;;  %v5214_v61 = vpop.f32.mrf.mxu0 }
 0x3ab   : > { %1519 = vrot.lane.b32.xlu1 %v1479_v39, %s5813_s18 }
 0x3ad   : > { %1533 = vrot.lane.b32.xlu0 %v1486_v19, %s5813_s18 }
 0x3af   : > { %1515 = vrot.lane.b32.xlu1 %v1477_v53, %s5813_s18 }
 0x3b1   : > { %1529 = vrot.lane.b32.xlu0 %v1484_v43, %s5813_s18  ;;  %v6588_v43 = vld [vmem:[%s8249_s3] ss:$0 sm:$0xff] }
 0x3b3   : > { %1511 = vrot.lane.b32.xlu1 %v1475_v50, %s5813_s18  ;;  %v6591_v50 = vadd.f32 %v6588_v43, %v566_v37 }
 0x3b5   : > { %1525 = vrot.lane.b32.xlu0 %v1482_v55, %s5813_s18 }
 0x3b7   : > { %1507 = vrot.lane.b32.xlu1 %v1473_v21, %s5813_s18  ;;  %v586_v21 = vpop.f32.mrf.mxu0 }
 0x3b9   : > { %1521 = vrot.lane.b32.xlu0 %v1480_v52, %s5813_s18 }
 0x3bb   : > { %1503 = vrot.lane.b32.xlu1 %v1471_v33, %s5813_s18  ;;  %v6602_v33 = vadd.f32 %v6588_v43, %v586_v21  ;;  %v6635_v21 = vadd.f32 %v6588_v43, %v5211_v45 }
 0x3bd   : > { %1517 = vrot.lane.b32.xlu0 %v1478_v56, %s5813_s18  ;;  %8365 = vst [vmem:[#allocation22_spill] sm:$0xff] %v6602_v33  ;;  %8371 = vst [vmem:[#allocation28_spill] sm:$0xff] %v6635_v21 }
 0x3c1   : > { %1513 = vrot.lane.b32.xlu0 %v1476_v0, %s5813_s18  ;;  %v6605_v0 = vadd.f32 %v6588_v43, %v5208_v46  ;;  %v6616_v46 = vadd.f32 %v6588_v43, %v5214_v61 }
 0x3c3   : > { %8366 = vst [vmem:[#allocation23_spill] sm:$0xff] %v6605_v0  ;;  %8367 = vst [vmem:[#allocation24_spill] sm:$0xff] %v6616_v46 }
 0x3c5   : > { %1509 = vrot.lane.b32.xlu0 %v1474_v58, %s5813_s18 }
 0x3c9   : > { %1505 = vrot.lane.b32.xlu0 %v1472_v60, %s5813_s18 }
 0x3f1   : > { %v6529_v1 = vpop.trf.xlu1 }
 0x3f4   : > { %v6519_v28 = vpop.trf.xlu0 }
 0x3f5   : > { %1772 = vrot.lane.b32.xlu0 %v6519_v28, %s5812_s15  ;;  %v6537_v62 = vpop.trf.xlu1 }
 0x3f8   : > { %v6523_v17 = vpop.trf.xlu0 }
 0x3f9   : > { %1774 = vrot.lane.b32.xlu0 %v6523_v17, %s5812_s15  ;;  %1798 = vrot.lane.b32.xlu1 %v6523_v17, %s5811_s14  ;;  %v6549_v25 = vpop.trf.xlu1 }
 0x3fc   : > { %v6531_v5 = vpop.trf.xlu0 }
 0x3fd   : > { %1786 = vrot.lane.b32.xlu0 %v6523_v17, %s5813_s18  ;;  %1800 = vrot.lane.b32.xlu1 %v6531_v5, %s5811_s14  ;;  %v6555_v32 = vpop.trf.xlu1 }
 0x400   : > { %v6539_v22 = vpop.trf.xlu0 }
 0x401   : > { %1776 = vrot.lane.b32.xlu0 %v6531_v5, %s5812_s15  ;;  %1778 = vrot.lane.b32.xlu1 %v6539_v22, %s5812_s15 }
 0x405   : > { %1788 = vrot.lane.b32.xlu0 %v6531_v5, %s5813_s18  ;;  %1790 = vrot.lane.b32.xlu1 %v6539_v22, %s5813_s18 }
 0x409   : > { %1802 = vrot.lane.b32.xlu1 %v6539_v22, %s5811_s14  ;;  %2243 = vrot.lane.b32.xlu0 %v6529_v1, %s5812_s15 }
 0x40d   : > { %2257 = vrot.lane.b32.xlu1 %v6537_v62, %s5813_s18  ;;  %2245 = vrot.lane.b32.xlu0 %v6537_v62, %s5812_s15 }
 0x411   : > { %v1532_v7 = vpop.permute.xlu1 %1531  ;;  %2269 = vrot.lane.b32.xlu1 %v6537_v62, %s5811_s14  ;;  %2247 = vrot.lane.b32.xlu0 %v6549_v25, %s5812_s15 }
 0x412   : > { %v1565_v19 = vsel %vm323_vm0, %v1532_v7, %v6308_v42  ;;  %v5217_v7 = vpop.f32.mrf.mxu0 }
 0x413   : > { %v6648_v45 = vadd.f32 %v6588_v43, %v5217_v7 }
 0x415   : > { %2259 = vrot.lane.b32.xlu1 %v6549_v25, %s5813_s18  ;;  %2249 = vrot.lane.b32.xlu0 %v6555_v32, %s5812_s15  ;;  %v1528_v27 = vpop.permute.xlu1 %1527  ;;  %8373 = vst [vmem:[#allocation30_spill] sm:$0xff] %v6648_v45 }
 0x416   : > { %v1563_v52 = vsel %vm323_vm0, %v1528_v27, %v6347_v24 }
 0x419   : > { %2271 = vrot.lane.b32.xlu1 %v6549_v25, %s5811_s14  ;;  %2261 = vrot.lane.b32.xlu0 %v6555_v32, %s5813_s18  ;;  %v1524_v48 = vpop.permute.xlu1 %1523 }
 0x41a   : > { %v1561_v37 = vsel %vm323_vm0, %v1524_v48, %v6374_v40 }
 0x41d   : > { %2273 = vrot.lane.b32.xlu1 %v6555_v32, %s5811_s14  ;;  %1784 = vrot.lane.b32.xlu0 %v6519_v28, %s5813_s18  ;;  %v1520_v39 = vpop.permute.xlu1 %1519 }
 0x41f   : > { %v1534_v44 = vpop.permute.xlu0 %1533 }
 0x420   : > { %v1566_v9 = vsel %vm323_vm0, %v1534_v44, %v6296_v8  ;;  %v6619_v44 = vadd.f32 %v6588_v43, %v576_v29  ;;  %v1559_v29 = vsel %vm323_vm0, %v1520_v39, %v6390_v12 }
 0x421   : > { %5296 = vmatprep.subr.mxu0 %v1566_v9  ;;  %2255 = vrot.lane.b32.xlu1 %v6529_v1, %s5813_s18  ;;  %v1516_v58 = vpop.permute.xlu1 %1515 }
 0x422   : > { %1796 = vrot.lane.b32.xlu0 %v6519_v28, %s5811_s14  ;;  %5297 = vmatpush3.msra.mxu0 %v1566_v9  ;;  %8368 = vst [vmem:[#allocation25_spill] sm:$0xff] %v6619_v44  ;;  %v596_v9 = vpop.f32.mrf.mxu0  ;;  %v1557_v39 = vsel %vm323_vm0, %v1516_v58, %v6404_v41 }
 0x423   : > { %v1530_v53 = vpop.permute.xlu0 %1529  ;;  %5298 = vmatprep.subr.mxu0 %v1565_v19  ;;  %v6632_v61 = vadd.f32 %v6588_v43, %v596_v9 }
 0x424   : > { %5299 = vmatpush3.msra.mxu0 %v1565_v19  ;;  %v1564_v55 = vsel %vm323_vm0, %v1530_v53, %v6323_v51  ;;  %v6623_v53 = vpop.f32.mrf.mxu1 }
 0x425   : > { %2267 = vrot.lane.b32.xlu1 %v6529_v1, %s5811_s14  ;;  %5300 = vmatprep.subr.mxu0 %v1564_v55  ;;  %8369 = vst [vmem:[#allocation26_spill] sm:$0xff] %v6623_v53  ;;  %v1512_v48 = vpop.permute.xlu1 %1511  ;;  %8370 = vst [vmem:[#allocation27_spill] sm:$0xff] %v6632_v61 }
 0x426   : > { %2666 = vrot.lane.b32.xlu0 %v6591_v50, %s5811_s14  ;;  %5301 = vmatpush3.msra.mxu0 %v1564_v55  ;;  %v1555_v58 = vsel %vm323_vm0, %v1512_v48, %v6418_v10 }
 0x427   : > { %v1526_v56 = vpop.permute.xlu0 %1525  ;;  %5302 = vmatprep.subr.mxu0 %v1563_v52 }
 0x428   : > { %5303 = vmatpush3.msra.mxu0 %v1563_v52  ;;  %v1562_v60 = vsel %vm323_vm0, %v1526_v56, %v6368_v36  ;;  %v6639_v56 = vpop.f32.mrf.mxu1 }
 0x429   : > { %3137 = vrot.lane.b32.xlu1 %v6602_v33, %s5811_s14  ;;  %5304 = vmatprep.subr.mxu0 %v1562_v60  ;;  %8372 = vst [vmem:[#allocation29_spill] sm:$0xff] %v6639_v56  ;;  %v4836_v56 = vld [vmem:[%s6411_s29 + $0x28] sm:$0xff] }
 0x42a   : > { %2668 = vrot.lane.b32.xlu0 %v6605_v0, %s5811_s14  ;;  %5305 = vmatpush3.msra.mxu0 %v1562_v60  ;;  %v6652_v9 = vpop.f32.mrf.mxu1 }
 0x42b   : > { %v1522_v27 = vpop.permute.xlu0 %1521  ;;  %5306 = vmatprep.subr.mxu0 %v1561_v37  ;;  %8374 = vst [vmem:[#allocation31_spill] sm:$0xff] %v6652_v9 }
 0x42c   : > { %5307 = vmatpush3.msra.mxu0 %v1561_v37  ;;  %v1560_v19 = vsel %vm323_vm0, %v1522_v27, %v6382_v54  ;;  %v1508_v37 = vpop.permute.xlu1 %1507 }
 0x42d   : > { %3139 = vrot.lane.b32.xlu1 %v6616_v46, %s5811_s14  ;;  %5308 = vmatprep.subr.mxu0 %v1560_v19 }
 0x42e   : > { %2670 = vrot.lane.b32.xlu0 %v6619_v44, %s5811_s14  ;;  %5309 = vmatpush3.msra.mxu0 %v1560_v19 }
 0x42f   : > { %v1518_v55 = vpop.permute.xlu0 %1517  ;;  %5310 = vmatprep.subr.mxu0 %v1559_v29 }
 0x430   : > { %5311 = vmatpush3.msra.mxu0 %v1559_v29  ;;  %v1558_v52 = vsel %vm323_vm0, %v1518_v55, %v6398_v49  ;;  %v6660_v29 = vpop.f32.mrf.mxu1  ;;  %v1504_v55 = vpop.permute.xlu1 %1503 }
 0x431   : > { %3141 = vrot.lane.b32.xlu1 %v6632_v61, %s5811_s14  ;;  %5312 = vmatprep.subr.mxu0 %v1558_v52  ;;  %8375 = vst [vmem:[#allocation32_spill] sm:$0xff] %v6660_v29 }
 0x432   : > { %2672 = vrot.lane.b32.xlu0 %v6635_v21, %s5811_s14  ;;  %5313 = vmatpush3.msra.mxu0 %v1558_v52  ;;  %v1553_v52 = vsel %vm323_vm0, %v1508_v37, %v6426_v47  ;;  %v4837_v21 = vld [vmem:[%s6411_s29 + $0x30] sm:$0xff] }
 0x433   : > { %v1514_v60 = vpop.permute.xlu0 %1513  ;;  %5314 = vmatprep.subr.mxu0 %v1557_v39 }
 0x434   : > { %5315 = vmatpush3.msra.mxu0 %v1557_v39  ;;  %v1556_v27 = vsel %vm323_vm0, %v1514_v60, %v6413_v14 }
 0x435   : > { %3143 = vrot.lane.b32.xlu1 %v6648_v45, %s5811_s14  ;;  %5316 = vmatprep.subr.mxu0 %v1556_v27 }
 0x436   : > { %5317 = vmatpush3.msra.mxu0 %v1556_v27 }
 0x437   : > { %v1510_v19 = vpop.permute.xlu0 %1509  ;;  %5318 = vmatprep.subr.mxu0 %v1555_v58 }
 0x438   : > { %5319 = vmatpush3.msra.mxu0 %v1555_v58  ;;  %v1554_v7 = vsel %vm323_vm0, %v1510_v19, %v6422_v11 }
 0x439   : > { %5320 = vmatprep.subr.mxu0 %v1554_v7 }
 0x43a   : > { %5321 = vmatpush3.msra.mxu0 %v1554_v7  ;;  %v1551_v7 = vsel %vm323_vm0, %v1504_v55, %v6435_v6 }
 0x43b   : > { %v5292_v39 = vpop.f32.mrf.mxu1  ;;  %v1506_v60 = vpop.permute.xlu0 %1505  ;;  %5322 = vmatprep.subr.mxu0 %v1553_v52 }
 0x43c   : > { %v4832_v27 = vclamps-f32 %v5292_v39, 5.0  ;;  %5323 = vmatpush3.msra.mxu0 %v1553_v52  ;;  %v1552_v48 = vsel %vm323_vm0, %v1506_v60, %v6430_v31 }
 0x43d   : > { %v1427_v58 = vpop.f32.mrf.mxu1  ;;  %5324 = vmatprep.subr.mxu0 %v1552_v48 }
 0x43e   : > { %v1456_v9 = vmul.f32 1.442695, %v4832_v27  ;;  %v4831_v19 = vclamps-f32 %v1427_v58, 5.0  ;;  %5325 = vmatpush3.msra.mxu0 %v1552_v48  ;;  %v4835_v48 = vld [vmem:[%s6411_s29 + $0x20] sm:$0xff] }
 0x43f   : > { %v5295_v29 = vpop.f32.mrf.mxu1  ;;  %5326 = vmatprep.subr.mxu0 %v1551_v7 }
 0x440   : > { %v1454_v37 = vmul.f32 1.442695, %v4831_v19  ;;  %v4834_v53 = vclamps-f32 %v5295_v29, 5.0  ;;  %5327 = vmatpush3.msra.mxu0 %v1551_v7  ;;  %5674 = vpow2.f32 %v1456_v9  ;;  %v4838_v29 = vld [vmem:[%s6411_s29 + $0x38] sm:$0xff] }
 0x441   : > { %v1437_v52 = vpop.f32.mrf.mxu1 }
 0x442   : > { %5676 = vpow2.f32 %v1454_v37  ;;  %v1460_v39 = vmul.f32 1.442695, %v4834_v53  ;;  %v4833_v60 = vclamps-f32 %v1437_v52, 5.0  ;;  %v8376_v53 = vld [vmem:[#allocation2_spill] sm:$0xff] }
 0x444   : > { %v1458_v27 = vmul.f32 1.442695, %v4833_v60  ;;  %5678 = vpow2.f32 %v1460_v39 }
 0x446   : > { %5680 = vpow2.f32 %v1458_v27 }
 0x44d   : > { %v5675_v58 = vpop.eup %5674 }
 0x44e   : > { %v1468_v61 = vmul.f32 %v5675_v58, %v4836_v56 }
 0x44f   : > { %v5677_v55 = vpop.eup %5676 }
 0x450   : > { %v1467_v45 = vmul.f32 %v5677_v55, %v4835_v48 }
 0x451   : > { %v5679_v19 = vpop.eup %5678 }
 0x452   : > { %5328 = vmatprep.mubr.f32.mxu0 %v1467_v45  ;;  %v1470_v46 = vmul.f32 %v5679_v19, %v4838_v29 }
 0x453   : > { %v5681_v7 = vpop.eup %5680  ;;  %5329 = vmatmul.mubr.f32.vlgmr.msra.gmra.mxu0 %v1468_v61 }
 0x454   : > { %v1469_v9 = vmul.f32 %v5681_v7, %v4837_v21 }
 0x456   : > { %5331 = vmatprep.mubr.f32.mxu0 %v1469_v9 }
 0x457   : > { %5332 = vmatmul.mubr.f32.gmra.mxu0 %v1470_v46 }
 0x458   : > { %5394 = vmatprep.mubr.msk.f32.mxu0 %vm323_vm0, %v8376_v53 }
 0x467   : > { %v1773_v37 = vpop.permute.xlu0 %1772 }
 0x46b   : > { %v1775_v52 = vpop.permute.xlu0 %1774  ;;  %v1799_v39 = vpop.permute.xlu1 %1798 }
 0x46c   : > { %v1809_v46 = vsel %vm323_vm0, %v6523_v17, %v1775_v52 }
 0x46f   : > { %v1787_v60 = vpop.permute.xlu0 %1786  ;;  %v1801_v27 = vpop.permute.xlu1 %1800 }
 0x470   : > { %v1813_v19 = vsel %vm757_vm2, %v1809_v46, %v1787_v60  ;;  %v6695_v60 = vld [vmem:[%s8250_s4 + $0x10] sm:$0xff] }
 0x471   : > { %v1817_v52 = vsel %vm762_vm1, %v1813_v19, %v1799_v39 }
 0x473   : > { %v1777_v48 = vpop.permute.xlu0 %1776  ;;  %v1779_v56 = vpop.permute.xlu1 %1778 }
 0x474   : > { %v1810_v45 = vsel %vm323_vm0, %v6531_v5, %v1777_v48  ;;  %v1811_v21 = vsel %vm323_vm0, %v6539_v22, %v1779_v56  ;;  %v6688_v5 = vld [vmem:[%s8250_s4 + $0x18] sm:$0xff]  ;;  %v6701_v56 = vld [vmem:[%s8250_s4 + $0x8] sm:$0xff] }
 0x477   : > { %v1789_v58 = vpop.permute.xlu0 %1788  ;;  %v1791_v55 = vpop.permute.xlu1 %1790 }
 0x478   : > { %v1814_v61 = vsel %vm757_vm2, %v1810_v45, %v1789_v58  ;;  %v1815_v29 = vsel %vm757_vm2, %v1811_v21, %v1791_v55 }
 0x479   : > { %v1818_v44 = vsel %vm762_vm1, %v1814_v61, %v1801_v27 }
 0x47a   : > { %v1822_v27 = vmul.f32 %v6695_v60, %v1818_v44 }
 0x47b   : > { %v2244_v7 = vpop.permute.xlu0 %2243  ;;  %v1803_v9 = vpop.permute.xlu1 %1802 }
 0x47c   : > { %v1819_v0 = vsel %vm762_vm1, %v1815_v29, %v1803_v9 }
 0x47d   : > { %v1823_v17 = vmul.f32 %v6688_v5, %v1819_v0  ;;  %v1821_v0 = vmul.f32 %v6701_v56, %v1817_v52 }
 0x47f   : > { %v2246_v22 = vpop.permute.xlu0 %2245  ;;  %v2258_v48 = vpop.permute.xlu1 %2257  ;;  %5334 = vmatprep.subr.mxu1 %v1823_v17 }
 0x480   : > { %5335 = vmatpush3.msra.mxu1 %v1823_v17  ;;  %v2280_v44 = vsel %vm323_vm0, %v6537_v62, %v2246_v22 }
 0x481   : > { %5336 = vmatprep.subr.mxu1 %v1822_v27  ;;  %v2284_v33 = vsel %vm757_vm2, %v2280_v44, %v2258_v48  ;;  %v2279_v48 = vsel %vm323_vm0, %v6529_v1, %v2244_v7  ;;  %v8377_v1 = vld [vmem:[#allocation4_spill] sm:$0xff]  ;;  %v8378_v7 = vld [vmem:[#allocation6_spill] sm:$0xff] }
 0x482   : > { %5337 = vmatpush3.msra.mxu1 %v1822_v27 }
 0x483   : > { %v2248_v39 = vpop.permute.xlu0 %2247  ;;  %v2270_v58 = vpop.permute.xlu1 %2269  ;;  %5338 = vmatprep.subr.mxu1 %v1821_v0 }
 0x484   : > { %5339 = vmatpush3.msra.mxu1 %v1821_v0  ;;  %v2281_v21 = vsel %vm323_vm0, %v6549_v25, %v2248_v39  ;;  %v2288_v22 = vsel %vm762_vm1, %v2284_v33, %v2270_v58  ;;  %v1808_v25 = vsel %vm323_vm0, %v6519_v28, %v1773_v37  ;;  %v6728_v28 = vld [vmem:[%s8250_s4] sm:$0xff] }
 0x487   : > { %v2250_v55 = vpop.permute.xlu0 %2249  ;;  %v2260_v45 = vpop.permute.xlu1 %2259 }
 0x488   : > { %v2282_v19 = vsel %vm323_vm0, %v6555_v32, %v2250_v55  ;;  %v2285_v29 = vsel %vm757_vm2, %v2281_v21, %v2260_v45 }
 0x48b   : > { %v2262_v61 = vpop.permute.xlu0 %2261  ;;  %v2272_v46 = vpop.permute.xlu1 %2271 }
 0x48c   : > { %v2286_v9 = vsel %vm757_vm2, %v2282_v19, %v2262_v61  ;;  %v2289_v27 = vsel %vm762_vm1, %v2285_v29, %v2272_v46  ;;  %v2292_v61 = vmul.f32 %v6701_v56, %v2288_v22  ;;  %v8382_v22 = vld [vmem:[#allocation7_spill] sm:$0xff] }
 0x48d   : > { %v2293_v32 = vmul.f32 %v6695_v60, %v2289_v27  ;;  %v8381_v27 = vld [vmem:[#allocation5_spill] sm:$0xff] }
 0x48f   : > { %v1785_v17 = vpop.permute.xlu0 %1784  ;;  %v2274_v52 = vpop.permute.xlu1 %2273 }
 0x490   : > { %v2290_v0 = vsel %vm762_vm1, %v2286_v9, %v2274_v52  ;;  %v1812_v55 = vsel %vm757_vm2, %v1808_v25, %v1785_v17  ;;  %v8379_v17 = vld [vmem:[#allocation3_spill] sm:$0xff]  ;;  %v8380_v52 = vld [vmem:[#allocation8_spill] sm:$0xff] }
 0x491   : > { %v2294_v62 = vmul.f32 %v6688_v5, %v2290_v0 }
 0x493   : > { %5386 = vmatprep.subr.mxu0 %v2294_v62  ;;  %v2256_v39 = vpop.permute.xlu1 %2255 }
 0x494   : > { %v1797_v45 = vpop.permute.xlu0 %1796  ;;  %5387 = vmatpush3.msra.mxu0 %v2294_v62  ;;  %v2283_v37 = vsel %vm757_vm2, %v2279_v48, %v2256_v39  ;;  %v1956_v48 = vmul.f32 %v6175_v63, %v8378_v7 }
 0x495   : > { %v1816_v46 = vsel %vm762_vm1, %v1812_v55, %v1797_v45  ;;  %5388 = vmatprep.subr.mxu0 %v2293_v32  ;;  %v2428_v55 = vmul.f32 %v6170_v59, %v8382_v22  ;;  %v2427_v45 = vmul.f32 %v6175_v63, %v8381_v27 }
 0x496   : > { %v1820_v33 = vmul.f32 %v6728_v28, %v1816_v46  ;;  %5389 = vmatpush3.msra.mxu0 %v2293_v32  ;;  %v2426_v46 = vmul.f32 %v6179_v13, %v8379_v17 }
 0x497   : > { %v2268_v58 = vpop.permute.xlu1 %2267  ;;  %5390 = vmatprep.subr.mxu0 %v2292_v61 }
 0x498   : > { %v2667_v44 = vpop.permute.xlu0 %2666  ;;  %v2287_v21 = vsel %vm762_vm1, %v2283_v37, %v2268_v58  ;;  %5340 = vmatprep.subr.mxu1 %v1820_v33  ;;  %5391 = vmatpush3.msra.mxu0 %v2292_v61  ;;  %v1957_v61 = vmul.f32 %v6170_v59, %v8380_v52  ;;  %v1955_v37 = vmul.f32 %v6179_v13, %v8377_v1 }
 0x499   : > { %v2291_v19 = vmul.f32 %v6728_v28, %v2287_v21  ;;  %2678 = vxpose.xlu0.b32.start [1/4] (short) (narrow) %v2667_v44, 32  ;;  %5341 = vmatpush3.msra.mxu1 %v1820_v33  ;;  %v2425_v33 = vmul.f32 %v6184_v15, %v8376_v53  ;;  %v2424_v58 = vmul.f32 %v6188_v16, %v8382_v22 }
 0x49a   : > { %5343 = vmatmul.mubr.msk.f32.vlgmr.msra.gmra.mxu1 %vm323_vm0, %v8377_v1  ;;  %v1954_v44 = vmul.f32 %v6184_v15, %v6332_v57  ;;  %v2423_v21 = vmul.f32 %v6193_v2, %v8381_v27 }
 0x49b   : > { %5345 = vmatprep.mubr.msk.f32.mxu1 %vm323_vm0, %v8378_v7  ;;  %v3138_v29 = vpop.permute.xlu1 %3137  ;;  %5392 = vmatprep.subr.mxu0 %v2291_v19 }
 0x49c   : > { %v2669_v9 = vpop.permute.xlu0 %2668  ;;  %3149 = vxpose.xlu1.b32.start [1/4] (short) (narrow) %v3138_v29, 32  ;;  %5393 = vmatpush3.msra.mxu0 %v2291_v19  ;;  %v1953_v19 = vmul.f32 %v6188_v16, %v8380_v52  ;;  %v2422_v29 = vmul.f32 %v6195_v18, %v8379_v17 }
 0x49d   : > { %2679 = vxpose.xlu0.b32.cont [2/4] (short) (narrow) %v2669_v9, 32  ;;  %5395 = vmatmul.mubr.msk.f32.vlgmr.msra.gmra.mxu0 %vm323_vm0, %v8379_v17  ;;  %v1952_v9 = vmul.f32 %v6193_v2, %v8378_v7 }
 0x49e   : > { %5346 = vmatmul.mubr.msk.f32.gmra.mxu1 %vm323_vm0, %v8380_v52  ;;  %5397 = vmatprep.mubr.msk.f32.mxu0 %vm323_vm0, %v8381_v27 }
 0x49f   : > { %v3140_v0 = vpop.permute.xlu1 %3139 }
 0x4a0   : > { %v2671_v62 = vpop.permute.xlu0 %2670  ;;  %3150 = vxpose.xlu1.b32.cont [2/4] (short) (narrow) %v3140_v0, 32  ;;  %v2421_v0 = vmul.f32 %v6199_v20, %v8376_v53 }
 0x4a1   : > { %2680 = vxpose.xlu0.b32.cont [3/4] (short) (narrow) %v2671_v62, 32  ;;  %5398 = vmatmul.mubr.msk.f32.gmra.mxu0 %vm323_vm0, %v8382_v22  ;;  %v1951_v62 = vmul.f32 %v6195_v18, %v8377_v1 }
 0x4a3   : > { %v3142_v25 = vpop.permute.xlu1 %3141 }
 0x4a4   : > { %v2673_v32 = vpop.permute.xlu0 %2672  ;;  %3151 = vxpose.xlu1.b32.cont [3/4] (short) (narrow) %v3142_v25, 32  ;;  %v2420_v25 = vmul.f32 %v6204_v3, %v8382_v22 }
 0x4a5   : > { %2681 = vxpose.xlu0.b32.end [4/4] (short) (narrow) %v2673_v32, 32  ;;  %v1950_v32 = vmul.f32 %v6199_v20, %v6332_v57 }
 0x4a7   : > { %v3144_v39 = vpop.permute.xlu1 %3143 }
 0x4a8   : > { %3152 = vxpose.xlu1.b32.end [4/4] (short) (narrow) %v3144_v39, 32  ;;  %v2419_v39 = vmul.f32 %v6206_v23, %v8381_v27 }
 0x4c6   : > { %2475 = vrot.lane.b32.xlu1 %v2428_v55, %s5813_s18  ;;  %v1949_v55 = vmul.f32 %v6204_v3, %v8380_v52 }
 0x4ca   : > { %2473 = vrot.lane.b32.xlu1 %v2427_v45, %s5813_s18  ;;  %v2418_v45 = vmul.f32 %v6212_v26, %v8379_v17 }
 0x4ce   : > { %2004 = vrot.lane.b32.xlu0 %v1957_v61, %s5813_s18  ;;  %2471 = vrot.lane.b32.xlu1 %v2426_v46, %s5813_s18  ;;  %v1948_v61 = vmul.f32 %v6206_v23, %v8378_v7  ;;  %v2417_v46 = vmul.f32 %v6215_v4, %v8376_v53 }
 0x4d2   : > { %2002 = vrot.lane.b32.xlu0 %v1956_v48, %s5813_s18  ;;  %2469 = vrot.lane.b32.xlu1 %v2425_v33, %s5813_s18  ;;  %v1947_v48 = vmul.f32 %v6212_v26, %v8377_v1  ;;  %v2416_v33 = vmul.f32 %v6223_v30, %v8382_v22  ;;  %v2414_v22 = vmul.f32 %v6239_v35, %v8379_v17 }
 0x4d6   : > { %2000 = vrot.lane.b32.xlu0 %v1955_v37, %s5813_s18  ;;  %2467 = vrot.lane.b32.xlu1 %v2424_v58, %s5813_s18  ;;  %v1946_v37 = vmul.f32 %v6215_v4, %v6332_v57  ;;  %v2415_v58 = vmul.f32 %v6231_v34, %v8381_v27  ;;  %v1943_v27 = vmul.f32 %v6239_v35, %v8377_v1 }
 0x4da   : > { %1998 = vrot.lane.b32.xlu0 %v1954_v44, %s5813_s18  ;;  %2465 = vrot.lane.b32.xlu1 %v2423_v21, %s5813_s18  ;;  %v1945_v44 = vmul.f32 %v6223_v30, %v8380_v52  ;;  %v1944_v21 = vmul.f32 %v6231_v34, %v8378_v7 }
 0x4de   : > { %1996 = vrot.lane.b32.xlu0 %v1953_v19, %s5813_s18  ;;  %2463 = vrot.lane.b32.xlu1 %v2422_v29, %s5813_s18 }
 0x4e2   : > { %1994 = vrot.lane.b32.xlu0 %v1952_v9, %s5813_s18  ;;  %2461 = vrot.lane.b32.xlu1 %v2421_v0, %s5813_s18 }
 0x4e6   : > { %1992 = vrot.lane.b32.xlu0 %v1951_v62, %s5813_s18  ;;  %2459 = vrot.lane.b32.xlu1 %v2420_v25, %s5813_s18  ;;  %v1942_v62 = vmul.f32 %v6246_v38, %v6332_v57  ;;  %v2413_v25 = vmul.f32 %v6246_v38, %v8376_v53 }
 0x4ea   : > { %1990 = vrot.lane.b32.xlu0 %v1950_v32, %s5813_s18  ;;  %2457 = vrot.lane.b32.xlu1 %v2419_v39, %s5813_s18 }
 0x4ee   : > { %1988 = vrot.lane.b32.xlu0 %v1949_v55, %s5813_s18  ;;  %2455 = vrot.lane.b32.xlu1 %v2418_v45, %s5813_s18 }
 0x4f2   : > { %1986 = vrot.lane.b32.xlu0 %v1948_v61, %s5813_s18  ;;  %2453 = vrot.lane.b32.xlu1 %v2417_v46, %s5813_s18 }
 0x4f6   : > { %1984 = vrot.lane.b32.xlu0 %v1947_v48, %s5813_s18  ;;  %2451 = vrot.lane.b32.xlu1 %v2416_v33, %s5813_s18 }
 0x4fa   : > { %1982 = vrot.lane.b32.xlu0 %v1946_v37, %s5813_s18  ;;  %2449 = vrot.lane.b32.xlu1 %v2415_v58, %s5813_s18 }
 0x4fe   : > { %1980 = vrot.lane.b32.xlu0 %v1945_v44, %s5813_s18  ;;  %2447 = vrot.lane.b32.xlu1 %v2414_v22, %s5813_s18 }
 0x502   : > { %1978 = vrot.lane.b32.xlu0 %v1944_v21, %s5813_s18 }
 0x506   : > { %1976 = vrot.lane.b32.xlu0 %v1943_v27, %s5813_s18 }
 0x515   : > { %v6836_v19 = vpop.trf.xlu0 }
 0x518   : > { %v6838_v52 = vpop.trf.xlu1 }
 0x519   : > { %v6840_v29 = vpop.trf.xlu0 }
 0x51c   : > { %v6842_v17 = vpop.trf.xlu1 }
 0x51d   : > { %v6844_v9 = vpop.trf.xlu0 }
 0x520   : > { %v6846_v0 = vpop.trf.xlu1 }
 0x521   : > { %v6848_v7 = vpop.trf.xlu0 }
 0x522   : > { %2720 = vrot.lane.b32.xlu0 %v6848_v7, %s5812_s15 }
 0x524   : > { %v6852_v1 = vpop.trf.xlu1 }
 0x525   : > { %3191 = vrot.lane.b32.xlu1 %v6852_v1, %s5812_s15 }
 0x526   : > { %2732 = vrot.lane.b32.xlu0 %v6848_v7, %s5813_s18 }
 0x529   : > { %3203 = vrot.lane.b32.xlu1 %v6852_v1, %s5813_s18 }
 0x52a   : > { %1974 = vrot.lane.b32.xlu0 %v1942_v62, %s5813_s18  ;;  %v5220_v62 = vpop.f32.mrf.mxu0 }
 0x52d   : > { %2445 = vrot.lane.b32.xlu1 %v2413_v25, %s5813_s18 }
 0x52e   : > { %2718 = vrot.lane.b32.xlu0 %v6844_v9, %s5812_s15 }
 0x531   : > { %2744 = vrot.lane.b32.xlu1 %v6848_v7, %s5811_s14 }
 0x532   : > { %3189 = vrot.lane.b32.xlu0 %v6846_v0, %s5812_s15 }
 0x535   : > { %3215 = vrot.lane.b32.xlu1 %v6852_v1, %s5811_s14 }
 0x536   : > { %2730 = vrot.lane.b32.xlu0 %v6844_v9, %s5813_s18 }
 0x538   : > { %v2476_v57 = vpop.permute.xlu1 %2475 }
 0x539   : > { %3201 = vrot.lane.b32.xlu1 %v6846_v0, %s5813_s18  ;;  %v2508_v53 = vsel %vm323_vm0, %v2476_v57, %v6296_v8 }
 0x53a   : > { %2716 = vrot.lane.b32.xlu0 %v6840_v29, %s5812_s15  ;;  %5400 = vmatprep.subr.mxu0 %v2508_v53 }
 0x53b   : > { %5401 = vmatpush3.msra.mxu0 %v2508_v53  ;;  %v606_v53 = vpop.f32.mrf.mxu0 }
 0x53c   : > { %v2474_v32 = vpop.permute.xlu1 %2473 }
 0x53d   : > { %2742 = vrot.lane.b32.xlu1 %v6844_v9, %s5811_s14  ;;  %v2507_v39 = vsel %vm323_vm0, %v2474_v32, %v6308_v42 }
 0x53e   : > { %3187 = vrot.lane.b32.xlu0 %v6842_v17, %s5812_s15  ;;  %5402 = vmatprep.subr.mxu0 %v2507_v39 }
 0x53f   : > { %5403 = vmatpush3.msra.mxu0 %v2507_v39 }
 0x540   : > { %v2005_v55 = vpop.permute.xlu0 %2004  ;;  %v2472_v45 = vpop.permute.xlu1 %2471 }
 0x541   : > { %3213 = vrot.lane.b32.xlu1 %v6846_v0, %s5811_s14  ;;  %v2037_v61 = vsel %vm323_vm0, %v2005_v55, %v6296_v8  ;;  %v2506_v46 = vsel %vm323_vm0, %v2472_v45, %v6323_v51  ;;  %v6920_v55 = vpop.f32.mrf.mxu0 }
 0x542   : > { %2728 = vrot.lane.b32.xlu0 %v6840_v29, %s5813_s18  ;;  %5348 = vmatprep.subr.mxu1 %v2037_v61  ;;  %8383 = vst [vmem:[#allocation2_spill] sm:$0xff] %v6920_v55  ;;  %v8397_v55 = vld [vmem:[#allocation9_spill] sm:$0xff] }
 0x543   : > { %5349 = vmatpush3.msra.mxu1 %v2037_v61  ;;  %5404 = vmatprep.subr.mxu0 %v2506_v46 }
 0x544   : > { %v2003_v48 = vpop.permute.xlu0 %2002  ;;  %5405 = vmatpush3.msra.mxu0 %v2506_v46  ;;  %v2470_v33 = vpop.permute.xlu1 %2469 }
 0x545   : > { %3199 = vrot.lane.b32.xlu1 %v6842_v17, %s5813_s18  ;;  %v2036_v37 = vsel %vm323_vm0, %v2003_v48, %v6308_v42  ;;  %v2505_v58 = vsel %vm323_vm0, %v2470_v33, %v6347_v24  ;;  %v6930_v33 = vpop.f32.mrf.mxu0 }
 0x546   : > { %2714 = vrot.lane.b32.xlu0 %v6836_v19, %s5812_s15  ;;  %5350 = vmatprep.subr.mxu1 %v2036_v37  ;;  %8384 = vst [vmem:[#allocation4_spill] sm:$0xff] %v6930_v33 }
 0x547   : > { %5351 = vmatpush3.msra.mxu1 %v2036_v37  ;;  %5406 = vmatprep.subr.mxu0 %v2505_v58  ;;  %v6933_v37 = vadd.f32 %v6588_v43, %v606_v53  ;;  %v6950_v53 = vadd.f32 %v6588_v43, %v5220_v62  ;;  %v8390_v62 = vld [vmem:[#allocation11_spill] sm:$0xff] }
 0x548   : > { %v2001_v44 = vpop.permute.xlu0 %2000  ;;  %5407 = vmatpush3.msra.mxu0 %v2505_v58  ;;  %v2468_v22 = vpop.permute.xlu1 %2467 }
 0x549   : > { %2740 = vrot.lane.b32.xlu1 %v6840_v29, %s5811_s14  ;;  %v2035_v21 = vsel %vm323_vm0, %v2001_v44, %v6323_v51  ;;  %v2504_v27 = vsel %vm323_vm0, %v2468_v22, %v6368_v36  ;;  %8385 = vst [vmem:[#allocation6_spill] sm:$0xff] %v6933_v37  ;;  %8389 = vst [vmem:[#allocation5_spill] sm:$0xff] %v6950_v53 }
 0x54a   : > { %3185 = vrot.lane.b32.xlu0 %v6838_v52, %s5812_s15  ;;  %5352 = vmatprep.subr.mxu1 %v2035_v21 }
 0x54b   : > { %5353 = vmatpush3.msra.mxu1 %v2035_v21  ;;  %5408 = vmatprep.subr.mxu0 %v2504_v27 }
 0x54c   : > { %v1999_v25 = vpop.permute.xlu0 %1998  ;;  %5409 = vmatpush3.msra.mxu0 %v2504_v27  ;;  %v2466_v57 = vpop.permute.xlu1 %2465  ;;  %v8386_v27 = vld [vmem:[#allocation12_spill] sm:$0xff] }
 0x54d   : > { %3211 = vrot.lane.b32.xlu1 %v6842_v17, %s5811_s14  ;;  %v2034_v32 = vsel %vm323_vm0, %v1999_v25, %v6347_v24  ;;  %v2503_v39 = vsel %vm323_vm0, %v2466_v57, %v6374_v40  ;;  %v6945_v25 = vadd.f32 %v6588_v43, %v8386_v27  ;;  %v6947_v57 = vpop.f32.mrf.mxu0 }
 0x54e   : > { %2726 = vrot.lane.b32.xlu0 %v6836_v19, %s5813_s18  ;;  %5354 = vmatprep.subr.mxu1 %v2034_v32  ;;  %8388 = vst [vmem:[#allocation8_spill] sm:$0xff] %v6947_v57 }
 0x54f   : > { %5355 = vmatpush3.msra.mxu1 %v2034_v32  ;;  %5410 = vmatprep.subr.mxu0 %v2503_v39  ;;  %8387 = vst [vmem:[#allocation3_spill] sm:$0xff] %v6945_v25 }
 0x550   : > { %v1997_v45 = vpop.permute.xlu0 %1996  ;;  %5411 = vmatpush3.msra.mxu0 %v2503_v39  ;;  %v2464_v61 = vpop.permute.xlu1 %2463 }
 0x551   : > { %3197 = vrot.lane.b32.xlu1 %v6838_v52, %s5813_s18  ;;  %v2033_v46 = vsel %vm323_vm0, %v1997_v45, %v6368_v36  ;;  %v2502_v48 = vsel %vm323_vm0, %v2464_v61, %v6382_v54 }
 0x552   : > { %2738 = vrot.lane.b32.xlu0 %v6836_v19, %s5811_s14  ;;  %5356 = vmatprep.subr.mxu1 %v2033_v46 }
 0x553   : > { %5357 = vmatpush3.msra.mxu1 %v2033_v46  ;;  %5412 = vmatprep.subr.mxu0 %v2502_v48 }
 0x554   : > { %v1995_v58 = vpop.permute.xlu0 %1994  ;;  %5413 = vmatpush3.msra.mxu0 %v2502_v48  ;;  %v2462_v44 = vpop.permute.xlu1 %2461  ;;  %v6964_v48 = vadd.f32 %v6588_v43, %v8390_v62 }
 0x555   : > { %3209 = vrot.lane.b32.xlu1 %v6838_v52, %s5811_s14  ;;  %v2032_v22 = vsel %vm323_vm0, %v1995_v58, %v6374_v40  ;;  %v2501_v21 = vsel %vm323_vm0, %v2462_v44, %v6390_v12  ;;  %v6966_v58 = vpop.f32.mrf.mxu0  ;;  %v8393_v44 = vld [vmem:[#allocation10_spill] sm:$0xff] }
 0x556   : > { %3608 = vrot.lane.b32.xlu0 %v6933_v37, %s5811_s14  ;;  %5358 = vmatprep.subr.mxu1 %v2032_v22  ;;  %8391 = vst [vmem:[#allocation7_spill] sm:$0xff] %v6964_v48  ;;  %8392 = vst [vmem:[#allocation12_spill] sm:$0xff] %v6966_v58 }
 0x557   : > { %5359 = vmatpush3.msra.mxu1 %v2032_v22  ;;  %5414 = vmatprep.subr.mxu0 %v2501_v21  ;;  %v6970_v22 = vadd.f32 %v6588_v43, %v8393_v44  ;;  %v8395_v44 = vld [vmem:[#allocation14_spill] sm:$0xff] }
 0x558   : > { %v1993_v32 = vpop.permute.xlu0 %1992  ;;  %5415 = vmatpush3.msra.mxu0 %v2501_v21  ;;  %v2460_v39 = vpop.permute.xlu1 %2459 }
 0x559   : > { %4079 = vrot.lane.b32.xlu1 %v6945_v25, %s5811_s14  ;;  %v2031_v45 = vsel %vm323_vm0, %v1993_v32, %v6382_v54  ;;  %v2500_v61 = vsel %vm323_vm0, %v2460_v39, %v6398_v49  ;;  %8394 = vst [vmem:[#allocation11_spill] sm:$0xff] %v6970_v22 }
 0x55a   : > { %3610 = vrot.lane.b32.xlu0 %v6950_v53, %s5811_s14  ;;  %v6960_v46 = vpop.f32.mrf.mxu1  ;;  %5360 = vmatprep.subr.mxu1 %v2031_v45 }
 0x55b   : > { %5361 = vmatpush3.msra.mxu1 %v2031_v45  ;;  %5416 = vmatprep.subr.mxu0 %v2500_v61 }
 0x55c   : > { %v1991_v21 = vpop.permute.xlu0 %1990  ;;  %v1898_v27 = vpop.f32.mrf.mxu1  ;;  %5417 = vmatpush3.msra.mxu0 %v2500_v61  ;;  %v6984_v61 = vadd.f32 %v6588_v43, %v8395_v44 }
 0x55d   : > { %v4843_v32 = vclamps-f32 %v1898_v27, 5.0  ;;  %v2458_v39 = vpop.permute.xlu1 %2457  ;;  %4081 = vrot.lane.b32.xlu1 %v6964_v48, %s5811_s14  ;;  %v2030_v62 = vsel %vm323_vm0, %v1991_v21, %v6390_v12  ;;  %v6976_v57 = vpop.f32.mrf.mxu0  ;;  %v6988_v21 = vadd.f32 %v6588_v43, %v8397_v55 }
 0x55e   : > { %3612 = vrot.lane.b32.xlu0 %v6970_v22, %s5811_s14  ;;  %5362 = vmatprep.subr.mxu1 %v2030_v62  ;;  %v2499_v45 = vsel %vm323_vm0, %v2458_v39, %v6404_v41  ;;  %8396 = vst [vmem:[#allocation10_spill] sm:$0xff] %v6984_v61 }
 0x55f   : > { %v1925_v27 = vmul.f32 1.442695, %v4843_v32  ;;  %5363 = vmatpush3.msra.mxu1 %v2030_v62  ;;  %5418 = vmatprep.subr.mxu0 %v2499_v45  ;;  %v2369_v58 = vpop.f32.mrf.mxu0  ;;  %v8398_v32 = vld [vmem:[#allocation13_spill] sm:$0xff] }
 0x560   : > { %v1989_v33 = vpop.permute.xlu0 %1988  ;;  %v4855_v25 = vclamps-f32 %v2369_v58, 5.0  ;;  %5419 = vmatpush3.msra.mxu0 %v2499_v45  ;;  %v7000_v58 = vadd.f32 %v6588_v43, %v8398_v32 }
 0x561   : > { %5682 = vpow2.f32 %v1925_v27  ;;  %v2456_v37 = vpop.permute.xlu1 %2455  ;;  %4083 = vrot.lane.b32.xlu1 %v6984_v61, %s5811_s14  ;;  %v2029_v39 = vsel %vm323_vm0, %v1989_v33, %v6398_v49  ;;  %v4862_v49 = vld [vmem:[%s6411_s29 + $0x78] sm:$0xff] }
 0x562   : > { %v2396_v44 = vmul.f32 1.442695, %v4855_v25  ;;  %3614 = vrot.lane.b32.xlu0 %v6988_v21, %s5811_s14  ;;  %5364 = vmatprep.subr.mxu1 %v2029_v39  ;;  %v2498_v55 = vsel %vm323_vm0, %v2456_v37, %v6413_v14 }
 0x563   : > { %5365 = vmatpush3.msra.mxu1 %v2029_v39  ;;  %5420 = vmatprep.subr.mxu0 %v2498_v55 }
 0x564   : > { %5684 = vpow2.f32 %v2396_v44  ;;  %v1987_v62 = vpop.permute.xlu0 %1986  ;;  %5421 = vmatpush3.msra.mxu0 %v2498_v55  ;;  %v4847_v55 = vld [vmem:[%s6411_s29 + $0x40] sm:$0xff] }
 0x565   : > { %v2454_v45 = vpop.permute.xlu1 %2453  ;;  %4085 = vrot.lane.b32.xlu1 %v7000_v58, %s5811_s14  ;;  %v2028_v33 = vsel %vm323_vm0, %v1987_v62, %v6404_v41 }
 0x566   : > { %5366 = vmatprep.subr.mxu1 %v2028_v33  ;;  %v2497_v37 = vsel %vm323_vm0, %v2454_v45, %v6418_v10 }
 0x567   : > { %5367 = vmatpush3.msra.mxu1 %v2028_v33  ;;  %5422 = vmatprep.subr.mxu0 %v2497_v37 }
 0x568   : > { %v1985_v43 = vpop.permute.xlu0 %1984  ;;  %5423 = vmatpush3.msra.mxu0 %v2497_v37 }
 0x569   : > { %v2452_v25 = vpop.permute.xlu1 %2451  ;;  %v2027_v27 = vsel %vm323_vm0, %v1985_v43, %v6413_v14  ;;  %v4859_v43 = vld [vmem:[%s6411_s29 + $0x60] sm:$0xff] }
 0x56a   : > { %5368 = vmatprep.subr.mxu1 %v2027_v27  ;;  %v2496_v39 = vsel %vm323_vm0, %v2452_v25, %v6422_v11 }
 0x56b   : > { %5369 = vmatpush3.msra.mxu1 %v2027_v27  ;;  %5424 = vmatprep.subr.mxu0 %v2496_v39 }
 0x56c   : > { %v1983_v44 = vpop.permute.xlu0 %1982  ;;  %5425 = vmatpush3.msra.mxu0 %v2496_v39 }
 0x56d   : > { %v2450_v32 = vpop.permute.xlu1 %2449  ;;  %v2026_v62 = vsel %vm323_vm0, %v1983_v44, %v6418_v10 }
 0x56e   : > { %v5683_v45 = vpop.eup %5682  ;;  %5370 = vmatprep.subr.mxu1 %v2026_v62  ;;  %v2495_v33 = vsel %vm323_vm0, %v2450_v32, %v6426_v47 }
 0x56f   : > { %5371 = vmatpush3.msra.mxu1 %v2026_v62  ;;  %5426 = vmatprep.subr.mxu0 %v2495_v33  ;;  %v1938_v37 = vmul.f32 %v5683_v45, %v4847_v55 }
 0x570   : > { %v1981_v14 = vpop.permute.xlu0 %1980  ;;  %5427 = vmatpush3.msra.mxu0 %v2495_v33  ;;  %v5399_v33 = vpop.f32.mrf.mxu0 }
 0x571   : > { %v5685_v25 = vpop.eup %5684  ;;  %v2448_v27 = vpop.permute.xlu1 %2447  ;;  %5380 = vmatprep.mubr.f32.mxu1 %v1938_v37  ;;  %v2025_v39 = vsel %vm323_vm0, %v1981_v14, %v6422_v11  ;;  %v4858_v48 = vclamps-f32 %v5399_v33, 5.0 }
 0x572   : > { %5372 = vmatprep.subr.mxu1 %v2025_v39  ;;  %v2494_v44 = vsel %vm323_vm0, %v2448_v27, %v6430_v31  ;;  %v2409_v10 = vmul.f32 %v5685_v25, %v4859_v43  ;;  %v5347_v14 = vpop.f32.mrf.mxu1  ;;  %v4844_v43 = vclamps-f32 %v6960_v46, 5.0  ;;  %v2379_v27 = vpop.f32.mrf.mxu0 }
 0x573   : > { %5373 = vmatpush3.msra.mxu1 %v2025_v39  ;;  %5428 = vmatprep.subr.mxu0 %v2494_v44  ;;  %v4846_v39 = vclamps-f32 %v5347_v14, 5.0 }
 0x574   : > { %v1979_v32 = vpop.permute.xlu0 %1978  ;;  %5429 = vmatpush3.msra.mxu0 %v2494_v44  ;;  %5432 = vmatprep.mubr.f32.mxu0 %v2409_v10  ;;  %v1908_v37 = vpop.f32.mrf.mxu1  ;;  %v4856_v10 = vclamps-f32 %v6976_v57, 5.0  ;;  %v1927_v44 = vmul.f32 1.442695, %v4844_v43 }
 0x575   : > { %v2024_v55 = vsel %vm323_vm0, %v1979_v32, %v6426_v47  ;;  %v4845_v25 = vclamps-f32 %v1908_v37, 5.0  ;;  %v4857_v32 = vclamps-f32 %v2379_v27, 5.0  ;;  %v1931_v11 = vmul.f32 1.442695, %v4846_v39 }
 0x576   : > { %5374 = vmatprep.subr.mxu1 %v2024_v55  ;;  %5686 = vpow2.f32 %v1927_v44  ;;  %v4860_v44 = vld [vmem:[%s6411_s29 + $0x68] sm:$0xff] }
 0x577   : > { %5375 = vmatpush3.msra.mxu1 %v2024_v55  ;;  %v1929_v47 = vmul.f32 1.442695, %v4845_v25  ;;  %v2398_v55 = vmul.f32 1.442695, %v4856_v10  ;;  %v4848_v25 = vld [vmem:[%s6411_s29 + $0x48] sm:$0xff]  ;;  %v4849_v10 = vld [vmem:[%s6411_s29 + $0x50] sm:$0xff] }
 0x578   : > { %v1977_v62 = vpop.permute.xlu0 %1976 }
 0x579   : > { %v2023_v45 = vsel %vm323_vm0, %v1977_v62, %v6430_v31  ;;  %v2400_v62 = vmul.f32 1.442695, %v4857_v32  ;;  %5688 = vpow2.f32 %v1929_v47  ;;  %v4861_v31 = vld [vmem:[%s6411_s29 + $0x70] sm:$0xff] }
 0x57a   : > { %5376 = vmatprep.subr.mxu1 %v2023_v45  ;;  %5690 = vpow2.f32 %v2398_v55 }
 0x57b   : > { %5377 = vmatpush3.msra.mxu1 %v2023_v45  ;;  %5692 = vpow2.f32 %v1931_v11  ;;  %v2402_v45 = vmul.f32 1.442695, %v4858_v48 }
 0x57c   : > { %5694 = vpow2.f32 %v2400_v62 }
 0x57d   : > { %5696 = vpow2.f32 %v2402_v45  ;;  %v4850_v45 = vld [vmem:[%s6411_s29 + $0x58] sm:$0xff] }
 0x583   : > { %v5687_v37 = vpop.eup %5686 }
 0x584   : > { %v1939_v48 = vmul.f32 %v5687_v37, %v4848_v25 }
 0x586   : > { %v5689_v27 = vpop.eup %5688 }
 0x587   : > { %v5691_v39 = vpop.eup %5690  ;;  %v1940_v62 = vmul.f32 %v5689_v27, %v4849_v10 }
 0x588   : > { %v5693_v11 = vpop.eup %5692  ;;  %v2410_v61 = vmul.f32 %v5691_v39, %v4860_v44 }
 0x589   : > { %v5695_v32 = vpop.eup %5694  ;;  %v1941_v25 = vmul.f32 %v5693_v11, %v4850_v45 }
 0x594   : > { %v2721_v46 = vpop.permute.xlu0 %2720 }
 0x595   : > { %v2753_v37 = vsel %vm323_vm0, %v6848_v7, %v2721_v46 }
 0x597   : > { %v3192_v57 = vpop.permute.xlu1 %3191 }
 0x598   : > { %v2733_v14 = vpop.permute.xlu0 %2732  ;;  %v3224_v7 = vsel %vm323_vm0, %v6852_v1, %v3192_v57 }
 0x599   : > { %v2757_v27 = vsel %vm757_vm2, %v2753_v37, %v2733_v14  ;;  %v8399_v14 = vld [vmem:[#allocation22_spill] sm:$0xff] }
 0x59b   : > { %v3204_v43 = vpop.permute.xlu1 %3203 }
 0x59c   : > { %v1975_v33 = vpop.permute.xlu0 %1974 }
 0x59d   : > { %v2022_v47 = vsel %vm323_vm0, %v1975_v33, %v6435_v6  ;;  %v5697_v33 = vpop.eup %5696 }
 0x59e   : > { %5378 = vmatprep.subr.mxu1 %v2022_v47  ;;  %v2412_v39 = vmul.f32 %v5697_v33, %v4862_v49 }
 0x59f   : > { %5379 = vmatpush3.msra.mxu1 %v2022_v47  ;;  %v2446_v55 = vpop.permute.xlu1 %2445  ;;  %v2411_v47 = vmul.f32 %v5695_v32, %v4861_v31  ;;  %v3228_v31 = vsel %vm757_vm2, %v3224_v7, %v3204_v43 }
 0x5a0   : > { %v2719_v41 = vpop.permute.xlu0 %2718  ;;  %5381 = vmatmul.mubr.f32.vlgmr.msra.gmra.mxu1 %v1939_v48  ;;  %v2493_v53 = vsel %vm323_vm0, %v2446_v55, %v6435_v6 }
 0x5a1   : > { %5383 = vmatprep.mubr.f32.mxu1 %v1940_v62  ;;  %5430 = vmatprep.subr.mxu0 %v2493_v53  ;;  %v2752_v1 = vsel %vm323_vm0, %v6844_v9, %v2719_v41 }
 0x5a2   : > { %5431 = vmatpush3.msra.mxu0 %v2493_v53 }
 0x5a3   : > { %v2745_v10 = vpop.permute.xlu1 %2744  ;;  %5433 = vmatmul.mubr.f32.vlgmr.msra.gmra.mxu0 %v2410_v61 }
 0x5a4   : > { %v3190_v22 = vpop.permute.xlu0 %3189  ;;  %v2761_v48 = vsel %vm762_vm1, %v2757_v27, %v2745_v10  ;;  %5384 = vmatmul.mubr.f32.gmra.mxu1 %v1941_v25  ;;  %5435 = vmatprep.mubr.f32.mxu0 %v2411_v47 }
 0x5a5   : > { %v2765_v55 = vmul.f32 %v6688_v5, %v2761_v48  ;;  %5446 = vmatprep.mubr.msk.f32.mxu1 %vm323_vm0, %v6591_v50  ;;  %v3223_v33 = vsel %vm323_vm0, %v6846_v0, %v3190_v22 }
 0x5a7   : > { %v3216_v53 = vpop.permute.xlu1 %3215  ;;  %5436 = vmatmul.mubr.f32.gmra.mxu0 %v2412_v39  ;;  %5438 = vmatprep.subr.mxu1 %v2765_v55 }
 0x5a8   : > { %v2731_v61 = vpop.permute.xlu0 %2730  ;;  %v3232_v46 = vsel %vm762_vm1, %v3228_v31, %v3216_v53  ;;  %5439 = vmatpush3.msra.mxu1 %v2765_v55  ;;  %5498 = vmatprep.mubr.msk.f32.mxu0 %vm323_vm0, %v8399_v14 }
 0x5a9   : > { %v3236_v11 = vmul.f32 %v6688_v5, %v3232_v46  ;;  %v2756_v57 = vsel %vm757_vm2, %v2752_v1, %v2731_v61 }
 0x5ab   : > { %v3202_v44 = vpop.permute.xlu1 %3201  ;;  %5490 = vmatprep.subr.mxu0 %v3236_v11 }
 0x5ac   : > { %v2717_v49 = vpop.permute.xlu0 %2716  ;;  %5491 = vmatpush3.msra.mxu0 %v3236_v11  ;;  %v3227_v5 = vsel %vm757_vm2, %v3223_v33, %v3202_v44  ;;  %v8401_v33 = vld [vmem:[#allocation25_spill] sm:$0xff] }
 0x5ad   : > { %v2751_v10 = vsel %vm323_vm0, %v6840_v29, %v2717_v49 }
 0x5af   : > { %v2743_v43 = vpop.permute.xlu1 %2742 }
 0x5b0   : > { %v3188_v32 = vpop.permute.xlu0 %3187  ;;  %v2760_v62 = vsel %vm762_vm1, %v2756_v57, %v2743_v43 }
 0x5b1   : > { %v2764_v45 = vmul.f32 %v6695_v60, %v2760_v62  ;;  %v3222_v7 = vsel %vm323_vm0, %v6842_v17, %v3188_v32 }
 0x5b3   : > { %v3214_v37 = vpop.permute.xlu1 %3213  ;;  %5440 = vmatprep.subr.mxu1 %v2764_v45 }
 0x5b4   : > { %v2729_v25 = vpop.permute.xlu0 %2728  ;;  %v3231_v47 = vsel %vm762_vm1, %v3227_v5, %v3214_v37  ;;  %5441 = vmatpush3.msra.mxu1 %v2764_v45  ;;  %v8400_v45 = vld [vmem:[#allocation23_spill] sm:$0xff]  ;;  %v8402_v37 = vld [vmem:[#allocation24_spill] sm:$0xff] }
 0x5b5   : > { %v3235_v41 = vmul.f32 %v6695_v60, %v3231_v47  ;;  %v2755_v48 = vsel %vm757_vm2, %v2751_v10, %v2729_v25  ;;  %v8403_v25 = vld [vmem:[#allocation28_spill] sm:$0xff] }
 0x5b7   : > { %v3200_v9 = vpop.permute.xlu1 %3199  ;;  %5492 = vmatprep.subr.mxu0 %v3235_v41 }
 0x5b8   : > { %v2715_v27 = vpop.permute.xlu0 %2714  ;;  %5493 = vmatpush3.msra.mxu0 %v3235_v41  ;;  %v3226_v60 = vsel %vm757_vm2, %v3222_v7, %v3200_v9  ;;  %v8405_v9 = vld [vmem:[#allocation30_spill] sm:$0xff]  ;;  %v2898_v7 = vmul.f32 %v6175_v63, %v8401_v33 }
 0x5b9   : > { %v2750_v46 = vsel %vm323_vm0, %v6836_v19, %v2715_v27 }
 0x5bb   : > { %v2741_v0 = vpop.permute.xlu1 %2740 }
 0x5bc   : > { %v3186_v22 = vpop.permute.xlu0 %3185  ;;  %v2759_v55 = vsel %vm762_vm1, %v2755_v48, %v2741_v0  ;;  %v3370_v0 = vmul.f32 %v6170_v59, %v8405_v9 }
 0x5bd   : > { %v2763_v39 = vmul.f32 %v6701_v56, %v2759_v55  ;;  %v3221_v1 = vsel %vm323_vm0, %v6838_v52, %v3186_v22  ;;  %v2899_v55 = vmul.f32 %v6170_v59, %v8403_v25 }
 0x5bf   : > { %v3212_v31 = vpop.permute.xlu1 %3211  ;;  %5442 = vmatprep.subr.mxu1 %v2763_v39 }
 0x5c0   : > { %v2727_v53 = vpop.permute.xlu0 %2726  ;;  %v3230_v61 = vsel %vm762_vm1, %v3226_v60, %v3212_v31  ;;  %5443 = vmatpush3.msra.mxu1 %v2763_v39  ;;  %v3368_v39 = vmul.f32 %v6179_v13, %v8402_v37  ;;  %v3367_v60 = vmul.f32 %v6184_v15, %v8399_v14  ;;  %v2897_v31 = vmul.f32 %v6179_v13, %v8400_v45 }
 0x5c1   : > { %v3234_v29 = vmul.f32 %v6701_v56, %v3230_v61  ;;  %v2754_v44 = vsel %vm757_vm2, %v2750_v46, %v2727_v53  ;;  %v3366_v53 = vmul.f32 %v6188_v16, %v8405_v9  ;;  %v2896_v61 = vmul.f32 %v6184_v15, %v6591_v50 }
 0x5c2   : > { %v2895_v46 = vmul.f32 %v6188_v16, %v8403_v25 }
 0x5c3   : > { %v3198_v11 = vpop.permute.xlu1 %3197  ;;  %5494 = vmatprep.subr.mxu0 %v3234_v29 }
 0x5c4   : > { %v2739_v49 = vpop.permute.xlu0 %2738  ;;  %5495 = vmatpush3.msra.mxu0 %v3234_v29  ;;  %v3225_v43 = vsel %vm757_vm2, %v3221_v1, %v3198_v11  ;;  %v3364_v11 = vmul.f32 %v6195_v18, %v8402_v37  ;;  %v3362_v1 = vmul.f32 %v6204_v3, %v8405_v9 }
 0x5c5   : > { %v2758_v17 = vsel %vm762_vm1, %v2754_v44, %v2739_v49  ;;  %v2894_v44 = vmul.f32 %v6193_v2, %v8401_v33  ;;  %v3363_v49 = vmul.f32 %v6199_v20, %v8399_v14 }
 0x5c6   : > { %v2762_v57 = vmul.f32 %v6728_v28, %v2758_v17  ;;  %v2893_v17 = vmul.f32 %v6195_v18, %v8400_v45 }
 0x5c7   : > { %v3210_v32 = vpop.permute.xlu1 %3209 }
 0x5c8   : > { %v3609_v56 = vpop.permute.xlu0 %3608  ;;  %v3229_v62 = vsel %vm762_vm1, %v3225_v43, %v3210_v32  ;;  %5444 = vmatprep.subr.mxu1 %v2762_v57  ;;  %v2891_v32 = vmul.f32 %v6204_v3, %v8403_v25 }
 0x5c9   : > { %v3233_v19 = vmul.f32 %v6728_v28, %v3229_v62  ;;  %3620 = vxpose.xlu0.b32.start [1/4] (short) (narrow) %v3609_v56, 32  ;;  %5445 = vmatpush3.msra.mxu1 %v2762_v57  ;;  %v8404_v28 = vld [vmem:[#allocation27_spill] sm:$0xff]  ;;  %v2892_v57 = vmul.f32 %v6199_v20, %v6591_v50  ;;  %v3360_v56 = vmul.f32 %v6212_v26, %v8402_v37 }
 0x5ca   : > { %5447 = vmatmul.mubr.msk.f32.vlgmr.msra.gmra.mxu1 %vm323_vm0, %v8400_v45  ;;  %v3369_v22 = vmul.f32 %v6175_v63, %v8404_v28  ;;  %v3365_v29 = vmul.f32 %v6193_v2, %v8404_v28  ;;  %v3361_v43 = vmul.f32 %v6206_v23, %v8404_v28  ;;  %v2890_v62 = vmul.f32 %v6206_v23, %v8401_v33 }
 0x5cb   : > { %5449 = vmatprep.mubr.msk.f32.mxu1 %vm323_vm0, %v8401_v33  ;;  %v4080_v52 = vpop.permute.xlu1 %4079  ;;  %5496 = vmatprep.subr.mxu0 %v3233_v19 }
 0x5cc   : > { %v3611_v5 = vpop.permute.xlu0 %3610  ;;  %4091 = vxpose.xlu1.b32.start [1/4] (short) (narrow) %v4080_v52, 32  ;;  %5497 = vmatpush3.msra.mxu0 %v3233_v19  ;;  %v3359_v19 = vmul.f32 %v6215_v4, %v8399_v14  ;;  %v2889_v52 = vmul.f32 %v6212_v26, %v8400_v45 }
 0x5cd   : > { %3621 = vxpose.xlu0.b32.cont [2/4] (short) (narrow) %v3611_v5, 32  ;;  %5499 = vmatmul.mubr.msk.f32.vlgmr.msra.gmra.mxu0 %vm323_vm0, %v8402_v37  ;;  %v3358_v5 = vmul.f32 %v6223_v30, %v8405_v9 }
 0x5ce   : > { %5450 = vmatmul.mubr.msk.f32.gmra.mxu1 %vm323_vm0, %v8403_v25  ;;  %5501 = vmatprep.mubr.msk.f32.mxu0 %vm323_vm0, %v8404_v28 }
 0x5cf   : > { %v4082_v47 = vpop.permute.xlu1 %4081 }
 0x5d0   : > { %v3613_v41 = vpop.permute.xlu0 %3612  ;;  %4092 = vxpose.xlu1.b32.cont [2/4] (short) (narrow) %v4082_v47, 32  ;;  %v2888_v47 = vmul.f32 %v6215_v4, %v6591_v50 }
 0x5d1   : > { %3622 = vxpose.xlu0.b32.cont [3/4] (short) (narrow) %v3613_v41, 32  ;;  %5502 = vmatmul.mubr.msk.f32.gmra.mxu0 %vm323_vm0, %v8405_v9  ;;  %v3357_v41 = vmul.f32 %v6231_v34, %v8404_v28  ;;  %v3356_v9 = vmul.f32 %v6239_v35, %v8402_v37  ;;  %v2885_v28 = vmul.f32 %v6239_v35, %v8400_v45 }
 0x5d3   : > { %v4084_v27 = vpop.permute.xlu1 %4083 }
 0x5d4   : > { %v3615_v10 = vpop.permute.xlu0 %3614  ;;  %4093 = vxpose.xlu1.b32.cont [3/4] (short) (narrow) %v4084_v27, 32  ;;  %v2887_v27 = vmul.f32 %v6223_v30, %v8403_v25 }
 0x5d5   : > { %3623 = vxpose.xlu0.b32.end [4/4] (short) (narrow) %v3615_v10, 32  ;;  %v2886_v10 = vmul.f32 %v6231_v34, %v8401_v33 }
 0x5d7   : > { %v4086_v48 = vpop.permute.xlu1 %4085 }
 0x5d8   : > { %4094 = vxpose.xlu1.b32.end [4/4] (short) (narrow) %v4086_v48, 32 }
 0x5f6   : > { %3417 = vrot.lane.b32.xlu1 %v3370_v0, %s5813_s18 }
 0x5fa   : > { %3415 = vrot.lane.b32.xlu1 %v3369_v22, %s5813_s18 }
 0x5fe   : > { %2946 = vrot.lane.b32.xlu0 %v2899_v55, %s5813_s18  ;;  %3413 = vrot.lane.b32.xlu1 %v3368_v39, %s5813_s18  ;;  %v2884_v39 = vmul.f32 %v6246_v38, %v6591_v50 }
 0x602   : > { %2944 = vrot.lane.b32.xlu0 %v2898_v7, %s5813_s18  ;;  %3411 = vrot.lane.b32.xlu1 %v3367_v60, %s5813_s18  ;;  %v3355_v7 = vmul.f32 %v6246_v38, %v8399_v14 }
 0x606   : > { %2942 = vrot.lane.b32.xlu0 %v2897_v31, %s5813_s18  ;;  %3409 = vrot.lane.b32.xlu1 %v3366_v53, %s5813_s18 }
 0x60a   : > { %2940 = vrot.lane.b32.xlu0 %v2896_v61, %s5813_s18  ;;  %3407 = vrot.lane.b32.xlu1 %v3365_v29, %s5813_s18 }
 0x60e   : > { %2938 = vrot.lane.b32.xlu0 %v2895_v46, %s5813_s18  ;;  %3405 = vrot.lane.b32.xlu1 %v3364_v11, %s5813_s18 }
 0x612   : > { %2936 = vrot.lane.b32.xlu0 %v2894_v44, %s5813_s18  ;;  %3403 = vrot.lane.b32.xlu1 %v3363_v49, %s5813_s18 }
 0x616   : > { %2934 = vrot.lane.b32.xlu0 %v2893_v17, %s5813_s18  ;;  %3401 = vrot.lane.b32.xlu1 %v3362_v1, %s5813_s18 }
 0x61a   : > { %2932 = vrot.lane.b32.xlu0 %v2892_v57, %s5813_s18  ;;  %3399 = vrot.lane.b32.xlu1 %v3361_v43, %s5813_s18 }
 0x61e   : > { %2930 = vrot.lane.b32.xlu0 %v2891_v32, %s5813_s18  ;;  %3397 = vrot.lane.b32.xlu1 %v3360_v56, %s5813_s18 }
 0x622   : > { %2928 = vrot.lane.b32.xlu0 %v2890_v62, %s5813_s18  ;;  %3395 = vrot.lane.b32.xlu1 %v3359_v19, %s5813_s18 }
 0x626   : > { %2926 = vrot.lane.b32.xlu0 %v2889_v52, %s5813_s18  ;;  %3393 = vrot.lane.b32.xlu1 %v3358_v5, %s5813_s18 }
 0x62a   : > { %2924 = vrot.lane.b32.xlu0 %v2888_v47, %s5813_s18  ;;  %3391 = vrot.lane.b32.xlu1 %v3357_v41, %s5813_s18 }
 0x62e   : > { %2922 = vrot.lane.b32.xlu0 %v2887_v27, %s5813_s18  ;;  %3389 = vrot.lane.b32.xlu1 %v3356_v9, %s5813_s18 }
 0x632   : > { %2920 = vrot.lane.b32.xlu0 %v2886_v10, %s5813_s18 }
 0x636   : > { %2918 = vrot.lane.b32.xlu0 %v2885_v28, %s5813_s18 }
 0x645   : > { %v7184_v48 = vpop.trf.xlu0 }
 0x648   : > { %v7186_v25 = vpop.trf.xlu1 }
 0x649   : > { %v7188_v0 = vpop.trf.xlu0 }
 0x64c   : > { %v7190_v37 = vpop.trf.xlu1 }
 0x64d   : > { %v7192_v22 = vpop.trf.xlu0 }
 0x650   : > { %v7194_v55 = vpop.trf.xlu1 }
 0x651   : > { %v7196_v33 = vpop.trf.xlu0 }
 0x652   : > { %3662 = vrot.lane.b32.xlu0 %v7196_v33, %s5812_s15 }
 0x654   : > { %v7200_v45 = vpop.trf.xlu1 }
 0x655   : > { %4133 = vrot.lane.b32.xlu1 %v7200_v45, %s5812_s15 }
 0x656   : > { %3674 = vrot.lane.b32.xlu0 %v7196_v33, %s5813_s18 }
 0x659   : > { %4145 = vrot.lane.b32.xlu1 %v7200_v45, %s5813_s18 }
 0x65a   : > { %2916 = vrot.lane.b32.xlu0 %v2884_v39, %s5813_s18 }
 0x65d   : > { %3387 = vrot.lane.b32.xlu1 %v3355_v7, %s5813_s18 }
 0x65e   : > { %3660 = vrot.lane.b32.xlu0 %v7192_v22, %s5812_s15 }
 0x660   : > { %v7260_v56 = vpop.f32.mrf.mxu1 }
 0x661   : > { %3686 = vrot.lane.b32.xlu1 %v7196_v33, %s5811_s14  ;;  %vm2124_vm12 = vcmp.gt.f32.partialorder %v7260_v56, 0.0 }
 0x662   : > { %4131 = vrot.lane.b32.xlu0 %v7194_v55, %s5812_s15  ;;  %v7270_v47 = vpop.f32.mrf.mxu1 }
 0x663   : > { %v7272_v41 = vpop.f32.mrf.mxu0  ;;  %vm2123_vm11 = vcmp.gt.f32.partialorder %v7270_v47, 0.0 }
 0x664   : > { %8406 = vst [vmem:[#allocation14_spill] sm:$0xff] %v7272_v41  ;;  %v7282_v39 = vpop.f32.mrf.mxu1 }
 0x665   : > { %4157 = vrot.lane.b32.xlu1 %v7200_v45, %s5811_s14  ;;  %v7284_v7 = vpop.f32.mrf.mxu0  ;;  %vm8330_vm14 = vcmp.gt.f32.partialorder %v7282_v39, 0.0 }
 0x666   : > { %3672 = vrot.lane.b32.xlu0 %v7192_v22, %s5813_s18  ;;  %vm8318_vm15 = vcmp.gt.f32.partialorder %v7284_v7, 0.0 }
 0x668   : > { %v3418_v50 = vpop.permute.xlu1 %3417 }
 0x669   : > { %4143 = vrot.lane.b32.xlu1 %v7194_v55, %s5813_s18  ;;  %v3450_v14 = vsel %vm323_vm0, %v3418_v50, %v6296_v8 }
 0x66a   : > { %3658 = vrot.lane.b32.xlu0 %v7188_v0, %s5812_s15  ;;  %5504 = vmatprep.subr.mxu0 %v3450_v14 }
 0x66b   : > { %5505 = vmatpush3.msra.mxu0 %v3450_v14 }
 0x66c   : > { %v3416_v60 = vpop.permute.xlu1 %3415 }
 0x66d   : > { %3684 = vrot.lane.b32.xlu1 %v7192_v22, %s5811_s14  ;;  %v3449_v31 = vsel %vm323_vm0, %v3416_v60, %v6308_v42  ;;  %v3841_v60 = vmul.f32 %v6170_v59, %v6988_v21 }
 0x66e   : > { %4129 = vrot.lane.b32.xlu0 %v7190_v37, %s5812_s15  ;;  %5506 = vmatprep.subr.mxu0 %v3449_v31 }
 0x66f   : > { %5507 = vmatpush3.msra.mxu0 %v3449_v31 }
 0x670   : > { %v2947_v53 = vpop.permute.xlu0 %2946  ;;  %v3414_v61 = vpop.permute.xlu1 %3413 }
 0x671   : > { %4155 = vrot.lane.b32.xlu1 %v7194_v55, %s5811_s14  ;;  %v2979_v29 = vsel %vm323_vm0, %v2947_v53, %v6296_v8  ;;  %v3448_v46 = vsel %vm323_vm0, %v3414_v61, %v6323_v51  ;;  %v7295_v61 = vpop.f32.mrf.mxu1 }
 0x672   : > { %3670 = vrot.lane.b32.xlu0 %v7188_v0, %s5813_s18  ;;  %5452 = vmatprep.subr.mxu1 %v2979_v29  ;;  %vm2125_vm13 = vcmp.gt.f32.partialorder %v7295_v61, 0.0 }
 0x673   : > { %5453 = vmatpush3.msra.mxu1 %v2979_v29  ;;  %5508 = vmatprep.subr.mxu0 %v3448_v46  ;;  %v7297_v29 = vpop.f32.mrf.mxu0 }
 0x674   : > { %v2945_v11 = vpop.permute.xlu0 %2944  ;;  %5509 = vmatpush3.msra.mxu0 %v3448_v46  ;;  %v3412_v44 = vpop.permute.xlu1 %3411  ;;  %8407 = vst [vmem:[#allocation9_spill] sm:$0xff] %v7297_v29  ;;  %v4312_v46 = vmul.f32 %v6170_v59, %v7000_v58  ;;  %v4886_v29 = vld [vmem:[%s6411_s29 + $0xb8] sm:$0xff] }
 0x675   : > { %4141 = vrot.lane.b32.xlu1 %v7190_v37, %s5813_s18  ;;  %v2978_v49 = vsel %vm323_vm0, %v2945_v11, %v6308_v42  ;;  %v3447_v17 = vsel %vm323_vm0, %v3412_v44, %v6347_v24  ;;  %v7311_v59 = vpop.f32.mrf.mxu0 }
 0x676   : > { %3656 = vrot.lane.b32.xlu0 %v7184_v48, %s5812_s15  ;;  %5454 = vmatprep.subr.mxu1 %v2978_v49  ;;  %8410 = vst [vmem:[#allocation13_spill] sm:$0xff] %v7311_v59 }
 0x677   : > { %5455 = vmatpush3.msra.mxu1 %v2978_v49  ;;  %5510 = vmatprep.subr.mxu0 %v3447_v17  ;;  %v8408_v49 = vld [vmem:[#allocation11_spill] sm:$0xff] }
 0x678   : > { %v2943_v1 = vpop.permute.xlu0 %2942  ;;  %5511 = vmatpush3.msra.mxu0 %v3447_v17  ;;  %v3410_v57 = vpop.permute.xlu1 %3409  ;;  %v3840_v17 = vmul.f32 %v6175_v63, %v8408_v49 }
 0x679   : > { %3682 = vrot.lane.b32.xlu1 %v7188_v0, %s5811_s14  ;;  %v2977_v43 = vsel %vm323_vm0, %v2943_v1, %v6323_v51  ;;  %v3446_v32 = vsel %vm323_vm0, %v3410_v57, %v6368_v36  ;;  %v8409_v57 = vld [vmem:[#allocation15_spill] sm:$0xff] }
 0x67a   : > { %4127 = vrot.lane.b32.xlu0 %v7186_v25, %s5812_s15  ;;  %5456 = vmatprep.subr.mxu1 %v2977_v43 }
 0x67b   : > { %5457 = vmatpush3.msra.mxu1 %v2977_v43  ;;  %5512 = vmatprep.subr.mxu0 %v3446_v32 }
 0x67c   : > { %v2941_v62 = vpop.permute.xlu0 %2940  ;;  %5513 = vmatpush3.msra.mxu0 %v3446_v32  ;;  %v3408_v19 = vpop.permute.xlu1 %3407 }
 0x67d   : > { %4153 = vrot.lane.b32.xlu1 %v7190_v37, %s5811_s14  ;;  %v2976_v52 = vsel %vm323_vm0, %v2941_v62, %v6347_v24  ;;  %v3445_v5 = vsel %vm323_vm0, %v3408_v19, %v6374_v40  ;;  %v8411_v62 = vld [vmem:[#allocation10_spill] sm:$0xff] }
 0x67e   : > { %3668 = vrot.lane.b32.xlu0 %v7184_v48, %s5813_s18  ;;  %5458 = vmatprep.subr.mxu1 %v2976_v52  ;;  %v4311_v19 = vmul.f32 %v6175_v63, %v8411_v62 }
 0x67f   : > { %5459 = vmatpush3.msra.mxu1 %v2976_v52  ;;  %5514 = vmatprep.subr.mxu0 %v3445_v5 }
 0x680   : > { %v2939_v27 = vpop.permute.xlu0 %2938  ;;  %5515 = vmatpush3.msra.mxu0 %v3445_v5  ;;  %v3406_v9 = vpop.permute.xlu1 %3405 }
 0x681   : > { %4139 = vrot.lane.b32.xlu1 %v7186_v25, %s5813_s18  ;;  %v2975_v10 = vsel %vm323_vm0, %v2939_v27, %v6368_v36  ;;  %v3444_v28 = vsel %vm323_vm0, %v3406_v9, %v6382_v54  ;;  %v8412_v27 = vld [vmem:[#allocation5_spill] sm:$0xff] }
 0x682   : > { %3680 = vrot.lane.b32.xlu0 %v7184_v48, %s5811_s14  ;;  %5460 = vmatprep.subr.mxu1 %v2975_v10  ;;  %v3839_v9 = vmul.f32 %v6179_v13, %v8412_v27 }
 0x683   : > { %5461 = vmatpush3.msra.mxu1 %v2975_v10  ;;  %5516 = vmatprep.subr.mxu0 %v3444_v28 }
 0x684   : > { %v2937_v50 = vpop.permute.xlu0 %2936  ;;  %5517 = vmatpush3.msra.mxu0 %v3444_v28  ;;  %v3404_v14 = vpop.permute.xlu1 %3403 }
 0x685   : > { %4151 = vrot.lane.b32.xlu1 %v7186_v25, %s5811_s14  ;;  %v2974_v31 = vsel %vm323_vm0, %v2937_v50, %v6374_v40  ;;  %v3443_v53 = vsel %vm323_vm0, %v3404_v14, %v6390_v12 }
 0x686   : > { %3888 = vrot.lane.b32.xlu0 %v3841_v60, %s5813_s18  ;;  %5462 = vmatprep.subr.mxu1 %v2974_v31  ;;  %v8413_v60 = vld [vmem:[#allocation16_spill] sm:$0xff] }
 0x687   : > { %5463 = vmatpush3.msra.mxu1 %v2974_v31  ;;  %5518 = vmatprep.subr.mxu0 %v3443_v53 }
 0x688   : > { %v2935_v11 = vpop.permute.xlu0 %2934  ;;  %5519 = vmatpush3.msra.mxu0 %v3443_v53  ;;  %v3402_v44 = vpop.permute.xlu1 %3401 }
 0x689   : > { %4359 = vrot.lane.b32.xlu1 %v4312_v46, %s5813_s18  ;;  %v2973_v1 = vsel %vm323_vm0, %v2935_v11, %v6382_v54  ;;  %v3442_v43 = vsel %vm323_vm0, %v3402_v44, %v8409_v57  ;;  %v8414_v46 = vld [vmem:[#allocation7_spill] sm:$0xff] }
 0x68a   : > { %3886 = vrot.lane.b32.xlu0 %v3840_v17, %s5813_s18  ;;  %v7309_v32 = vpop.f32.mrf.mxu1  ;;  %5464 = vmatprep.subr.mxu1 %v2973_v1  ;;  %v4310_v11 = vmul.f32 %v6179_v13, %v8414_v46 }
 0x68b   : > { %5465 = vmatpush3.msra.mxu1 %v2973_v1  ;;  %5520 = vmatprep.subr.mxu0 %v3442_v43  ;;  %v8415_v1 = vld [vmem:[#allocation6_spill] sm:$0xff] }
 0x68c   : > { %v2933_v52 = vpop.permute.xlu0 %2932  ;;  %v2840_v5 = vpop.f32.mrf.mxu1  ;;  %5521 = vmatpush3.msra.mxu0 %v3442_v43  ;;  %v3838_v43 = vmul.f32 %v6184_v15, %v8415_v1 }
 0x68d   : > { %v4867_v10 = vclamps-f32 %v2840_v5, 5.0  ;;  %v3400_v28 = vpop.permute.xlu1 %3399  ;;  %4357 = vrot.lane.b32.xlu1 %v4311_v19, %s5813_s18  ;;  %v2972_v50 = vsel %vm323_vm0, %v2933_v52, %v6390_v12  ;;  %v7320_v14 = vpop.f32.mrf.mxu0 }
 0x68e   : > { %3884 = vrot.lane.b32.xlu0 %v3839_v9, %s5813_s18  ;;  %5466 = vmatprep.subr.mxu1 %v2972_v50  ;;  %v3441_v63 = vsel %vm323_vm0, %v3400_v28, %v8413_v60  ;;  %v8416_v9 = vld [vmem:[#allocation17_spill] sm:$0xff] }
 0x68f   : > { %v2867_v31 = vmul.f32 1.442695, %v4867_v10  ;;  %5467 = vmatpush3.msra.mxu1 %v2972_v50  ;;  %5522 = vmatprep.subr.mxu0 %v3441_v63  ;;  %v3311_v53 = vpop.f32.mrf.mxu0  ;;  %v8417_v10 = vld [vmem:[#allocation3_spill] sm:$0xff] }
 0x690   : > { %v2931_v44 = vpop.permute.xlu0 %2930  ;;  %v4879_v17 = vclamps-f32 %v3311_v53, 5.0  ;;  %5523 = vmatpush3.msra.mxu0 %v3441_v63  ;;  %v4309_v28 = vmul.f32 %v6184_v15, %v8417_v10  ;;  %v3837_v63 = vmul.f32 %v6188_v16, %v6988_v21  ;;  %v4308_v15 = vmul.f32 %v6188_v16, %v7000_v58 }
 0x691   : > { %5698 = vpow2.f32 %v2867_v31  ;;  %v3398_v19 = vpop.permute.xlu1 %3397  ;;  %4355 = vrot.lane.b32.xlu1 %v4310_v11, %s5813_s18  ;;  %v2971_v52 = vsel %vm323_vm0, %v2931_v44, %v8409_v57  ;;  %v8418_v11 = vld [vmem:[#allocation18_spill] sm:$0xff]  ;;  %v4307_v16 = vmul.f32 %v6193_v2, %v8411_v62 }
 0x692   : > { %v3338_v5 = vmul.f32 1.442695, %v4879_v17  ;;  %3882 = vrot.lane.b32.xlu0 %v3838_v43, %s5813_s18  ;;  %5468 = vmatprep.subr.mxu1 %v2971_v52  ;;  %v3440_v13 = vsel %vm323_vm0, %v3398_v19, %v8416_v9  ;;  %v3836_v43 = vmul.f32 %v6193_v2, %v8408_v49 }
 0x693   : > { %5469 = vmatpush3.msra.mxu1 %v2971_v52  ;;  %5524 = vmatprep.subr.mxu0 %v3440_v13 }
 0x694   : > { %5700 = vpow2.f32 %v3338_v5  ;;  %v2929_v50 = vpop.permute.xlu0 %2928  ;;  %5525 = vmatpush3.msra.mxu0 %v3440_v13  ;;  %v8419_v5 = vld [vmem:[#allocation19_spill] sm:$0xff] }
 0x695   : > { %v3396_v31 = vpop.permute.xlu1 %3395  ;;  %4353 = vrot.lane.b32.xlu1 %v4309_v28, %s5813_s18  ;;  %v2970_v53 = vsel %vm323_vm0, %v2929_v50, %v8413_v60  ;;  %v3835_v50 = vmul.f32 %v6195_v18, %v8412_v27 }
 0x696   : > { %3880 = vrot.lane.b32.xlu0 %v3837_v63, %s5813_s18  ;;  %5470 = vmatprep.subr.mxu1 %v2970_v53  ;;  %v3439_v44 = vsel %vm323_vm0, %v3396_v31, %v8418_v11  ;;  %v4871_v63 = vld [vmem:[%s6411_s29 + $0x80] sm:$0xff] }
 0x697   : > { %5471 = vmatpush3.msra.mxu1 %v2970_v53  ;;  %5526 = vmatprep.subr.mxu0 %v3439_v44 }
 0x698   : > { %v2927_v17 = vpop.permute.xlu0 %2926  ;;  %5527 = vmatpush3.msra.mxu0 %v3439_v44 }
 0x699   : > { %v3394_v19 = vpop.permute.xlu1 %3393  ;;  %4351 = vrot.lane.b32.xlu1 %v4308_v15, %s5813_s18  ;;  %v2969_v52 = vsel %vm323_vm0, %v2927_v17, %v8416_v9  ;;  %v8420_v15 = vld [vmem:[#allocation20_spill] sm:$0xff] }
 0x69a   : > { %3878 = vrot.lane.b32.xlu0 %v3836_v43, %s5813_s18  ;;  %5472 = vmatprep.subr.mxu1 %v2969_v52  ;;  %v3438_v13 = vsel %vm323_vm0, %v3394_v19, %v8419_v5  ;;  %v4306_v43 = vmul.f32 %v6195_v18, %v8414_v46  ;;  %v4883_v19 = vld [vmem:[%s6411_s29 + $0xa0] sm:$0xff] }
 0x69b   : > { %5473 = vmatpush3.msra.mxu1 %v2969_v52  ;;  %5528 = vmatprep.subr.mxu0 %v3438_v13 }
 0x69c   : > { %v2925_v28 = vpop.permute.xlu0 %2924  ;;  %5529 = vmatpush3.msra.mxu0 %v3438_v13  ;;  %v3834_v13 = vmul.f32 %v6199_v20, %v8415_v1 }
 0x69d   : > { %v3392_v31 = vpop.permute.xlu1 %3391  ;;  %4349 = vrot.lane.b32.xlu1 %v4307_v16, %s5813_s18  ;;  %v2968_v53 = vsel %vm323_vm0, %v2925_v28, %v8418_v11 }
 0x69e   : > { %v5699_v44 = vpop.eup %5698  ;;  %3876 = vrot.lane.b32.xlu0 %v3835_v50, %s5813_s18  ;;  %5474 = vmatprep.subr.mxu1 %v2968_v53  ;;  %v3437_v2 = vsel %vm323_vm0, %v3392_v31, %v8420_v15 }
 0x69f   : > { %5475 = vmatpush3.msra.mxu1 %v2968_v53  ;;  %5530 = vmatprep.subr.mxu0 %v3437_v2  ;;  %v2880_v17 = vmul.f32 %v5699_v44, %v4871_v63  ;;  %v8421_v63 = vld [vmem:[#allocation21_spill] sm:$0xff]  ;;  %v4305_v53 = vmul.f32 %v6199_v20, %v8417_v10  ;;  %v3832_v20 = vmul.f32 %v6206_v23, %v8408_v49 }
 0x6a0   : > { %v2923_v52 = vpop.permute.xlu0 %2922  ;;  %5531 = vmatpush3.msra.mxu0 %v3437_v2  ;;  %v3833_v2 = vmul.f32 %v6204_v3, %v6988_v21 }
 0x6a1   : > { %v5701_v16 = vpop.eup %5700  ;;  %v3390_v28 = vpop.permute.xlu1 %3389  ;;  %5484 = vmatprep.mubr.f32.mxu1 %v2880_v17  ;;  %4347 = vrot.lane.b32.xlu1 %v4306_v43, %s5813_s18  ;;  %v2967_v50 = vsel %vm323_vm0, %v2923_v52, %v8419_v5  ;;  %v4304_v43 = vmul.f32 %v6204_v3, %v7000_v58  ;;  %v4302_v3 = vmul.f32 %v6212_v26, %v8414_v46 }
 0x6a2   : > { %3874 = vrot.lane.b32.xlu0 %v3834_v13, %s5813_s18  ;;  %5476 = vmatprep.subr.mxu1 %v2967_v50  ;;  %v3436_v18 = vsel %vm323_vm0, %v3390_v28, %v8421_v63  ;;  %v3351_v31 = vmul.f32 %v5701_v16, %v4883_v19  ;;  %v4303_v13 = vmul.f32 %v6206_v23, %v8411_v62  ;;  %v5451_v28 = vpop.f32.mrf.mxu1 }
 0x6a3   : > { %5477 = vmatpush3.msra.mxu1 %v2967_v50  ;;  %5532 = vmatprep.subr.mxu0 %v3436_v18  ;;  %v3831_v16 = vmul.f32 %v6212_v26, %v8412_v27  ;;  %v3830_v50 = vmul.f32 %v6215_v4, %v8415_v1  ;;  %v4301_v23 = vmul.f32 %v6215_v4, %v8417_v10  ;;  %v4868_v26 = vclamps-f32 %v7309_v32, 5.0 }
 0x6a4   : > { %v2921_v44 = vpop.permute.xlu0 %2920  ;;  %5533 = vmatpush3.msra.mxu0 %v3436_v18  ;;  %5536 = vmatprep.mubr.f32.mxu0 %v3351_v31  ;;  %v2850_v18 = vpop.f32.mrf.mxu1  ;;  %v4880_v4 = vclamps-f32 %v7320_v14, 5.0 }
 0x6a5   : > { %4345 = vrot.lane.b32.xlu1 %v4305_v53, %s5813_s18  ;;  %v2966_v17 = vsel %vm323_vm0, %v2921_v44, %v8420_v15  ;;  %v5503_v31 = vpop.f32.mrf.mxu0  ;;  %v3829_v53 = vmul.f32 %v6223_v30, %v6988_v21  ;;  %v4869_v44 = vclamps-f32 %v2850_v18, 5.0  ;;  %v4297_v18 = vmul.f32 %v6246_v38, %v8417_v10 }
 0x6a6   : > { %3872 = vrot.lane.b32.xlu0 %v3833_v2, %s5813_s18  ;;  %5478 = vmatprep.subr.mxu1 %v2966_v17  ;;  %v4300_v2 = vmul.f32 %v6223_v30, %v7000_v58  ;;  %v3827_v30 = vmul.f32 %v6239_v35, %v8412_v27  ;;  %v4882_v14 = vclamps-f32 %v5503_v31, 5.0 }
 0x6a7   : > { %5479 = vmatpush3.msra.mxu1 %v2966_v17  ;;  %v3321_v17 = vpop.f32.mrf.mxu0 }
 0x6a8   : > { %v2919_v19 = vpop.permute.xlu0 %2918  ;;  %v4881_v32 = vclamps-f32 %v3321_v17, 5.0 }
 0x6a9   : > { %4343 = vrot.lane.b32.xlu1 %v4304_v43, %s5813_s18  ;;  %v2965_v52 = vsel %vm323_vm0, %v2919_v19, %v8421_v63  ;;  %v3828_v43 = vmul.f32 %v6231_v34, %v8408_v49  ;;  %v2869_v19 = vmul.f32 1.442695, %v4868_v26 }
 0x6aa   : > { %3870 = vrot.lane.b32.xlu0 %v3832_v20, %s5813_s18  ;;  %5480 = vmatprep.subr.mxu1 %v2965_v52  ;;  %v4870_v20 = vclamps-f32 %v5451_v28, 5.0  ;;  %v3342_v28 = vmul.f32 1.442695, %v4881_v32 }
 0x6ab   : > { %5481 = vmatpush3.msra.mxu1 %v2965_v52  ;;  %v2871_v52 = vmul.f32 1.442695, %v4869_v44  ;;  %5702 = vpow2.f32 %v2869_v19  ;;  %v8423_v44 = vld [vmem:[#allocation26_spill] sm:$0xff] }
 0x6ac   : > { %vm1182_vm4 = vcmp.gt.f32.partialorder %v8423_v44, 0.0 }
 0x6ad   : > { %4341 = vrot.lane.b32.xlu1 %v4303_v13, %s5813_s18  ;;  %v4299_v13 = vmul.f32 %v6231_v34, %v8411_v62  ;;  %5704 = vpow2.f32 %v2871_v52  ;;  %v3344_v34 = vmul.f32 1.442695, %v4882_v14  ;;  %v4873_v52 = vld [vmem:[%s6411_s29 + $0x90] sm:$0xff] }
 0x6ae   : > { %3868 = vrot.lane.b32.xlu0 %v3831_v16, %s5813_s18  ;;  %v3340_v16 = vmul.f32 1.442695, %v4880_v4 }
 0x6b0   : > { %5706 = vpow2.f32 %v3340_v16 }
 0x6b1   : > { %4339 = vrot.lane.b32.xlu1 %v4302_v3, %s5813_s18  ;;  %v2873_v3 = vmul.f32 1.442695, %v4870_v20  ;;  %v1186_v20 = vsel %vm1182_vm4, %v8423_v44, 1.0 }
 0x6b2   : > { %3866 = vrot.lane.b32.xlu0 %v3830_v50, %s5813_s18  ;;  %v4298_v50 = vmul.f32 %v6239_v35, %v8414_v46  ;;  %v8422_v35 = vld [vmem:[#allocation29_spill] sm:$0xff] }
 0x6b3   : > { %5708 = vpow2.f32 %v2873_v3  ;;  %vm1181_vm3 = vcmp.gt.f32.partialorder %v8422_v35, 0.0 }
 0x6b4   : > { %5710 = vpow2.f32 %v3342_v28 }
 0x6b5   : > { %4337 = vrot.lane.b32.xlu1 %v4301_v23, %s5813_s18  ;;  %v3826_v23 = vmul.f32 %v6246_v38, %v8415_v1  ;;  %5712 = vpow2.f32 %v3344_v34 }
 0x6b6   : > { %3864 = vrot.lane.b32.xlu0 %v3829_v53, %s5813_s18 }
 0x6b8   : > { %v5703_v38 = vpop.eup %5702 }
 0x6b9   : > { %4335 = vrot.lane.b32.xlu1 %v4300_v2, %s5813_s18  ;;  %v1185_v2 = vsel %vm1181_vm3, %v8422_v35, 1.0 }
 0x6ba   : > { %3862 = vrot.lane.b32.xlu0 %v3828_v43, %s5813_s18  ;;  %v4872_v43 = vld [vmem:[%s6411_s29 + $0x88] sm:$0xff]  ;;  %v5705_v4 = vpop.eup %5704 }
 0x6bb   : > { %v2881_v16 = vmul.f32 %v5703_v38, %v4872_v43  ;;  %v2882_v28 = vmul.f32 %v5705_v4, %v4873_v52 }
 0x6bd   : > { %4333 = vrot.lane.b32.xlu1 %v4299_v13, %s5813_s18  ;;  %v5707_v13 = vpop.eup %5706 }
 0x6be   : > { %3860 = vrot.lane.b32.xlu0 %v3827_v30, %s5813_s18  ;;  %v8424_v30 = vld [vmem:[#allocation32_spill] sm:$0xff] }
 0x6bf   : > { %vm1183_vm5 = vcmp.gt.f32.partialorder %v8424_v30, 0.0 }
 0x6c0   : > { %v5709_v3 = vpop.eup %5708  ;;  %v1187_v38 = vsel %vm1183_vm5, %v8424_v30, 1.0 }
 0x6c1   : > { %4331 = vrot.lane.b32.xlu1 %v4298_v50, %s5813_s18  ;;  %v4874_v50 = vld [vmem:[%s6411_s29 + $0x98] sm:$0xff]  ;;  %v5711_v34 = vpop.eup %5710 }
 0x6c2   : > { %3858 = vrot.lane.b32.xlu0 %v3826_v23, %s5813_s18  ;;  %v4884_v23 = vld [vmem:[%s6411_s29 + $0xa8] sm:$0xff]  ;;  %v2883_v4 = vmul.f32 %v5709_v3, %v4874_v50 }
 0x6c3   : > { %v3352_v52 = vmul.f32 %v5707_v13, %v4884_v23 }
 0x6c4   : > { %v3663_v31 = vpop.permute.xlu0 %3662 }
 0x6c5   : > { %4329 = vrot.lane.b32.xlu1 %v4297_v18, %s5813_s18  ;;  %v3695_v43 = vsel %vm323_vm0, %v7196_v33, %v3663_v31  ;;  %v5799_v33 = vld [vmem:[%s8250_s4 + $0x18] sm:$0xff] }
 0x6c6   : > { %1233 = vrot.lane.b32.xlu0 %v8422_v35, %s5812_s15 }
 0x6c7   : > { %v4134_v53 = vpop.permute.xlu1 %4133 }
 0x6c8   : > { %v3675_v26 = vpop.permute.xlu0 %3674  ;;  %v4166_v13 = vsel %vm323_vm0, %v7200_v45, %v4134_v53 }
 0x6c9   : > { %1235 = vrot.lane.b32.xlu1 %v8423_v44, %s5812_s15 }
 0x6ca   : > { %1193 = vrot.lane.b32.xlu0 %v1185_v2, %s5811_s14 }
 0x6cb   : > { %v4146_v17 = vpop.permute.xlu1 %4145 }
 0x6cc   : > { %v2917_v19 = vpop.permute.xlu0 %2916  ;;  %v4170_v50 = vsel %vm757_vm2, %v4166_v13, %v4146_v17  ;;  %v5801_v13 = vld [vmem:[%s8250_s4 + $0x8] sm:$0xff] }
 0x6cd   : > { %1195 = vrot.lane.b32.xlu1 %v1186_v20, %s5811_s14  ;;  %v2964_v32 = vsel %vm323_vm0, %v2917_v19, %v6435_v6  ;;  %v4885_v19 = vld [vmem:[%s6411_s29 + $0xb0] sm:$0xff]  ;;  %v8425_v20 = vld [vmem:[#allocation31_spill] sm:$0xff] }
 0x6ce   : > { %1237 = vrot.lane.b32.xlu0 %v8424_v30, %s5812_s15  ;;  %5482 = vmatprep.subr.mxu1 %v2964_v32  ;;  %vm1184_vm6 = vcmp.gt.f32.partialorder %v8425_v20, 0.0 }
 0x6cf   : > { %5483 = vmatpush3.msra.mxu1 %v2964_v32  ;;  %v3388_v14 = vpop.permute.xlu1 %3387  ;;  %v5713_v32 = vpop.eup %5712 }
 0x6d0   : > { %v3661_v18 = vpop.permute.xlu0 %3660  ;;  %5485 = vmatmul.mubr.f32.vlgmr.msra.gmra.mxu1 %v2881_v16  ;;  %v3435_v2 = vsel %vm323_vm0, %v3388_v14, %v6435_v6  ;;  %v3699_v16 = vsel %vm757_vm2, %v3695_v43, %v3675_v26  ;;  %v1188_v26 = vsel %vm1184_vm6, %v8425_v20, 1.0  ;;  %v3354_v3 = vmul.f32 %v5713_v32, %v4886_v29  ;;  %v5800_v43 = vld [vmem:[%s8250_s4 + $0x10] sm:$0xff] }
 0x6d1   : > { %5487 = vmatprep.mubr.f32.mxu1 %v2882_v28  ;;  %1239 = vrot.lane.b32.xlu1 %v8425_v20, %s5812_s15  ;;  %v3353_v28 = vmul.f32 %v5711_v34, %v4885_v19  ;;  %v3694_v45 = vsel %vm323_vm0, %v7192_v22, %v3661_v18 }
 0x6d2   : > { %5534 = vmatprep.subr.mxu0 %v3435_v2  ;;  %1197 = vrot.lane.b32.xlu0 %v1187_v38, %s5811_s14 }
 0x6d3   : > { %5535 = vmatpush3.msra.mxu0 %v3435_v2  ;;  %v3687_v14 = vpop.permute.xlu1 %3686 }
 0x6d4   : > { %v4132_v59 = vpop.permute.xlu0 %4131  ;;  %v3703_v41 = vsel %vm762_vm1, %v3699_v16, %v3687_v14  ;;  %5488 = vmatmul.mubr.f32.gmra.mxu1 %v2883_v4  ;;  %5537 = vmatmul.mubr.f32.vlgmr.msra.gmra.mxu0 %v3352_v52 }
 0x6d5   : > { %v3707_v31 = vmul.f32 %v5799_v33, %v3703_v41  ;;  %5539 = vmatprep.mubr.f32.mxu0 %v3353_v28  ;;  %5550 = vmatprep.mubr.msk.f32.mxu1 %vm323_vm0, %v8415_v1 }
 0x6d6   : > { %1199 = vrot.lane.b32.xlu1 %v1188_v26, %s5811_s14 }
 0x6d7   : > { %v4158_v23 = vpop.permute.xlu1 %4157  ;;  %5542 = vmatprep.subr.mxu1 %v3707_v31 }
 0x6d8   : > { %v3673_v34 = vpop.permute.xlu0 %3672  ;;  %v4174_v41 = vsel %vm762_vm1, %v4170_v50, %v4158_v23  ;;  %5540 = vmatmul.mubr.f32.gmra.mxu0 %v3354_v3  ;;  %5543 = vmatpush3.msra.mxu1 %v3707_v31 }
 0x6d9   : > { %v4178_v1 = vmul.f32 %v5799_v33, %v4174_v41  ;;  %5602 = vmatprep.mubr.msk.f32.mxu0 %vm323_vm0, %v8417_v10  ;;  %v3698_v29 = vsel %vm757_vm2, %v3694_v45, %v3673_v34  ;;  %v4165_v10 = vsel %vm323_vm0, %v7194_v55, %v4132_v59 }
 0x6db   : > { %v4144_v2 = vpop.permute.xlu1 %4143  ;;  %5594 = vmatprep.subr.mxu0 %v4178_v1 }
 0x6dc   : > { %v3659_v19 = vpop.permute.xlu0 %3658  ;;  %5595 = vmatpush3.msra.mxu0 %v4178_v1  ;;  %v4169_v52 = vsel %vm757_vm2, %v4165_v10, %v4144_v2 }
 0x6dd   : > { %v3693_v33 = vsel %vm323_vm0, %v7188_v0, %v3659_v19 }
 0x6df   : > { %v3685_v53 = vpop.permute.xlu1 %3684 }
 0x6e0   : > { %v4130_v17 = vpop.permute.xlu0 %4129  ;;  %v3702_v38 = vsel %vm762_vm1, %v3698_v29, %v3685_v53 }
 0x6e1   : > { %v3706_v4 = vmul.f32 %v5800_v43, %v3702_v38  ;;  %v4164_v50 = vsel %vm323_vm0, %v7190_v37, %v4130_v17  ;;  %v5802_v17 = vld [vmem:[%s8250_s4] sm:$0xff] }
 0x6e3   : > { %v4156_v32 = vpop.permute.xlu1 %4155  ;;  %5544 = vmatprep.subr.mxu1 %v3706_v4 }
 0x6e4   : > { %v3671_v16 = vpop.permute.xlu0 %3670  ;;  %v4173_v22 = vsel %vm762_vm1, %v4169_v52, %v4156_v32  ;;  %5545 = vmatpush3.msra.mxu1 %v3706_v4 }
 0x6e5   : > { %v4177_v18 = vmul.f32 %v5800_v43, %v4173_v22  ;;  %v3697_v31 = vsel %vm757_vm2, %v3693_v33, %v3671_v16 }
 0x6e7   : > { %v4142_v14 = vpop.permute.xlu1 %4141  ;;  %5596 = vmatprep.subr.mxu0 %v4177_v18 }
 0x6e8   : > { %v3657_v28 = vpop.permute.xlu0 %3656  ;;  %5597 = vmatpush3.msra.mxu0 %v4177_v18  ;;  %v4168_v23 = vsel %vm757_vm2, %v4164_v50, %v4142_v14 }
 0x6e9   : > { %v3692_v2 = vsel %vm323_vm0, %v7184_v48, %v3657_v28 }
 0x6eb   : > { %v3683_v26 = vpop.permute.xlu1 %3682 }
 0x6ec   : > { %v4128_v55 = vpop.permute.xlu0 %4127  ;;  %v3701_v59 = vsel %vm762_vm1, %v3697_v31, %v3683_v26 }
 0x6ed   : > { %v3705_v3 = vmul.f32 %v5801_v13, %v3701_v59  ;;  %v4163_v53 = vsel %vm323_vm0, %v7186_v25, %v4128_v55 }
 0x6ef   : > { %v4154_v34 = vpop.permute.xlu1 %4153  ;;  %5546 = vmatprep.subr.mxu1 %v3705_v3 }
 0x6f0   : > { %v3669_v41 = vpop.permute.xlu0 %3668  ;;  %v4172_v0 = vsel %vm762_vm1, %v4168_v23, %v4154_v34  ;;  %5547 = vmatpush3.msra.mxu1 %v3705_v3 }
 0x6f1   : > { %v4176_v1 = vmul.f32 %v5801_v13, %v4172_v0  ;;  %v3696_v45 = vsel %vm757_vm2, %v3692_v2, %v3669_v41 }
 0x6f3   : > { %v4140_v19 = vpop.permute.xlu1 %4139  ;;  %5598 = vmatprep.subr.mxu0 %v4176_v1 }
 0x6f4   : > { %v3681_v29 = vpop.permute.xlu0 %3680  ;;  %5599 = vmatpush3.msra.mxu0 %v4176_v1  ;;  %v4167_v43 = vsel %vm757_vm2, %v4163_v53, %v4140_v19 }
 0x6f5   : > { %v3700_v37 = vsel %vm762_vm1, %v3696_v45, %v3681_v29 }
 0x6f6   : > { %v3704_v38 = vmul.f32 %v5802_v17, %v3700_v37 }
 0x6f7   : > { %v4152_v4 = vpop.permute.xlu1 %4151 }
 0x6f8   : > { %v3889_v48 = vpop.permute.xlu0 %3888  ;;  %v4171_v10 = vsel %vm762_vm1, %v4167_v43, %v4152_v4  ;;  %5548 = vmatprep.subr.mxu1 %v3704_v38 }
 0x6f9   : > { %v4175_v52 = vmul.f32 %v5802_v17, %v4171_v10  ;;  %5549 = vmatpush3.msra.mxu1 %v3704_v38  ;;  %v3921_v32 = vsel %vm323_vm0, %v3889_v48, %v6296_v8 }
 0x6fa   : > { %5551 = vmatmul.mubr.msk.f32.vlgmr.msra.gmra.mxu1 %vm323_vm0, %v8412_v27  ;;  %5556 = vmatprep.subr.mxu1 %v3921_v32 }
 0x6fb   : > { %5553 = vmatprep.mubr.msk.f32.mxu1 %vm323_vm0, %v8408_v49  ;;  %5557 = vmatpush3.msra.mxu1 %v3921_v32  ;;  %v4360_v25 = vpop.permute.xlu1 %4359 }
 0x6fc   : > { %v3887_v16 = vpop.permute.xlu0 %3886  ;;  %5600 = vmatprep.subr.mxu0 %v4175_v52  ;;  %v4392_v22 = vsel %vm323_vm0, %v4360_v25, %v6296_v8 }
 0x6fd   : > { %5601 = vmatpush3.msra.mxu0 %v4175_v52  ;;  %v3920_v18 = vsel %vm323_vm0, %v3887_v16, %v6308_v42 }
 0x6fe   : > { %5554 = vmatmul.mubr.msk.f32.gmra.mxu1 %vm323_vm0, %v6988_v21  ;;  %5558 = vmatprep.subr.mxu1 %v3920_v18 }
 0x6ff   : > { %5603 = vmatmul.mubr.msk.f32.vlgmr.msra.gmra.mxu0 %vm323_vm0, %v8414_v46  ;;  %5608 = vmatprep.subr.mxu0 %v4392_v22  ;;  %v4358_v49 = vpop.permute.xlu1 %4357 }
 0x700   : > { %5559 = vmatpush3.msra.mxu1 %v3920_v18  ;;  %5605 = vmatprep.mubr.msk.f32.mxu0 %vm323_vm0, %v8411_v62  ;;  %v3885_v27 = vpop.permute.xlu0 %3884  ;;  %v4391_v8 = vsel %vm323_vm0, %v4358_v49, %v6308_v42 }
 0x701   : > { %5609 = vmatpush3.msra.mxu0 %v4392_v22  ;;  %v3919_v14 = vsel %vm323_vm0, %v3885_v27, %v6323_v51 }
 0x702   : > { %5560 = vmatprep.subr.mxu1 %v3919_v14  ;;  %5610 = vmatprep.subr.mxu0 %v4391_v8 }
 0x703   : > { %5606 = vmatmul.mubr.msk.f32.gmra.mxu0 %vm323_vm0, %v7000_v58  ;;  %5561 = vmatpush3.msra.mxu1 %v3919_v14  ;;  %v4356_v21 = vpop.permute.xlu1 %4355 }
 0x704   : > { %5611 = vmatpush3.msra.mxu0 %v4391_v8  ;;  %v3883_v46 = vpop.permute.xlu0 %3882  ;;  %v4390_v62 = vsel %vm323_vm0, %v4356_v21, %v6323_v51 }
 0x705   : > { %v3918_v28 = vsel %vm323_vm0, %v3883_v46, %v6347_v24  ;;  %5612 = vmatprep.subr.mxu0 %v4390_v62 }
 0x706   : > { %5562 = vmatprep.subr.mxu1 %v3918_v28  ;;  %5613 = vmatpush3.msra.mxu0 %v4390_v62 }
 0x707   : > { %5563 = vmatpush3.msra.mxu1 %v3918_v28  ;;  %v4354_v42 = vpop.permute.xlu1 %4353 }
 0x708   : > { %v3881_v33 = vpop.permute.xlu0 %3880  ;;  %v4389_v31 = vsel %vm323_vm0, %v4354_v42, %v6347_v24 }
 0x709   : > { %v3917_v58 = vsel %vm323_vm0, %v3881_v33, %v6368_v36  ;;  %5614 = vmatprep.subr.mxu0 %v4389_v31 }
 0x70a   : > { %5564 = vmatprep.subr.mxu1 %v3917_v58  ;;  %5615 = vmatpush3.msra.mxu0 %v4389_v31 }
 0x70b   : > { %5565 = vmatpush3.msra.mxu1 %v3917_v58  ;;  %v4352_v51 = vpop.permute.xlu1 %4351 }
 0x70c   : > { %v3879_v26 = vpop.permute.xlu0 %3878  ;;  %v4388_v55 = vsel %vm323_vm0, %v4352_v51, %v6368_v36 }
 0x70d   : > { %v3916_v59 = vsel %vm323_vm0, %v3879_v26, %v6374_v40  ;;  %5616 = vmatprep.subr.mxu0 %v4388_v55 }
 0x70e   : > { %5566 = vmatprep.subr.mxu1 %v3916_v59  ;;  %5617 = vmatpush3.msra.mxu0 %v4388_v55 }
 0x70f   : > { %5567 = vmatpush3.msra.mxu1 %v3916_v59  ;;  %v4350_v24 = vpop.permute.xlu1 %4349 }
 0x710   : > { %v3877_v13 = vpop.permute.xlu0 %3876  ;;  %v4387_v3 = vsel %vm323_vm0, %v4350_v24, %v6374_v40 }
 0x711   : > { %v3915_v50 = vsel %vm323_vm0, %v3877_v13, %v6382_v54  ;;  %5618 = vmatprep.subr.mxu0 %v4387_v3 }
 0x712   : > { %5568 = vmatprep.subr.mxu1 %v3915_v50  ;;  %5619 = vmatpush3.msra.mxu0 %v4387_v3 }
 0x713   : > { %5569 = vmatpush3.msra.mxu1 %v3915_v50  ;;  %v4348_v36 = vpop.permute.xlu1 %4347  ;;  %v8426_v50 = vld [vmem:[#allocation4_spill] sm:$0xff] }
 0x714   : > { %v3875_v23 = vpop.permute.xlu0 %3874  ;;  %v4386_v34 = vsel %vm323_vm0, %v4348_v36, %v6382_v54  ;;  %vm1652_vm7 = vcmp.gt.f32.partialorder %v8426_v50, 0.0 }
 0x715   : > { %v3914_v41 = vsel %vm323_vm0, %v3875_v23, %v6390_v12  ;;  %5620 = vmatprep.subr.mxu0 %v4386_v34  ;;  %v1656_v36 = vsel %vm1652_vm7, %v8426_v50, 1.0  ;;  %v8427_v23 = vld [vmem:[#allocation2_spill] sm:$0xff] }
 0x716   : > { %5570 = vmatprep.subr.mxu1 %v3914_v41  ;;  %5621 = vmatpush3.msra.mxu0 %v4386_v34  ;;  %vm1653_vm8 = vcmp.gt.f32.partialorder %v8427_v23, 0.0 }
 0x717   : > { %5571 = vmatpush3.msra.mxu1 %v3914_v41  ;;  %v4346_v40 = vpop.permute.xlu1 %4345  ;;  %v1657_v34 = vsel %vm1653_vm8, %v8427_v23, 1.0  ;;  %v8428_v41 = vld [vmem:[#allocation12_spill] sm:$0xff] }
 0x718   : > { %v3873_v0 = vpop.permute.xlu0 %3872  ;;  %v4385_v1 = vsel %vm323_vm0, %v4346_v40, %v6390_v12  ;;  %vm1654_vm9 = vcmp.gt.f32.partialorder %v8428_v41, 0.0 }
 0x719   : > { %v3913_v2 = vsel %vm323_vm0, %v3873_v0, %v8409_v57  ;;  %5622 = vmatprep.subr.mxu0 %v4385_v1  ;;  %v1658_v40 = vsel %vm1654_vm9, %v8428_v41, 1.0  ;;  %v8429_v0 = vld [vmem:[#allocation8_spill] sm:$0xff] }
 0x71a   : > { %5572 = vmatprep.subr.mxu1 %v3913_v2  ;;  %5623 = vmatpush3.msra.mxu0 %v4385_v1  ;;  %vm1655_vm10 = vcmp.gt.f32.partialorder %v8429_v0, 0.0 }
 0x71b   : > { %5573 = vmatpush3.msra.mxu1 %v3913_v2  ;;  %v4344_v54 = vpop.permute.xlu1 %4343  ;;  %v1659_v1 = vsel %vm1655_vm10, %v8429_v0, 1.0  ;;  %v2127_v2 = vsel %vm2123_vm11, %v7270_v47, 1.0 }
 0x71c   : > { %v3871_v19 = vpop.permute.xlu0 %3870  ;;  %v4384_v45 = vsel %vm323_vm0, %v4344_v54, %v8409_v57  ;;  %v2128_v54 = vsel %vm2124_vm12, %v7260_v56, 1.0 }
 0x71d   : > { %v3912_v29 = vsel %vm323_vm0, %v3871_v19, %v8413_v60  ;;  %5624 = vmatprep.subr.mxu0 %v4384_v45  ;;  %v2129_v19 = vsel %vm2125_vm13, %v7295_v61, 1.0 }
 0x71e   : > { %5574 = vmatprep.subr.mxu1 %v3912_v29  ;;  %5625 = vmatpush3.msra.mxu0 %v4384_v45  ;;  %v2130_v45 = vsel %vm8330_vm14, %v7282_v39, 1.0 }
 0x71f   : > { %5575 = vmatpush3.msra.mxu1 %v3912_v29  ;;  %v4342_v12 = vpop.permute.xlu1 %4341 }
 0x720   : > { %v3869_v37 = vpop.permute.xlu0 %3868  ;;  %v4383_v53 = vsel %vm323_vm0, %v4342_v12, %v8413_v60 }
 0x721   : > { %v3911_v17 = vsel %vm323_vm0, %v3869_v37, %v8416_v9  ;;  %5626 = vmatprep.subr.mxu0 %v4383_v53 }
 0x722   : > { %5576 = vmatprep.subr.mxu1 %v3911_v17  ;;  %5627 = vmatpush3.msra.mxu0 %v4383_v53 }
 0x723   : > { %5577 = vmatpush3.msra.mxu1 %v3911_v17  ;;  %v4340_v57 = vpop.permute.xlu1 %4339 }
 0x724   : > { %v3867_v38 = vpop.permute.xlu0 %3866  ;;  %v4382_v43 = vsel %vm323_vm0, %v4340_v57, %v8416_v9 }
 0x725   : > { %v3910_v4 = vsel %vm323_vm0, %v3867_v38, %v8418_v11  ;;  %5628 = vmatprep.subr.mxu0 %v4382_v43 }
 0x726   : > { %5578 = vmatprep.subr.mxu1 %v3910_v4  ;;  %5629 = vmatpush3.msra.mxu0 %v4382_v43 }
 0x727   : > { %5579 = vmatpush3.msra.mxu1 %v3910_v4  ;;  %v4338_v60 = vpop.permute.xlu1 %4337 }
 0x728   : > { %v3865_v48 = vpop.permute.xlu0 %3864  ;;  %v4381_v10 = vsel %vm323_vm0, %v4338_v60, %v8418_v11 }
 0x729   : > { %v3909_v52 = vsel %vm323_vm0, %v3865_v48, %v8419_v5  ;;  %5630 = vmatprep.subr.mxu0 %v4381_v10 }
 0x72a   : > { %5580 = vmatprep.subr.mxu1 %v3909_v52  ;;  %5631 = vmatpush3.msra.mxu0 %v4381_v10 }
 0x72b   : > { %5581 = vmatpush3.msra.mxu1 %v3909_v52  ;;  %v4336_v9 = vpop.permute.xlu1 %4335 }
 0x72c   : > { %v3863_v32 = vpop.permute.xlu0 %3862  ;;  %v4380_v25 = vsel %vm323_vm0, %v4336_v9, %v8419_v5 }
 0x72d   : > { %v3908_v16 = vsel %vm323_vm0, %v3863_v32, %v8420_v15  ;;  %5632 = vmatprep.subr.mxu0 %v4380_v25 }
 0x72e   : > { %5582 = vmatprep.subr.mxu1 %v3908_v16  ;;  %5633 = vmatpush3.msra.mxu0 %v4380_v25 }
 0x72f   : > { %5583 = vmatpush3.msra.mxu1 %v3908_v16  ;;  %v4334_v11 = vpop.permute.xlu1 %4333 }
 0x730   : > { %v3861_v22 = vpop.permute.xlu0 %3860  ;;  %v4379_v18 = vsel %vm323_vm0, %v4334_v11, %v8420_v15 }
 0x731   : > { %v3907_v49 = vsel %vm323_vm0, %v3861_v22, %v8421_v63  ;;  %5634 = vmatprep.subr.mxu0 %v4379_v18 }
 0x732   : > { %5584 = vmatprep.subr.mxu1 %v3907_v49  ;;  %5635 = vmatpush3.msra.mxu0 %v4379_v18 }
 0x733   : > { %5585 = vmatpush3.msra.mxu1 %v3907_v49  ;;  %v4332_v5 = vpop.permute.xlu1 %4331 }
 0x734   : > { %v3859_v27 = vpop.permute.xlu0 %3858  ;;  %v4378_v8 = vsel %vm323_vm0, %v4332_v5, %v8421_v63 }
 0x735   : > { %v3906_v14 = vsel %vm323_vm0, %v3859_v27, %v6435_v6  ;;  %5636 = vmatprep.subr.mxu0 %v4378_v8 }
 0x736   : > { %5586 = vmatprep.subr.mxu1 %v3906_v14  ;;  %5637 = vmatpush3.msra.mxu0 %v4378_v8 }
 0x737   : > { %5587 = vmatpush3.msra.mxu1 %v3906_v14  ;;  %v4330_v15 = vpop.permute.xlu1 %4329 }
 0x738   : > { %v7594_v21 = vpop.permute.xlu0 %1233  ;;  %v4377_v46 = vsel %vm323_vm0, %v4330_v15, %v6435_v6 }
 0x739   : > { %5638 = vmatprep.subr.mxu0 %v4377_v46 }
 0x73a   : > { %5639 = vmatpush3.msra.mxu0 %v4377_v46 }
 0x73b   : > { %v7598_v62 = vpop.permute.xlu1 %1235 }
 0x73c   : > { %v1194_v28 = vpop.permute.xlu0 %1193 }
 0x73d   : > { %5714 = vrcp.f32 %v1194_v28 }
 0x73f   : > { %v1196_v63 = vpop.permute.xlu1 %1195 }
 0x740   : > { %5716 = vrcp.f32 %v1196_v63  ;;  %v7600_v42 = vpop.permute.xlu0 %1237 }
 0x743   : > { %v7602_v33 = vpop.permute.xlu1 %1239 }
 0x744   : > { %v1198_v31 = vpop.permute.xlu0 %1197 }
 0x745   : > { %5718 = vrcp.f32 %v1198_v31 }
 0x748   : > { %v1200_v58 = vpop.permute.xlu1 %1199 }
 0x749   : > { %5720 = vrcp.f32 %v1200_v58 }
 0x74a   : > { %v5715_v51 = vpop.eup %5714 }
 0x74b   : > { %v1206_v26 = vmul.f32 %v5715_v51, %v8422_v35 }
 0x74d   : > { %v5717_v6 = vpop.eup %5716  ;;  %1217 = vrot.lane.b32.xlu0 %v1206_v26, %s5812_s15 }
 0x74e   : > { %v1208_v55 = vmul.f32 %v5717_v6, %v8423_v44 }
 0x750   : > { %1219 = vrot.lane.b32.xlu1 %v1208_v55, %s5812_s15 }
 0x752   : > { %v5719_v59 = vpop.eup %5718 }
 0x753   : > { %v1210_v24 = vmul.f32 %v5719_v59, %v8424_v30 }
 0x755   : > { %1221 = vrot.lane.b32.xlu0 %v1210_v24, %s5812_s15 }
 0x756   : > { %v5721_v13 = vpop.eup %5720 }
 0x757   : > { %v1212_v3 = vmul.f32 %v5721_v13, %v8425_v20  ;;  %v4895_v13 = vld [vmem:[%s6411_s29 + $0xc0] sm:$0xff] }
 0x759   : > { %1223 = vrot.lane.b32.xlu1 %v1212_v3, %s5812_s15  ;;  %1704 = vrot.lane.b32.xlu0 %v8426_v50, %s5812_s15 }
 0x75d   : > { %1706 = vrot.lane.b32.xlu1 %v8427_v23, %s5812_s15  ;;  %1664 = vrot.lane.b32.xlu0 %v1656_v36, %s5811_s14  ;;  %v4896_v36 = vld [vmem:[%s6411_s29 + $0xc8] sm:$0xff] }
 0x761   : > { %1666 = vrot.lane.b32.xlu1 %v1657_v34, %s5811_s14  ;;  %1708 = vrot.lane.b32.xlu0 %v8428_v41, %s5812_s15 }
 0x765   : > { %1710 = vrot.lane.b32.xlu1 %v8429_v0, %s5812_s15  ;;  %1668 = vrot.lane.b32.xlu0 %v1658_v40, %s5811_s14 }
 0x769   : > { %1670 = vrot.lane.b32.xlu1 %v1659_v1, %s5811_s14  ;;  %2175 = vrot.lane.b32.xlu0 %v7270_v47, %s5812_s15 }
 0x76d   : > { %2177 = vrot.lane.b32.xlu1 %v7260_v56, %s5812_s15  ;;  %2135 = vrot.lane.b32.xlu0 %v2127_v2, %s5811_s14 }
 0x771   : > { %2137 = vrot.lane.b32.xlu1 %v2128_v54, %s5811_s14  ;;  %2179 = vrot.lane.b32.xlu0 %v7295_v61, %s5812_s15 }
 0x775   : > { %2181 = vrot.lane.b32.xlu1 %v7282_v39, %s5812_s15  ;;  %2139 = vrot.lane.b32.xlu0 %v2129_v19, %s5811_s14 }
 0x779   : > { %2141 = vrot.lane.b32.xlu1 %v2130_v45, %s5811_s14  ;;  %v4897_v45 = vld [vmem:[%s6411_s29 + $0xd0] sm:$0xff] }
 0x790   : > { %v7668_v29 = vpop.f32.mrf.mxu1 }
 0x791   : > { %8430 = vst [vmem:[#allocation22_spill] sm:$0xff] %v7668_v29 }
 0x792   : > { %v7670_v12 = vpop.f32.mrf.mxu1 }
 0x793   : > { %8431 = vst [vmem:[#allocation23_spill] sm:$0xff] %v7670_v12 }
 0x794   : > { %v7672_v37 = vpop.f32.mrf.mxu0  ;;  %v7674_v53 = vpop.f32.mrf.mxu1 }
 0x795   : > { %8432 = vst [vmem:[#allocation25_spill] sm:$0xff] %v7674_v53 }
 0x796   : > { %v7676_v17 = vpop.f32.mrf.mxu0  ;;  %v7678_v57 = vpop.f32.mrf.mxu1 }
 0x797   : > { %8433 = vst [vmem:[#allocation24_spill] sm:$0xff] %v7678_v57 }
 0x798   : > { %v7680_v38 = vpop.f32.mrf.mxu0 }
 0x799   : > { %8434 = vst [vmem:[#allocation28_spill] sm:$0xff] %v7680_v38 }
 0x79a   : > { %v7682_v48 = vpop.f32.mrf.mxu0 }
 0x7ba   : > { %v5552_v43 = vpop.f32.mrf.mxu1 }
 0x7bb   : > { %v4892_v4 = vclamps-f32 %v5552_v43, 5.0 }
 0x7bc   : > { %v3782_v60 = vpop.f32.mrf.mxu1 }
 0x7bd   : > { %v3811_v10 = vmul.f32 1.442695, %v4892_v4  ;;  %v4891_v52 = vclamps-f32 %v3782_v60, 5.0  ;;  %v4907_v4 = vld [vmem:[%s6411_s29 + $0xe0] sm:$0xff]  ;;  %v4898_v60 = vld [vmem:[%s6411_s29 + $0xd8] sm:$0xff] }
 0x7be   : > { %v5555_v9 = vpop.f32.mrf.mxu1 }
 0x7bf   : > { %v3809_v32 = vmul.f32 1.442695, %v4891_v52  ;;  %v4894_v25 = vclamps-f32 %v5555_v9, 5.0  ;;  %v5604_v16 = vpop.f32.mrf.mxu0  ;;  %5722 = vpow2.f32 %v3811_v10  ;;  %v7684_v14 = vpop.permute.xlu0 %1217  ;;  %v4908_v52 = vld [vmem:[%s6411_s29 + $0xe8] sm:$0xff] }
 0x7c0   : > { %v4904_v11 = vclamps-f32 %v5604_v16, 5.0  ;;  %v3792_v22 = vpop.f32.mrf.mxu1 }
 0x7c1   : > { %5724 = vpow2.f32 %v3809_v32  ;;  %v3815_v18 = vmul.f32 1.442695, %v4894_v25  ;;  %v4893_v49 = vclamps-f32 %v3792_v22, 5.0  ;;  %v4253_v5 = vpop.f32.mrf.mxu0 }
 0x7c2   : > { %v4282_v27 = vmul.f32 1.442695, %v4904_v11  ;;  %v4903_v8 = vclamps-f32 %v4253_v5, 5.0  ;;  %v7686_v26 = vpop.permute.xlu1 %1219 }
 0x7c3   : > { %5726 = vpow2.f32 %v3815_v18  ;;  %v3813_v15 = vmul.f32 1.442695, %v4893_v49  ;;  %v5607_v46 = vpop.f32.mrf.mxu0  ;;  %v4909_v49 = vld [vmem:[%s6411_s29 + $0xf0] sm:$0xff] }
 0x7c4   : > { %5728 = vpow2.f32 %v4282_v27  ;;  %v4280_v28 = vmul.f32 1.442695, %v4903_v8  ;;  %v4906_v63 = vclamps-f32 %v5607_v46, 5.0  ;;  %v4910_v27 = vld [vmem:[%s6411_s29 + $0xf8] sm:$0xff] }
 0x7c5   : > { %5730 = vpow2.f32 %v3813_v15  ;;  %v4263_v31 = vpop.f32.mrf.mxu0 }
 0x7c6   : > { %5732 = vpow2.f32 %v4280_v28  ;;  %v4286_v58 = vmul.f32 1.442695, %v4906_v63  ;;  %v4905_v51 = vclamps-f32 %v4263_v31, 5.0 }
 0x7c7   : > { %v7688_v6 = vpop.permute.xlu0 %1221 }
 0x7c8   : > { %v4284_v55 = vmul.f32 1.442695, %v4905_v51  ;;  %5734 = vpow2.f32 %v4286_v58 }
 0x7ca   : > { %5736 = vpow2.f32 %v4284_v55 }
 0x7cb   : > { %v7690_v59 = vpop.permute.xlu1 %1223  ;;  %v7692_v24 = vpop.permute.xlu0 %1704 }
 0x7cc   : > { %v5723_v3 = vpop.eup %5722 }
 0x7cd   : > { %v3823_v19 = vmul.f32 %v5723_v3, %v4896_v36 }
 0x7ce   : > { %v5725_v34 = vpop.eup %5724 }
 0x7cf   : > { %v7696_v40 = vpop.permute.xlu1 %1706  ;;  %v1665_v1 = vpop.permute.xlu0 %1664  ;;  %v3822_v2 = vmul.f32 %v5725_v34, %v4895_v13 }
 0x7d0   : > { %v5727_v54 = vpop.eup %5726  ;;  %5738 = vrcp.f32 %v1665_v1 }
 0x7d1   : > { %v5729_v43 = vpop.eup %5728  ;;  %5588 = vmatprep.mubr.f32.mxu1 %v3822_v2  ;;  %v3825_v22 = vmul.f32 %v5727_v54, %v4898_v60 }
 0x7d2   : > { %v5731_v10 = vpop.eup %5730  ;;  %5589 = vmatmul.mubr.f32.vlgmr.msra.gmra.mxu1 %v3823_v19  ;;  %v4294_v18 = vmul.f32 %v5729_v43, %v4908_v52 }
 0x7d3   : > { %v5733_v9 = vpop.eup %5732  ;;  %v1667_v32 = vpop.permute.xlu1 %1666  ;;  %v3824_v16 = vmul.f32 %v5731_v10, %v4897_v45 }
 0x7d4   : > { %v7702_v25 = vpop.permute.xlu0 %1708  ;;  %5740 = vrcp.f32 %v1667_v32  ;;  %v4293_v11 = vmul.f32 %v5733_v9, %v4907_v4 }
 0x7d5   : > { %5591 = vmatprep.mubr.f32.mxu1 %v3824_v16  ;;  %v5735_v5 = vpop.eup %5734 }
 0x7d6   : > { %5640 = vmatprep.mubr.f32.mxu0 %v4293_v11  ;;  %5592 = vmatmul.mubr.f32.gmra.mxu1 %v3825_v22  ;;  %v4296_v63 = vmul.f32 %v5735_v5, %v4910_v27  ;;  %v2598_v5 = vsel %vm8318_vm15, %v7284_v7, 1.0  ;;  %v8435_v27 = vld [vmem:[#allocation14_spill] sm:$0xff] }
 0x7d7   : > { %v5737_v8 = vpop.eup %5736  ;;  %5641 = vmatmul.mubr.f32.vlgmr.msra.gmra.mxu0 %v4294_v18  ;;  %v7706_v15 = vpop.permute.xlu1 %1710  ;;  %vm8319_vm1 = vcmp.gt.f32.partialorder %v8435_v27, 0.0 }
 0x7d8   : > { %v1669_v46 = vpop.permute.xlu0 %1668  ;;  %v4295_v28 = vmul.f32 %v5737_v8, %v4909_v49  ;;  %v2599_v8 = vsel %vm8319_vm1, %v8435_v27, 1.0  ;;  %vm8322_vm1 = vcmp.gt.f32.partialorder %v7670_v12, 0.0 }
 0x7d9   : > { %5742 = vrcp.f32 %v1669_v46  ;;  %v8436_v46 = vld [vmem:[#allocation13_spill] sm:$0xff] }
 0x7da   : > { %5643 = vmatprep.mubr.f32.mxu0 %v4295_v28  ;;  %vm8320_vm2 = vcmp.gt.f32.partialorder %v8436_v46, 0.0 }
 0x7db   : > { %5644 = vmatmul.mubr.f32.gmra.mxu0 %v4296_v63  ;;  %v1671_v31 = vpop.permute.xlu1 %1670  ;;  %v2600_v28 = vsel %vm8320_vm2, %v8436_v46, 1.0  ;;  %v8437_v63 = vld [vmem:[#allocation9_spill] sm:$0xff]  ;;  %vm8328_vm2 = vcmp.gt.f32.partialorder %v7668_v29, 0.0 }
 0x7dc   : > { %v7708_v58 = vpop.permute.xlu0 %2175  ;;  %5744 = vrcp.f32 %v1671_v31  ;;  %vm8321_vm15 = vcmp.gt.f32.partialorder %v8437_v63, 0.0 }
 0x7dd   : > { %v5739_v51 = vpop.eup %5738  ;;  %v2601_v31 = vsel %vm8321_vm15, %v8437_v63, 1.0  ;;  %vm8324_vm15 = vcmp.gt.f32.partialorder %v7678_v57, 0.0 }
 0x7de   : > { %v1677_v55 = vmul.f32 %v5739_v51, %v8426_v50  ;;  %v3069_v51 = vsel %vm8322_vm1, %v7670_v12, 1.0  ;;  %vm8323_vm1 = vcmp.gt.f32.partialorder %v7674_v53, 0.0 }
 0x7df   : > { %v7711_v13 = vpop.permute.xlu1 %2177 }
 0x7e0   : > { %v2136_v3 = vpop.permute.xlu0 %2135  ;;  %1688 = vrot.lane.b32.xlu0 %v1677_v55, %s5812_s15  ;;  %v3070_v55 = vsel %vm8328_vm2, %v7668_v29, 1.0 }
 0x7e1   : > { %5746 = vrcp.f32 %v2136_v3  ;;  %v5741_v36 = vpop.eup %5740  ;;  %v3071_v3 = vsel %vm8324_vm15, %v7678_v57, 1.0  ;;  %vm8326_vm15 = vcmp.gt.f32.partialorder %v7672_v37, 0.0 }
 0x7e2   : > { %v1679_v34 = vmul.f32 %v5741_v36, %v8427_v23  ;;  %v3072_v36 = vsel %vm8323_vm1, %v7674_v53, 1.0  ;;  %vm8325_vm1 = vcmp.gt.f32.partialorder %v7676_v17, 0.0 }
 0x7e3   : > { %v2138_v1 = vpop.permute.xlu1 %2137 }
 0x7e4   : > { %v7715_v2 = vpop.permute.xlu0 %2179  ;;  %5748 = vrcp.f32 %v2138_v1  ;;  %1690 = vrot.lane.b32.xlu1 %v1679_v34, %s5812_s15 }
 0x7e6   : > { %v5743_v54 = vpop.eup %5742 }
 0x7e7   : > { %v1681_v19 = vmul.f32 %v5743_v54, %v8428_v41  ;;  %v7719_v45 = vpop.permute.xlu1 %2181 }
 0x7e8   : > { %v2140_v43 = vpop.permute.xlu0 %2139 }
 0x7e9   : > { %5750 = vrcp.f32 %v2140_v43  ;;  %1692 = vrot.lane.b32.xlu0 %v1681_v19, %s5812_s15  ;;  %v5745_v4 = vpop.eup %5744 }
 0x7ea   : > { %v1683_v60 = vmul.f32 %v5745_v4, %v8429_v0 }
 0x7eb   : > { %v2142_v10 = vpop.permute.xlu1 %2141 }
 0x7ec   : > { %5752 = vrcp.f32 %v2142_v10  ;;  %1694 = vrot.lane.b32.xlu1 %v1683_v60, %s5812_s15 }
 0x7ee   : > { %v5747_v52 = vpop.eup %5746 }
 0x7ef   : > { %v2148_v9 = vmul.f32 %v5747_v52, %v7270_v47 }
 0x7f1   : > { %2159 = vrot.lane.b32.xlu0 %v2148_v9, %s5812_s15  ;;  %v5749_v32 = vpop.eup %5748 }
 0x7f2   : > { %v2150_v16 = vmul.f32 %v5749_v32, %v7260_v56 }
 0x7f4   : > { %2161 = vrot.lane.b32.xlu1 %v2150_v16, %s5812_s15 }
 0x7f6   : > { %v5751_v11 = vpop.eup %5750 }
 0x7f7   : > { %v2152_v22 = vmul.f32 %v5751_v11, %v7295_v61 }
 0x7f9   : > { %2163 = vrot.lane.b32.xlu0 %v2152_v22, %s5812_s15  ;;  %v5753_v18 = vpop.eup %5752 }
 0x7fa   : > { %v2154_v49 = vmul.f32 %v5753_v18, %v7282_v39 }
 0x7fc   : > { %2165 = vrot.lane.b32.xlu1 %v2154_v49, %s5812_s15 }
 0x7fd   : > { %2646 = vrot.lane.b32.xlu0 %v7284_v7, %s5812_s15 }
 0x800   : > { %2648 = vrot.lane.b32.xlu1 %v8435_v27, %s5812_s15 }
 0x801   : > { %2606 = vrot.lane.b32.xlu0 %v2598_v5, %s5811_s14 }
 0x804   : > { %2608 = vrot.lane.b32.xlu1 %v2599_v8, %s5811_s14 }
 0x805   : > { %2650 = vrot.lane.b32.xlu0 %v8436_v46, %s5812_s15 }
 0x808   : > { %2652 = vrot.lane.b32.xlu1 %v8437_v63, %s5812_s15 }
 0x809   : > { %2610 = vrot.lane.b32.xlu0 %v2600_v28, %s5811_s14 }
 0x80c   : > { %2612 = vrot.lane.b32.xlu1 %v2601_v31, %s5811_s14 }
 0x80d   : > { %3117 = vrot.lane.b32.xlu0 %v7670_v12, %s5812_s15 }
 0x810   : > { %3119 = vrot.lane.b32.xlu1 %v7668_v29, %s5812_s15 }
 0x811   : > { %3077 = vrot.lane.b32.xlu0 %v3069_v51, %s5811_s14 }
 0x814   : > { %3079 = vrot.lane.b32.xlu1 %v3070_v55, %s5811_s14 }
 0x815   : > { %3121 = vrot.lane.b32.xlu0 %v7678_v57, %s5812_s15 }
 0x818   : > { %3123 = vrot.lane.b32.xlu1 %v7674_v53, %s5812_s15 }
 0x819   : > { %3081 = vrot.lane.b32.xlu0 %v3071_v3, %s5811_s14 }
 0x81c   : > { %3083 = vrot.lane.b32.xlu1 %v3072_v36, %s5811_s14 }
 0x852   : > { %v7788_v34 = vpop.permute.xlu0 %1688 }
 0x856   : > { %v7790_v1 = vpop.permute.xlu1 %1690 }
 0x857   : > { %v1717_v30 = vsel %vm1653_vm8, %v7790_v1, %v7696_v40  ;;  %v8471_v40 = vld [vmem:[#allocation23_spill] sm:$0xff] }
 0x858   : > { %vm8472_vm8 = vcmp.gt.f32.partialorder %v8471_v40, 0.0 }
 0x85b   : > { %v7792_v54 = vpop.permute.xlu0 %1692 }
 0x85c   : > { %v1718_v20 = vsel %vm1654_vm9, %v7792_v54, %v7702_v25 }
 0x85e   : > { %v7794_v19 = vpop.permute.xlu1 %1694 }
 0x863   : > { %v7796_v43 = vpop.permute.xlu0 %2159 }
 0x866   : > { %v7798_v4 = vpop.permute.xlu1 %2161 }
 0x867   : > { %v2188_v50 = vsel %vm2124_vm12, %v7798_v4, %v7711_v13  ;;  %v8475_v13 = vld [vmem:[#allocation22_spill] sm:$0xff]  ;;  %vm8486_vm12 = vcmp.gt.f32.partialorder %v7676_v17, 0.0 }
 0x868   : > { %vm8476_vm9 = vcmp.gt.f32.partialorder %v8475_v13, 0.0 }
 0x86b   : > { %v7800_v60 = vpop.permute.xlu0 %2163 }
 0x86c   : > { %v2189_v23 = vsel %vm2125_vm13, %v7800_v60, %v7715_v2  ;;  %vm8487_vm13 = vcmp.gt.f32.partialorder %v7672_v37, 0.0 }
 0x86e   : > { %v7802_v10 = vpop.permute.xlu1 %2165 }
 0x86f   : > { %v7804_v52 = vpop.permute.xlu0 %2646 }
 0x872   : > { %v7806_v9 = vpop.permute.xlu1 %2648 }
 0x873   : > { %v2607_v32 = vpop.permute.xlu0 %2606 }
 0x874   : > { %5754 = vrcp.f32 %v2607_v32 }
 0x876   : > { %v2609_v16 = vpop.permute.xlu1 %2608 }
 0x877   : > { %v7808_v11 = vpop.permute.xlu0 %2650  ;;  %5756 = vrcp.f32 %v2609_v16 }
 0x87a   : > { %v7810_v22 = vpop.permute.xlu1 %2652 }
 0x87b   : > { %8438 = vst [vmem:[#allocation27_spill] sm:$0xff] %v7810_v22  ;;  %v2611_v18 = vpop.permute.xlu0 %2610 }
 0x87c   : > { %5758 = vrcp.f32 %v2611_v18 }
 0x87e   : > { %v2613_v49 = vpop.permute.xlu1 %2612 }
 0x87f   : > { %v7812_v5 = vpop.permute.xlu0 %3117  ;;  %5760 = vrcp.f32 %v2613_v49 }
 0x880   : > { %8439 = vst [vmem:[#allocation30_spill] sm:$0xff] %v7812_v5 }
 0x881   : > { %v5755_v8 = vpop.eup %5754 }
 0x882   : > { %v2619_v28 = vmul.f32 %v5755_v8, %v7284_v7  ;;  %v7815_v31 = vpop.permute.xlu1 %3119  ;;  %v8465_v0 = vld [vmem:[#allocation27_spill] sm:$0xff] }
 0x883   : > { %8440 = vst [vmem:[#allocation11_spill] sm:$0xff] %v7815_v31  ;;  %v3078_v51 = vpop.permute.xlu0 %3077 }
 0x884   : > { %5762 = vrcp.f32 %v3078_v51  ;;  %2630 = vrot.lane.b32.xlu0 %v2619_v28, %s5812_s15  ;;  %v5757_v55 = vpop.eup %5756 }
 0x885   : > { %v2621_v3 = vmul.f32 %v5757_v55, %v8435_v27 }
 0x886   : > { %v3080_v36 = vpop.permute.xlu1 %3079 }
 0x887   : > { %v7819_v32 = vpop.permute.xlu0 %3121  ;;  %5764 = vrcp.f32 %v3080_v36  ;;  %2632 = vrot.lane.b32.xlu1 %v2621_v3, %s5812_s15 }
 0x888   : > { %8441 = vst [vmem:[#allocation15_spill] sm:$0xff] %v7819_v32 }
 0x889   : > { %v5759_v16 = vpop.eup %5758 }
 0x88a   : > { %v2623_v18 = vmul.f32 %v5759_v16, %v8436_v46  ;;  %v7823_v49 = vpop.permute.xlu1 %3123 }
 0x88b   : > { %8442 = vst [vmem:[#allocation10_spill] sm:$0xff] %v7823_v49  ;;  %v3082_v8 = vpop.permute.xlu0 %3081 }
 0x88c   : > { %5766 = vrcp.f32 %v3082_v8  ;;  %2634 = vrot.lane.b32.xlu0 %v2623_v18, %s5812_s15  ;;  %v5761_v51 = vpop.eup %5760 }
 0x88d   : > { %v2625_v28 = vmul.f32 %v5761_v51, %v8437_v63 }
 0x88e   : > { %v3084_v31 = vpop.permute.xlu1 %3083 }
 0x88f   : > { %5768 = vrcp.f32 %v3084_v31  ;;  %2636 = vrot.lane.b32.xlu1 %v2625_v28, %s5812_s15  ;;  %v3540_v28 = vsel %vm8325_vm1, %v7676_v17, 1.0  ;;  %vm8327_vm1 = vcmp.gt.f32.partialorder %v7682_v48, 0.0 }
 0x891   : > { %v5763_v55 = vpop.eup %5762 }
 0x892   : > { %v3090_v36 = vmul.f32 %v5763_v55, %v7670_v12  ;;  %v7846_v55 = vpop.f32.mrf.mxu1  ;;  %v8481_v54 = vld [vmem:[#allocation10_spill] sm:$0xff] }
 0x893   : > { %8443 = vst [vmem:[#allocation5_spill] sm:$0xff] %v7846_v55 }
 0x894   : > { %3101 = vrot.lane.b32.xlu0 %v3090_v36, %s5812_s15  ;;  %v5765_v3 = vpop.eup %5764  ;;  %v3541_v36 = vsel %vm8326_vm15, %v7672_v37, 1.0  ;;  %vm8329_vm15 = vcmp.gt.f32.partialorder %v7680_v38, 0.0 }
 0x895   : > { %v3092_v16 = vmul.f32 %v5765_v3, %v7668_v29  ;;  %v7855_v3 = vpop.f32.mrf.mxu1 }
 0x896   : > { %vm8341_vm2 = vcmp.gt.f32.partialorder %v7855_v3, 0.0 }
 0x897   : > { %3103 = vrot.lane.b32.xlu1 %v3092_v16, %s5812_s15  ;;  %v3542_v16 = vsel %vm8327_vm1, %v7682_v48, 1.0  ;;  %vm8340_vm1 = vcmp.gt.f32.partialorder %v7846_v55, 0.0 }
 0x899   : > { %v5767_v8 = vpop.eup %5766 }
 0x89a   : > { %v3094_v18 = vmul.f32 %v5767_v8, %v7678_v57  ;;  %v7864_v8 = vpop.f32.mrf.mxu1 }
 0x89b   : > { %8444 = vst [vmem:[#allocation16_spill] sm:$0xff] %v7864_v8  ;;  %vm8337_vm14 = vcmp.gt.f32.partialorder %v7864_v8, 0.0 }
 0x89c   : > { %3105 = vrot.lane.b32.xlu0 %v3094_v18, %s5812_s15  ;;  %v5769_v51 = vpop.eup %5768  ;;  %v3543_v18 = vsel %vm8329_vm15, %v7680_v38, 1.0 }
 0x89d   : > { %v3096_v31 = vmul.f32 %v5769_v51, %v7674_v53  ;;  %v7874_v51 = vpop.f32.mrf.mxu1 }
 0x89e   : > { %8445 = vst [vmem:[#allocation7_spill] sm:$0xff] %v7874_v51  ;;  %vm8339_vm15 = vcmp.gt.f32.partialorder %v7874_v51, 0.0 }
 0x89f   : > { %3107 = vrot.lane.b32.xlu1 %v3096_v31, %s5812_s15  ;;  %v4012_v31 = vsel %vm8340_vm1, %v7846_v55, 1.0 }
 0x8a0   : > { %3588 = vrot.lane.b32.xlu0 %v7676_v17, %s5812_s15 }
 0x8a3   : > { %3590 = vrot.lane.b32.xlu1 %v7672_v37, %s5812_s15 }
 0x8a4   : > { %3548 = vrot.lane.b32.xlu0 %v3540_v28, %s5811_s14  ;;  %v4011_v28 = vsel %vm8341_vm2, %v7855_v3, 1.0 }
 0x8a7   : > { %3550 = vrot.lane.b32.xlu1 %v3541_v36, %s5811_s14  ;;  %v4014_v36 = vsel %vm8337_vm14, %v7864_v8, 1.0 }
 0x8a8   : > { %3592 = vrot.lane.b32.xlu0 %v7682_v48, %s5812_s15 }
 0x8ab   : > { %3594 = vrot.lane.b32.xlu1 %v7680_v38, %s5812_s15 }
 0x8ac   : > { %3552 = vrot.lane.b32.xlu0 %v3542_v16, %s5811_s14  ;;  %v4013_v16 = vsel %vm8339_vm15, %v7874_v51, 1.0 }
 0x8af   : > { %3554 = vrot.lane.b32.xlu1 %v3543_v18, %s5811_s14 }
 0x8b0   : > { %4059 = vrot.lane.b32.xlu0 %v7855_v3, %s5812_s15 }
 0x8b3   : > { %4021 = vrot.lane.b32.xlu1 %v4012_v31, %s5811_s14 }
 0x8b4   : > { %4019 = vrot.lane.b32.xlu0 %v4011_v28, %s5811_s14 }
 0x8b7   : > { %4025 = vrot.lane.b32.xlu1 %v4014_v36, %s5811_s14 }
 0x8b8   : > { %4023 = vrot.lane.b32.xlu0 %v4013_v16, %s5811_s14 }
 0x8f6   : > { %v7894_v18 = vpop.permute.xlu0 %2630 }
 0x8f9   : > { %v7896_v53 = vpop.permute.xlu1 %2632 }
 0x8fe   : > { %v7898_v31 = vpop.permute.xlu0 %2634 }
 0x901   : > { %v7900_v28 = vpop.permute.xlu1 %2636 }
 0x902   : > { %8446 = vst [vmem:[#allocation6_spill] sm:$0xff] %v7900_v28 }
 0x906   : > { %v7902_v49 = vpop.permute.xlu0 %3101 }
 0x907   : > { %8447 = vst [vmem:[#allocation17_spill] sm:$0xff] %v7902_v49 }
 0x909   : > { %v7904_v57 = vpop.permute.xlu1 %3103 }
 0x90a   : > { %8448 = vst [vmem:[#allocation3_spill] sm:$0xff] %v7904_v57 }
 0x90e   : > { %v7906_v32 = vpop.permute.xlu0 %3105 }
 0x90f   : > { %8449 = vst [vmem:[#allocation18_spill] sm:$0xff] %v7906_v32 }
 0x911   : > { %v7908_v29 = vpop.permute.xlu1 %3107 }
 0x912   : > { %8450 = vst [vmem:[#allocation19_spill] sm:$0xff] %v7908_v29  ;;  %v7910_v12 = vpop.permute.xlu0 %3588 }
 0x913   : > { %8451 = vst [vmem:[#allocation20_spill] sm:$0xff] %v7910_v12 }
 0x915   : > { %v7912_v36 = vpop.permute.xlu1 %3590 }
 0x916   : > { %v3549_v16 = vpop.permute.xlu0 %3548 }
 0x917   : > { %5770 = vrcp.f32 %v3549_v16 }
 0x919   : > { %v3551_v5 = vpop.permute.xlu1 %3550 }
 0x91a   : > { %v7914_v63 = vpop.permute.xlu0 %3592  ;;  %5772 = vrcp.f32 %v3551_v5  ;;  %v8485_v60 = vld [vmem:[#allocation20_spill] sm:$0xff] }
 0x91b   : > { %8452 = vst [vmem:[#allocation21_spill] sm:$0xff] %v7914_v63 }
 0x91d   : > { %v7916_v22 = vpop.permute.xlu1 %3594 }
 0x91e   : > { %8453 = vst [vmem:[#allocation29_spill] sm:$0xff] %v7916_v22  ;;  %v3553_v28 = vpop.permute.xlu0 %3552 }
 0x91f   : > { %5774 = vrcp.f32 %v3553_v28 }
 0x921   : > { %v3555_v49 = vpop.permute.xlu1 %3554 }
 0x922   : > { %v7918_v57 = vpop.permute.xlu0 %4059  ;;  %5776 = vrcp.f32 %v3555_v49 }
 0x923   : > { %8454 = vst [vmem:[#allocation26_spill] sm:$0xff] %v7918_v57  ;;  %v7926_v57 = vpop.f32.mrf.mxu0 }
 0x924   : > { %v5771_v32 = vpop.eup %5770  ;;  %vm4479_vm15 = vcmp.gt.f32.partialorder %v7926_v57, 0.0 }
 0x925   : > { %v3561_v29 = vmul.f32 %v5771_v32, %v7676_v17  ;;  %v4022_v12 = vpop.permute.xlu1 %4021 }
 0x926   : > { %v4020_v46 = vpop.permute.xlu0 %4019  ;;  %5778 = vrcp.f32 %v4022_v12 }
 0x927   : > { %3572 = vrot.lane.b32.xlu0 %v3561_v29, %s5812_s15  ;;  %v5773_v16 = vpop.eup %5772  ;;  %5780 = vrcp.f32 %v4020_v46  ;;  %v7930_v46 = vpop.f32.mrf.mxu0 }
 0x928   : > { %v3563_v5 = vmul.f32 %v5773_v16, %v7672_v37  ;;  %vm4478_vm14 = vcmp.gt.f32.partialorder %v7930_v46, 0.0 }
 0x929   : > { %v4026_v63 = vpop.permute.xlu1 %4025 }
 0x92a   : > { %v4024_v22 = vpop.permute.xlu0 %4023  ;;  %5782 = vrcp.f32 %v4026_v63  ;;  %3574 = vrot.lane.b32.xlu1 %v3563_v5, %s5812_s15  ;;  %v8493_v37 = vld [vmem:[#allocation26_spill] sm:$0xff] }
 0x92b   : > { %5784 = vrcp.f32 %v4024_v22 }
 0x92c   : > { %v5775_v28 = vpop.eup %5774 }
 0x92d   : > { %v3565_v49 = vmul.f32 %v5775_v28, %v7682_v48  ;;  %v7935_v28 = vpop.f32.mrf.mxu0 }
 0x92e   : > { %vm4481_vm2 = vcmp.gt.f32.partialorder %v7935_v28, 0.0 }
 0x92f   : > { %3576 = vrot.lane.b32.xlu0 %v3565_v49, %s5812_s15  ;;  %v5777_v32 = vpop.eup %5776 }
 0x930   : > { %v3567_v29 = vmul.f32 %v5777_v32, %v7680_v38  ;;  %v7942_v38 = vpop.f32.mrf.mxu0 }
 0x931   : > { %vm4480_vm1 = vcmp.gt.f32.partialorder %v7942_v38, 0.0 }
 0x932   : > { %3578 = vrot.lane.b32.xlu1 %v3567_v29, %s5812_s15 }
 0x933   : > { %v5779_v12 = vpop.eup %5778 }
 0x934   : > { %v5781_v16 = vpop.eup %5780  ;;  %v4034_v63 = vmul.f32 %v5779_v12, %v7846_v55  ;;  %v4482_v12 = vsel %vm4478_vm14, %v7930_v46, 1.0 }
 0x935   : > { %v4032_v5 = vmul.f32 %v5781_v16, %v7855_v3  ;;  %v4483_v16 = vsel %vm4479_vm15, %v7926_v57, 1.0 }
 0x936   : > { %4045 = vrot.lane.b32.xlu1 %v4034_v63, %s5812_s15  ;;  %v4484_v63 = vsel %vm4480_vm1, %v7942_v38, 1.0 }
 0x937   : > { %v5783_v22 = vpop.eup %5782  ;;  %4043 = vrot.lane.b32.xlu0 %v4032_v5, %s5812_s15  ;;  %v4485_v5 = vsel %vm4481_vm2, %v7935_v28, 1.0 }
 0x938   : > { %v5785_v49 = vpop.eup %5784  ;;  %v4038_v32 = vmul.f32 %v5783_v22, %v7864_v8  ;;  %v1245_v22 = vsel %vm1181_vm3, %v7684_v14, %v7594_v21  ;;  %vm8460_vm3 = vcmp.gt.f32.partialorder %v7282_v39, 0.0  ;;  %v8463_v39 = vld [vmem:[#allocation13_spill] sm:$0xff] }
 0x939   : > { %v4036_v29 = vmul.f32 %v5785_v49, %v7874_v51  ;;  %v1246_v49 = vsel %vm1182_vm4, %v7686_v26, %v7598_v62  ;;  %v2190_v47 = vsel %vm8460_vm3, %v7802_v10, %v7719_v45  ;;  %vm8461_vm4 = vcmp.gt.f32.partialorder %v7284_v7, 0.0  ;;  %v8477_v45 = vld [vmem:[#allocation15_spill] sm:$0xff] }
 0x93a   : > { %4049 = vrot.lane.b32.xlu1 %v4038_v32, %s5812_s15  ;;  %v2658_v56 = vsel %vm8461_vm4, %v7894_v18, %v7804_v52  ;;  %vm8489_vm3 = vcmp.gt.f32.partialorder %v7682_v48, 0.0  ;;  %v8490_v18 = vld [vmem:[#allocation29_spill] sm:$0xff] }
 0x93b   : > { %4047 = vrot.lane.b32.xlu0 %v4036_v29, %s5812_s15 }
 0x93e   : > { %4490 = vrot.lane.b32.xlu1 %v4482_v12, %s5811_s14 }
 0x93f   : > { %4492 = vrot.lane.b32.xlu0 %v4483_v16, %s5811_s14 }
 0x942   : > { %4494 = vrot.lane.b32.xlu1 %v4484_v63, %s5811_s14 }
 0x943   : > { %4496 = vrot.lane.b32.xlu0 %v4485_v5, %s5811_s14 }
 0x946   : > { %4061 = vrot.lane.b32.xlu1 %v7846_v55, %s5812_s15 }
 0x947   : > { %4063 = vrot.lane.b32.xlu0 %v7874_v51, %s5812_s15 }
 0x94a   : > { %4065 = vrot.lane.b32.xlu1 %v7864_v8, %s5812_s15 }
 0x94b   : > { %4530 = vrot.lane.b32.xlu0 %v7930_v46, %s5812_s15 }
 0x94e   : > { %4532 = vrot.lane.b32.xlu1 %v7926_v57, %s5812_s15 }
 0x94f   : > { %4534 = vrot.lane.b32.xlu0 %v7942_v38, %s5812_s15 }
 0x952   : > { %4536 = vrot.lane.b32.xlu1 %v7935_v28, %s5812_s15 }
 0x953   : > { %4578 = vrot.lane.b32.xlu0 %v1245_v22, %s5811_s14 }
 0x956   : > { %4580 = vrot.lane.b32.xlu1 %v1246_v49, %s5811_s14 }
 0x999   : > { %v7990_v29 = vpop.permute.xlu0 %3572 }
 0x99a   : > { %v3600_v10 = vsel %vm8486_vm12, %v7990_v29, %v8485_v60 }
 0x99c   : > { %v7988_v32 = vpop.permute.xlu1 %3574 }
 0x99d   : > { %v3601_v52 = vsel %vm8487_vm13, %v7988_v32, %v7912_v36  ;;  %v8495_v32 = vld [vmem:[#allocation5_spill] sm:$0xff] }
 0x9a1   : > { %v7994_v35 = vpop.permute.xlu0 %3576 }
 0x9a4   : > { %v7992_v12 = vpop.permute.xlu1 %3578 }
 0x9a8   : > { %v7996_v21 = vpop.permute.xlu1 %4045 }
 0x9a9   : > { %v7998_v14 = vpop.permute.xlu0 %4043 }
 0x9ac   : > { %v8000_v16 = vpop.permute.xlu1 %4049 }
 0x9ad   : > { %8455 = vst [vmem:[#allocation32_spill] sm:$0xff] %v8000_v16  ;;  %v8002_v63 = vpop.permute.xlu0 %4047 }
 0x9ae   : > { %8456 = vst [vmem:[#allocation31_spill] sm:$0xff] %v8002_v63 }
 0x9b0   : > { %v4491_v44 = vpop.permute.xlu1 %4490 }
 0x9b1   : > { %5786 = vrcp.f32 %v4491_v44  ;;  %v4493_v62 = vpop.permute.xlu0 %4492 }
 0x9b2   : > { %5788 = vrcp.f32 %v4493_v62 }
 0x9b4   : > { %v4495_v26 = vpop.permute.xlu1 %4494 }
 0x9b5   : > { %5790 = vrcp.f32 %v4495_v26  ;;  %v4497_v5 = vpop.permute.xlu0 %4496 }
 0x9b6   : > { %5792 = vrcp.f32 %v4497_v5 }
 0x9b8   : > { %v8004_v22 = vpop.permute.xlu1 %4061 }
 0x9b9   : > { %v8006_v49 = vpop.permute.xlu0 %4063 }
 0x9ba   : > { %8457 = vst [vmem:[#allocation4_spill] sm:$0xff] %v8006_v49 }
 0x9bc   : > { %v8008_v8 = vpop.permute.xlu1 %4065 }
 0x9bd   : > { %v8010_v51 = vpop.permute.xlu0 %4530 }
 0x9be   : > { %v5787_v16 = vpop.eup %5786 }
 0x9bf   : > { %v5789_v55 = vpop.eup %5788  ;;  %v4503_v63 = vmul.f32 %v5787_v16, %v7930_v46 }
 0x9c0   : > { %v8013_v44 = vpop.permute.xlu1 %4532  ;;  %v4505_v62 = vmul.f32 %v5789_v55, %v7926_v57 }
 0x9c1   : > { %8458 = vst [vmem:[#allocation2_spill] sm:$0xff] %v8013_v44  ;;  %v8016_v26 = vpop.permute.xlu0 %4534  ;;  %4514 = vrot.lane.b32.xlu0 %v4503_v63, %s5812_s15  ;;  %v1247_v63 = vsel %vm1183_vm5, %v7688_v6, %v7600_v42  ;;  %v1719_v42 = vsel %vm1655_vm10, %v7794_v19, %v7706_v15  ;;  %vm8462_vm5 = vcmp.gt.f32.partialorder %v8435_v27, 0.0  ;;  %v8466_v6 = vld [vmem:[#allocation6_spill] sm:$0xff]  ;;  %v8473_v15 = vld [vmem:[#allocation11_spill] sm:$0xff]  ;;  %v8497_v29 = vld [vmem:[#allocation4_spill] sm:$0xff] }
 0x9c2   : > { %8459 = vst [vmem:[#allocation12_spill] sm:$0xff] %v8016_v26  ;;  %v5791_v5 = vpop.eup %5790  ;;  %4516 = vrot.lane.b32.xlu1 %v4505_v62, %s5812_s15  ;;  %v2659_v61 = vsel %vm8462_vm5, %v7896_v53, %v7806_v9  ;;  %v8470_v53 = vld [vmem:[#allocation17_spill] sm:$0xff]  ;;  %v8478_v27 = vld [vmem:[#allocation18_spill] sm:$0xff]  ;;  %v8482_v19 = vld [vmem:[#allocation19_spill] sm:$0xff]  ;;  %vm8494_vm5 = vcmp.gt.f32.partialorder %v7855_v3, 0.0 }
 0x9c3   : > { %v5793_v49 = vpop.eup %5792  ;;  %v4507_v16 = vmul.f32 %v5791_v5, %v7942_v38  ;;  %v1248_v5 = vsel %vm1184_vm6, %v7690_v59, %v7602_v33  ;;  %v2187_v33 = vsel %vm2123_vm11, %v7796_v43, %v7708_v58  ;;  %vm8464_vm6 = vcmp.gt.f32.partialorder %v8463_v39, 0.0  ;;  %v8467_v59 = vld [vmem:[#allocation9_spill] sm:$0xff]  ;;  %v8474_v58 = vld [vmem:[#allocation3_spill] sm:$0xff] }
 0x9c4   : > { %v8028_v44 = vpop.permute.xlu1 %4536  ;;  %v4509_v55 = vmul.f32 %v5793_v49, %v7935_v28  ;;  %v1716_v49 = vsel %vm1652_vm7, %v7788_v34, %v7692_v24  ;;  %v2660_v41 = vsel %vm8464_vm6, %v7898_v31, %v7808_v11  ;;  %vm8468_vm7 = vcmp.gt.f32.partialorder %v8467_v59, 0.0  ;;  %v8469_v24 = vld [vmem:[#allocation30_spill] sm:$0xff]  ;;  %v8479_v34 = vld [vmem:[#allocation24_spill] sm:$0xff]  ;;  %v8483_v43 = vld [vmem:[#allocation25_spill] sm:$0xff] }
 0x9c5   : > { %v4579_v26 = vpop.permute.xlu0 %4578  ;;  %4518 = vrot.lane.b32.xlu0 %v4507_v16, %s5812_s15  ;;  %v2661_v7 = vsel %vm8468_vm7, %v8466_v6, %v8465_v0  ;;  %v3129_v25 = vsel %vm8472_vm8, %v8470_v53, %v8469_v24  ;;  %v3130_v2 = vsel %vm8476_vm9, %v8474_v58, %v8473_v15  ;;  %vm8480_vm10 = vcmp.gt.f32.partialorder %v8479_v34, 0.0  ;;  %v8488_v9 = vld [vmem:[#allocation21_spill] sm:$0xff]  ;;  %v8491_v31 = vld [vmem:[#allocation28_spill] sm:$0xff] }
 0x9c6   : > { %4674 = vst.msk [vmem:[%s8025_s7] sm:$0xff] %vm323_vm0, %v4579_v26  ;;  %4520 = vrot.lane.b32.xlu1 %v4509_v55, %s5812_s15  ;;  %v3131_v1 = vsel %vm8480_vm10, %v8478_v27, %v8477_v45  ;;  %vm8484_vm11 = vcmp.gt.f32.partialorder %v8483_v43, 0.0  ;;  %v3602_v11 = vsel %vm8489_vm3, %v7994_v35, %v8488_v9  ;;  %vm8492_vm4 = vcmp.gt.f32.partialorder %v8491_v31, 0.0  ;;  %v8499_v35 = vld [vmem:[#allocation7_spill] sm:$0xff]  ;;  %v8501_v16 = vld [vmem:[#allocation32_spill] sm:$0xff] }
 0x9c7   : > { %v3132_v4 = vsel %vm8484_vm11, %v8482_v19, %v8481_v54  ;;  %v3603_v17 = vsel %vm8492_vm4, %v7992_v12, %v8490_v18  ;;  %v4071_v36 = vsel %vm8494_vm5, %v7998_v14, %v8493_v37  ;;  %vm8496_vm6 = vcmp.gt.f32.partialorder %v8495_v32, 0.0  ;;  %v8498_v12 = vld [vmem:[#allocation31_spill] sm:$0xff]  ;;  %v8502_v55 = vld [vmem:[#allocation16_spill] sm:$0xff] }
 0x9c8   : > { %v4581_v62 = vpop.permute.xlu1 %4580  ;;  %v4072_v48 = vsel %vm8496_vm6, %v7996_v21, %v8004_v22  ;;  %vm8500_vm7 = vcmp.gt.f32.partialorder %v8499_v35, 0.0  ;;  %vm8503_vm8 = vcmp.gt.f32.partialorder %v8502_v55, 0.0 }
 0x9c9   : > { %4675 = vst.msk [vmem:[%s8025_s7 + $0x8] sm:$0xff] %vm323_vm0, %v4581_v62  ;;  %4582 = vrot.lane.b32.xlu0 %v1247_v63, %s5811_s14  ;;  %v4073_v26 = vsel %vm8500_vm7, %v8498_v12, %v8497_v29  ;;  %v4074_v3 = vsel %vm8503_vm8, %v8501_v16, %v8008_v8  ;;  %v8504_v63 = vld [vmem:[#allocation2_spill] sm:$0xff] }
 0x9ca   : > { %4584 = vrot.lane.b32.xlu1 %v1248_v5, %s5811_s14 }
 0x9cd   : > { %4586 = vrot.lane.b32.xlu0 %v1716_v49, %s5811_s14  ;;  %v8505_v49 = vld [vmem:[#allocation12_spill] sm:$0xff] }
 0x9ce   : > { %4588 = vrot.lane.b32.xlu1 %v1717_v30, %s5811_s14 }
 0x9d1   : > { %4590 = vrot.lane.b32.xlu0 %v1718_v20, %s5811_s14 }
 0x9d2   : > { %4592 = vrot.lane.b32.xlu1 %v1719_v42, %s5811_s14 }
 0x9d5   : > { %4594 = vrot.lane.b32.xlu0 %v2187_v33, %s5811_s14 }
 0x9d6   : > { %4596 = vrot.lane.b32.xlu1 %v2188_v50, %s5811_s14 }
 0x9d9   : > { %4598 = vrot.lane.b32.xlu0 %v2189_v23, %s5811_s14 }
 0x9da   : > { %4600 = vrot.lane.b32.xlu1 %v2190_v47, %s5811_s14 }
 0x9dd   : > { %4602 = vrot.lane.b32.xlu0 %v2658_v56, %s5811_s14 }
 0x9de   : > { %4604 = vrot.lane.b32.xlu1 %v2659_v61, %s5811_s14 }
 0x9e1   : > { %4606 = vrot.lane.b32.xlu0 %v2660_v41, %s5811_s14 }
 0x9e2   : > { %4608 = vrot.lane.b32.xlu1 %v2661_v7, %s5811_s14 }
 0x9e5   : > { %4610 = vrot.lane.b32.xlu0 %v3129_v25, %s5811_s14 }
 0x9e6   : > { %4612 = vrot.lane.b32.xlu1 %v3130_v2, %s5811_s14 }
 0x9e9   : > { %4614 = vrot.lane.b32.xlu0 %v3131_v1, %s5811_s14 }
 0x9ea   : > { %4616 = vrot.lane.b32.xlu1 %v3132_v4, %s5811_s14 }
 0x9ed   : > { %4618 = vrot.lane.b32.xlu0 %v3600_v10, %s5811_s14 }
 0x9ee   : > { %4620 = vrot.lane.b32.xlu1 %v3601_v52, %s5811_s14 }
 0x9f1   : > { %4622 = vrot.lane.b32.xlu0 %v3602_v11, %s5811_s14 }
 0x9f2   : > { %4624 = vrot.lane.b32.xlu1 %v3603_v17, %s5811_s14 }
 0x9f5   : > { %4626 = vrot.lane.b32.xlu0 %v4071_v36, %s5811_s14 }
 0x9f6   : > { %4628 = vrot.lane.b32.xlu1 %v4072_v48, %s5811_s14 }
 0x9f9   : > { %4630 = vrot.lane.b32.xlu0 %v4073_v26, %s5811_s14 }
 0x9fa   : > { %4632 = vrot.lane.b32.xlu1 %v4074_v3, %s5811_s14 }
 0xa33   : > { %v4515_v21 = vpop.permute.xlu0 %4514 }
 0xa34   : > { %v4517_v14 = vpop.permute.xlu1 %4516  ;;  %v4542_v22 = vsel %vm4478_vm14, %v4515_v21, %v8010_v51 }
 0xa35   : > { %v4543_v62 = vsel %vm4479_vm15, %v4517_v14, %v8504_v63  ;;  %4634 = vrot.lane.b32.xlu0 %v4542_v22, %s5811_s14 }
 0xa36   : > { %4636 = vrot.lane.b32.xlu1 %v4543_v62, %s5811_s14 }
 0xa37   : > { %v4519_v8 = vpop.permute.xlu0 %4518 }
 0xa38   : > { %v4521_v5 = vpop.permute.xlu1 %4520  ;;  %v4544_v30 = vsel %vm4480_vm1, %v4519_v8, %v8505_v49 }
 0xa39   : > { %v4545_v51 = vsel %vm4481_vm2, %v4521_v5, %v8028_v44  ;;  %4638 = vrot.lane.b32.xlu0 %v4544_v30, %s5811_s14 }
 0xa3a   : > { %4640 = vrot.lane.b32.xlu1 %v4545_v51, %s5811_s14 }
 0xa3b   : > { %v4583_v57 = vpop.permute.xlu0 %4582 }
 0xa3c   : > { %v4585_v46 = vpop.permute.xlu1 %4584  ;;  %4676 = vst.msk [vmem:[%s8025_s7 + $0x10] sm:$0xff] %vm323_vm0, %v4583_v57 }
 0xa3d   : > { %4677 = vst.msk [vmem:[%s8025_s7 + $0x18] sm:$0xff] %vm323_vm0, %v4585_v46 }
 0xa3f   : > { %v4587_v38 = vpop.permute.xlu0 %4586 }
 0xa40   : > { %v4589_v20 = vpop.permute.xlu1 %4588  ;;  %4678 = vst.msk [vmem:[%s8025_s7 + $0x20] sm:$0xff] %vm323_vm0, %v4587_v38 }
 0xa41   : > { %4679 = vst.msk [vmem:[%s8025_s7 + $0x28] sm:$0xff] %vm323_vm0, %v4589_v20 }
 0xa43   : > { %v4591_v28 = vpop.permute.xlu0 %4590 }
 0xa44   : > { %v4593_v44 = vpop.permute.xlu1 %4592  ;;  %4680 = vst.msk [vmem:[%s8025_s7 + $0x30] sm:$0xff] %vm323_vm0, %v4591_v28 }
 0xa45   : > { %4681 = vst.msk [vmem:[%s8025_s7 + $0x38] sm:$0xff] %vm323_vm0, %v4593_v44 }
 0xa47   : > { %v4595_v42 = vpop.permute.xlu0 %4594 }
 0xa48   : > { %v4597_v33 = vpop.permute.xlu1 %4596  ;;  %4682 = vst.msk [vmem:[%s8025_s7 + $0x40] sm:$0xff] %vm323_vm0, %v4595_v42 }
 0xa49   : > { %4683 = vst.msk [vmem:[%s8025_s7 + $0x48] sm:$0xff] %vm323_vm0, %v4597_v33 }
 0xa4b   : > { %v4599_v50 = vpop.permute.xlu0 %4598 }
 0xa4c   : > { %v4601_v23 = vpop.permute.xlu1 %4600  ;;  %4684 = vst.msk [vmem:[%s8025_s7 + $0x50] sm:$0xff] %vm323_vm0, %v4599_v50 }
 0xa4d   : > { %4685 = vst.msk [vmem:[%s8025_s7 + $0x58] sm:$0xff] %vm323_vm0, %v4601_v23 }
 0xa4f   : > { %v4603_v47 = vpop.permute.xlu0 %4602 }
 0xa50   : > { %v4605_v56 = vpop.permute.xlu1 %4604  ;;  %4686 = vst.msk [vmem:[%s8025_s7 + $0x60] sm:$0xff] %vm323_vm0, %v4603_v47 }
 0xa51   : > { %4687 = vst.msk [vmem:[%s8025_s7 + $0x68] sm:$0xff] %vm323_vm0, %v4605_v56 }
 0xa53   : > { %v4607_v61 = vpop.permute.xlu0 %4606 }
 0xa54   : > { %v4609_v39 = vpop.permute.xlu1 %4608  ;;  %4688 = vst.msk [vmem:[%s8025_s7 + $0x70] sm:$0xff] %vm323_vm0, %v4607_v61 }
 0xa55   : > { %4689 = vst.msk [vmem:[%s8025_s7 + $0x78] sm:$0xff] %vm323_vm0, %v4609_v39 }
 0xa57   : > { %v4611_v41 = vpop.permute.xlu0 %4610 }
 0xa58   : > { %v4613_v0 = vpop.permute.xlu1 %4612  ;;  %4690 = vst.msk [vmem:[%s8025_s7 + $0x80] sm:$0xff] %vm323_vm0, %v4611_v41 }
 0xa59   : > { %4691 = vst.msk [vmem:[%s8025_s7 + $0x88] sm:$0xff] %vm323_vm0, %v4613_v0 }
 0xa5b   : > { %v4615_v6 = vpop.permute.xlu0 %4614 }
 0xa5c   : > { %v4617_v59 = vpop.permute.xlu1 %4616  ;;  %4692 = vst.msk [vmem:[%s8025_s7 + $0x90] sm:$0xff] %vm323_vm0, %v4615_v6 }
 0xa5d   : > { %4693 = vst.msk [vmem:[%s8025_s7 + $0x98] sm:$0xff] %vm323_vm0, %v4617_v59 }
 0xa5f   : > { %v4619_v7 = vpop.permute.xlu0 %4618 }
 0xa60   : > { %v4621_v24 = vpop.permute.xlu1 %4620  ;;  %4694 = vst.msk [vmem:[%s8025_s7 + $0xa0] sm:$0xff] %vm323_vm0, %v4619_v7 }
 0xa61   : > { %4695 = vst.msk [vmem:[%s8025_s7 + $0xa8] sm:$0xff] %vm323_vm0, %v4621_v24 }
 0xa63   : > { %v4623_v53 = vpop.permute.xlu0 %4622 }
 0xa64   : > { %v4625_v40 = vpop.permute.xlu1 %4624  ;;  %4696 = vst.msk [vmem:[%s8025_s7 + $0xb0] sm:$0xff] %vm323_vm0, %v4623_v53 }
 0xa65   : > { %4697 = vst.msk [vmem:[%s8025_s7 + $0xb8] sm:$0xff] %vm323_vm0, %v4625_v40 }
 0xa67   : > { %v4627_v25 = vpop.permute.xlu0 %4626 }
 0xa68   : > { %v4629_v15 = vpop.permute.xlu1 %4628  ;;  %4698 = vst.msk [vmem:[%s8025_s7 + $0xc0] sm:$0xff] %vm323_vm0, %v4627_v25 }
 0xa69   : > { %4699 = vst.msk [vmem:[%s8025_s7 + $0xc8] sm:$0xff] %vm323_vm0, %v4629_v15 }
 0xa6b   : > { %v4631_v58 = vpop.permute.xlu0 %4630 }
 0xa6c   : > { %v4633_v13 = vpop.permute.xlu1 %4632  ;;  %4700 = vst.msk [vmem:[%s8025_s7 + $0xd0] sm:$0xff] %vm323_vm0, %v4631_v58 }
 0xa6d   : > { %4701 = vst.msk [vmem:[%s8025_s7 + $0xd8] sm:$0xff] %vm323_vm0, %v4633_v13 }
 0xaa7   : > { %v4635_v2 = vpop.permute.xlu0 %4634 }
 0xaa8   : > { %v4637_v45 = vpop.permute.xlu1 %4636  ;;  %4702 = vst.msk [vmem:[%s8025_s7 + $0xe0] sm:$0xff] %vm323_vm0, %v4635_v2 }
 0xaa9   : > { %4703 = vst.msk [vmem:[%s8025_s7 + $0xe8] sm:$0xff] %vm323_vm0, %v4637_v45 }
 0xaab   : > { %v4639_v27 = vpop.permute.xlu0 %4638 }
 0xaac   : > { %v4641_v34 = vpop.permute.xlu1 %4640  ;;  %4704 = vst.msk [vmem:[%s8025_s7 + $0xf0] sm:$0xff] %vm323_vm0, %v4639_v27 }
 0xaad   : > { %4705 = vst.msk [vmem:[%s8025_s7 + $0xf8] sm:$0xff] %vm323_vm0, %v4641_v34 }
 0xaae PF: > { %s16_s21 = sadd.s32 1, %s5809_s21  }
 0xaaf   : > { %p13_p5 = scmp.ge.s32.totalorder %s16_s21, 4  }
 0xab1   :  { %15 = sbr.rel (!%p13_p5) target bundleno = 1 (0x1), region = 84 }

</bundles_post_ra>
